<compile_context>
chip_gen: v7x
topology: tpu7x:2x2x1
jax: 0.10.0
libtpu: 0.0.40
codegen_flags: <defaults>
</compile_context>

<pallas_src>
import functools

import numpy as np
import jax
import jax.numpy as jnp
from jax.experimental import pallas as pl
from jax.experimental.pallas import tpu as pltpu


def scf_kernel(x_ref, y_ref,
               ln1_w_ref, ln1_b_ref, ln2_w_ref, ln2_b_ref,
               w_qvkv_ref, b_qvkv_ref,
               w_dw_ref, b_dw_ref, tap_mask_ref,
               attn_bias_ref, temp_ref,
               w_proj_ref, b_proj_ref,
               out_ref,
               *, W):
    """BB images per grid step.

    x_ref/y_ref  : (BB, H*W, C)   channels-last, spatially flattened inputs
    w_qvkv_ref   : (2C, 4C)       blockdiag(w_hsi_qv, w_lidar_kv) fused 1x1 weight
    w_dw_ref     : (9, 4C)        fused depthwise 3x3 weights [hsi_dw | lidar_dw]
    tap_mask_ref : (BB*HW, 9)     per-tap image-edge masks (0/1), per image in the slab
    attn_bias_ref: (C, C)         0 on same-head block diagonal, -1e30 elsewhere
    temp_ref     : (1, C)         per-output-channel temperature (head value repeated)
    """
    BB, HW, C = x_ref.shape
    N = BB * HW

    def layer_norm(v, w, b):
        mu = jnp.mean(v, axis=-1, keepdims=True)
        var = jnp.mean(jnp.square(v - mu), axis=-1, keepdims=True)
        return (v - mu) * jax.lax.rsqrt(var + 1e-5) * w + b

    x = x_ref[...].reshape(N, C)                         # leading-dim merge: layout no-op
    y = y_ref[...].reshape(N, C)
    xn = layer_norm(x, ln1_w_ref[...], ln1_b_ref[...])
    yn = layer_norm(y, ln2_w_ref[...], ln2_b_ref[...])

    # --- fused 1x1 convs: one MXU call with K=2C, N=4C -------------------------------
    xyn = jnp.concatenate([xn, yn], axis=1)              # (N, 2C)
    qv = jnp.dot(xyn, w_qvkv_ref[...],
                 preferred_element_type=jnp.float32) + b_qvkv_ref[...]   # (N, 4C)

    # --- fused depthwise 3x3 conv, stride 1, padding 1 (cross-correlation) ------------
    # 9 taps = roll of the whole slab by the combined flat offset oi*W+oj (XLU slot),
    # edge-masked with precomputed (N,1) masks, FMA'd on the VPU.  No shifted copies.
    w_dw = w_dw_ref[...]                                 # (9, 4C)
    tap_mask = tap_mask_ref[...]                         # (N, 9)
    dw = qv * w_dw[4:5, :]                               # center tap: no edge mask
    taps = [(oi, oj) for oi in (-1, 0, 1) for oj in (-1, 0, 1)]
    for k, (oi, oj) in enumerate(taps):
        if oi == 0 and oj == 0:
            continue
        d = oi * W + oj
        rolled = pltpu.roll(qv, shift=(-d) % N, axis=0)  # rolled[r] = qv[r + d]
        dw = dw + rolled * tap_mask[:, k:k + 1] * w_dw[k:k + 1, :]
    dw = dw + b_dw_ref[...]                              # (N, 4C)

    hq, hv = dw[:, 0 * C:1 * C], dw[:, 1 * C:2 * C]
    lk, lv = dw[:, 2 * C:3 * C], dw[:, 3 * C:4 * C]

    def l2norm(v):                                       # F.normalize along spatial (HW)
        n = jnp.sqrt(jnp.sum(v * v, axis=0, keepdims=True))
        return v / jnp.maximum(n, 1e-12)

    temp = temp_ref[...]
    attn_bias = attn_bias_ref[...]

    h_outs, l_outs = [], []
    for b in range(BB):                                  # unrolled: per-image attention
        s0, s1 = b * HW, (b + 1) * HW
        hq_b, hv_b = hq[s0:s1], hv[s0:s1]
        lk_b, lv_b = lk[s0:s1], lv[s0:s1]

        qn = l2norm(hq_b) * temp                         # fold per-head temperature into q
        kn = l2norm(lk_b)

        # per-head gram matrices as one (C, C) matmul + constant block-diagonal bias
        s = jax.lax.dot_general(qn, kn, (((0,), (0,)), ((), ())),
                                preferred_element_type=jnp.float32)      # (C, C)
        s = s + attn_bias
        s = s - jnp.max(s, axis=-1, keepdims=True)
        p = jnp.exp(s)                                   # masked entries underflow to 0
        row_sum = jnp.sum(p, axis=-1, keepdims=True)
        inv = pl.reciprocal(row_sum, approx=True)
        inv = inv * (2.0 - row_sum * inv)                # one Newton step -> f32 accuracy
        attn = p * inv
        # TODO(synk): nn.Dropout(0.1) on attn is stochastic; implemented as eval-mode identity.

        # apply attn to hv and lv in one matmul (stack along sublanes: M = 2*HW)
        v2 = jnp.concatenate([hv_b, lv_b], axis=0)       # (2*HW, C)
        att2 = jax.lax.dot_general(v2, attn, (((1,), (1,)), ((), ())),
                                   preferred_element_type=jnp.float32)   # (2*HW, C)
        h_outs.append(att2[:HW] + hv_b + xn[s0:s1])      # residuals onto normalized inputs
        l_outs.append(att2[HW:] + lv_b + yn[s0:s1])

    h_out = h_outs[0] if BB == 1 else jnp.concatenate(h_outs, axis=0)    # (N, C)
    l_out = l_outs[0] if BB == 1 else jnp.concatenate(l_outs, axis=0)

    # project_out over the whole slab; split matmul avoids a 64-lane-offset concatenate
    w_proj = w_proj_ref[...]                             # (2C, C)
    proj = (jnp.dot(h_out, w_proj[:C], preferred_element_type=jnp.float32)
            + jnp.dot(l_out, w_proj[C:], preferred_element_type=jnp.float32)
            + b_proj_ref[...])
    out_ref[...] = proj.reshape(BB, HW, C).astype(out_ref.dtype)


def _pick_bb(B, HW, max_rows=1024):
    """Largest images-per-step that divides B, keeps >=2 grid steps (so both v7x
    TensorCores get work) and caps the slab at max_rows spatial rows (VMEM headroom;
    re-derive for v7x's 64 MiB if HW grows)."""
    best = 1
    for bb in range(1, B + 1):
        if B % bb == 0 and bb * HW <= max_rows and B // bb >= min(2, B):
            best = bb
    return best


def _tap_masks(BB, H, W):
    """(BB*HW, 9) f32 edge masks, one column per 3x3 tap, per image in the slab."""
    HW = H * W
    r = np.arange(BB * HW)
    i = (r % HW) // W
    j = r % W
    cols = []
    for oi in (-1, 0, 1):
        for oj in (-1, 0, 1):
            ok = (i + oi >= 0) & (i + oi <= H - 1) & (j + oj >= 0) & (j + oj <= W - 1)
            cols.append(ok.astype(np.float32))
    return jnp.asarray(np.stack(cols, axis=1))


def scf_trans_block(x, y, params, *, H, W, num_heads):
    """x, y: (B, H, W, C) float32 (NHWC). Returns (B, H, W, C)."""
    B, _, _, C = x.shape
    HW = H * W
    C2, C4 = 2 * C, 4 * C
    ch = C // num_heads

    BB = _pick_bb(B, HW)
    G = B // BB
    N = BB * HW

    xf = x.reshape(B, HW, C)
    yf = y.reshape(B, HW, C)

    # per-output-channel temperature laid out lane-wise (head value repeated)
    temp_row = jnp.repeat(params['temperature'], ch).reshape(1, C).astype(jnp.float32)
    # fuse the two 1x1 convs into one block-diagonal weight (K=2C, N=4C)
    zero = jnp.zeros((C, C2), jnp.float32)
    w_qvkv = jnp.concatenate(
        [jnp.concatenate([params['w_hqv'], zero], axis=1),
         jnp.concatenate([zero, params['w_lkv']], axis=1)], axis=0)       # (2C, 4C)
    b_qvkv = jnp.concatenate([params['b_hqv'], params['b_lkv']], axis=1)  # (1, 4C)
    # fuse the two depthwise convs: channels [hsi_qv | lidar_kv]
    w_dw = jnp.concatenate([params['w_hdw'], params['w_ldw']], axis=1)    # (9, 4C)
    b_dw = jnp.concatenate([params['b_hdw'], params['b_ldw']], axis=1)    # (1, 4C)
    # constant additive head mask for the (C, C) gram matrix
    head_id = np.repeat(np.arange(num_heads), ch)
    attn_bias = jnp.asarray(
        np.where(head_id[:, None] == head_id[None, :], 0.0, -1e30).astype(np.float32))
    tap_mask = _tap_masks(BB, H, W)                                       # (N, 9)

    def full(shape):
        return pl.BlockSpec(shape, lambda g, _s=shape: (0,) * len(_s))

    in_specs = [
        pl.BlockSpec((BB, HW, C), lambda g: (g, 0, 0)),   # x
        pl.BlockSpec((BB, HW, C), lambda g: (g, 0, 0)),   # y
        full((1, C)), full((1, C)), full((1, C)), full((1, C)),   # LN params
        full((C2, C4)), full((1, C4)),                    # fused 1x1 qv/kv
        full((9, C4)), full((1, C4)),                     # fused depthwise 3x3
        full((N, 9)),                                     # tap edge masks
        full((C, C)),                                     # head-mask bias
        full((1, C)),                                     # temperature (lane vector)
        full((C2, C)), full((1, C)),                      # project_out 1x1
    ]

    kern = functools.partial(scf_kernel, W=W)
    out = pl.pallas_call(
        kern,
        out_shape=jax.ShapeDtypeStruct((B, HW, C), jnp.float32),
        grid_spec=pltpu.PrefetchScalarGridSpec(
            num_scalar_prefetch=0,
            grid=(G,),
            in_specs=in_specs,
            out_specs=pl.BlockSpec((BB, HW, C), lambda g: (g, 0, 0))),
        compiler_params=pltpu.CompilerParams(
            dimension_semantics=("parallel",)),
    )(xf, yf,
      params['ln1_w'], params['ln1_b'], params['ln2_w'], params['ln2_b'],
      w_qvkv, b_qvkv, w_dw, b_dw, tap_mask, attn_bias, temp_row,
      params['w_proj'], params['b_proj'])
    return out.reshape(B, H, W, C)


def init_params(key, C, nh):
    C2 = 2 * C
    ks = jax.random.split(key, 15)
    f = lambda k, shape, s=0.1: (s * jax.random.normal(k, shape)).astype(jnp.float32)
    return dict(
        ln1_w=1.0 + f(ks[0], (1, C)), ln1_b=f(ks[1], (1, C)),
        ln2_w=1.0 + f(ks[2], (1, C)), ln2_b=f(ks[3], (1, C)),
        w_hqv=f(ks[4], (C, C2)), b_hqv=f(ks[5], (1, C2)),
        w_lkv=f(ks[6], (C, C2)), b_lkv=f(ks[7], (1, C2)),
        w_hdw=f(ks[8], (9, C2)), b_hdw=f(ks[9], (1, C2)),
        w_ldw=f(ks[10], (9, C2)), b_ldw=f(ks[11], (1, C2)),
        temperature=(1.0 + f(ks[12], (nh,))).astype(jnp.float32),
        w_proj=f(ks[13], (C2, C)), b_proj=f(ks[14], (1, C)),
    )


def reference(x, y, p, *, H, W, nh):
    """Pure-JAX reference mirroring the PyTorch forward (eval mode)."""
    B, _, _, C = x.shape
    HW, C2, ch = H * W, 2 * C, C // nh

    def ln(v, w, b):
        mu = v.mean(-1, keepdims=True)
        var = ((v - mu) ** 2).mean(-1, keepdims=True)
        return (v - mu) / jnp.sqrt(var + 1e-5) * w + b

    xf, yf = x.reshape(B, HW, C), y.reshape(B, HW, C)
    xn = ln(xf, p['ln1_w'], p['ln1_b'])
    yn = ln(yf, p['ln2_w'], p['ln2_b'])

    def dw(v, w9, b):
        img = v.reshape(B, H, W, C2)
        rhs = w9.reshape(3, 3, 1, C2)
        out = jax.lax.conv_general_dilated(
            img, rhs, window_strides=(1, 1), padding='SAME',
            dimension_numbers=('NHWC', 'HWIO', 'NHWC'), feature_group_count=C2)
        return (out + b.reshape(1, 1, 1, C2)).reshape(B, HW, C2)

    hqv = dw(xn @ p['w_hqv'] + p['b_hqv'], p['w_hdw'], p['b_hdw'])
    lkv = dw(yn @ p['w_lkv'] + p['b_lkv'], p['w_ldw'], p['b_ldw'])
    hq, hv = hqv[..., :C], hqv[..., C:]
    lk, lv = lkv[..., :C], lkv[..., C:]

    split = lambda v: v.reshape(B, HW, nh, ch)

    def l2n(v):
        n = jnp.sqrt((v * v).sum(axis=1, keepdims=True))
        return v / jnp.maximum(n, 1e-12)

    q, k = l2n(split(hq)), l2n(split(lk))
    hv4, lv4 = split(hv), split(lv)
    attn = jnp.einsum('bnhc,bnhd->bhcd', q, k) * p['temperature'][None, :, None, None]
    attn = jax.nn.softmax(attn, axis=-1)
    ho = (jnp.einsum('bhcd,bnhd->bnhc', attn, hv4) + hv4).reshape(B, HW, C) + xn
    lo = (jnp.einsum('bhcd,bnhd->bnhc', attn, lv4) + lv4).reshape(B, HW, C) + yn
    out = jnp.concatenate([ho, lo], axis=-1) @ p['w_proj'] + p['b_proj']
    return out.reshape(B, H, W, C)


if __name__ == "__main__":
    B, H, W, C, NH = 4, 8, 8, 64, 8
    key = jax.random.PRNGKey(0)
    kx, ky, kp = jax.random.split(key, 3)
    x = jax.random.normal(kx, (B, H, W, C), dtype=jnp.float32)
    y = jax.random.normal(ky, (B, H, W, C), dtype=jnp.float32)
    params = init_params(kp, C, NH)

    out = scf_trans_block(x, y, params, H=H, W=W, num_heads=NH)
    out = jax.block_until_ready(out)

    ref = reference(x, y, params, H=H, W=W, nh=NH)
    assert out.shape == (B, H, W, C)
    assert jnp.allclose(out, ref, atol=1e-3, rtol=1e-3), float(jnp.max(jnp.abs(out - ref)))
    print("KERNEL_OK")
</pallas_src>

<mosaic_0001>
module attributes {stable_mosaic.version = 11 : i64} {
  func.func @scf_kernel(%arg0: i32, %arg1: memref<2x64x64xf32, #tpu.memory_space<vmem>>, %arg2: memref<2x64x64xf32, #tpu.memory_space<vmem>>, %arg3: memref<1x64xf32, #tpu.memory_space<vmem>>, %arg4: memref<1x64xf32, #tpu.memory_space<vmem>>, %arg5: memref<1x64xf32, #tpu.memory_space<vmem>>, %arg6: memref<1x64xf32, #tpu.memory_space<vmem>>, %arg7: memref<128x256xf32, #tpu.memory_space<vmem>>, %arg8: memref<1x256xf32, #tpu.memory_space<vmem>>, %arg9: memref<9x256xf32, #tpu.memory_space<vmem>>, %arg10: memref<1x256xf32, #tpu.memory_space<vmem>>, %arg11: memref<128x9xf32, #tpu.memory_space<vmem>>, %arg12: memref<64x64xf32, #tpu.memory_space<vmem>>, %arg13: memref<1x64xf32, #tpu.memory_space<vmem>>, %arg14: memref<128x64xf32, #tpu.memory_space<vmem>>, %arg15: memref<1x64xf32, #tpu.memory_space<vmem>>, %arg16: memref<2x64x64xf32, #tpu.memory_space<vmem>>) attributes {dimension_semantics = [#tpu.dimension_semantics<parallel>], iteration_bounds = array<i64: 2>, scalar_prefetch = 0 : i64, scratch_operands = 0 : i64, tpu.core_type = #tpu.core_type<tc>, window_params = [{transform_indices = @transform_0, window_bounds = array<i64: 2, 64, 64>}, {transform_indices = @transform_1, window_bounds = array<i64: 2, 64, 64>}, {pipeline_mode = #tpu.pipeline_mode<synchronous>, transform_indices = @transform_2, window_bounds = array<i64: 1, 64>}, {pipeline_mode = #tpu.pipeline_mode<synchronous>, transform_indices = @transform_3, window_bounds = array<i64: 1, 64>}, {pipeline_mode = #tpu.pipeline_mode<synchronous>, transform_indices = @transform_4, window_bounds = array<i64: 1, 64>}, {pipeline_mode = #tpu.pipeline_mode<synchronous>, transform_indices = @transform_5, window_bounds = array<i64: 1, 64>}, {pipeline_mode = #tpu.pipeline_mode<synchronous>, transform_indices = @transform_6, window_bounds = array<i64: 128, 256>}, {pipeline_mode = #tpu.pipeline_mode<synchronous>, transform_indices = @transform_7, window_bounds = array<i64: 1, 256>}, {pipeline_mode = #tpu.pipeline_mode<synchronous>, transform_indices = @transform_8, window_bounds = array<i64: 9, 256>}, {pipeline_mode = #tpu.pipeline_mode<synchronous>, transform_indices = @transform_9, window_bounds = array<i64: 1, 256>}, {pipeline_mode = #tpu.pipeline_mode<synchronous>, transform_indices = @transform_10, window_bounds = array<i64: 128, 9>}, {pipeline_mode = #tpu.pipeline_mode<synchronous>, transform_indices = @transform_11, window_bounds = array<i64: 64, 64>}, {pipeline_mode = #tpu.pipeline_mode<synchronous>, transform_indices = @transform_12, window_bounds = array<i64: 1, 64>}, {pipeline_mode = #tpu.pipeline_mode<synchronous>, transform_indices = @transform_13, window_bounds = array<i64: 128, 64>}, {pipeline_mode = #tpu.pipeline_mode<synchronous>, transform_indices = @transform_14, window_bounds = array<i64: 1, 64>}, {transform_indices = @transform_15, window_bounds = array<i64: 2, 64, 64>}]} {
    %c0 = arith.constant 0 : index
    %c0_0 = arith.constant 0 : index
    %c0_1 = arith.constant 0 : index
    %0 = vector.load %arg1[%c0, %c0_0, %c0_1] : memref<2x64x64xf32, #tpu.memory_space<vmem>>, vector<2x64x64xf32>
    %1 = vector.shape_cast %0 : vector<2x64x64xf32> to vector<128x64xf32>
    %c0_2 = arith.constant 0 : index
    %c0_3 = arith.constant 0 : index
    %c0_4 = arith.constant 0 : index
    %2 = vector.load %arg2[%c0_2, %c0_3, %c0_4] : memref<2x64x64xf32, #tpu.memory_space<vmem>>, vector<2x64x64xf32>
    %3 = vector.shape_cast %2 : vector<2x64x64xf32> to vector<128x64xf32>
    %c0_5 = arith.constant 0 : index
    %c0_6 = arith.constant 0 : index
    %4 = vector.load %arg3[%c0_5, %c0_6] : memref<1x64xf32, #tpu.memory_space<vmem>>, vector<1x64xf32>
    %c0_7 = arith.constant 0 : index
    %c0_8 = arith.constant 0 : index
    %5 = vector.load %arg4[%c0_7, %c0_8] : memref<1x64xf32, #tpu.memory_space<vmem>>, vector<1x64xf32>
    %cst = arith.constant dense<0.000000e+00> : vector<128xf32>
    %6 = vector.multi_reduction <add>, %1, %cst [1] : vector<128x64xf32> to vector<128xf32>
    %7 = vector.shape_cast %6 : vector<128xf32> to vector<128x1xf32>
    %cst_9 = arith.constant 6.400000e+01 : f32
    %8 = vector.broadcast %cst_9 : f32 to vector<128x1xf32>
    %9 = arith.divf %7, %8 : vector<128x1xf32>
    %10 = vector.broadcast %9 : vector<128x1xf32> to vector<128x64xf32>
    %11 = arith.subf %1, %10 : vector<128x64xf32>
    %12 = arith.mulf %11, %11 : vector<128x64xf32>
    %cst_10 = arith.constant dense<0.000000e+00> : vector<128xf32>
    %13 = vector.multi_reduction <add>, %12, %cst_10 [1] : vector<128x64xf32> to vector<128xf32>
    %14 = vector.shape_cast %13 : vector<128xf32> to vector<128x1xf32>
    %cst_11 = arith.constant 6.400000e+01 : f32
    %15 = vector.broadcast %cst_11 : f32 to vector<128x1xf32>
    %16 = arith.divf %14, %15 : vector<128x1xf32>
    %17 = vector.broadcast %9 : vector<128x1xf32> to vector<128x64xf32>
    %18 = arith.subf %1, %17 : vector<128x64xf32>
    %cst_12 = arith.constant 9.99999974E-6 : f32
    %19 = vector.broadcast %cst_12 : f32 to vector<128x1xf32>
    %20 = arith.addf %16, %19 : vector<128x1xf32>
    %21 = math.rsqrt %20 : vector<128x1xf32>
    %22 = vector.broadcast %21 : vector<128x1xf32> to vector<128x64xf32>
    %23 = arith.mulf %18, %22 : vector<128x64xf32>
    %24 = vector.broadcast %4 : vector<1x64xf32> to vector<128x64xf32>
    %25 = arith.mulf %23, %24 : vector<128x64xf32>
    %26 = vector.broadcast %5 : vector<1x64xf32> to vector<128x64xf32>
    %27 = arith.addf %25, %26 : vector<128x64xf32>
    %c0_13 = arith.constant 0 : index
    %c0_14 = arith.constant 0 : index
    %28 = vector.load %arg5[%c0_13, %c0_14] : memref<1x64xf32, #tpu.memory_space<vmem>>, vector<1x64xf32>
    %c0_15 = arith.constant 0 : index
    %c0_16 = arith.constant 0 : index
    %29 = vector.load %arg6[%c0_15, %c0_16] : memref<1x64xf32, #tpu.memory_space<vmem>>, vector<1x64xf32>
    %cst_17 = arith.constant dense<0.000000e+00> : vector<128xf32>
    %30 = vector.multi_reduction <add>, %3, %cst_17 [1] : vector<128x64xf32> to vector<128xf32>
    %31 = vector.shape_cast %30 : vector<128xf32> to vector<128x1xf32>
    %cst_18 = arith.constant 6.400000e+01 : f32
    %32 = vector.broadcast %cst_18 : f32 to vector<128x1xf32>
    %33 = arith.divf %31, %32 : vector<128x1xf32>
    %34 = vector.broadcast %33 : vector<128x1xf32> to vector<128x64xf32>
    %35 = arith.subf %3, %34 : vector<128x64xf32>
    %36 = arith.mulf %35, %35 : vector<128x64xf32>
    %cst_19 = arith.constant dense<0.000000e+00> : vector<128xf32>
    %37 = vector.multi_reduction <add>, %36, %cst_19 [1] : vector<128x64xf32> to vector<128xf32>
    %38 = vector.shape_cast %37 : vector<128xf32> to vector<128x1xf32>
    %cst_20 = arith.constant 6.400000e+01 : f32
    %39 = vector.broadcast %cst_20 : f32 to vector<128x1xf32>
    %40 = arith.divf %38, %39 : vector<128x1xf32>
    %41 = vector.broadcast %33 : vector<128x1xf32> to vector<128x64xf32>
    %42 = arith.subf %3, %41 : vector<128x64xf32>
    %cst_21 = arith.constant 9.99999974E-6 : f32
    %43 = vector.broadcast %cst_21 : f32 to vector<128x1xf32>
    %44 = arith.addf %40, %43 : vector<128x1xf32>
    %45 = math.rsqrt %44 : vector<128x1xf32>
    %46 = vector.broadcast %45 : vector<128x1xf32> to vector<128x64xf32>
    %47 = arith.mulf %42, %46 : vector<128x64xf32>
    %48 = vector.broadcast %28 : vector<1x64xf32> to vector<128x64xf32>
    %49 = arith.mulf %47, %48 : vector<128x64xf32>
    %50 = vector.broadcast %29 : vector<1x64xf32> to vector<128x64xf32>
    %51 = arith.addf %49, %50 : vector<128x64xf32>
    %52 = tpu.concatenate %27, %51 in 1 : vector<128x64xf32>, vector<128x64xf32> -> vector<128x128xf32>
    %c0_22 = arith.constant 0 : index
    %c0_23 = arith.constant 0 : index
    %53 = vector.load %arg7[%c0_22, %c0_23] : memref<128x256xf32, #tpu.memory_space<vmem>>, vector<128x256xf32>
    %cst_24 = arith.constant dense<0.000000e+00> : vector<128x256xf32>
    %54 = tpu.matmul %52, %53, %cst_24 {dimension_numbers = #tpu.dot_dimension_numbers<[1], [0], [0], [1], [0, 0, 1, 1], [], []>} : vector<128x128xf32>, vector<128x256xf32>, vector<128x256xf32> -> vector<128x256xf32>
    %c0_25 = arith.constant 0 : index
    %c0_26 = arith.constant 0 : index
    %55 = vector.load %arg8[%c0_25, %c0_26] : memref<1x256xf32, #tpu.memory_space<vmem>>, vector<1x256xf32>
    %56 = vector.broadcast %55 : vector<1x256xf32> to vector<128x256xf32>
    %57 = arith.addf %54, %56 : vector<128x256xf32>
    %c0_27 = arith.constant 0 : index
    %c0_28 = arith.constant 0 : index
    %58 = vector.load %arg9[%c0_27, %c0_28] : memref<9x256xf32, #tpu.memory_space<vmem>>, vector<9x256xf32>
    %c0_29 = arith.constant 0 : index
    %c0_30 = arith.constant 0 : index
    %59 = vector.load %arg11[%c0_29, %c0_30] : memref<128x9xf32, #tpu.memory_space<vmem>>, vector<128x9xf32>
    %60 = vector.extract_strided_slice %58 {offsets = [4, 0], sizes = [1, 256], strides = [1, 1]} : vector<9x256xf32> to vector<1x256xf32>
    %61 = vector.broadcast %60 : vector<1x256xf32> to vector<128x256xf32>
    %62 = arith.mulf %57, %61 : vector<128x256xf32>
    %c9_i32 = arith.constant 9 : i32
    %63 = tpu.dynamic_rotate %57 by %c9_i32 dim 0 : vector<128x256xf32>, i32 -> vector<128x256xf32>
    %64 = vector.extract_strided_slice %59 {offsets = [0, 0], sizes = [128, 1], strides = [1, 1]} : vector<128x9xf32> to vector<128x1xf32>
    %65 = vector.broadcast %64 : vector<128x1xf32> to vector<128x256xf32>
    %66 = arith.mulf %63, %65 : vector<128x256xf32>
    %67 = vector.extract_strided_slice %58 {offsets = [0, 0], sizes = [1, 256], strides = [1, 1]} : vector<9x256xf32> to vector<1x256xf32>
    %68 = vector.broadcast %67 : vector<1x256xf32> to vector<128x256xf32>
    %69 = arith.mulf %66, %68 : vector<128x256xf32>
    %70 = arith.addf %62, %69 : vector<128x256xf32>
    %c8_i32 = arith.constant 8 : i32
    %71 = tpu.dynamic_rotate %57 by %c8_i32 dim 0 : vector<128x256xf32>, i32 -> vector<128x256xf32>
    %72 = vector.extract_strided_slice %59 {offsets = [0, 1], sizes = [128, 1], strides = [1, 1]} : vector<128x9xf32> to vector<128x1xf32>
    %73 = vector.broadcast %72 : vector<128x1xf32> to vector<128x256xf32>
    %74 = arith.mulf %71, %73 : vector<128x256xf32>
    %75 = vector.extract_strided_slice %58 {offsets = [1, 0], sizes = [1, 256], strides = [1, 1]} : vector<9x256xf32> to vector<1x256xf32>
    %76 = vector.broadcast %75 : vector<1x256xf32> to vector<128x256xf32>
    %77 = arith.mulf %74, %76 : vector<128x256xf32>
    %78 = arith.addf %70, %77 : vector<128x256xf32>
    %c7_i32 = arith.constant 7 : i32
    %79 = tpu.dynamic_rotate %57 by %c7_i32 dim 0 : vector<128x256xf32>, i32 -> vector<128x256xf32>
    %80 = vector.extract_strided_slice %59 {offsets = [0, 2], sizes = [128, 1], strides = [1, 1]} : vector<128x9xf32> to vector<128x1xf32>
    %81 = vector.broadcast %80 : vector<128x1xf32> to vector<128x256xf32>
    %82 = arith.mulf %79, %81 : vector<128x256xf32>
    %83 = vector.extract_strided_slice %58 {offsets = [2, 0], sizes = [1, 256], strides = [1, 1]} : vector<9x256xf32> to vector<1x256xf32>
    %84 = vector.broadcast %83 : vector<1x256xf32> to vector<128x256xf32>
    %85 = arith.mulf %82, %84 : vector<128x256xf32>
    %86 = arith.addf %78, %85 : vector<128x256xf32>
    %c1_i32 = arith.constant 1 : i32
    %87 = tpu.dynamic_rotate %57 by %c1_i32 dim 0 : vector<128x256xf32>, i32 -> vector<128x256xf32>
    %88 = vector.extract_strided_slice %59 {offsets = [0, 3], sizes = [128, 1], strides = [1, 1]} : vector<128x9xf32> to vector<128x1xf32>
    %89 = vector.broadcast %88 : vector<128x1xf32> to vector<128x256xf32>
    %90 = arith.mulf %87, %89 : vector<128x256xf32>
    %91 = vector.extract_strided_slice %58 {offsets = [3, 0], sizes = [1, 256], strides = [1, 1]} : vector<9x256xf32> to vector<1x256xf32>
    %92 = vector.broadcast %91 : vector<1x256xf32> to vector<128x256xf32>
    %93 = arith.mulf %90, %92 : vector<128x256xf32>
    %94 = arith.addf %86, %93 : vector<128x256xf32>
    %c127_i32 = arith.constant 127 : i32
    %95 = tpu.dynamic_rotate %57 by %c127_i32 dim 0 : vector<128x256xf32>, i32 -> vector<128x256xf32>
    %96 = vector.extract_strided_slice %59 {offsets = [0, 5], sizes = [128, 1], strides = [1, 1]} : vector<128x9xf32> to vector<128x1xf32>
    %97 = vector.broadcast %96 : vector<128x1xf32> to vector<128x256xf32>
    %98 = arith.mulf %95, %97 : vector<128x256xf32>
    %99 = vector.extract_strided_slice %58 {offsets = [5, 0], sizes = [1, 256], strides = [1, 1]} : vector<9x256xf32> to vector<1x256xf32>
    %100 = vector.broadcast %99 : vector<1x256xf32> to vector<128x256xf32>
    %101 = arith.mulf %98, %100 : vector<128x256xf32>
    %102 = arith.addf %94, %101 : vector<128x256xf32>
    %c121_i32 = arith.constant 121 : i32
    %103 = tpu.dynamic_rotate %57 by %c121_i32 dim 0 : vector<128x256xf32>, i32 -> vector<128x256xf32>
    %104 = vector.extract_strided_slice %59 {offsets = [0, 6], sizes = [128, 1], strides = [1, 1]} : vector<128x9xf32> to vector<128x1xf32>
    %105 = vector.broadcast %104 : vector<128x1xf32> to vector<128x256xf32>
    %106 = arith.mulf %103, %105 : vector<128x256xf32>
    %107 = vector.extract_strided_slice %58 {offsets = [6, 0], sizes = [1, 256], strides = [1, 1]} : vector<9x256xf32> to vector<1x256xf32>
    %108 = vector.broadcast %107 : vector<1x256xf32> to vector<128x256xf32>
    %109 = arith.mulf %106, %108 : vector<128x256xf32>
    %110 = arith.addf %102, %109 : vector<128x256xf32>
    %c120_i32 = arith.constant 120 : i32
    %111 = tpu.dynamic_rotate %57 by %c120_i32 dim 0 : vector<128x256xf32>, i32 -> vector<128x256xf32>
    %112 = vector.extract_strided_slice %59 {offsets = [0, 7], sizes = [128, 1], strides = [1, 1]} : vector<128x9xf32> to vector<128x1xf32>
    %113 = vector.broadcast %112 : vector<128x1xf32> to vector<128x256xf32>
    %114 = arith.mulf %111, %113 : vector<128x256xf32>
    %115 = vector.extract_strided_slice %58 {offsets = [7, 0], sizes = [1, 256], strides = [1, 1]} : vector<9x256xf32> to vector<1x256xf32>
    %116 = vector.broadcast %115 : vector<1x256xf32> to vector<128x256xf32>
    %117 = arith.mulf %114, %116 : vector<128x256xf32>
    %118 = arith.addf %110, %117 : vector<128x256xf32>
    %c119_i32 = arith.constant 119 : i32
    %119 = tpu.dynamic_rotate %57 by %c119_i32 dim 0 : vector<128x256xf32>, i32 -> vector<128x256xf32>
    %120 = vector.extract_strided_slice %59 {offsets = [0, 8], sizes = [128, 1], strides = [1, 1]} : vector<128x9xf32> to vector<128x1xf32>
    %121 = vector.broadcast %120 : vector<128x1xf32> to vector<128x256xf32>
    %122 = arith.mulf %119, %121 : vector<128x256xf32>
    %123 = vector.extract_strided_slice %58 {offsets = [8, 0], sizes = [1, 256], strides = [1, 1]} : vector<9x256xf32> to vector<1x256xf32>
    %124 = vector.broadcast %123 : vector<1x256xf32> to vector<128x256xf32>
    %125 = arith.mulf %122, %124 : vector<128x256xf32>
    %126 = arith.addf %118, %125 : vector<128x256xf32>
    %c0_31 = arith.constant 0 : index
    %c0_32 = arith.constant 0 : index
    %127 = vector.load %arg10[%c0_31, %c0_32] : memref<1x256xf32, #tpu.memory_space<vmem>>, vector<1x256xf32>
    %128 = vector.broadcast %127 : vector<1x256xf32> to vector<128x256xf32>
    %129 = arith.addf %126, %128 : vector<128x256xf32>
    %130 = vector.extract_strided_slice %129 {offsets = [0, 0], sizes = [128, 64], strides = [1, 1]} : vector<128x256xf32> to vector<128x64xf32>
    %131 = vector.extract_strided_slice %129 {offsets = [0, 64], sizes = [128, 64], strides = [1, 1]} : vector<128x256xf32> to vector<128x64xf32>
    %132 = vector.extract_strided_slice %129 {offsets = [0, 128], sizes = [128, 64], strides = [1, 1]} : vector<128x256xf32> to vector<128x64xf32>
    %133 = vector.extract_strided_slice %129 {offsets = [0, 192], sizes = [128, 64], strides = [1, 1]} : vector<128x256xf32> to vector<128x64xf32>
    %c0_33 = arith.constant 0 : index
    %c0_34 = arith.constant 0 : index
    %134 = vector.load %arg13[%c0_33, %c0_34] : memref<1x64xf32, #tpu.memory_space<vmem>>, vector<1x64xf32>
    %c0_35 = arith.constant 0 : index
    %c0_36 = arith.constant 0 : index
    %135 = vector.load %arg12[%c0_35, %c0_36] : memref<64x64xf32, #tpu.memory_space<vmem>>, vector<64x64xf32>
    %136 = vector.extract_strided_slice %130 {offsets = [0, 0], sizes = [64, 64], strides = [1, 1]} : vector<128x64xf32> to vector<64x64xf32>
    %137 = vector.extract_strided_slice %131 {offsets = [0, 0], sizes = [64, 64], strides = [1, 1]} : vector<128x64xf32> to vector<64x64xf32>
    %138 = vector.extract_strided_slice %132 {offsets = [0, 0], sizes = [64, 64], strides = [1, 1]} : vector<128x64xf32> to vector<64x64xf32>
    %139 = vector.extract_strided_slice %133 {offsets = [0, 0], sizes = [64, 64], strides = [1, 1]} : vector<128x64xf32> to vector<64x64xf32>
    %140 = arith.mulf %136, %136 : vector<64x64xf32>
    %cst_37 = arith.constant dense<0.000000e+00> : vector<64xf32>
    %141 = vector.multi_reduction <add>, %140, %cst_37 [0] : vector<64x64xf32> to vector<64xf32>
    %142 = vector.shape_cast %141 : vector<64xf32> to vector<1x64xf32>
    %143 = math.sqrt %142 : vector<1x64xf32>
    %cst_38 = arith.constant 9.99999996E-13 : f32
    %144 = vector.broadcast %cst_38 : f32 to vector<1x64xf32>
    %145 = arith.maximumf %143, %144 : vector<1x64xf32>
    %146 = vector.broadcast %145 : vector<1x64xf32> to vector<64x64xf32>
    %147 = arith.divf %136, %146 : vector<64x64xf32>
    %148 = vector.broadcast %134 : vector<1x64xf32> to vector<64x64xf32>
    %149 = arith.mulf %147, %148 : vector<64x64xf32>
    %150 = arith.mulf %138, %138 : vector<64x64xf32>
    %cst_39 = arith.constant dense<0.000000e+00> : vector<64xf32>
    %151 = vector.multi_reduction <add>, %150, %cst_39 [0] : vector<64x64xf32> to vector<64xf32>
    %152 = vector.shape_cast %151 : vector<64xf32> to vector<1x64xf32>
    %153 = math.sqrt %152 : vector<1x64xf32>
    %cst_40 = arith.constant 9.99999996E-13 : f32
    %154 = vector.broadcast %cst_40 : f32 to vector<1x64xf32>
    %155 = arith.maximumf %153, %154 : vector<1x64xf32>
    %156 = vector.broadcast %155 : vector<1x64xf32> to vector<64x64xf32>
    %157 = arith.divf %138, %156 : vector<64x64xf32>
    %cst_41 = arith.constant dense<0.000000e+00> : vector<64x64xf32>
    %158 = tpu.matmul %149, %157, %cst_41 {dimension_numbers = #tpu.dot_dimension_numbers<[0], [0], [1], [1], [0, 1, 1, 1], [], []>} : vector<64x64xf32>, vector<64x64xf32>, vector<64x64xf32> -> vector<64x64xf32>
    %159 = arith.addf %158, %135 : vector<64x64xf32>
    %cst_42 = arith.constant dense<0xFF800000> : vector<64xf32>
    %160 = vector.multi_reduction <maximumf>, %159, %cst_42 [1] : vector<64x64xf32> to vector<64xf32>
    %161 = vector.shape_cast %160 : vector<64xf32> to vector<64x1xf32>
    %162 = vector.broadcast %161 : vector<64x1xf32> to vector<64x64xf32>
    %163 = arith.subf %159, %162 : vector<64x64xf32>
    %164 = math.exp %163 : vector<64x64xf32>
    %cst_43 = arith.constant dense<0.000000e+00> : vector<64xf32>
    %165 = vector.multi_reduction <add>, %164, %cst_43 [1] : vector<64x64xf32> to vector<64xf32>
    %166 = vector.shape_cast %165 : vector<64xf32> to vector<64x1xf32>
    %167 = tpu.reciprocal %166 {approx = true} : vector<64x1xf32> -> vector<64x1xf32>
    %168 = arith.mulf %166, %167 : vector<64x1xf32>
    %cst_44 = arith.constant 2.000000e+00 : f32
    %169 = vector.broadcast %cst_44 : f32 to vector<64x1xf32>
    %170 = arith.subf %169, %168 : vector<64x1xf32>
    %171 = arith.mulf %167, %170 : vector<64x1xf32>
    %172 = vector.broadcast %171 : vector<64x1xf32> to vector<64x64xf32>
    %173 = arith.mulf %164, %172 : vector<64x64xf32>
    %174 = tpu.concatenate %137, %139 in 0 : vector<64x64xf32>, vector<64x64xf32> -> vector<128x64xf32>
    %cst_45 = arith.constant dense<0.000000e+00> : vector<128x64xf32>
    %175 = tpu.matmul %174, %173, %cst_45 {dimension_numbers = #tpu.dot_dimension_numbers<[1], [1], [0], [0], [0, 0, 1, 0], [], []>} : vector<128x64xf32>, vector<64x64xf32>, vector<128x64xf32> -> vector<128x64xf32>
    %176 = vector.extract_strided_slice %175 {offsets = [0, 0], sizes = [64, 64], strides = [1, 1]} : vector<128x64xf32> to vector<64x64xf32>
    %177 = arith.addf %176, %137 : vector<64x64xf32>
    %178 = vector.extract_strided_slice %27 {offsets = [0, 0], sizes = [64, 64], strides = [1, 1]} : vector<128x64xf32> to vector<64x64xf32>
    %179 = arith.addf %177, %178 : vector<64x64xf32>
    %180 = vector.extract_strided_slice %175 {offsets = [64, 0], sizes = [64, 64], strides = [1, 1]} : vector<128x64xf32> to vector<64x64xf32>
    %181 = arith.addf %180, %139 : vector<64x64xf32>
    %182 = vector.extract_strided_slice %51 {offsets = [0, 0], sizes = [64, 64], strides = [1, 1]} : vector<128x64xf32> to vector<64x64xf32>
    %183 = arith.addf %181, %182 : vector<64x64xf32>
    %184 = vector.extract_strided_slice %130 {offsets = [64, 0], sizes = [64, 64], strides = [1, 1]} : vector<128x64xf32> to vector<64x64xf32>
    %185 = vector.extract_strided_slice %131 {offsets = [64, 0], sizes = [64, 64], strides = [1, 1]} : vector<128x64xf32> to vector<64x64xf32>
    %186 = vector.extract_strided_slice %132 {offsets = [64, 0], sizes = [64, 64], strides = [1, 1]} : vector<128x64xf32> to vector<64x64xf32>
    %187 = vector.extract_strided_slice %133 {offsets = [64, 0], sizes = [64, 64], strides = [1, 1]} : vector<128x64xf32> to vector<64x64xf32>
    %188 = arith.mulf %184, %184 : vector<64x64xf32>
    %cst_46 = arith.constant dense<0.000000e+00> : vector<64xf32>
    %189 = vector.multi_reduction <add>, %188, %cst_46 [0] : vector<64x64xf32> to vector<64xf32>
    %190 = vector.shape_cast %189 : vector<64xf32> to vector<1x64xf32>
    %191 = math.sqrt %190 : vector<1x64xf32>
    %cst_47 = arith.constant 9.99999996E-13 : f32
    %192 = vector.broadcast %cst_47 : f32 to vector<1x64xf32>
    %193 = arith.maximumf %191, %192 : vector<1x64xf32>
    %194 = vector.broadcast %193 : vector<1x64xf32> to vector<64x64xf32>
    %195 = arith.divf %184, %194 : vector<64x64xf32>
    %196 = vector.broadcast %134 : vector<1x64xf32> to vector<64x64xf32>
    %197 = arith.mulf %195, %196 : vector<64x64xf32>
    %198 = arith.mulf %186, %186 : vector<64x64xf32>
    %cst_48 = arith.constant dense<0.000000e+00> : vector<64xf32>
    %199 = vector.multi_reduction <add>, %198, %cst_48 [0] : vector<64x64xf32> to vector<64xf32>
    %200 = vector.shape_cast %199 : vector<64xf32> to vector<1x64xf32>
    %201 = math.sqrt %200 : vector<1x64xf32>
    %cst_49 = arith.constant 9.99999996E-13 : f32
    %202 = vector.broadcast %cst_49 : f32 to vector<1x64xf32>
    %203 = arith.maximumf %201, %202 : vector<1x64xf32>
    %204 = vector.broadcast %203 : vector<1x64xf32> to vector<64x64xf32>
    %205 = arith.divf %186, %204 : vector<64x64xf32>
    %cst_50 = arith.constant dense<0.000000e+00> : vector<64x64xf32>
    %206 = tpu.matmul %197, %205, %cst_50 {dimension_numbers = #tpu.dot_dimension_numbers<[0], [0], [1], [1], [0, 1, 1, 1], [], []>} : vector<64x64xf32>, vector<64x64xf32>, vector<64x64xf32> -> vector<64x64xf32>
    %207 = arith.addf %206, %135 : vector<64x64xf32>
    %cst_51 = arith.constant dense<0xFF800000> : vector<64xf32>
    %208 = vector.multi_reduction <maximumf>, %207, %cst_51 [1] : vector<64x64xf32> to vector<64xf32>
    %209 = vector.shape_cast %208 : vector<64xf32> to vector<64x1xf32>
    %210 = vector.broadcast %209 : vector<64x1xf32> to vector<64x64xf32>
    %211 = arith.subf %207, %210 : vector<64x64xf32>
    %212 = math.exp %211 : vector<64x64xf32>
    %cst_52 = arith.constant dense<0.000000e+00> : vector<64xf32>
    %213 = vector.multi_reduction <add>, %212, %cst_52 [1] : vector<64x64xf32> to vector<64xf32>
    %214 = vector.shape_cast %213 : vector<64xf32> to vector<64x1xf32>
    %215 = tpu.reciprocal %214 {approx = true} : vector<64x1xf32> -> vector<64x1xf32>
    %216 = arith.mulf %214, %215 : vector<64x1xf32>
    %cst_53 = arith.constant 2.000000e+00 : f32
    %217 = vector.broadcast %cst_53 : f32 to vector<64x1xf32>
    %218 = arith.subf %217, %216 : vector<64x1xf32>
    %219 = arith.mulf %215, %218 : vector<64x1xf32>
    %220 = vector.broadcast %219 : vector<64x1xf32> to vector<64x64xf32>
    %221 = arith.mulf %212, %220 : vector<64x64xf32>
    %222 = tpu.concatenate %185, %187 in 0 : vector<64x64xf32>, vector<64x64xf32> -> vector<128x64xf32>
    %cst_54 = arith.constant dense<0.000000e+00> : vector<128x64xf32>
    %223 = tpu.matmul %222, %221, %cst_54 {dimension_numbers = #tpu.dot_dimension_numbers<[1], [1], [0], [0], [0, 0, 1, 0], [], []>} : vector<128x64xf32>, vector<64x64xf32>, vector<128x64xf32> -> vector<128x64xf32>
    %224 = vector.extract_strided_slice %223 {offsets = [0, 0], sizes = [64, 64], strides = [1, 1]} : vector<128x64xf32> to vector<64x64xf32>
    %225 = arith.addf %224, %185 : vector<64x64xf32>
    %226 = vector.extract_strided_slice %27 {offsets = [64, 0], sizes = [64, 64], strides = [1, 1]} : vector<128x64xf32> to vector<64x64xf32>
    %227 = arith.addf %225, %226 : vector<64x64xf32>
    %228 = vector.extract_strided_slice %223 {offsets = [64, 0], sizes = [64, 64], strides = [1, 1]} : vector<128x64xf32> to vector<64x64xf32>
    %229 = arith.addf %228, %187 : vector<64x64xf32>
    %230 = vector.extract_strided_slice %51 {offsets = [64, 0], sizes = [64, 64], strides = [1, 1]} : vector<128x64xf32> to vector<64x64xf32>
    %231 = arith.addf %229, %230 : vector<64x64xf32>
    %232 = tpu.concatenate %179, %227 in 0 : vector<64x64xf32>, vector<64x64xf32> -> vector<128x64xf32>
    %233 = tpu.concatenate %183, %231 in 0 : vector<64x64xf32>, vector<64x64xf32> -> vector<128x64xf32>
    %c0_55 = arith.constant 0 : index
    %c0_56 = arith.constant 0 : index
    %234 = vector.load %arg14[%c0_55, %c0_56] : memref<128x64xf32, #tpu.memory_space<vmem>>, vector<128x64xf32>
    %235 = vector.extract_strided_slice %234 {offsets = [0, 0], sizes = [64, 64], strides = [1, 1]} : vector<128x64xf32> to vector<64x64xf32>
    %cst_57 = arith.constant dense<0.000000e+00> : vector<128x64xf32>
    %236 = tpu.matmul %232, %235, %cst_57 {dimension_numbers = #tpu.dot_dimension_numbers<[1], [0], [0], [1], [0, 0, 1, 1], [], []>} : vector<128x64xf32>, vector<64x64xf32>, vector<128x64xf32> -> vector<128x64xf32>
    %237 = vector.extract_strided_slice %234 {offsets = [64, 0], sizes = [64, 64], strides = [1, 1]} : vector<128x64xf32> to vector<64x64xf32>
    %cst_58 = arith.constant dense<0.000000e+00> : vector<128x64xf32>
    %238 = tpu.matmul %233, %237, %cst_58 {dimension_numbers = #tpu.dot_dimension_numbers<[1], [0], [0], [1], [0, 0, 1, 1], [], []>} : vector<128x64xf32>, vector<64x64xf32>, vector<128x64xf32> -> vector<128x64xf32>
    %239 = arith.addf %236, %238 : vector<128x64xf32>
    %c0_59 = arith.constant 0 : index
    %c0_60 = arith.constant 0 : index
    %240 = vector.load %arg15[%c0_59, %c0_60] : memref<1x64xf32, #tpu.memory_space<vmem>>, vector<1x64xf32>
    %241 = vector.broadcast %240 : vector<1x64xf32> to vector<128x64xf32>
    %242 = arith.addf %239, %241 : vector<128x64xf32>
    %243 = vector.shape_cast %242 : vector<128x64xf32> to vector<2x64x64xf32>
    %c0_61 = arith.constant 0 : index
    %c0_62 = arith.constant 0 : index
    %c0_63 = arith.constant 0 : index
    %244 = vector.load %arg16[%c0_61, %c0_62, %c0_63] : memref<2x64x64xf32, #tpu.memory_space<vmem>>, vector<2x64x64xf32>
    tpu.vector_store %arg16[%c0_61, %c0_62, %c0_63], %243 {strides = array<i32>} : memref<2x64x64xf32, #tpu.memory_space<vmem>>, vector<2x64x64xf32>,
    return
  }
  func.func @transform_0(%arg0: i32) -> (i32, i32, i32) {
    %c0_i32 = arith.constant 0 : i32
    %c0_i32_0 = arith.constant 0 : i32
    %c0_i32_1 = arith.constant 0 : i32
    return %arg0, %c0_i32, %c0_i32_0 : i32, i32, i32
  }
  func.func @transform_1(%arg0: i32) -> (i32, i32, i32) {
    %c0_i32 = arith.constant 0 : i32
    %c0_i32_0 = arith.constant 0 : i32
    %c0_i32_1 = arith.constant 0 : i32
    return %arg0, %c0_i32, %c0_i32_0 : i32, i32, i32
  }
  func.func @transform_2(%arg0: i32) -> (i32, i32) {
    %c0_i32 = arith.constant 0 : i32
    %c0_i32_0 = arith.constant 0 : i32
    %c0_i32_1 = arith.constant 0 : i32
    return %c0_i32, %c0_i32_0 : i32, i32
  }
  func.func @transform_3(%arg0: i32) -> (i32, i32) {
    %c0_i32 = arith.constant 0 : i32
    %c0_i32_0 = arith.constant 0 : i32
    %c0_i32_1 = arith.constant 0 : i32
    return %c0_i32, %c0_i32_0 : i32, i32
  }
  func.func @transform_4(%arg0: i32) -> (i32, i32) {
    %c0_i32 = arith.constant 0 : i32
    %c0_i32_0 = arith.constant 0 : i32
    %c0_i32_1 = arith.constant 0 : i32
    return %c0_i32, %c0_i32_0 : i32, i32
  }
  func.func @transform_5(%arg0: i32) -> (i32, i32) {
    %c0_i32 = arith.constant 0 : i32
    %c0_i32_0 = arith.constant 0 : i32
    %c0_i32_1 = arith.constant 0 : i32
    return %c0_i32, %c0_i32_0 : i32, i32
  }
  func.func @transform_6(%arg0: i32) -> (i32, i32) {
    %c0_i32 = arith.constant 0 : i32
    %c0_i32_0 = arith.constant 0 : i32
    %c0_i32_1 = arith.constant 0 : i32
    return %c0_i32, %c0_i32_0 : i32, i32
  }
  func.func @transform_7(%arg0: i32) -> (i32, i32) {
    %c0_i32 = arith.constant 0 : i32
    %c0_i32_0 = arith.constant 0 : i32
    %c0_i32_1 = arith.constant 0 : i32
    return %c0_i32, %c0_i32_0 : i32, i32
  }
  func.func @transform_8(%arg0: i32) -> (i32, i32) {
    %c0_i32 = arith.constant 0 : i32
    %c0_i32_0 = arith.constant 0 : i32
    %c0_i32_1 = arith.constant 0 : i32
    return %c0_i32, %c0_i32_0 : i32, i32
  }
  func.func @transform_9(%arg0: i32) -> (i32, i32) {
    %c0_i32 = arith.constant 0 : i32
    %c0_i32_0 = arith.constant 0 : i32
    %c0_i32_1 = arith.constant 0 : i32
    return %c0_i32, %c0_i32_0 : i32, i32
  }
  func.func @transform_10(%arg0: i32) -> (i32, i32) {
    %c0_i32 = arith.constant 0 : i32
    %c0_i32_0 = arith.constant 0 : i32
    %c0_i32_1 = arith.constant 0 : i32
    return %c0_i32, %c0_i32_0 : i32, i32
  }
  func.func @transform_11(%arg0: i32) -> (i32, i32) {
    %c0_i32 = arith.constant 0 : i32
    %c0_i32_0 = arith.constant 0 : i32
    %c0_i32_1 = arith.constant 0 : i32
    return %c0_i32, %c0_i32_0 : i32, i32
  }
  func.func @transform_12(%arg0: i32) -> (i32, i32) {
    %c0_i32 = arith.constant 0 : i32
    %c0_i32_0 = arith.constant 0 : i32
    %c0_i32_1 = arith.constant 0 : i32
    return %c0_i32, %c0_i32_0 : i32, i32
  }
  func.func @transform_13(%arg0: i32) -> (i32, i32) {
    %c0_i32 = arith.constant 0 : i32
    %c0_i32_0 = arith.constant 0 : i32
    %c0_i32_1 = arith.constant 0 : i32
    return %c0_i32, %c0_i32_0 : i32, i32
  }
  func.func @transform_14(%arg0: i32) -> (i32, i32) {
    %c0_i32 = arith.constant 0 : i32
    %c0_i32_0 = arith.constant 0 : i32
    %c0_i32_1 = arith.constant 0 : i32
    return %c0_i32, %c0_i32_0 : i32, i32
  }
  func.func @transform_15(%arg0: i32) -> (i32, i32, i32) {
    %c0_i32 = arith.constant 0 : i32
    %c0_i32_0 = arith.constant 0 : i32
    %c0_i32_1 = arith.constant 0 : i32
    return %arg0, %c0_i32, %c0_i32_0 : i32, i32, i32
  }
}

</mosaic_0001>

<bundles_post_ra>
// kernel: tpu_custom_call.1
= control target key start
LH: loop header
LB: loop body
LE: loop exit
PB: predicated region body
PF: predicated region fallthrough
CT: control target
= control target key end

     0   :  { %s10630_s0 = inlined_call_operand.vmem [shape: f32[4,64,64], index: 0, kind: input, shape index: {}]   ;;  %s10631_s1 = inlined_call_operand.hbm [shape: f32[4,64,64], index: 1, kind: input, shape index: {}]   ;;  %s10632_s2 = inlined_call_operand.hbm [shape: f32[1,64], index: 2, kind: input, shape index: {}]   ;;  %s10633_s3 = inlined_call_operand.hbm [shape: f32[1,64], index: 3, kind: input, shape index: {}]   ;;  %s10634_s4 = inlined_call_operand.hbm [shape: f32[1,64], index: 4, kind: input, shape index: {}]   ;;  %s10635_s5 = inlined_call_operand.hbm [shape: f32[1,64], index: 5, kind: input, shape index: {}]   ;;  %s10636_s6 = inlined_call_operand.hbm [shape: f32[128,256], index: 6, kind: input, shape index: {}]   ;;  %s10637_s7 = inlined_call_operand.vmem [shape: f32[1,256], index: 7, kind: input, shape index: {}]   ;;  %s10638_s8 = inlined_call_operand.vmem [shape: f32[9,256], index: 8, kind: input, shape index: {}]   ;;  %s10639_s9 = inlined_call_operand.hbm [shape: f32[1,256], index: 9, kind: input, shape index: {}]   ;;  %s10640_s10 = inlined_call_operand.vmem [shape: f32[128,9], index: 10, kind: input, shape index: {}]   ;;  %s10641_s11 = inlined_call_operand.hbm [shape: f32[64,64], index: 11, kind: input, shape index: {}]   ;;  %s10642_s12 = inlined_call_operand.vmem [shape: f32[1,64], index: 12, kind: input, shape index: {}]   ;;  %s10643_s13 = inlined_call_operand.vmem [shape: f32[128,64], index: 13, kind: input, shape index: {}]   ;;  %s10644_s14 = inlined_call_operand.vmem [shape: f32[1,64], index: 14, kind: input, shape index: {}]   ;;  %s10645_s15 = inlined_call_operand.hbm [shape: f32[4,64,64], index: 15, kind: output, shape index: {}]  }
   0x1   :  { %10947 = sst [smem:[#allocation132_spill]] %s10630_s0 }
   0x2   :  { %10948 = sst [smem:[#allocation133_spill]] %s10632_s2 }
   0x3   :  { %10949 = sst [smem:[#allocation134_spill]] %s10634_s4 }
   0x4   :  { %10950 = sst [smem:[#allocation135_spill]] %s10637_s7 }
   0x5   :  { %10951 = sst [smem:[#allocation136_spill]] %s10638_s8 }
   0x6   :  { %10952 = sst [smem:[#allocation137_spill]] %s10640_s10 }
   0x7   :  { %10953 = sst [smem:[#allocation138_spill]] %s10642_s12 }
   0x8   :  { %10954 = sst [smem:[#allocation139_spill]] %s10643_s13 }
   0x9   :  { %10955 = sst [smem:[#allocation140_spill]] %s10644_s14 }
   0xa   :  { %10956 = sst [smem:[#allocation141_spill]] %s10645_s15 }
   0xb   :  { %20 = vsyncpa [#allocation3], 0 }
   0xc   :  { %22 = vsyncpa [#allocation3 + $0x1], 0 }
   0xd   :  { %23 = vsyncpa [#allocation6], 0 }
   0xe   :  { %24 = vsyncpa [#allocation9], 0 }
   0xf   :  { %25 = vsyncpa [#allocation12], 0 }
  0x10   :  { %26 = vsyncpa [#allocation15], 0 }
  0x11   :  { %27 = vsyncpa [#allocation4], 0 }
  0x12   :  { %29 = vsyncpa [#allocation4 + $0x1], 0  ;;  %s6490_s18 = smov 0   ;;  %s6492_s19 = smov 0  }
  0x13   :  { %s6494_s20 = smov 0   ;;  %s6496_s21 = smov 0  }
  0x14 LB: > { %s6385_s22 = smov [#allocation5]   ;;  %s6511_s24 = sadd.s32 4294967295, %s6383_s21   ;;  %s6383_s21 = sphi %s6496_s21, %s11508_s21   ;;  %s6379_s20 = sphi %s6494_s20, %s11507_s20   ;;  %s6375_s19 = sphi %s6492_s19, %s11506_s19   ;;  %s6371_s18 = sphi %s6490_s18, %s11505_s18  }
  0x15   : > { %s404_s23 = sshll.u32 %s6385_s22, 4  ;;  %p5020_p0 = scmp.ge.s32.totalorder %s6383_s21, 1  ;;  %s6516_s23 = int_to_ptr.vmem [resolvable:$true] %s404_s23 }
  0x16   : > { %p10651_p1 = scmp.eq.s32.totalorder %s6511_s24, 0  ;;  %p391_p2 = scmp.lt.s32.totalorder %s6383_s21, 3 }
  0x17   : > { %s6386_s26 = smov [#allocation8]   ;;  %s6387_s28 = smov [#allocation11]  }
  0x18   : > { %p6518_p3 = pnand %p5020_p0, %p391_p2  ;;  %s426_s27 = sshll.u32 %s6386_s26, 4  ;;  %s6525_s27 = int_to_ptr.vmem [resolvable:$true] %s426_s27 }
  0x19   : > { %s447_s29 = sshll.u32 %s6387_s28, 4  ;;  %s10959_s2 = sld [smem:[#allocation133_spill]]  ;;  %s6533_s29 = int_to_ptr.vmem [resolvable:$true] %s447_s29 }
  0x1a   : > { %s10957_s25 = scalar_select %p6518_p3, 1, 0 }
  0x1b   : > { %p5705_p5 = pneg %p6518_p3 }
  0x1d   : > { %p6529_p6 = pnand %p5705_p5, %p10651_p1 }
  0x1f   : > { %s6075_s22 = scalar_lea.hbm %s10959_s2, 16  ;;  %p6543_p8 = pneg %p6529_p6 }
  0x20   : > { %p6076_p7 = scmp.ne.s32.totalorder %s10959_s2, %s6075_s22  ;;  %p6082_p11 = scmp.lt.u32.totalorder %s6075_s22, %s10959_s2 }
  0x22   : > { %p6078_p9 = pnand %p6543_p8, %p6076_p7 }
  0x24   : > { %p6079_p10 = pneg %p6078_p9 }
  0x26   : > { %p6084_p12 = pnand %p6082_p11, %p6079_p10 }
  0x28   : > { %6087 = shalt.err (!%p6084_p12)
}
  0x29   : > { %s6088_s14 = scalar_lea.vmem %s6516_s23, 16  ;;  %s6095_s15 = scalar_lea.vmem %s6516_s23, 32 }
  0x2a   : > { %p6089_p13 = scmp.ne.s32.totalorder %s6516_s23, %s6088_s14  ;;  %p6096_p5 = scmp.lt.s32.totalorder %s6516_s23, %s6516_s23 }
  0x2b   : > { %p6097_p7 = scmp.lt.s32.totalorder %s6095_s15, %s6088_s14 }
  0x2c   : > { %p6091_p0 = pnand %p6089_p13, %p6543_p8 }
  0x2d   : > { %p6098_p9 = por %p6097_p7, %p6096_p5 }
  0x2e   : > { %p6092_p2 = pneg %p6091_p0 }
  0x30   : > { %p6099_p4 = pnand %p6098_p9, %p6092_p2 }
  0x32   : > { %6102 = shalt.err (!%p6099_p4)
}
  0x33   : > { %5708 = dma.hbm_to_vmem [thread:$0]  (!%p6529_p6), %s10959_s2, 16, %s6516_s23, [#allocation6]  }
  0x34   : > { %s10961_s4 = sld [smem:[#allocation134_spill]] }
  0x3a   : > { %s6103_s28 = scalar_lea.hbm %s10961_s4, 16 }
  0x3b   : > { %p6104_p10 = scmp.ne.s32.totalorder %s10961_s4, %s6103_s28  ;;  %p6110_p4 = scmp.lt.u32.totalorder %s6103_s28, %s10961_s4 }
  0x3d   : > { %p6106_p11 = pnand %p6104_p10, %p6543_p8 }
  0x3f   : > { %p6107_p12 = pneg %p6106_p11 }
  0x41   : > { %p6112_p13 = pnand %p6110_p4, %p6107_p12 }
  0x43   : > { %6115 = shalt.err (!%p6112_p13)
}
  0x44   : > { %s6116_s23 = scalar_lea.vmem %s6525_s27, 16  ;;  %s6123_s8 = scalar_lea.vmem %s6525_s27, 32 }
  0x45   : > { %p6117_p0 = scmp.ne.s32.totalorder %s6525_s27, %s6116_s23  ;;  %p6124_p7 = scmp.lt.s32.totalorder %s6525_s27, %s6525_s27 }
  0x46   : > { %p6125_p9 = scmp.lt.s32.totalorder %s6123_s8, %s6116_s23 }
  0x47   : > { %p6119_p2 = pnand %p6117_p0, %p6543_p8 }
  0x48   : > { %p6126_p10 = por %p6125_p9, %p6124_p7 }
  0x49   : > { %p6120_p5 = pneg %p6119_p2 }
  0x4b   : > { %p6127_p11 = pnand %p6126_p10, %p6120_p5 }
  0x4d   : > { %6130 = shalt.err (!%p6127_p11)
}
  0x4e   : > { %5714 = dma.hbm_to_vmem [thread:$0]  (!%p6529_p6), %s10961_s4, 16, %s6525_s27, [#allocation9]  }
  0x4f   : > { %s6131_s22 = scalar_lea.hbm %s10636_s6, 4096 }
  0x50   : > { %p6132_p12 = scmp.ne.s32.totalorder %s10636_s6, %s6131_s22  ;;  %p6138_p0 = scmp.lt.u32.totalorder %s6131_s22, %s10636_s6 }
  0x52   : > { %p6134_p4 = pnand %p6132_p12, %p6543_p8 }
  0x54   : > { %p6135_p13 = pneg %p6134_p4 }
  0x56   : > { %p6140_p2 = pnand %p6138_p0, %p6135_p13 }
  0x58   : > { %6143 = shalt.err (!%p6140_p2)
}
  0x59   : > { %s6144_s27 = scalar_lea.vmem %s6533_s29, 4096  ;;  %p6152_p10 = scmp.lt.s32.totalorder %s6533_s29, %s6533_s29 }
  0x5a   : > { %p6145_p5 = scmp.ne.s32.totalorder %s6533_s29, %s6144_s27  ;;  %p6153_p11 = scmp.lt.s32.totalorder %s6144_s27, %s6144_s27 }
  0x5c   : > { %p6147_p7 = pnand %p6145_p5, %p6543_p8  ;;  %p6154_p12 = por %p6153_p11, %p6152_p10 }
  0x5e   : > { %p6148_p9 = pneg %p6147_p7 }
  0x60   : > { %p6155_p4 = pnand %p6154_p12, %p6148_p9 }
  0x62   : > { %6158 = shalt.err (!%p6155_p4)
}
  0x63   : > { %s6388_s8 = smov 256   ;;  %s6389_s12 = smov 16  }
  0x64   : > { %5720 = dma.hbm_to_vmem [thread:$0]  (!%p6529_p6), %s10636_s6, 4096, %s6533_s29, [#allocation12], %s6388_s8, %s6388_s8, %s6389_s12  }
  0x65   : > { %s6390_s17 = smov [#allocation7]   ;;  %s6391_s28 = smov [#allocation10]  }
  0x66   : > { %s415_s22 = sshll.u32 %s6390_s17, 4  ;;  %s437_s14 = sshll.u32 %s6391_s28, 4  ;;  %s416_s22 = int_to_ptr.vmem [resolvable:$true] %s415_s22  ;;  %s438_s14 = int_to_ptr.vmem [resolvable:$true] %s437_s14 }
  0x67   : > { %s6159_s27 = scalar_lea.hbm %s10633_s3, 16 }
  0x68   : > { %p6160_p13 = scmp.ne.s32.totalorder %s10633_s3, %s6159_s27  ;;  %p6166_p5 = scmp.lt.u32.totalorder %s6159_s27, %s10633_s3 }
  0x6a   : > { %p6162_p0 = pnand %p6160_p13, %p6543_p8 }
  0x6c   : > { %p6163_p2 = pneg %p6162_p0 }
  0x6e   : > { %p6168_p7 = pnand %p6166_p5, %p6163_p2 }
  0x70   : > { %6171 = shalt.err (!%p6168_p7)
}
  0x71   : > { %s6172_s29 = scalar_lea.vmem %s416_s22, 16  ;;  %s6179_s8 = scalar_lea.vmem %s416_s22, 32 }
  0x72   : > { %p6173_p9 = scmp.ne.s32.totalorder %s416_s22, %s6172_s29  ;;  %p6180_p12 = scmp.lt.s32.totalorder %s416_s22, %s416_s22 }
  0x73   : > { %p6181_p4 = scmp.lt.s32.totalorder %s6179_s8, %s6172_s29 }
  0x74   : > { %p6175_p10 = pnand %p6173_p9, %p6543_p8 }
  0x75   : > { %p6182_p1 = por %p6181_p4, %p6180_p12 }
  0x76   : > { %p6176_p11 = pneg %p6175_p10 }
  0x78   : > { %p6183_p3 = pnand %p6182_p1, %p6176_p11 }
  0x7a   : > { %6186 = shalt.err (!%p6183_p3)
}
  0x7b   : > { %5711 = dma.hbm_to_vmem [thread:$0]  (!%p6529_p6), %s10633_s3, 16, %s416_s22, [#allocation6]  }
  0x7c   : > { %s6187_s12 = scalar_lea.hbm %s10635_s5, 16 }
  0x7d   : > { %p6188_p13 = scmp.ne.s32.totalorder %s10635_s5, %s6187_s12  ;;  %p6194_p3 = scmp.lt.u32.totalorder %s6187_s12, %s10635_s5 }
  0x7f   : > { %p6190_p0 = pnand %p6188_p13, %p6543_p8 }
  0x81   : > { %p6191_p1 = pneg %p6190_p0 }
  0x83   : > { %p6196_p2 = pnand %p6194_p3, %p6191_p1 }
  0x85   : > { %6199 = shalt.err (!%p6196_p2)
}
  0x86   : > { %s6200_s15 = scalar_lea.vmem %s438_s14, 16  ;;  %s6207_s22 = scalar_lea.vmem %s438_s14, 32 }
  0x87   : > { %p6201_p5 = scmp.ne.s32.totalorder %s438_s14, %s6200_s15  ;;  %p6208_p10 = scmp.lt.s32.totalorder %s438_s14, %s438_s14 }
  0x88   : > { %p6209_p11 = scmp.lt.s32.totalorder %s6207_s22, %s6200_s15 }
  0x89   : > { %p6203_p7 = pnand %p6201_p5, %p6543_p8 }
  0x8a   : > { %p6210_p12 = por %p6209_p11, %p6208_p10 }
  0x8b   : > { %p6204_p9 = pneg %p6203_p7 }
  0x8d   : > { %p6211_p4 = pnand %p6210_p12, %p6204_p9 }
  0x8f   : > { %6214 = shalt.err (!%p6211_p4)
}
  0x90   : > { %5717 = dma.hbm_to_vmem [thread:$0]  (!%p6529_p6), %s10635_s5, 16, %s438_s14, [#allocation9]  }
  0x91   : > { %s6392_s29 = smov [#allocation13]   ;;  %s6393_s2 = smov [#allocation14]  }
  0x92   : > { %s467_s8 = sshll.u32 %s6392_s29, 4  ;;  %s480_s4 = sshll.u32 %s6393_s2, 4  ;;  %s468_s8 = int_to_ptr.vmem [resolvable:$true] %s467_s8  ;;  %s481_s4 = int_to_ptr.vmem [resolvable:$true] %s480_s4 }
  0x93   : > { %s6215_s12 = scalar_lea.hbm %s10639_s9, 32 }
  0x94   : > { %p6216_p13 = scmp.ne.s32.totalorder %s10639_s9, %s6215_s12  ;;  %p6222_p3 = scmp.lt.u32.totalorder %s6215_s12, %s10639_s9 }
  0x96   : > { %p6218_p0 = pnand %p6216_p13, %p6543_p8 }
  0x98   : > { %p6219_p1 = pneg %p6218_p0 }
  0x9a   : > { %p6224_p2 = pnand %p6222_p3, %p6219_p1 }
  0x9c   : > { %6227 = shalt.err (!%p6224_p2)
}
  0x9d   : > { %s6228_s14 = scalar_lea.vmem %s468_s8, 32  ;;  %p6236_p10 = scmp.lt.s32.totalorder %s468_s8, %s468_s8 }
  0x9e   : > { %p6229_p5 = scmp.ne.s32.totalorder %s468_s8, %s6228_s14  ;;  %p6237_p11 = scmp.lt.s32.totalorder %s6228_s14, %s6228_s14 }
  0xa0   : > { %p6231_p7 = pnand %p6229_p5, %p6543_p8  ;;  %p6238_p12 = por %p6237_p11, %p6236_p10 }
  0xa2   : > { %p6232_p9 = pneg %p6231_p7 }
  0xa4   : > { %p6239_p4 = pnand %p6238_p12, %p6232_p9 }
  0xa6   : > { %6242 = shalt.err (!%p6239_p4)
}
  0xa7   : > { %5723 = dma.hbm_to_vmem [thread:$0]  (!%p6529_p6), %s10639_s9, 32, %s468_s8, [#allocation12]  }
  0xa8   : > { %s6243_s29 = scalar_lea.hbm %s10641_s11, 1024 }
  0xa9   : > { %p6244_p13 = scmp.ne.s32.totalorder %s10641_s11, %s6243_s29  ;;  %p6250_p3 = scmp.lt.u32.totalorder %s6243_s29, %s10641_s11 }
  0xab   : > { %p6246_p0 = pnand %p6244_p13, %p6543_p8 }
  0xad   : > { %p6247_p1 = pneg %p6246_p0 }
  0xaf   : > { %p6252_p2 = pnand %p6250_p3, %p6247_p1 }
  0xb1   : > { %6255 = shalt.err (!%p6252_p2)
}
  0xb2   : > { %s6256_s13 = scalar_lea.vmem %s481_s4, 1024  ;;  %p6264_p10 = scmp.lt.s32.totalorder %s481_s4, %s481_s4 }
  0xb3   : > { %p6257_p5 = scmp.ne.s32.totalorder %s481_s4, %s6256_s13  ;;  %p6265_p11 = scmp.lt.s32.totalorder %s6256_s13, %s6256_s13 }
  0xb5   : > { %p6259_p7 = pnand %p6257_p5, %p6543_p8  ;;  %p6266_p12 = por %p6265_p11, %p6264_p10 }
  0xb7   : > { %p6260_p9 = pneg %p6259_p7 }
  0xb9   : > { %p6267_p4 = pnand %p6266_p12, %p6260_p9 }
  0xbb   : > { %6270 = shalt.err (!%p6267_p4)
}
  0xbc   : > { %s6394_s8 = smov 128   ;;  %s6395_s26 = smov 8  }
  0xbd   : > { %5726 = dma.hbm_to_vmem [thread:$0]  (!%p6529_p6), %s10641_s11, 1024, %s481_s4, [#allocation15], %s6394_s8, %s6394_s8, %s6395_s26  }
  0xbe   : > { %s5019_s28 = sadd.s32 4294967294, %s6383_s21   ;;  %s6689_s14 = sadd.s32 1, %s6383_s21  }
  0xbf   : > { %s68_s15 = sadd.s32 1, %s6379_s20  ;;  %s65_s22 = ssub.s32 %s6383_s21, %s6689_s14 }
  0xc0   : > { %p75_p8 = scmp.ne.s32.totalorder %s6379_s20, %s6375_s19  ;;  %p66_p13 = scmp.eq.s32.totalorder %s65_s22, 0 }
  0xc1   : > { %p76_p0 = scmp.eq.s32.totalorder %s6383_s21, 0  ;;  %p81_p1 = scmp.ne.s32.totalorder %s6375_s19, %s6371_s18 }
  0xc2   : > { %p378_p3 = scmp.eq.s32.totalorder %s6511_s24, 1  ;;  %p10962_p5 = scmp.eq.s32.totalorder %s6511_s24, 0 }
  0xc3   : > { %s6701_s30 = scalar_select %p66_p13, %s6379_s20, %s68_s15  }
  0xc4   : > { %p77_p2 = por %p76_p0, %p75_p8  ;;  %p6705_p7 = por %p10962_p5, %p81_p1 }
  0xc5   : > { %p6709_p6 = por %p378_p3, %p75_p8  ;;  %p384_p9 = scmp.eq.s32.totalorder %s5019_s28, 1 }
  0xc6   : > { %p5742_p10 = scmp.lt.s32.totalorder %s6383_s21, 2  ;;  %s513_s27 = sand.u32 1, %s6379_s20  }
  0xc7   : > { %s10964_s4 = scalar_select %p6709_p6, 1, 0 }
  0xc8   : > { %p6715_p11 = por %p384_p9, %p81_p1  ;;  %s5029_s2 = sshll.u32 %s513_s27, 7 }
  0xc9   : > { %s5157_s7 = sshll.u32 %s6383_s21, 11  ;;  %s517_s16 = scalar_lea.vmem [#allocation2], %s5029_s2 }
  0xca   : > { %s10965_s29 = scalar_select %p6715_p11, 1, 0 }
  0xcb   : > { %s6723_s13 = scalar_lea.hbm %s10631_s1, %s5157_s7  ;;  %s525_s17 = sshll.u32 %s517_s16, 4  ;;  %s6729_s17 = int_to_ptr.vmem [resolvable:$true] %s525_s17 }
  0xcc   : > { %p6725_p12 = pnand %p5742_p10, %p77_p2  ;;  %s6731_s15 = scalar_lea.sflag [#allocation3], %s513_s27 }
  0xcd   : > { %s6271_s22 = scalar_lea.hbm %s6723_s13, 2048  ;;  %s6276_s10 = scalar_lea.hbm %s10631_s1, 4096 }
  0xce   : > { %p6272_p4 = scmp.ne.s32.totalorder %s6723_s13, %s6271_s22  ;;  %p6273_p8 = pneg %p6725_p12 }
  0xcf   : > { %p6277_p1 = scmp.lt.u32.totalorder %s6723_s13, %s10631_s1  ;;  %p6278_p3 = scmp.lt.u32.totalorder %s6276_s10, %s6271_s22 }
  0xd0   : > { %p6274_p13 = pnand %p6273_p8, %p6272_p4  ;;  %p6280_p5 = scmp.lt.u32.totalorder %s6271_s22, %s6723_s13 }
  0xd1   : > { %p6279_p2 = por %p6278_p3, %p6277_p1 }
  0xd2   : > { %p6275_p0 = pneg %p6274_p13 }
  0xd3   : > { %p6281_p9 = por %p6280_p5, %p6279_p2 }
  0xd5   : > { %p6282_p10 = pnand %p6281_p9, %p6275_p0 }
  0xd7   : > { %6285 = shalt.err (!%p6282_p10)
}
  0xd8   : > { %s6286_s27 = scalar_lea.vmem %s6729_s17, 2048  ;;  %s6396_s2 = smov [#allocation2]  }
  0xd9   : > { %p6287_p4 = scmp.ne.s32.totalorder %s6729_s17, %s6286_s27  ;;  %s6291_s7 = sshll.u32 %s6396_s2, 4  ;;  %s6292_s7 = int_to_ptr.vmem [resolvable:$false] %s6291_s7 }
  0xda   : > { %s6293_s12 = scalar_lea.vmem %s6292_s7, 4096  ;;  %p6294_p6 = scmp.lt.s32.totalorder %s6729_s17, %s6292_s7 }
  0xdb   : > { %p6289_p13 = pnand %p6287_p4, %p6273_p8  ;;  %p6295_p1 = scmp.lt.s32.totalorder %s6293_s12, %s6286_s27 }
  0xdd   : > { %p6290_p11 = pneg %p6289_p13  ;;  %p6296_p3 = por %p6295_p1, %p6294_p6 }
  0xdf   : > { %p6297_p2 = pnand %p6296_p3, %p6290_p11 }
  0xe1   : > { %6300 = shalt.err (!%p6297_p2)
}
  0xe2   : > { %5730 = dma.hbm_to_vmem [thread:$0]  (!%p6725_p12), %s6723_s13, 2048, %s6729_s17, %s6731_s15, %s6394_s8, %s6394_s8, %s6395_s26  }
  0xe3   : > { %p10967_p8 = scmp.ne.s32.totalorder %s10957_s25, 0 }
  0xe5   : > { %537 = sbr.rel (%p10967_p8) target bundleno = 3044 (0xbe4), region = 80 }
  0xec   : > { %s6765_s22 = sand.u32 1, %s6375_s19  }
  0xed   : > { %s5034_s10 = sshll.u32 %s6765_s22, 7  ;;  %s540_s16 = scalar_lea.sflag [#allocation3], %s6765_s22 }
  0xee   : > { %s6771_s28 = scalar_lea.vmem [#allocation2], %s5034_s10 }
  0xef   : > { %6346 = dma.done.wait (%p6705_p7), %s540_s16, 2048  }
  0xf0   : > { %6348 = vsyncadd (%p6705_p7), %s540_s16, 4294965248  ;;  %p10968_p6 = scmp.eq.s32.totalorder %s6511_s24, 0 }
  0xf2   : > { %6350 = dma.done.wait (%p10968_p6), [#allocation6], 32   ;;  %p10969_p11 = pmov %p10968_p6 }
  0xf3   : > { %p10970_p12 = pmov %p10968_p6 }
  0xf4   : > { %6352 = vsyncadd (%p10969_p11), [#allocation6], 4294967264 }
  0xf5   : > { %6354 = dma.done.wait (%p10970_p12), [#allocation9], 32   ;;  %p10971_p0 = pmov %p10968_p6 }
  0xf7   : > { %6356 = vsyncadd (%p10971_p0), [#allocation9], 4294967264  ;;  %p10972_p5 = pmov %p10971_p0 }
  0xf8   : > { %p10973_p9 = pmov %p10971_p0 }
  0xf9   : > { %6358 = dma.done.wait (%p10972_p5), [#allocation12], 4128  }
  0xfa   : > { %6360 = vsyncadd (%p10973_p9), [#allocation12], 4294963168  ;;  %p10974_p7 = pmov %p10971_p0 }
  0xfb   : > { %p10975_p10 = pmov %p10971_p0 }
  0xfc   : > { %6362 = dma.done.wait (%p10974_p7), [#allocation15], 1024  }
  0xfd   : > { %6364 = vsyncadd (%p10975_p10), [#allocation15], 4294966272  ;;  %vm667_vm0 = vcmask 523264   ;;  %v6794_v0 = vld [vmem:[%s6771_s28 + $0x10] sm:$0xff]  ;;  %v6797_v1 = vld [vmem:[%s6771_s28] sm:$0xff]  ;;  %s5043_s25 = sshll.u32 %s6511_s24, 1 }
  0xfe   : > { %v6800_v2 = vld [vmem:[%s6771_s28 + $0x18] sm:$0xff]  ;;  %v929_v3 = vsel %vm667_vm0, %v6794_v0, 0.0  ;;  %v923_v4 = vsel %vm667_vm0, %v6797_v1, 0.0  ;;  %v6807_v5 = vld [vmem:[%s6771_s28 + $0x8] sm:$0xff]  ;;  %v6817_v9 = vld [vmem:[%s6771_s28 + $0x20] sm:$0xff]  ;;  %p625_p4 = scmp.lt.s32.totalorder %s5043_s25, 3 }
  0xff   : > { %930 = vadd.xlane.f32.xlu1 %v929_v3  ;;  %924 = vadd.xlane.f32.xlu0 %v923_v4  ;;  %v932_v6 = vsel %vm667_vm0, %v6800_v2, 0.0  ;;  %v926_v7 = vsel %vm667_vm0, %v6807_v5, 0.0  ;;  %v6814_v8 = vld [vmem:[%s6771_s28 + $0x28] sm:$0xff]  ;;  %v935_v11 = vsel %vm667_vm0, %v6817_v9, 0.0  ;;  %v6825_v12 = vld [vmem:[%s6771_s28 + $0x38] sm:$0xff]  ;;  %v6828_v13 = vld [vmem:[%s6771_s28 + $0x30] sm:$0xff] }
 0x100   : > { %v938_v10 = vsel %vm667_vm0, %v6814_v8, 0.0  ;;  %v944_v14 = vsel %vm667_vm0, %v6825_v12, 0.0  ;;  %v941_v15 = vsel %vm667_vm0, %v6828_v13, 0.0  ;;  %v6835_v16 = vld [vmem:[%s6771_s28 + $0x48] sm:$0xff]  ;;  %v6838_v17 = vld [vmem:[%s6771_s28 + $0x40] sm:$0xff]  ;;  %s11510_s25 = smov (!%p625_p4, %s5043_s25), 3  ;;  %vm9957_vm9 = vmpackc.low %vm667_vm0, %vm667_vm0 }
 0x101   : > { %v950_v18 = vsel %vm667_vm0, %v6835_v16, 0.0  ;;  %v947_v19 = vsel %vm667_vm0, %v6838_v17, 0.0  ;;  %v6845_v20 = vld [vmem:[%s6771_s28 + $0x58] sm:$0xff]  ;;  %v6848_v21 = vld [vmem:[%s6771_s28 + $0x50] sm:$0xff]  ;;  %s5158_s8 = sshll.u32 %s11510_s25, 6  ;;  %v6855_v24 = vld [vmem:[%s6771_s28 + $0x68] sm:$0xff] }
 0x102   : > { %v956_v22 = vsel %vm667_vm0, %v6845_v20, 0.0  ;;  %v953_v23 = vsel %vm667_vm0, %v6848_v21, 0.0  ;;  %v6858_v25 = vld [vmem:[%s6771_s28 + $0x60] sm:$0xff]  ;;  %s10976_s0 = sld [smem:[#allocation132_spill]]  ;;  %v962_v26 = vsel %vm667_vm0, %v6855_v24, 0.0  ;;  %v6873_v29 = vld [vmem:[%s6771_s28 + $0x70] sm:$0xff] }
 0x103   : > { %933 = vadd.xlane.f32.xlu1 %v932_v6  ;;  %927 = vadd.xlane.f32.xlu0 %v926_v7  ;;  %v959_v27 = vsel %vm667_vm0, %v6858_v25, 0.0  ;;  %v965_v31 = vsel %vm667_vm0, %v6873_v29, 0.0  ;;  %v6883_v33 = vld [vmem:[%s6771_s28 + $0x78] sm:$0xff]  ;;  %s6399_s17 = smov 64   ;;  %s10993_s2 = sld [smem:[#allocation137_spill]] }
 0x104   : > { %v968_v35 = vsel %vm667_vm0, %v6883_v33, 0.0  ;;  %s11036_s27 = sld [smem:[#allocation135_spill]]  ;;  %s11044_s16 = sld [smem:[#allocation136_spill]] }
 0x105   : > { %s11329_s7 = sld [smem:[#allocation138_spill]]  ;;  %s11499_s23 = sld [smem:[#allocation140_spill]] }
 0x106   : > { %s11500_s28 = sld [smem:[#allocation141_spill]]  ;;  %p11501_p1 = scmp.ne.s32.totalorder %s10964_s4, 0 }
 0x107   : > { %939 = vadd.xlane.f32.xlu1 %v938_v10  ;;  %936 = vadd.xlane.f32.xlu0 %v935_v11  ;;  %s6407_s26 = smov [#allocation16]  }
 0x108   : > { %s6863_s13 = scalar_lea.vmem %s10976_s0, %s5158_s8 }
 0x109   : > { %v6870_v28 = vld [vmem:[%s6863_s13] sm:$0xff]  ;;  %v6880_v32 = vld [vmem:[%s6863_s13 + $0x8] sm:$0xff]  ;;  %v6890_v36 = vld [vmem:[%s6863_s13 + $0x18] sm:$0xff] }
 0x10a   : > { %v668_v30 = vsel %vm667_vm0, %v6870_v28, 0.0  ;;  %v671_v34 = vsel %vm667_vm0, %v6880_v32, 0.0  ;;  %v6893_v37 = vld [vmem:[%s6863_s13 + $0x10] sm:$0xff]  ;;  %v677_v38 = vsel %vm667_vm0, %v6890_v36, 0.0  ;;  %v6900_v40 = vld [vmem:[%s6863_s13 + $0x28] sm:$0xff]  ;;  %v6903_v41 = vld [vmem:[%s6863_s13 + $0x20] sm:$0xff] }
 0x10b   : > { %945 = vadd.xlane.f32.xlu1 %v944_v14  ;;  %942 = vadd.xlane.f32.xlu0 %v941_v15  ;;  %v674_v39 = vsel %vm667_vm0, %v6893_v37, 0.0  ;;  %v683_v42 = vsel %vm667_vm0, %v6900_v40, 0.0  ;;  %v680_v43 = vsel %vm667_vm0, %v6903_v41, 0.0  ;;  %v6910_v44 = vld [vmem:[%s6863_s13 + $0x30] sm:$0xff]  ;;  %v6915_v46 = vld [vmem:[%s6863_s13 + $0x38] sm:$0xff]  ;;  %v6920_v48 = vld [vmem:[%s6863_s13 + $0x40] sm:$0xff] }
 0x10c   : > { %v686_v45 = vsel %vm667_vm0, %v6910_v44, 0.0  ;;  %v689_v47 = vsel %vm667_vm0, %v6915_v46, 0.0  ;;  %v692_v49 = vsel %vm667_vm0, %v6920_v48, 0.0  ;;  %v6925_v50 = vld [vmem:[%s6863_s13 + $0x48] sm:$0xff]  ;;  %v6930_v52 = vld [vmem:[%s6863_s13 + $0x50] sm:$0xff]  ;;  %v6935_v54 = vld [vmem:[%s6863_s13 + $0x58] sm:$0xff] }
 0x10d   : > { %v695_v51 = vsel %vm667_vm0, %v6925_v50, 0.0  ;;  %v698_v53 = vsel %vm667_vm0, %v6930_v52, 0.0  ;;  %v701_v55 = vsel %vm667_vm0, %v6935_v54, 0.0  ;;  %v6940_v56 = vld [vmem:[%s6863_s13 + $0x60] sm:$0xff]  ;;  %v6945_v58 = vld [vmem:[%s6863_s13 + $0x68] sm:$0xff]  ;;  %v6950_v60 = vld [vmem:[%s6863_s13 + $0x70] sm:$0xff] }
 0x10e   : > { %v704_v57 = vsel %vm667_vm0, %v6940_v56, 0.0  ;;  %v707_v59 = vsel %vm667_vm0, %v6945_v58, 0.0  ;;  %v710_v61 = vsel %vm667_vm0, %v6950_v60, 0.0  ;;  %v6955_v62 = vld [vmem:[%s6863_s13 + $0x78] sm:$0xff] }
 0x10f   : > { %951 = vadd.xlane.f32.xlu1 %v950_v18  ;;  %948 = vadd.xlane.f32.xlu0 %v947_v19  ;;  %v713_v63 = vsel %vm667_vm0, %v6955_v62, 0.0 }
 0x113   : > { %957 = vadd.xlane.f32.xlu1 %v956_v22  ;;  %954 = vadd.xlane.f32.xlu0 %v953_v23 }
 0x117   : > { %963 = vadd.xlane.f32.xlu1 %v962_v26  ;;  %960 = vadd.xlane.f32.xlu0 %v959_v27 }
 0x11b   : > { %669 = vadd.xlane.f32.xlu1 %v668_v30  ;;  %966 = vadd.xlane.f32.xlu0 %v965_v31 }
 0x11f   : > { %672 = vadd.xlane.f32.xlu1 %v671_v34  ;;  %969 = vadd.xlane.f32.xlu0 %v968_v35 }
 0x123   : > { %678 = vadd.xlane.f32.xlu1 %v677_v38  ;;  %675 = vadd.xlane.f32.xlu0 %v674_v39 }
 0x127   : > { %684 = vadd.xlane.f32.xlu1 %v683_v42  ;;  %681 = vadd.xlane.f32.xlu0 %v680_v43 }
 0x12b   : > { %687 = vadd.xlane.f32.xlu1 %v686_v45 }
 0x12f   : > { %690 = vadd.xlane.f32.xlu1 %v689_v47 }
 0x133   : > { %693 = vadd.xlane.f32.xlu1 %v692_v49 }
 0x137   : > { %696 = vadd.xlane.f32.xlu1 %v695_v51 }
 0x13b   : > { %699 = vadd.xlane.f32.xlu1 %v698_v53 }
 0x13f   : > { %702 = vadd.xlane.f32.xlu1 %v701_v55 }
 0x143   : > { %705 = vadd.xlane.f32.xlu1 %v704_v57 }
 0x147   : > { %708 = vadd.xlane.f32.xlu1 %v707_v59 }
 0x14b   : > { %711 = vadd.xlane.f32.xlu1 %v710_v61 }
 0x14f   : > { %714 = vadd.xlane.f32.xlu1 %v713_v63 }
 0x18c   : > { %v931_v3 = vpop.xlane.xlu1 %930  ;;  %v925_v4 = vpop.xlane.xlu0 %924 }
 0x18d   : > { %v973_v6 = vmul.f32 0.015625, %v931_v3  ;;  %v971_v7 = vmul.f32 0.015625, %v925_v4 }
 0x18f   : > { %v6960_v10 = vsub.f32 %v6797_v1, %v971_v7  ;;  %v6963_v15 = vsub.f32 %v6794_v0, %v973_v6 }
 0x190   : > { %v934_v11 = vpop.xlane.xlu1 %933  ;;  %v928_v14 = vpop.xlane.xlu0 %927 }
 0x191   : > { %v974_v18 = vmul.f32 0.015625, %v934_v11  ;;  %v972_v19 = vmul.f32 0.015625, %v928_v14  ;;  %v1003_v22 = vmul.f32 %v6960_v10, %v6960_v10  ;;  %v1005_v34 = vmul.f32 %v6963_v15, %v6963_v15 }
 0x193   : > { %v6968_v23 = vsub.f32 %v6807_v5, %v972_v19  ;;  %v1019_v26 = vsel %vm667_vm0, %v1003_v22, 0.0  ;;  %v6972_v1 = vsub.f32 %v6800_v2, %v974_v18  ;;  %v1025_v43 = vsel %vm667_vm0, %v1005_v34, 0.0 }
 0x194   : > { %v940_v27 = vpop.xlane.xlu1 %939  ;;  %1020 = vadd.xlane.f32.xlu0 %v1019_v26  ;;  %v937_v30 = vpop.xlane.xlu0 %936 }
 0x195   : > { %v1004_v0 = vmul.f32 %v6968_v23, %v6968_v23  ;;  %v975_v31 = vmul.f32 0.015625, %v937_v30  ;;  %v976_v38 = vmul.f32 0.015625, %v940_v27  ;;  %v1006_v2 = vmul.f32 %v6972_v1, %v6972_v1 }
 0x197   : > { %v1022_v35 = vsel %vm667_vm0, %v1004_v0, 0.0  ;;  %v6980_v42 = vsub.f32 %v6817_v9, %v975_v31  ;;  %v6986_v45 = vsub.f32 %v6814_v8, %v976_v38  ;;  %v1028_v51 = vsel %vm667_vm0, %v1006_v2, 0.0 }
 0x198   : > { %v946_v5 = vpop.xlane.xlu1 %945  ;;  %1023 = vadd.xlane.f32.xlu0 %v1022_v35  ;;  %v943_v39 = vpop.xlane.xlu0 %942 }
 0x199   : > { %v977_v53 = vmul.f32 0.015625, %v943_v39  ;;  %v1007_v55 = vmul.f32 %v6980_v42, %v6980_v42  ;;  %v978_v57 = vmul.f32 0.015625, %v946_v5  ;;  %v1008_v59 = vmul.f32 %v6986_v45, %v6986_v45 }
 0x19b   : > { %v6994_v8 = vsub.f32 %v6828_v13, %v977_v53  ;;  %v1031_v3 = vsel %vm667_vm0, %v1007_v55, 0.0  ;;  %v7001_v6 = vsub.f32 %v6825_v12, %v978_v57  ;;  %v1034_v11 = vsel %vm667_vm0, %v1008_v59, 0.0 }
 0x19c   : > { %v952_v47 = vpop.xlane.xlu1 %951  ;;  %1026 = vadd.xlane.f32.xlu0 %v1025_v43  ;;  %v949_v49 = vpop.xlane.xlu0 %948 }
 0x19d   : > { %v979_v19 = vmul.f32 0.015625, %v949_v49  ;;  %v1009_v13 = vmul.f32 %v6994_v8, %v6994_v8  ;;  %v980_v12 = vmul.f32 0.015625, %v952_v47  ;;  %v1010_v30 = vmul.f32 %v7001_v6, %v7001_v6 }
 0x19f   : > { %v7015_v31 = vsub.f32 %v6838_v17, %v979_v19  ;;  %v1037_v34 = vsel %vm667_vm0, %v1009_v13, 0.0  ;;  %v7025_v5 = vsub.f32 %v6835_v16, %v980_v12  ;;  %v1040_v47 = vsel %vm667_vm0, %v1010_v30, 0.0 }
 0x1a0   : > { %v958_v9 = vpop.xlane.xlu1 %957  ;;  %1029 = vadd.xlane.f32.xlu0 %v1028_v51  ;;  %v955_v61 = vpop.xlane.xlu0 %954 }
 0x1a1   : > { %v982_v63 = vmul.f32 0.015625, %v958_v9  ;;  %v981_v43 = vmul.f32 0.015625, %v955_v61  ;;  %v1012_v57 = vmul.f32 %v7025_v5, %v7025_v5 }
 0x1a3   : > { %v6998_v4 = vsub.f32 %v6845_v20, %v982_v63  ;;  %v7037_v55 = vsub.f32 %v6848_v21, %v981_v43 }
 0x1a4   : > { %v964_v7 = vpop.xlane.xlu1 %963  ;;  %1032 = vadd.xlane.f32.xlu0 %v1031_v3  ;;  %v961_v22 = vpop.xlane.xlu0 %960 }
 0x1a5   : > { %v984_v14 = vmul.f32 0.015625, %v964_v7  ;;  %v1014_v18 = vmul.f32 %v6998_v4, %v6998_v4  ;;  %v983_v63 = vmul.f32 0.015625, %v961_v22  ;;  %v1013_v22 = vmul.f32 %v7037_v55, %v7037_v55 }
 0x1a7   : > { %v7009_v26 = vsub.f32 %v6855_v24, %v984_v14  ;;  %v1052_v20 = vsel %vm667_vm0, %v1014_v18, 0.0  ;;  %v7050_v19 = vsub.f32 %v6858_v25, %v983_v63  ;;  %v1049_v25 = vsel %vm667_vm0, %v1013_v22, 0.0 }
 0x1a8   : > { %1035 = vadd.xlane.f32.xlu0 %v1034_v11  ;;  %1053 = vadd.xlane.f32.xlu1 %v1052_v20  ;;  %v670_v27 = vpop.xlane.xlu1 %669  ;;  %v967_v2 = vpop.xlane.xlu0 %966  ;;  %v1046_v11 = vsel %vm667_vm0, %v1012_v57, 0.0 }
 0x1a9   : > { %v717_v0 = vmul.f32 0.015625, %v670_v27  ;;  %v1016_v35 = vmul.f32 %v7009_v26, %v7009_v26  ;;  %v985_v14 = vmul.f32 0.015625, %v967_v2 }
 0x1ab   : > { %v7021_v24 = vsub.f32 %v6870_v28, %v717_v0  ;;  %v1058_v38 = vsel %vm667_vm0, %v1016_v35, 0.0  ;;  %v1011_v28 = vmul.f32 %v7015_v31, %v7015_v31  ;;  %v7061_v27 = vsub.f32 %v6873_v29, %v985_v14 }
 0x1ac   : > { %1038 = vadd.xlane.f32.xlu0 %v1037_v34  ;;  %1059 = vadd.xlane.f32.xlu1 %v1058_v38  ;;  %v673_v39 = vpop.xlane.xlu1 %672  ;;  %v1015_v35 = vmul.f32 %v7050_v19, %v7050_v19 }
 0x1ad   : > { %v718_v17 = vmul.f32 0.015625, %v673_v39  ;;  %v749_v49 = vmul.f32 %v7021_v24, %v7021_v24  ;;  %v1043_v59 = vsel %vm667_vm0, %v1011_v28, 0.0  ;;  %v1017_v39 = vmul.f32 %v7061_v27, %v7061_v27 }
 0x1ae   : > { %v1055_v2 = vsel %vm667_vm0, %v1015_v35, 0.0 }
 0x1af   : > { %v7033_v51 = vsub.f32 %v6880_v32, %v718_v17  ;;  %v765_v16 = vsel %vm667_vm0, %v749_v49, 0.0  ;;  %v970_v32 = vpop.xlane.xlu0 %969  ;;  %v1061_v28 = vsel %vm667_vm0, %v1017_v39, 0.0 }
 0x1b0   : > { %1041 = vadd.xlane.f32.xlu0 %v1040_v47  ;;  %766 = vadd.xlane.f32.xlu1 %v765_v16  ;;  %v679_v53 = vpop.xlane.xlu1 %678  ;;  %v986_v34 = vmul.f32 0.015625, %v970_v32 }
 0x1b1   : > { %v720_v9 = vmul.f32 0.015625, %v679_v53  ;;  %v750_v61 = vmul.f32 %v7033_v51, %v7033_v51 }
 0x1b2   : > { %v7072_v43 = vsub.f32 %v6883_v33, %v986_v34 }
 0x1b3   : > { %v7045_v3 = vsub.f32 %v6890_v36, %v720_v9  ;;  %v768_v7 = vsel %vm667_vm0, %v750_v61, 0.0  ;;  %v676_v30 = vpop.xlane.xlu0 %675 }
 0x1b4   : > { %1044 = vadd.xlane.f32.xlu0 %v1043_v59  ;;  %769 = vadd.xlane.f32.xlu1 %v768_v7  ;;  %v685_v21 = vpop.xlane.xlu1 %684  ;;  %v719_v17 = vmul.f32 0.015625, %v676_v30  ;;  %v1018_v33 = vmul.f32 %v7072_v43, %v7072_v43 }
 0x1b5   : > { %v722_v18 = vmul.f32 0.015625, %v685_v21  ;;  %v752_v13 = vmul.f32 %v7045_v3, %v7045_v3 }
 0x1b6   : > { %v7080_v53 = vsub.f32 %v6893_v37, %v719_v17  ;;  %v1064_v63 = vsel %vm667_vm0, %v1018_v33, 0.0  ;;  %v1257_v33 = vld [vmem:[#allocation11 + $0x10] sm:$0xff] }
 0x1b7   : > { %v7057_v36 = vsub.f32 %v6900_v40, %v722_v18  ;;  %v774_v20 = vsel %vm667_vm0, %v752_v13, 0.0  ;;  %v682_v47 = vpop.xlane.xlu0 %681 }
 0x1b8   : > { %1047 = vadd.xlane.f32.xlu0 %v1046_v11  ;;  %775 = vadd.xlane.f32.xlu1 %v774_v20  ;;  %v688_v12 = vpop.xlane.xlu1 %687  ;;  %v721_v9 = vmul.f32 0.015625, %v682_v47  ;;  %v751_v37 = vmul.f32 %v7080_v53, %v7080_v53  ;;  %v1256_v47 = vld [vmem:[#allocation11 + $0x8] sm:$0xff] }
 0x1b9   : > { %v754_v0 = vmul.f32 %v7057_v36, %v7057_v36  ;;  %v723_v61 = vmul.f32 0.015625, %v688_v12 }
 0x1ba   : > { %v7089_v32 = vsub.f32 %v6903_v41, %v721_v9  ;;  %v771_v11 = vsel %vm667_vm0, %v751_v37, 0.0  ;;  %v1261_v37 = vld [vmem:[#allocation11 + $0x30] sm:$0xff] }
 0x1bb   : > { %v780_v40 = vsel %vm667_vm0, %v754_v0, 0.0  ;;  %v7094_v21 = vsub.f32 %v6910_v44, %v723_v61  ;;  %v1259_v61 = vld [vmem:[#allocation11 + $0x20] sm:$0xff] }
 0x1bc   : > { %1050 = vadd.xlane.f32.xlu0 %v1049_v25  ;;  %781 = vadd.xlane.f32.xlu1 %v780_v40  ;;  %v691_v38 = vpop.xlane.xlu1 %690  ;;  %v753_v18 = vmul.f32 %v7089_v32, %v7089_v32 }
 0x1bd   : > { %v724_v29 = vmul.f32 0.015625, %v691_v38  ;;  %v755_v12 = vmul.f32 %v7094_v21, %v7094_v21 }
 0x1be   : > { %v777_v22 = vsel %vm667_vm0, %v753_v18, 0.0  ;;  %v1263_v18 = vld [vmem:[#allocation11 + $0x40] sm:$0xff] }
 0x1bf   : > { %v7076_v49 = vsub.f32 %v6915_v46, %v724_v29  ;;  %v783_v30 = vsel %vm667_vm0, %v755_v12, 0.0 }
 0x1c0   : > { %1056 = vadd.xlane.f32.xlu0 %v1055_v2  ;;  %v694_v16 = vpop.xlane.xlu1 %693 }
 0x1c1   : > { %v756_v57 = vmul.f32 %v7076_v49, %v7076_v49  ;;  %v725_v14 = vmul.f32 0.015625, %v694_v16  ;;  %v1255_v16 = vld [vmem:[#allocation11] sm:$0xff] }
 0x1c2   : > { %v5507_v9 = vpack.c.bf16 %v1257_v33, %v1255_v16  ;;  %v1276_v33 = vld [vmem:[#allocation11 + $0xa8] sm:$0xff] }
 0x1c3   : > { %v786_v59 = vsel %vm667_vm0, %v756_v57, 0.0  ;;  %v7102_v41 = vsub.f32 %v6920_v48, %v725_v14  ;;  %v1266_v14 = vld [vmem:[#allocation11 + $0x58] sm:$0xff] }
 0x1c4   : > { %1062 = vadd.xlane.f32.xlu0 %v1061_v28  ;;  %787 = vadd.xlane.f32.xlu1 %v786_v59  ;;  %v697_v46 = vpop.xlane.xlu1 %696  ;;  %v1258_v28 = vld [vmem:[#allocation11 + $0x18] sm:$0xff]  ;;  %v1260_v59 = vld [vmem:[#allocation11 + $0x28] sm:$0xff] }
 0x1c5   : > { %v726_v20 = vmul.f32 0.015625, %v697_v46  ;;  %v757_v0 = vmul.f32 %v7102_v41, %v7102_v41  ;;  %v5505_v57 = vpack.c.bf16 %v1258_v28, %v1256_v47  ;;  %v1262_v46 = vld [vmem:[#allocation11 + $0x38] sm:$0xff]  ;;  %v1271_v47 = vld [vmem:[#allocation11 + $0x80] sm:$0xff]  ;;  %v1273_v28 = vld [vmem:[#allocation11 + $0x90] sm:$0xff] }
 0x1c7   : > { %v7108_v44 = vsub.f32 %v6925_v50, %v726_v20  ;;  %v789_v35 = vsel %vm667_vm0, %v757_v0, 0.0  ;;  %5506 = vmatprep.subr.bf16.mxu0 %v5505_v57  ;;  %v1265_v20 = vld [vmem:[#allocation11 + $0x50] sm:$0xff]  ;;  %v5523_v57 = vpack.c.bf16 %v1273_v28, %v1271_v47  ;;  %v1283_v47 = vld [vmem:[#allocation11 + $0xe0] sm:$0xff] }
 0x1c8   : > { %1065 = vadd.xlane.f32.xlu0 %v1064_v63  ;;  %v700_v7 = vpop.xlane.xlu1 %699  ;;  %5508 = vmatpush1.bf16.msra.mxu0 %v5507_v9  ;;  %v5509_v63 = vpack.c.bf16 %v1262_v46, %v1260_v59  ;;  %v5515_v12 = vpack.c.bf16 %v1265_v20, %v1263_v18  ;;  %v1278_v9 = vld [vmem:[#allocation11 + $0xb8] sm:$0xff]  ;;  %v1275_v59 = vld [vmem:[#allocation11 + $0xa0] sm:$0xff]  ;;  %v1285_v28 = vld [vmem:[#allocation11 + $0xf0] sm:$0xff] }
 0x1c9   : > { %v727_v25 = vmul.f32 0.015625, %v700_v7  ;;  %v758_v40 = vmul.f32 %v7108_v44, %v7108_v44  ;;  %v5511_v7 = vpack.c.bf16 %v1261_v37, %v1259_v61  ;;  %v5525_v61 = vpack.c.bf16 %v1278_v9, %v1276_v33  ;;  %v1282_v20 = vld [vmem:[#allocation11 + $0xd8] sm:$0xff] }
 0x1ca   : > { %5510 = vmatprep.subr.bf16.mxu0 %v5509_v63  ;;  %v1277_v63 = vld [vmem:[#allocation11 + $0xb0] sm:$0xff]  ;;  %v5535_v33 = vpack.c.bf16 %v1285_v28, %v1283_v47 }
 0x1cb   : > { %v7114_v48 = vsub.f32 %v6930_v52, %v727_v25  ;;  %v792_v50 = vsel %vm667_vm0, %v758_v40, 0.0  ;;  %v1270_v25 = vld [vmem:[#allocation11 + $0x78] sm:$0xff]  ;;  %v1272_v40 = vld [vmem:[#allocation11 + $0x88] sm:$0xff] }
 0x1cc   : > { %772 = vadd.xlane.f32.xlu0 %v771_v11  ;;  %v7099_v13 = vpop.xlane.xlu1 %702  ;;  %5512 = vmatpush1.bf16.msra.mxu0 %v5511_v7  ;;  %v1264_v11 = vld [vmem:[#allocation11 + $0x48] sm:$0xff]  ;;  %v5527_v7 = vpack.c.bf16 %v1277_v63, %v1275_v59 }
 0x1cd   : > { %v759_v29 = vmul.f32 %v7114_v48, %v7114_v48 }
 0x1cf   : > { %v795_v2 = vsel %vm667_vm0, %v759_v29, 0.0 }
 0x1d0   : > { %778 = vadd.xlane.f32.xlu0 %v777_v22  ;;  %v706_v34 = vpop.xlane.xlu1 %705  ;;  %v5513_v22 = vpack.c.bf16 %v1266_v14, %v1264_v11 }
 0x1d1   : > { %v729_v38 = vmul.f32 0.015625, %v706_v34  ;;  %v1267_v34 = vld [vmem:[#allocation11 + $0x60] sm:$0xff] }
 0x1d2   : > { %5514 = vmatprep.subr.bf16.mxu0 %v5513_v22  ;;  %v1280_v22 = vld [vmem:[#allocation11 + $0xc8] sm:$0xff] }
 0x1d3   : > { %v7121_v39 = vsub.f32 %v6940_v56, %v729_v38  ;;  %v10654_v56 = vmov 0   ;;  %5516 = vmatpush1.bf16.msra.mxu0 %v5515_v12  ;;  %v1279_v12 = vld [vmem:[#allocation11 + $0xc0] sm:$0xff] }
 0x1d4   : > { %784 = vadd.xlane.f32.xlu0 %v783_v30  ;;  %5827 = vset.pattern.permute.xlu1 %v10654_v56  ;;  %v1268_v30 = vld [vmem:[#allocation11 + $0x68] sm:$0xff] }
 0x1d5   : > { %v761_v52 = vmul.f32 %v7121_v39, %v7121_v39  ;;  %5826 = vset.pattern.permute.xlu0 %v10654_v56  ;;  %v5517_v0 = vpack.c.bf16 %v1270_v25, %v1268_v30  ;;  %v5529_v25 = vpack.c.bf16 %v1282_v20, %v1280_v22  ;;  %v7143_v20 = vld [vmem:[#allocation10] ss:$0 sm:$0xff] }
 0x1d7   : > { %v801_v17 = vsel %vm667_vm0, %v761_v52, 0.0  ;;  %5518 = vmatprep.subr.bf16.mxu0 %v5517_v0  ;;  %v1281_v0 = vld [vmem:[#allocation11 + $0xd0] sm:$0xff] }
 0x1d8   : > { %790 = vadd.xlane.f32.xlu0 %v789_v35  ;;  %v1269_v35 = vld [vmem:[#allocation11 + $0x70] sm:$0xff] }
 0x1d9   : > { %v5519_v38 = vpack.c.bf16 %v1269_v35, %v1267_v34  ;;  %v5531_v34 = vpack.c.bf16 %v1281_v0, %v1279_v12 }
 0x1db   : > { %5520 = vmatpush1.bf16.msra.mxu0 %v5519_v38 }
 0x1dc   : > { %793 = vadd.xlane.f32.xlu0 %v792_v50  ;;  %v1274_v50 = vld [vmem:[#allocation11 + $0x98] sm:$0xff] }
 0x1e0   : > { %796 = vadd.xlane.f32.xlu0 %v795_v2  ;;  %v5521_v2 = vpack.c.bf16 %v1274_v50, %v1272_v40  ;;  %v1284_v50 = vld [vmem:[#allocation11 + $0xe8] sm:$0xff] }
 0x1e2   : > { %5522 = vmatprep.subr.bf16.mxu0 %v5521_v2 }
 0x1e3   : > { %5524 = vmatpush1.bf16.msra.mxu0 %v5523_v57 }
 0x1e4   : > { %802 = vadd.xlane.f32.xlu0 %v801_v17  ;;  %v7131_v17 = vpop.xlane.xlu1 %708  ;;  %5526 = vmatprep.subr.bf16.mxu0 %v5525_v61  ;;  %v7139_v61 = vld [vmem:[#allocation8] ss:$0 sm:$0xff] }
 0x1e7   : > { %5528 = vmatpush1.bf16.msra.mxu0 %v5527_v7 }
 0x1e8   : > { %v7133_v18 = vpop.xlane.xlu1 %711  ;;  %5530 = vmatprep.subr.bf16.mxu0 %v5529_v25 }
 0x1eb   : > { %5532 = vmatpush1.bf16.msra.mxu0 %v5531_v34 }
 0x1ec   : > { %v7135_v2 = vpop.xlane.xlu1 %714 }
 0x221   : > { %v1021_v29 = vpop.xlane.xlu0 %1020 }
 0x222   : > { %v1067_v52 = vmul.f32 0.015625, %v1021_v29  ;;  %v1286_v29 = vld [vmem:[#allocation11 + $0xf8] sm:$0xff] }
 0x224   : > { %v1083_v16 = vadd.f32 1e-05, %v1067_v52  ;;  %v5533_v52 = vpack.c.bf16 %v1286_v29, %v1284_v50 }
 0x225   : > { %v1024_v46 = vpop.xlane.xlu0 %1023 }
 0x226   : > { %5919 = vrsqrt.f32 %v1083_v16  ;;  %v1068_v37 = vmul.f32 0.015625, %v1024_v46  ;;  %5534 = vmatprep.subr.bf16.mxu0 %v5533_v52  ;;  %v10670_v46 = vmov 0.0  }
 0x227   : > { %1363 = vmatprep.mubr.f32.mxu0 %v10670_v46  ;;  %5536 = vmatpush1.bf16.msra.mxu0 %v5535_v33 }
 0x228   : > { %v1084_v11 = vadd.f32 1e-05, %v1068_v37 }
 0x229   : > { %v1027_v14 = vpop.xlane.xlu0 %1026 }
 0x22a   : > { %5921 = vrsqrt.f32 %v1084_v11  ;;  %v1069_v30 = vmul.f32 0.015625, %v1027_v14 }
 0x22c   : > { %v1085_v35 = vadd.f32 1e-05, %v1069_v30 }
 0x22d   : > { %v1030_v40 = vpop.xlane.xlu0 %1029 }
 0x22e   : > { %5923 = vrsqrt.f32 %v1085_v35  ;;  %v1070_v38 = vmul.f32 0.015625, %v1030_v40 }
 0x230   : > { %v5920_v16 = vpop.eup %5919  ;;  %v1086_v57 = vadd.f32 1e-05, %v1070_v38 }
 0x231   : > { %v1033_v9 = vpop.xlane.xlu0 %1032  ;;  %v1115_v59 = vmul.f32 %v5920_v16, %v6960_v10 }
 0x232   : > { %5925 = vrsqrt.f32 %v1086_v57 }
 0x233   : > { %v1137_v14 = vmul.f32 %v7139_v61, %v1115_v59 }
 0x234   : > { %v5922_v63 = vpop.eup %5921 }
 0x235   : > { %v1036_v37 = vpop.xlane.xlu0 %1035  ;;  %v1054_v7 = vpop.xlane.xlu1 %1053  ;;  %v1116_v11 = vmul.f32 %v5922_v63, %v6968_v23  ;;  %v7147_v34 = vadd.f32 %v7143_v20, %v1137_v14 }
 0x236   : > { %v1078_v22 = vmul.f32 0.015625, %v1054_v7 }
 0x237   : > { %v1138_v10 = vmul.f32 %v7139_v61, %v1116_v11  ;;  %10977 = vst [vmem:[#allocation23_spill] sm:$0xff] %v7147_v34 }
 0x238   : > { %v5924_v12 = vpop.eup %5923  ;;  %v1094_v30 = vadd.f32 1e-05, %v1078_v22 }
 0x239   : > { %v1039_v25 = vpop.xlane.xlu0 %1038  ;;  %v1060_v0 = vpop.xlane.xlu1 %1059  ;;  %v7150_v35 = vadd.f32 %v7143_v20, %v1138_v10  ;;  %v1117_v40 = vmul.f32 %v5924_v12, %v6963_v15 }
 0x23a   : > { %v1080_v23 = vmul.f32 0.015625, %v1060_v0  ;;  %5927 = vrsqrt.f32 %v1094_v30 }
 0x23b   : > { %10978 = vst [vmem:[#allocation24_spill] sm:$0xff] %v7150_v35  ;;  %v5806_v38 = vpack.i.bf16 %v7150_v35, %v7147_v34  ;;  %v1139_v28 = vmul.f32 %v7139_v61, %v1117_v40 }
 0x23c   : > { %v5926_v50 = vpop.eup %5925  ;;  %v1096_v29 = vadd.f32 1e-05, %v1080_v23 }
 0x23d   : > { %v1042_v52 = vpop.xlane.xlu0 %1041  ;;  %5807 = vrot.lane.b32.xlu1 %v5806_v38, %s6399_s17  ;;  %v1118_v47 = vmul.f32 %v5926_v50, %v6972_v1  ;;  %v7160_v15 = vadd.f32 %v7143_v20, %v1139_v28 }
 0x23e   : > { %5929 = vrsqrt.f32 %v1096_v29 }
 0x23f   : > { %v1140_v16 = vmul.f32 %v7139_v61, %v1118_v47  ;;  %10979 = vst [vmem:[#allocation25_spill] sm:$0xff] %v7160_v15  ;;  %v1072_v47 = vmul.f32 0.015625, %v1036_v37 }
 0x241   : > { %v1045_v57 = vpop.xlane.xlu0 %1044  ;;  %v7163_v33 = vadd.f32 %v7143_v20, %v1140_v16  ;;  %v1071_v16 = vmul.f32 0.015625, %v1033_v9 }
 0x243   : > { %10980 = vst [vmem:[#allocation26_spill] sm:$0xff] %v7163_v33  ;;  %v5811_v59 = vpack.i.bf16 %v7163_v33, %v7160_v15 }
 0x244   : > { %v5928_v63 = vpop.eup %5927 }
 0x245   : > { %v1048_v7 = vpop.xlane.xlu0 %1047  ;;  %5812 = vrot.lane.b32.xlu0 %v5811_v59, %s6399_s17  ;;  %v1126_v11 = vmul.f32 %v5928_v63, %v6998_v4 }
 0x246   : > { %v1076_v1 = vmul.f32 0.015625, %v1048_v7  ;;  %v1088_v7 = vadd.f32 1e-05, %v1072_v47  ;;  %v1075_v47 = vmul.f32 0.015625, %v1045_v57 }
 0x247   : > { %v1148_v22 = vmul.f32 %v7139_v61, %v1126_v11 }
 0x248   : > { %v1092_v14 = vadd.f32 1e-05, %v1076_v1  ;;  %v5930_v10 = vpop.eup %5929  ;;  %v1074_v1 = vmul.f32 0.015625, %v1042_v52 }
 0x249   : > { %v1051_v12 = vpop.xlane.xlu0 %1050  ;;  %v7171_v0 = vadd.f32 %v7143_v20, %v1148_v22  ;;  %v1128_v40 = vmul.f32 %v5930_v10, %v7009_v26  ;;  %v728_v26 = vmul.f32 0.015625, %v7099_v13  ;;  %v1087_v10 = vadd.f32 1e-05, %v1071_v16 }
 0x24a   : > { %5931 = vrsqrt.f32 %v1092_v14  ;;  %v1077_v30 = vmul.f32 0.015625, %v1051_v12  ;;  %v730_v14 = vmul.f32 0.015625, %v7131_v17  ;;  %v1073_v12 = vmul.f32 0.015625, %v1039_v25 }
 0x24b   : > { %10981 = vst [vmem:[#allocation27_spill] sm:$0xff] %v7171_v0  ;;  %v1150_v50 = vmul.f32 %v7139_v61, %v1128_v40  ;;  %v1090_v9 = vadd.f32 1e-05, %v1074_v1  ;;  %v7183_v52 = vsub.f32 %v6935_v54, %v728_v26  ;;  %v731_v17 = vmul.f32 0.015625, %v7133_v18 }
 0x24c   : > { %v1093_v23 = vadd.f32 1e-05, %v1077_v30  ;;  %v7186_v13 = vsub.f32 %v6945_v58, %v730_v14  ;;  %v1089_v25 = vadd.f32 1e-05, %v1073_v12  ;;  %v732_v58 = vmul.f32 0.015625, %v7135_v2 }
 0x24d   : > { %v1057_v38 = vpop.xlane.xlu0 %1056  ;;  %v7176_v4 = vadd.f32 %v7143_v20, %v1150_v50  ;;  %v7195_v16 = vsub.f32 %v6950_v60, %v731_v17  ;;  %v760_v18 = vmul.f32 %v7183_v52, %v7183_v52 }
 0x24e   : > { %5933 = vrsqrt.f32 %v1093_v23  ;;  %v1079_v29 = vmul.f32 0.015625, %v1057_v38  ;;  %v7208_v60 = vsub.f32 %v6955_v62, %v732_v58 }
 0x24f   : > { %10982 = vst [vmem:[#allocation28_spill] sm:$0xff] %v7176_v4  ;;  %v798_v2 = vsel %vm667_vm0, %v760_v18, 0.0  ;;  %v763_v14 = vmul.f32 %v7195_v16, %v7195_v16 }
 0x250   : > { %v1095_v28 = vadd.f32 1e-05, %v1079_v29 }
 0x251   : > { %v1063_v59 = vpop.xlane.xlu0 %1062 }
 0x252   : > { %5935 = vrsqrt.f32 %v1095_v28  ;;  %v1081_v63 = vmul.f32 0.015625, %v1063_v59 }
 0x254   : > { %v5932_v11 = vpop.eup %5931  ;;  %v1097_v22 = vadd.f32 1e-05, %v1081_v63  ;;  %v1091_v63 = vadd.f32 1e-05, %v1075_v47 }
 0x255   : > { %v1066_v30 = vpop.xlane.xlu0 %1065  ;;  %v1124_v37 = vmul.f32 %v5932_v11, %v7025_v5 }
 0x256   : > { %5937 = vrsqrt.f32 %v1097_v22  ;;  %v1082_v40 = vmul.f32 0.015625, %v1066_v30 }
 0x257   : > { %5939 = vrsqrt.f32 %v1088_v7  ;;  %v1146_v23 = vmul.f32 %v7139_v61, %v1124_v37 }
 0x258   : > { %v5934_v38 = vpop.eup %5933  ;;  %v1098_v50 = vadd.f32 1e-05, %v1082_v40  ;;  %5941 = vrsqrt.f32 %v1087_v10  ;;  %v807_v40 = vsel %vm667_vm0, %v763_v14, 0.0  ;;  %v7293_v14 = vld [vmem:[%s10993_s2 + $0x30] sm:$0xff] }
 0x259   : > { %v1125_v5 = vmul.f32 %v5934_v38, %v7037_v55  ;;  %v7191_v29 = vadd.f32 %v7143_v20, %v1146_v23  ;;  %v762_v55 = vmul.f32 %v7186_v13, %v7186_v13 }
 0x25a   : > { %5943 = vrsqrt.f32 %v1098_v50 }
 0x25b   : > { %10983 = vst [vmem:[#allocation29_spill] sm:$0xff] %v7191_v29  ;;  %5945 = vrsqrt.f32 %v1090_v9  ;;  %v1147_v28 = vmul.f32 %v7139_v61, %v1125_v5  ;;  %v804_v26 = vsel %vm667_vm0, %v762_v55, 0.0  ;;  %v764_v9 = vmul.f32 %v7208_v60, %v7208_v60 }
 0x25c   : > { %v5936_v54 = vpop.eup %5935  ;;  %5947 = vrsqrt.f32 %v1089_v25 }
 0x25d   : > { %v7203_v59 = vadd.f32 %v7143_v20, %v1147_v28  ;;  %v1127_v57 = vmul.f32 %v5936_v54, %v7050_v19  ;;  %5949 = vrsqrt.f32 %v1091_v63  ;;  %v810_v5 = vsel %vm667_vm0, %v764_v9, 0.0 }
 0x25f   : > { %10984 = vst [vmem:[#allocation30_spill] sm:$0xff] %v7203_v59  ;;  %v1149_v7 = vmul.f32 %v7139_v61, %v1127_v57 }
 0x260   : > { %v5938_v1 = vpop.eup %5937 }
 0x261   : > { %v5940_v11 = vpop.eup %5939  ;;  %799 = vadd.xlane.f32.xlu1 %v798_v2  ;;  %v7215_v22 = vadd.f32 %v7143_v20, %v1149_v7  ;;  %v1129_v19 = vmul.f32 %v5938_v1, %v7061_v27 }
 0x262   : > { %v5942_v10 = vpop.eup %5941  ;;  %v1120_v30 = vmul.f32 %v5940_v11, %v6986_v45  ;;  %v7287_v11 = vld [vmem:[%s10993_s2 + $0x10] sm:$0xff] }
 0x263   : > { %10985 = vst [vmem:[#allocation31_spill] sm:$0xff] %v7215_v22  ;;  %v1151_v12 = vmul.f32 %v7139_v61, %v1129_v19  ;;  %v1119_v27 = vmul.f32 %v5942_v10, %v6980_v42  ;;  %v7300_v10 = vld [vmem:[%s10993_s2 + $0x8] sm:$0xff] }
 0x264   : > { %v5944_v62 = vpop.eup %5943  ;;  %805 = vadd.xlane.f32.xlu0 %v804_v26  ;;  %v1142_v25 = vmul.f32 %v7139_v61, %v1120_v30  ;;  %v773_v26 = vpop.xlane.xlu0 %772 }
 0x265   : > { %v5946_v37 = vpop.eup %5945  ;;  %v7224_v23 = vadd.f32 %v7143_v20, %v1151_v12  ;;  %v1130_v38 = vmul.f32 %v5944_v62, %v7072_v43  ;;  %v1141_v28 = vmul.f32 %v7139_v61, %v1119_v27 }
 0x266   : > { %v5948_v17 = vpop.eup %5947  ;;  %v1122_v45 = vmul.f32 %v5946_v37, %v7001_v6  ;;  %v7238_v42 = vadd.f32 %v7143_v20, %v1142_v25 }
 0x267   : > { %10986 = vst [vmem:[#allocation32_spill] sm:$0xff] %v7224_v23  ;;  %v1152_v50 = vmul.f32 %v7139_v61, %v1130_v38  ;;  %v1121_v54 = vmul.f32 %v5948_v17, %v6994_v8  ;;  %v5950_v58 = vpop.eup %5949  ;;  %v7242_v18 = vadd.f32 %v7143_v20, %v1141_v28  ;;  %v815_v38 = vmul.f32 0.015625, %v773_v26  ;;  %v7314_v17 = vld [vmem:[%s10993_s2 + $0x18] sm:$0xff] }
 0x268   : > { %808 = vadd.xlane.f32.xlu0 %v807_v40  ;;  %10988 = vst [vmem:[#allocation34_spill] sm:$0xff] %v7238_v42  ;;  %v1144_v43 = vmul.f32 %v7139_v61, %v1122_v45  ;;  %v1123_v8 = vmul.f32 %v5950_v58, %v7015_v31  ;;  %v7273_v31 = vld [vmem:[%s10993_s2] sm:$0xff]  ;;  %v7303_v62 = vpop.xlane.xlu0 %778  ;;  %v10668_v40 = vmov 5  }
 0x269   : > { %v7233_v47 = vadd.f32 %v7143_v20, %v1152_v50  ;;  %10989 = vst [vmem:[#allocation35_spill] sm:$0xff] %v7242_v18  ;;  %v1143_v6 = vmul.f32 %v7139_v61, %v1121_v54  ;;  %v5816_v55 = vpack.i.bf16 %v7238_v42, %v7242_v18  ;;  %v831_v45 = vadd.f32 1e-05, %v815_v38  ;;  %v7763_v18 = vld [vmem:[%s11044_s16] sm:$0xff] }
 0x26a   : > { %v7248_v57 = vadd.f32 %v7143_v20, %v1144_v43  ;;  %v1145_v1 = vmul.f32 %v7139_v61, %v1123_v8  ;;  %v10660_v61 = vmov 1  }
 0x26b   : > { %10987 = vst [vmem:[#allocation33_spill] sm:$0xff] %v7233_v47  ;;  %v7253_v63 = vadd.f32 %v7143_v20, %v1143_v6 }
 0x26c   : > { %811 = vadd.xlane.f32.xlu0 %v810_v5  ;;  %10990 = vst [vmem:[#allocation36_spill] sm:$0xff] %v7248_v57  ;;  %v7260_v2 = vadd.f32 %v7143_v20, %v1145_v1  ;;  %v767_v20 = vpop.xlane.xlu1 %766  ;;  %v7309_v27 = vpop.xlane.xlu0 %784  ;;  %v10658_v5 = vmov 2  }
 0x26d   : > { %10991 = vst [vmem:[#allocation37_spill] sm:$0xff] %v7253_v63  ;;  %v5821_v7 = vpack.i.bf16 %v7248_v57, %v7253_v63  ;;  %v813_v19 = vmul.f32 0.015625, %v767_v20  ;;  %v7341_v20 = vld [vmem:[%s10993_s2 + $0x20] sm:$0xff] }
 0x26e   : > { %10992 = vst [vmem:[#allocation38_spill] sm:$0xff] %v7260_v2 }
 0x26f   : > { %v829_v30 = vadd.f32 1e-05, %v813_v19 }
 0x270   : > { %v770_v12 = vpop.xlane.xlu1 %769  ;;  %v7320_v28 = vpop.xlane.xlu0 %790 }
 0x271   : > { %v814_v37 = vmul.f32 0.015625, %v770_v12  ;;  %5951 = vrsqrt.f32 %v829_v30  ;;  %v7348_v30 = vld [vmem:[#allocation7] ss:$0 sm:$0xff] }
 0x272   : > { %5817 = vrot.lane.b32.xlu1 %v5816_v55, %s6399_s17 }
 0x273   : > { %v830_v9 = vadd.f32 1e-05, %v814_v37  ;;  %v7355_v37 = vld [vmem:[%s10993_s2 + $0x38] sm:$0xff] }
 0x274   : > { %v776_v50 = vpop.xlane.xlu1 %775  ;;  %v7328_v6 = vpop.xlane.xlu0 %793 }
 0x275   : > { %5953 = vrsqrt.f32 %v830_v9  ;;  %v816_v25 = vmul.f32 0.015625, %v776_v50 }
 0x276   : > { %5822 = vrot.lane.b32.xlu1 %v5821_v7, %s6399_s17  ;;  %5955 = vrsqrt.f32 %v831_v45  ;;  %v7333_v7 = vld [vmem:[#allocation5] ss:$0 sm:$0xff] }
 0x277   : > { %v832_v54 = vadd.f32 1e-05, %v816_v25 }
 0x278   : > { %v7326_v58 = vpop.xlane.xlu1 %781 }
 0x279   : > { %5957 = vrsqrt.f32 %v832_v54 }
 0x27a   : > { %1207 = vrot.lane.b32.xlu1 %v7260_v2, %s6399_s17 }
 0x27b   : > { %v5952_v43 = vpop.eup %5951 }
 0x27c   : > { %v861_v55 = vmul.f32 %v5952_v43, %v7021_v24  ;;  %v7336_v1 = vpop.xlane.xlu1 %787  ;;  %v7345_v24 = vpop.xlane.xlu0 %796 }
 0x27e   : > { %1211 = vrot.lane.b32.xlu1 %v7203_v59, %s6399_s17  ;;  %v883_v26 = vmul.f32 %v7333_v7, %v861_v55 }
 0x27f   : > { %v5954_v8 = vpop.eup %5953 }
 0x280   : > { %v862_v19 = vmul.f32 %v5954_v8, %v7033_v51  ;;  %v5956_v12 = vpop.eup %5955  ;;  %v7358_v51 = vadd.f32 %v7348_v30, %v883_v26  ;;  %v7366_v55 = vpop.xlane.xlu0 %802 }
 0x281   : > { %v863_v25 = vmul.f32 %v5956_v12, %v7080_v53 }
 0x282   : > { %1209 = vrot.lane.b32.xlu0 %v7191_v29, %s6399_s17  ;;  %1213 = vrot.lane.b32.xlu1 %v7171_v0, %s6399_s17  ;;  %10994 = vst [vmem:[#allocation39_spill] sm:$0xff] %v7358_v51  ;;  %v884_v50 = vmul.f32 %v7333_v7, %v862_v19  ;;  %v10662_v19 = vmov 3  }
 0x283   : > { %v5958_v45 = vpop.eup %5957  ;;  %v885_v53 = vmul.f32 %v7333_v7, %v863_v25  ;;  %v7389_v25 = vld [vmem:[%s10993_s2 + $0x28] sm:$0xff] }
 0x284   : > { %v7371_v8 = vadd.f32 %v7348_v30, %v884_v50  ;;  %v864_v26 = vmul.f32 %v5958_v45, %v7045_v3 }
 0x285   : > { %v7383_v50 = vadd.f32 %v7348_v30, %v885_v53 }
 0x286   : > { %1215 = vrot.lane.b32.xlu1 %v7215_v22, %s6399_s17  ;;  %1589 = vperm.xlu0 %5826, %v7273_v31   ;;  %10995 = vst [vmem:[#allocation40_spill] sm:$0xff] %v7371_v8  ;;  %v886_v3 = vmul.f32 %v7333_v7, %v864_v26  ;;  %v10664_v26 = vmov 7  }
 0x287   : > { %10996 = vst [vmem:[#allocation41_spill] sm:$0xff] %v7383_v50 }
 0x28a   : > { %1217 = vrot.lane.b32.xlu1 %v7176_v4, %s6399_s17  ;;  %5828 = vset.pattern.permute.xlu0 %v10660_v61 }
 0x28b   : > { %1772 = vperm.xlu0 %5828, %v7273_v31  }
 0x28e   : > { %1219 = vrot.lane.b32.xlu1 %v7224_v23, %s6399_s17 }
 0x28f   : > { %1780 = vperm.xlu0 %5828, %v7287_v11  }
 0x292   : > { %1221 = vrot.lane.b32.xlu1 %v7233_v47, %s6399_s17 }
 0x293   : > { %1796 = vperm.xlu0 %5828, %v7293_v14  }
 0x296   : > { %1594 = vperm.xlu1 %5827, %v7300_v10  }
 0x297   : > { %5845 = vset.pattern.permute.xlu0 %v10668_v40 }
 0x298   : > { %2345 = vperm.xlu0 %5845, %v7300_v10  }
 0x29a   : > { %1599 = vperm.xlu1 %5827, %v7287_v11  }
 0x29c   : > { %2353 = vperm.xlu0 %5845, %v7314_v17  }
 0x29e   : > { %5829 = vset.pattern.permute.xlu1 %v10660_v61 }
 0x29f   : > { %1776 = vperm.xlu1 %5829, %v7300_v10  }
 0x2a0   : > { %5848 = vset.pattern.permute.xlu0 %v10658_v5 }
 0x2a1   : > { %2009 = vperm.xlu0 %5848, %v7300_v10  }
 0x2a3   : > { %5830 = vset.pattern.permute.xlu1 %v10654_v56 }
 0x2a4   : > { %1604 = vperm.xlu1 %5830, %v7314_v17  }
 0x2a5   : > { %2013 = vperm.xlu0 %5848, %v7287_v11  }
 0x2a8   : > { %5831 = vset.pattern.permute.xlu1 %v10658_v5 }
 0x2a9   : > { %2005 = vperm.xlu1 %5831, %v7273_v31   ;;  %2017 = vperm.xlu0 %5848, %v7314_v17  }
 0x2ad   : > { %5832 = vset.pattern.permute.xlu1 %v10654_v56  ;;  %2021 = vperm.xlu0 %5848, %v7341_v20  }
 0x2ae   : > { %1609 = vperm.xlu1 %5832, %v7341_v20  }
 0x2af   : > { %v5808_v9 = vpop.permute.xlu1 %5807 }
 0x2b0   : > { %v5809_v38 = vunpack.i.l.bf16 %v5808_v9  ;;  %v5810_v54 = vunpack.i.h.bf16 %v5808_v9 }
 0x2b1   : > { %2033 = vperm.xlu0 %5848, %v7355_v37  }
 0x2b2   : > { %5833 = vset.pattern.permute.xlu1 %v10660_v61  ;;  %v1239_v43 = vsel %vm667_vm0, %v7358_v51, %v5809_v38  ;;  %v1240_v12 = vsel %vm667_vm0, %v7371_v8, %v5810_v54 }
 0x2b3   : > { %1784 = vperm.xlu1 %5833, %v7314_v17   ;;  %1364 = vmatmul.mubr.f32.vlgmr.msra.gmra.mrb[0].mxu0 %v1239_v43  ;;  %v7397_v43 = vadd.f32 %v7348_v30, %v886_v3 }
 0x2b4   : > { %1369 = vmatprep.mubr.f32.mxu0 %v10670_v46 }
 0x2b5   : > { %5856 = vset.pattern.permute.xlu0 %v10662_v19  ;;  %10997 = vst [vmem:[#allocation42_spill] sm:$0xff] %v7397_v43 }
 0x2b6   : > { %2177 = vperm.xlu0 %5856, %v7300_v10  }
 0x2b7   : > { %v5813_v9 = vpop.permute.xlu0 %5812  ;;  %5834 = vset.pattern.permute.xlu1 %v10662_v19  ;;  %1370 = vmatmul.mubr.f32.gmra.mrb[2].mxu0 %v1240_v12  ;;  %v10666_v12 = vmov 6  }
 0x2b8   : > { %v5814_v38 = vunpack.i.l.bf16 %v5813_v9  ;;  %2173 = vperm.xlu1 %5834, %v7273_v31   ;;  %1375 = vmatprep.mubr.f32.mxu0 %v10670_v46  ;;  %v5815_v45 = vunpack.i.h.bf16 %v5813_v9  ;;  %v817_v9 = vmul.f32 0.015625, %v7303_v62  ;;  %v10656_v62 = vmov 8  }
 0x2ba   : > { %v1241_v54 = vsel %vm667_vm0, %v7383_v50, %v5814_v38  ;;  %2193 = vperm.xlu0 %5856, %v7389_v25   ;;  %v1242_v53 = vsel %vm667_vm0, %v7397_v43, %v5815_v45  ;;  %v818_v38 = vmul.f32 0.015625, %v7326_v58  ;;  %v833_v3 = vadd.f32 1e-05, %v817_v9 }
 0x2bb   : > { %1376 = vmatmul.mubr.f32.gmra.mrb[4].mxu0 %v1241_v54  ;;  %v819_v54 = vmul.f32 0.015625, %v7309_v27  ;;  %v820_v58 = vmul.f32 0.015625, %v7336_v1  ;;  %v821_v9 = vmul.f32 0.015625, %v7320_v28 }
 0x2bc   : > { %5835 = vset.pattern.permute.xlu1 %v10654_v56  ;;  %1381 = vmatprep.mubr.f32.mxu0 %v10670_v46  ;;  %v834_v45 = vadd.f32 1e-05, %v818_v38  ;;  %5959 = vrsqrt.f32 %v833_v3  ;;  %v7440_v38 = vld [vmem:[%s10993_s2 + $0x40] sm:$0xff] }
 0x2bd   : > { %1614 = vperm.xlu1 %5835, %v7389_v25   ;;  %v836_v27 = vadd.f32 1e-05, %v820_v58  ;;  %v837_v1 = vadd.f32 1e-05, %v821_v9  ;;  %v7451_v58 = vld [vmem:[%s10993_s2 + $0x48] sm:$0xff] }
 0x2be   : > { %2201 = vperm.xlu0 %5856, %v7355_v37   ;;  %5961 = vrsqrt.f32 %v834_v45  ;;  %v822_v45 = vmul.f32 0.015625, %v7328_v6 }
 0x2bf   : > { %1382 = vmatmul.mubr.f32.gmra.mrb[6].mxu0 %v1242_v53  ;;  %v835_v53 = vadd.f32 1e-05, %v819_v54 }
 0x2c0   : > { %1387 = vmatprep.mubr.f32.mxu0 %v10670_v46 }
 0x2c1   : > { %5836 = vset.pattern.permute.xlu1 %v10660_v61  ;;  %5963 = vrsqrt.f32 %v835_v53  ;;  %v838_v53 = vadd.f32 1e-05, %v822_v45 }
 0x2c2   : > { %1788 = vperm.xlu1 %5836, %v7341_v20   ;;  %5861 = vset.pattern.permute.xlu0 %v10664_v26  ;;  %5965 = vrsqrt.f32 %v836_v27 }
 0x2c3   : > { %2681 = vperm.xlu0 %5861, %v7300_v10   ;;  %5967 = vrsqrt.f32 %v837_v1  ;;  %v7463_v1 = vld [vmem:[%s10993_s2 + $0x58] sm:$0xff] }
 0x2c4   : > { %5969 = vrsqrt.f32 %v838_v53 }
 0x2c6   : > { %5837 = vset.pattern.permute.xlu1 %v10662_v19  ;;  %v5960_v3 = vpop.eup %5959 }
 0x2c7   : > { %2181 = vperm.xlu1 %5837, %v7287_v11   ;;  %2685 = vperm.xlu0 %5861, %v7287_v11   ;;  %v865_v28 = vmul.f32 %v5960_v3, %v7089_v32 }
 0x2c8   : > { %v5962_v54 = vpop.eup %5961 }
 0x2c9   : > { %v887_v6 = vmul.f32 %v7333_v7, %v865_v28  ;;  %v866_v32 = vmul.f32 %v5962_v54, %v7057_v36 }
 0x2cb   : > { %5838 = vset.pattern.permute.xlu1 %v10668_v40  ;;  %2693 = vperm.xlu0 %5861, %v7341_v20   ;;  %v5964_v9 = vpop.eup %5963  ;;  %v7467_v28 = vadd.f32 %v7348_v30, %v887_v6  ;;  %v888_v36 = vmul.f32 %v7333_v7, %v866_v32  ;;  %v825_v32 = vmul.f32 0.015625, %v7366_v55 }
 0x2cc   : > { %2341 = vperm.xlu1 %5838, %v7273_v31   ;;  %v867_v54 = vmul.f32 %v5964_v9, %v7094_v21 }
 0x2cd   : > { %10998 = vst [vmem:[#allocation43_spill] sm:$0xff] %v7467_v28  ;;  %v7483_v21 = vadd.f32 %v7348_v30, %v888_v36 }
 0x2ce   : > { %v889_v9 = vmul.f32 %v7333_v7, %v867_v54 }
 0x2cf   : > { %5864 = vset.pattern.permute.xlu0 %v10666_v12  ;;  %10999 = vst [vmem:[#allocation44_spill] sm:$0xff] %v7483_v21 }
 0x2d0   : > { %5839 = vset.pattern.permute.xlu1 %v10654_v56  ;;  %2509 = vperm.xlu0 %5864, %v7273_v31  }
 0x2d1   : > { %1619 = vperm.xlu1 %5839, %v7293_v14  }
 0x2d4   : > { %2525 = vperm.xlu0 %5864, %v7341_v20  }
 0x2d5   : > { %5840 = vset.pattern.permute.xlu1 %v10660_v61 }
 0x2d6   : > { %1792 = vperm.xlu1 %5840, %v7389_v25  }
 0x2d8   : > { %2533 = vperm.xlu0 %5864, %v7293_v14  }
 0x2da   : > { %5841 = vset.pattern.permute.xlu1 %v10662_v19 }
 0x2db   : > { %2185 = vperm.xlu1 %5841, %v7314_v17  }
 0x2dc   : > { %2537 = vperm.xlu0 %5864, %v7355_v37  }
 0x2df   : > { %5842 = vset.pattern.permute.xlu1 %v10668_v40 }
 0x2e0   : > { %2349 = vperm.xlu1 %5842, %v7287_v11   ;;  %5870 = vset.pattern.permute.xlu0 %v10656_v62 }
 0x2e1   : > { %2865 = vperm.xlu0 %5870, %v7389_v25  }
 0x2e4   : > { %5843 = vset.pattern.permute.xlu1 %v10666_v12 }
 0x2e5   : > { %2513 = vperm.xlu1 %5843, %v7300_v10   ;;  %2873 = vperm.xlu0 %5870, %v7355_v37  }
 0x2e9   : > { %5844 = vset.pattern.permute.xlu1 %v10654_v56  ;;  %5872 = vset.pattern.permute.xlu0 %v10654_v56  ;;  %v823_v56 = vmul.f32 0.015625, %v7345_v24 }
 0x2ea   : > { %1624 = vperm.xlu1 %5844, %v7355_v37   ;;  %1629 = vperm.xlu0 %5872, %v7440_v38  }
 0x2eb   : > { %v839_v24 = vadd.f32 1e-05, %v823_v56  ;;  %v7476_v56 = vld [vmem:[%s10993_s2 + $0x70] sm:$0xff] }
 0x2ed   : > { %5971 = vrsqrt.f32 %v839_v24 }
 0x2ee   : > { %5846 = vset.pattern.permute.xlu1 %v10658_v5  ;;  %v800_v27 = vpop.xlane.xlu1 %799  ;;  %5875 = vset.pattern.permute.xlu0 %v10660_v61 }
 0x2ef   : > { %2025 = vperm.xlu1 %5846, %v7389_v25   ;;  %1808 = vperm.xlu0 %5875, %v7451_v58   ;;  %v824_v3 = vmul.f32 0.015625, %v800_v27  ;;  %v5966_v27 = vpop.eup %5965 }
 0x2f1   : > { %v806_v62 = vpop.xlane.xlu0 %805  ;;  %v840_v61 = vadd.f32 1e-05, %v824_v3  ;;  %v868_v3 = vmul.f32 %v5966_v27, %v7076_v49  ;;  %v7494_v49 = vadd.f32 %v7348_v30, %v889_v9 }
 0x2f2   : > { %v5818_v45 = vpop.permute.xlu1 %5817  ;;  %v826_v36 = vmul.f32 0.015625, %v806_v62 }
 0x2f3   : > { %v5819_v5 = vunpack.i.l.bf16 %v5818_v45  ;;  %5847 = vset.pattern.permute.xlu1 %v10662_v19  ;;  %1816 = vperm.xlu0 %5875, %v7463_v1   ;;  %v5820_v53 = vunpack.i.h.bf16 %v5818_v45  ;;  %v5968_v45 = vpop.eup %5967  ;;  %5973 = vrsqrt.f32 %v840_v61  ;;  %11000 = vst [vmem:[#allocation45_spill] sm:$0xff] %v7494_v49  ;;  %v890_v61 = vmul.f32 %v7333_v7, %v868_v3 }
 0x2f4   : > { %2189 = vperm.xlu1 %5847, %v7341_v20   ;;  %v869_v54 = vmul.f32 %v5968_v45, %v7102_v41  ;;  %v5970_v27 = vpop.eup %5969 }
 0x2f5   : > { %v1243_v6 = vsel %vm667_vm0, %v7467_v28, %v5819_v5  ;;  %v809_v5 = vpop.xlane.xlu0 %808  ;;  %v1244_v55 = vsel %vm667_vm0, %v7483_v21, %v5820_v53  ;;  %v11001_v53 = vmov 7   ;;  %v7506_v41 = vadd.f32 %v7348_v30, %v890_v61 }
 0x2f6   : > { %v5823_v19 = vpop.permute.xlu1 %5822  ;;  %1388 = vmatmul.mubr.f32.gmra.mrb[8].mxu0 %v1243_v6  ;;  %v841_v6 = vadd.f32 1e-05, %v825_v32  ;;  %v842_v32 = vadd.f32 1e-05, %v826_v36  ;;  %v870_v45 = vmul.f32 %v5970_v27, %v7108_v44  ;;  %v11004_v61 = vmov 0.0  }
 0x2f7   : > { %1393 = vmatprep.mubr.f32.mxu0 %v10670_v46  ;;  %1828 = vperm.xlu0 %5875, %v7476_v56   ;;  %v5824_v24 = vunpack.i.l.bf16 %v5823_v19  ;;  %11002 = vst [vmem:[#allocation46_spill] sm:$0xff] %v7506_v41 }
 0x2f8   : > { %5849 = vset.pattern.permute.xlu1 %v10666_v12  ;;  %v5825_v12 = vunpack.i.h.bf16 %v5823_v19  ;;  %5975 = vrsqrt.f32 %v841_v6  ;;  %v891_v19 = vmul.f32 %v7333_v7, %v869_v54  ;;  %v892_v54 = vmul.f32 %v7333_v7, %v870_v45 }
 0x2f9   : > { %2517 = vperm.xlu1 %5849, %v7287_v11   ;;  %v1245_v62 = vsel %vm667_vm0, %v7494_v49, %v5824_v24  ;;  %v812_v3 = vpop.xlane.xlu0 %811  ;;  %5977 = vrsqrt.f32 %v842_v32 }
 0x2fa   : > { %v1208_v26 = vpop.permute.xlu1 %1207  ;;  %1394 = vmatmul.mubr.f32.gmra.mrb[10].mxu0 %v1244_v55  ;;  %v827_v55 = vmul.f32 0.015625, %v809_v5  ;;  %v1246_v5 = vsel %vm667_vm0, %v7506_v41, %v5825_v12  ;;  %v828_v36 = vmul.f32 0.015625, %v812_v3  ;;  %v7517_v44 = vadd.f32 %v7348_v30, %v891_v19 }
 0x2fb   : > { %1399 = vmatprep.mubr.f32.mxu0 %v10670_v46  ;;  %5892 = vset.pattern.permute.xlu0 %v10668_v40  ;;  %v5972_v40 = vpop.eup %5971  ;;  %v11006_v12 = vmov 2  }
 0x2fc   : > { %2377 = vperm.xlu0 %5892, %v7451_v58   ;;  %v843_v6 = vadd.f32 1e-05, %v827_v55  ;;  %11005 = vst [vmem:[#allocation47_spill] sm:$0xff] %v7517_v44  ;;  %v871_v27 = vmul.f32 %v5972_v40, %v7114_v48  ;;  %v1247_v32 = vsel %vm667_vm0, %v7517_v44, %v1208_v26  ;;  %v844_v3 = vadd.f32 1e-05, %v828_v36 }
 0x2fd   : > { %5850 = vset.pattern.permute.xlu1 %v11001_v53  ;;  %v5974_v24 = vpop.eup %5973  ;;  %v7529_v48 = vadd.f32 %v7348_v30, %v892_v54  ;;  %v1287_v44 = vld [vmem:[%s11036_s27] sm:$0x3]  ;;  %s11457_s27 = sld [smem:[#allocation139_spill]] }
 0x2fe   : > { %2677 = vperm.xlu1 %5850, %v7273_v31   ;;  %v1212_v9 = vpop.permute.xlu1 %1211  ;;  %1400 = vmatmul.mubr.f32.gmra.mrb[12].mxu0 %v1245_v62  ;;  %v11003_v62 = vmov 1   ;;  %v872_v55 = vmul.f32 %v5974_v24, %v7183_v52  ;;  %5979 = vrsqrt.f32 %v843_v6  ;;  %v893_v40 = vmul.f32 %v7333_v7, %v871_v27  ;;  %v7540_v24 = vld [vmem:[%s10993_s2 + $0x60] sm:$0xff] }
 0x2ff   : > { %1405 = vmatprep.mubr.f32.mxu0 %v10670_v46  ;;  %11007 = vst [vmem:[#allocation48_spill] sm:$0xff] %v7529_v48  ;;  %5981 = vrsqrt.f32 %v844_v3  ;;  %v11009_v27 = vmov 5   ;;  %v7558_v3 = vld [vmem:[%s10993_s2 + $0x78] sm:$0xff] }
 0x300   : > { %2385 = vperm.xlu0 %5892, %v7463_v1   ;;  %v894_v26 = vmul.f32 %v7333_v7, %v872_v55  ;;  %v7544_v6 = vadd.f32 %v7348_v30, %v893_v40 }
 0x302   : > { %5851 = vset.pattern.permute.xlu1 %v11003_v62  ;;  %v1214_v46 = vpop.permute.xlu1 %1213  ;;  %1406 = vmatmul.mubr.f32.gmra.mrb[14].mxu0 %v1246_v5  ;;  %v1210_v5 = vpop.permute.xlu0 %1209  ;;  %11008 = vst [vmem:[#allocation49_spill] sm:$0xff] %v7544_v6 }
 0x303   : > { %1800 = vperm.xlu1 %5851, %v7355_v37   ;;  %1411 = vmatprep.mubr.f32.mxu0 %v11004_v61  ;;  %v5976_v19 = vpop.eup %5975  ;;  %v1248_v52 = vsel %vm667_vm0, %v7529_v48, %v1210_v5 }
 0x304   : > { %5895 = vset.pattern.permute.xlu0 %v11006_v12  ;;  %v873_v36 = vmul.f32 %v5976_v19, %v7121_v39  ;;  %v5978_v54 = vpop.eup %5977 }
 0x305   : > { %2037 = vperm.xlu0 %5895, %v7440_v38   ;;  %v874_v5 = vmul.f32 %v5978_v54, %v7186_v13 }
 0x306   : > { %v1216_v41 = vpop.permute.xlu1 %1215  ;;  %1412 = vmatmul.mubr.f32.gmra.mrb[16].mxu0 %v1247_v32  ;;  %v7552_v32 = vadd.f32 %v7348_v30, %v894_v26  ;;  %v895_v39 = vmul.f32 %v7333_v7, %v873_v36 }
 0x307   : > { %5852 = vset.pattern.permute.xlu1 %v11006_v12  ;;  %1417 = vmatprep.mubr.f32.mxu0 %v11004_v61  ;;  %v896_v36 = vmul.f32 %v7333_v7, %v874_v5 }
 0x308   : > { %2029 = vperm.xlu1 %5852, %v7293_v14   ;;  %11010 = vst [vmem:[#allocation50_spill] sm:$0xff] %v7552_v32  ;;  %v5980_v40 = vpop.eup %5979  ;;  %v1250_v19 = vsel %vm667_vm0, %v7552_v32, %v1214_v46  ;;  %v7570_v26 = vadd.f32 %v7348_v30, %v895_v39  ;;  %v11013_v46 = vmov 3   ;;  %v11014_v32 = vmov 8  }
 0x309   : > { %2049 = vperm.xlu0 %5895, %v7463_v1   ;;  %v1249_v1 = vsel %vm667_vm0, %v7544_v6, %v1212_v9  ;;  %v11011_v9 = vmov 6   ;;  %v875_v13 = vmul.f32 %v5980_v40, %v7195_v16  ;;  %v5982_v54 = vpop.eup %5981  ;;  %v7583_v39 = vadd.f32 %v7348_v30, %v896_v36  ;;  %v1477_v40 = vld [vmem:[%s10993_s2 + $0x68] sm:$0xff] }
 0x30a   : > { %v1218_v45 = vpop.permute.xlu1 %1217  ;;  %1418 = vmatmul.mubr.f32.gmra.mrb[18].mxu0 %v1248_v52  ;;  %11012 = vst [vmem:[#allocation51_spill] sm:$0xff] %v7570_v26  ;;  %v876_v5 = vmul.f32 %v5982_v54, %v7208_v60 }
 0x30b   : > { %1423 = vmatprep.mubr.f32.mxu0 %v11004_v61  ;;  %11016 = vst [vmem:[#allocation53_spill] sm:$0xff] %v7583_v39  ;;  %v897_v16 = vmul.f32 %v7333_v7, %v875_v13 }
 0x30c   : > { %5853 = vset.pattern.permute.xlu1 %v11009_v27  ;;  %v898_v60 = vmul.f32 %v7333_v7, %v876_v5 }
 0x30d   : > { %2357 = vperm.xlu1 %5853, %v7341_v20   ;;  %2053 = vperm.xlu0 %5895, %v7540_v24  }
 0x30e   : > { %v1220_v55 = vpop.permute.xlu1 %1219  ;;  %1424 = vmatmul.mubr.f32.gmra.mrb[20].mxu0 %v1249_v1  ;;  %v1251_v1 = vsel %vm667_vm0, %v7570_v26, %v1216_v41  ;;  %v1252_v41 = vsel %vm667_vm0, %v7583_v39, %v1218_v45  ;;  %v7607_v13 = vadd.f32 %v7348_v30, %v898_v60 }
 0x30f   : > { %1429 = vmatprep.mubr.f32.mxu0 %v11004_v61 }
 0x310   : > { %11019 = vst [vmem:[#allocation56_spill] sm:$0xff] %v7607_v13 }
 0x311   : > { %5854 = vset.pattern.permute.xlu1 %v11011_v9  ;;  %2065 = vperm.xlu0 %5895, %v7558_v3  }
 0x312   : > { %2521 = vperm.xlu1 %5854, %v7314_v17   ;;  %v1222_v52 = vpop.permute.xlu1 %1221  ;;  %1430 = vmatmul.mubr.f32.gmra.mrb[22].mxu0 %v1250_v19  ;;  %v7598_v19 = vadd.f32 %v7348_v30, %v897_v16  ;;  %v1474_v30 = vld [vmem:[%s10993_s2 + $0x50] sm:$0xff] }
 0x313   : > { %1435 = vmatprep.mubr.f32.mxu0 %v11004_v61 }
 0x314   : > { %11017 = vst [vmem:[#allocation54_spill] sm:$0xff] %v7598_v19  ;;  %v1253_v45 = vsel %vm667_vm0, %v7598_v19, %v1220_v55 }
 0x315   : > { %5903 = vset.pattern.permute.xlu0 %v11013_v46 }
 0x316   : > { %5855 = vset.pattern.permute.xlu1 %v11014_v32  ;;  %1436 = vmatmul.mubr.f32.gmra.mrb[24].mxu0 %v1251_v1  ;;  %v7578_v6 = vpop.permute.xlu1 %1594 }
 0x317   : > { %11015 = vst [vmem:[#allocation52_spill] sm:$0xff] %v7578_v6  ;;  %2845 = vperm.xlu1 %5855, %v7273_v31   ;;  %1441 = vmatprep.mubr.f32.mxu0 %v11004_v61 }
 0x318   : > { %2209 = vperm.xlu0 %5903, %v7451_v58  }
 0x31a   : > { %1442 = vmatmul.mubr.f32.gmra.mrb[26].mxu0 %v1252_v41  ;;  %v7593_v31 = vpop.permute.xlu1 %1599 }
 0x31b   : > { %2849 = vperm.xlu1 %5855, %v7300_v10   ;;  %1447 = vmatprep.mubr.f32.mxu0 %v11004_v61  ;;  %v1254_v10 = vsel %vm667_vm0, %v7607_v13, %v1222_v52 }
 0x31c   : > { %2225 = vperm.xlu0 %5903, %v1477_v40  }
 0x31e   : > { %1448 = vmatmul.mubr.f32.gmra.mrb[28].mxu0 %v1253_v45  ;;  %v7603_v36 = vpop.permute.xlu1 %1776 }
 0x31f   : > { %11018 = vst [vmem:[#allocation55_spill] sm:$0xff] %v7603_v36  ;;  %1453 = vmatprep.mubr.f32.mxu0 %v11004_v61  ;;  %5857 = vset.pattern.permute.xlu1 %v11013_v46 }
 0x320   : > { %2197 = vperm.xlu1 %5857, %v7293_v14   ;;  %2233 = vperm.xlu0 %5903, %v7558_v3  }
 0x322   : > { %1454 = vmatmul.mubr.f32.gmra.mrb[30].mxu0 %v1254_v10 }
 0x323   : > { %v7614_v7 = vpop.permute.xlu1 %1604 }
 0x324   : > { %5858 = vset.pattern.permute.xlu1 %v11009_v27  ;;  %5908 = vset.pattern.permute.xlu0 %v11001_v53 }
 0x325   : > { %2361 = vperm.xlu1 %5858, %v7389_v25   ;;  %2713 = vperm.xlu0 %5908, %v7451_v58  }
 0x328   : > { %v7623_v61 = vpop.permute.xlu1 %2005 }
 0x329   : > { %11020 = vst [vmem:[#allocation57_spill] sm:$0xff] %v7623_v61  ;;  %5859 = vset.pattern.permute.xlu1 %v11001_v53  ;;  %2717 = vperm.xlu0 %5908, %v1474_v30   ;;  %v1289_v30 = vlaneseq }
 0x32a   : > { %2689 = vperm.xlu1 %5859, %v7314_v17  }
 0x32b   : > { %v7699_v19 = vshrl.u32 %v1289_v30, 7 }
 0x32d   : > { %v7627_v55 = vpop.permute.xlu1 %1609  ;;  %2725 = vperm.xlu0 %5908, %v7540_v24   ;;  %11033 = vst [vmem:[#allocation70_spill] sm:$0xff] %v7699_v19  ;;  %v7706_v48 = vsub.s32 1, %v7699_v19  ;;  %v7719_v30 = vsub.s32 0, %v7699_v19  ;;  %v1482_v0 = vsub.s32 4, %v7699_v19  ;;  %vm1554_vm1 = vcmp.lt.s32.totalorder %v7699_v19, 1 }
 0x32e   : > { %5860 = vset.pattern.permute.xlu1 %v11014_v32  ;;  %vm1971_vm2 = vcmp.lt.s32.totalorder %v7699_v19, 7 }
 0x32f   : > { %2853 = vperm.xlu1 %5860, %v7287_v11   ;;  %11035 = vst [vmem:[#allocation72_spill] sm:$0xff] %v7706_v48  ;;  %v7716_v28 = vrot.slane %v1287_v44, %v7706_v48  ;;  %v7727_v47 = vrot.slane %v1287_v44, %v7719_v30  ;;  %v7790_v12 = vrot.slane %v7763_v18, %v1482_v0 }
 0x330   : > { %v7794_v62 = vrot.slane %v7763_v18, %v7719_v30 }
 0x331   : > { %5911 = vset.pattern.permute.xlu0 %v11011_v9  ;;  %11039 = vst [vmem:[#allocation75_spill] sm:$0xff] %v7727_v47  ;;  %11053 = vst [vmem:[#allocation88_spill] sm:$0xff] %v7790_v12 }
 0x332   : > { %v7633_v58 = vpop.permute.xlu1 %1784  ;;  %2541 = vperm.xlu0 %5911, %v7440_v38   ;;  %11054 = vst [vmem:[#allocation89_spill] sm:$0xff] %v7794_v62 }
 0x333   : > { %5862 = vset.pattern.permute.xlu1 %v11009_v27 }
 0x334   : > { %2365 = vperm.xlu1 %5862, %v7293_v14  }
 0x336   : > { %2557 = vperm.xlu0 %5911, %v7540_v24  }
 0x337   : > { %v7640_v52 = vpop.permute.xlu1 %2173 }
 0x338   : > { %5863 = vset.pattern.permute.xlu1 %v11011_v9  ;;  %11021 = vst [vmem:[#allocation58_spill] sm:$0xff] %v7640_v52 }
 0x339   : > { %2529 = vperm.xlu1 %5863, %v7389_v25  }
 0x33a   : > { %2565 = vperm.xlu0 %5911, %v7476_v56  }
 0x33c   : > { %v7646_v11 = vpop.permute.xlu1 %1614 }
 0x33d   : > { %5865 = vset.pattern.permute.xlu1 %v11014_v32  ;;  %11022 = vst [vmem:[#allocation59_spill] sm:$0xff] %v7646_v11 }
 0x33e   : > { %2857 = vperm.xlu1 %5865, %v7314_v17   ;;  %2569 = vperm.xlu0 %5911, %v7558_v3   ;;  %v7658_v17 = vpop.permute.xlu0 %1589 }
 0x33f   : > { %11023 = vst [vmem:[#allocation60_spill] sm:$0xff] %v7658_v17 }
 0x341   : > { %v7652_v38 = vpop.permute.xlu1 %1788 }
 0x342   : > { %5866 = vset.pattern.permute.xlu1 %v11009_v27  ;;  %5917 = vset.pattern.permute.xlu0 %v11014_v32  ;;  %v7665_v3 = vpop.permute.xlu0 %1772 }
 0x343   : > { %2369 = vperm.xlu1 %5866, %v7355_v37   ;;  %2897 = vperm.xlu0 %5917, %v1477_v40   ;;  %11025 = vst [vmem:[#allocation62_spill] sm:$0xff] %v7665_v3 }
 0x346   : > { %v7656_v56 = vpop.permute.xlu1 %2181 }
 0x347   : > { %5867 = vset.pattern.permute.xlu1 %v11001_v53 }
 0x348   : > { %2697 = vperm.xlu1 %5867, %v7389_v25   ;;  %v7671_v25 = vpop.permute.xlu0 %1780 }
 0x34b   : > { %v7662_v24 = vpop.permute.xlu1 %2341 }
 0x34c   : > { %5868 = vset.pattern.permute.xlu1 %v11014_v32  ;;  %11024 = vst [vmem:[#allocation61_spill] sm:$0xff] %v7662_v24 }
 0x34d   : > { %2861 = vperm.xlu1 %5868, %v7341_v20   ;;  %v7677_v20 = vpop.permute.xlu0 %1796 }
 0x34e   : > { %11027 = vst [vmem:[#allocation64_spill] sm:$0xff] %v7677_v20 }
 0x350   : > { %v7669_v54 = vpop.permute.xlu1 %1619 }
 0x351   : > { %5869 = vset.pattern.permute.xlu1 %v11001_v53  ;;  %11026 = vst [vmem:[#allocation63_spill] sm:$0xff] %v7669_v54  ;;  %v7681_v5 = vpop.permute.xlu0 %2345 }
 0x352   : > { %2701 = vperm.xlu1 %5869, %v7293_v14   ;;  %11028 = vst [vmem:[#allocation65_spill] sm:$0xff] %v7681_v5 }
 0x355   : > { %v7675_v1 = vpop.permute.xlu1 %1792  ;;  %v7685_v40 = vpop.permute.xlu0 %2353 }
 0x356   : > { %2705 = vperm.xlu1 %5869, %v7355_v37  }
 0x359   : > { %v7689_v60 = vpop.permute.xlu0 %2009 }
 0x35a   : > { %5871 = vset.pattern.permute.xlu1 %v11014_v32  ;;  %v7679_v16 = vpop.permute.xlu1 %2185  ;;  %11030 = vst [vmem:[#allocation67_spill] sm:$0xff] %v7689_v60 }
 0x35b   : > { %2869 = vperm.xlu1 %5871, %v7293_v14  }
 0x35d   : > { %v7693_v10 = vpop.permute.xlu0 %2013 }
 0x35f   : > { %v7683_v41 = vpop.permute.xlu1 %2349 }
 0x361   : > { %v7697_v13 = vpop.permute.xlu0 %2017 }
 0x364   : > { %v7687_v37 = vpop.permute.xlu1 %2513 }
 0x365   : > { %11029 = vst [vmem:[#allocation66_spill] sm:$0xff] %v7687_v37  ;;  %v7703_v26 = vpop.permute.xlu0 %2021 }
 0x366   : > { %11034 = vst [vmem:[#allocation71_spill] sm:$0xff] %v7703_v26 }
 0x369   : > { %v7691_v45 = vpop.permute.xlu1 %1624  ;;  %v7721_v50 = vpop.permute.xlu0 %2033 }
 0x36a   : > { %11031 = vst [vmem:[#allocation68_spill] sm:$0xff] %v7691_v45  ;;  %11037 = vst [vmem:[#allocation73_spill] sm:$0xff] %v7721_v50  ;;  %v2102_v50 = vsub.s32 2, %v7699_v19 }
 0x36d   : > { %v7739_v29 = vpop.permute.xlu0 %2177 }
 0x36e   : > { %v7695_v14 = vpop.permute.xlu1 %2025  ;;  %11043 = vst [vmem:[#allocation79_spill] sm:$0xff] %v7739_v29 }
 0x36f   : > { %11032 = vst [vmem:[#allocation69_spill] sm:$0xff] %v7695_v14  ;;  %v11071_v14 = vsub.s32 7, %v7699_v19 }
 0x371   : > { %v7787_v46 = vpop.permute.xlu0 %2193 }
 0x372   : > { %11052 = vst [vmem:[#allocation87_spill] sm:$0xff] %v7787_v46 }
 0x373   : > { %v7701_v39 = vpop.permute.xlu1 %2189 }
 0x375   : > { %v7836_v37 = vpop.permute.xlu0 %2201 }
 0x376   : > { %11058 = vst [vmem:[#allocation93_spill] sm:$0xff] %v7836_v37 }
 0x378   : > { %v7711_v49 = vpop.permute.xlu1 %2517 }
 0x37d   : > { %v7729_v4 = vpop.permute.xlu1 %2677 }
 0x37e   : > { %11040 = vst [vmem:[#allocation76_spill] sm:$0xff] %v7729_v4  ;;  %v7840_v4 = vrot.slane %v7763_v18, %v7706_v48 }
 0x380   : > { %11059 = vst [vmem:[#allocation94_spill] sm:$0xff] %v7840_v4 }
 0x382   : > { %v7774_v35 = vpop.permute.xlu1 %1800 }
 0x383   : > { %11050 = vst [vmem:[#allocation85_spill] sm:$0xff] %v7774_v35 }
 0x386   : > { %v7713_v21 = vpop.f32.mrb[0].mxu0 }
 0x387   : > { %v1367_v43 = vpop.f32.mrb[1].mxu0  ;;  %v7821_v60 = vpop.permute.xlu1 %2029 }
 0x388   : > { %v7724_v8 = vadd.f32 %v1367_v43, %v7716_v28  ;;  %v7744_v43 = vld [vmem:[%s11044_s16 + $0x8] sm:$0xff]  ;;  %11057 = vst [vmem:[#allocation92_spill] sm:$0xff] %v7821_v60 }
 0x389   : > { %v7766_v33 = vrot.slane %v7744_v43, %v1482_v0  ;;  %v7771_v15 = vrot.slane %v7744_v43, %v7719_v30  ;;  %v7810_v17 = vrot.slane %v7744_v43, %v7706_v48 }
 0x38a   : > { %11038 = vst [vmem:[#allocation74_spill] sm:$0xff] %v7724_v8  ;;  %v1371_v51 = vpop.f32.mrb[2].mxu0  ;;  %v10702_v44 = vrot.slane %v7724_v8, 7 }
 0x38b   : > { %v1373_v23 = vpop.f32.mrb[3].mxu0  ;;  %v7736_v59 = vadd.f32 %v1371_v51, %v7727_v47  ;;  %11048 = vst [vmem:[#allocation83_spill] sm:$0xff] %v7766_v33  ;;  %11049 = vst [vmem:[#allocation84_spill] sm:$0xff] %v7771_v15 }
 0x38c   : > { %v7732_v22 = vadd.f32 %v1373_v23, %v7716_v28  ;;  %11056 = vst [vmem:[#allocation91_spill] sm:$0xff] %v7810_v17 }
 0x38d   : > { %11042 = vst [vmem:[#allocation78_spill] sm:$0xff] %v7736_v59 }
 0x38e   : > { %11041 = vst [vmem:[#allocation77_spill] sm:$0xff] %v7732_v22  ;;  %v1523_v2 = vrot.slane %v7732_v22, 7  ;;  %v1377_v23 = vpop.f32.mrb[4].mxu0  ;;  %v10737_v37 = vrot.slane %v7732_v22, 1 }
 0x38f   : > { %v7749_v57 = vadd.f32 %v1377_v23, %v7727_v47  ;;  %v1379_v63 = vpop.f32.mrb[5].mxu0  ;;  %v10712_v23 = vrot.slane %v7736_v59, 7 }
 0x390   : > { %v7755_v51 = vsel %vm1554_vm1, %v10702_v44, %v1523_v2  ;;  %v7758_v42 = vadd.f32 %v1379_v63, %v7716_v28 }
 0x391   : > { %11045 = vst [vmem:[#allocation80_spill] sm:$0xff] %v7749_v57  ;;  %11046 = vst [vmem:[#allocation81_spill] sm:$0xff] %v7755_v51  ;;  %v1524_v44 = vrot.slane %v7749_v57, 7  ;;  %v1672_v34 = vmul.f32 %v7593_v31, %v7755_v51  ;;  %v1841_v29 = vmul.f32 %v7633_v58, %v7749_v57  ;;  %v1943_v35 = vrot.slane %v7749_v57, 1 }
 0x392   : > { %11047 = vst [vmem:[#allocation82_spill] sm:$0xff] %v7758_v42  ;;  %v1525_v63 = vrot.slane %v7758_v42, 7  ;;  %v1383_v32 = vpop.f32.mrb[6].mxu0  ;;  %v1493_v9 = vmul.f32 %v7766_v33, %v7758_v42  ;;  %v1944_v8 = vrot.slane %v7758_v42, 1 }
 0x393   : > { %v7783_v53 = vsel %vm1554_vm1, %v10712_v23, %v1524_v44  ;;  %v1385_v27 = vpop.f32.mrb[7].mxu0  ;;  %v1840_v23 = vmul.f32 %v7671_v25, %v7732_v22  ;;  %v1712_v52 = vmul.f32 %v7771_v15, %v1672_v34  ;;  %v7804_v6 = vadd.f32 %v1383_v32, %v7727_v47 }
 0x394   : > { %11051 = vst [vmem:[#allocation86_spill] sm:$0xff] %v7783_v53  ;;  %v7798_v61 = vsel %vm1554_vm1, %v1523_v2, %v1525_v63  ;;  %v1673_v0 = vmul.f32 %v7614_v7, %v7783_v53  ;;  %v7813_v3 = vadd.f32 %v1385_v27, %v7716_v28 }
 0x395   : > { %11055 = vst [vmem:[#allocation90_spill] sm:$0xff] %v7798_v61  ;;  %v1674_v2 = vmul.f32 %v7614_v7, %v7798_v61  ;;  %v1744_v5 = vadd.f32 %v1712_v52, %v1493_v9  ;;  %v1494_v34 = vmul.f32 %v7790_v12, %v7804_v6  ;;  %v10726_v32 = vrot.slane %v7804_v6, 7 }
 0x396   : > { %v1713_v24 = vmul.f32 %v7794_v62, %v1673_v0  ;;  %v1495_v27 = vmul.f32 %v7766_v33, %v7813_v3  ;;  %v10731_v51 = vrot.slane %v7813_v3, 7  ;;  %v1880_v7 = vmul.f32 %v7810_v17, %v1840_v23 }
 0x397   : > { %v7833_v9 = vsel %vm1554_vm1, %v1524_v44, %v10726_v32  ;;  %v1714_v0 = vmul.f32 %v7771_v15, %v1674_v2  ;;  %v1842_v44 = vmul.f32 %v7633_v58, %v7758_v42  ;;  %v10733_v2 = vrot.slane %v7736_v59, 1  ;;  %v7878_v42 = vpop.permute.xlu0 %2681 }
 0x398   : > { %v1745_v52 = vadd.f32 %v1713_v24, %v1494_v34  ;;  %v7846_v23 = vsel %vm1554_vm1, %v1525_v63, %v10731_v51  ;;  %v1912_v34 = vadd.f32 %v1880_v7, %v1744_v5  ;;  %v1881_v32 = vmul.f32 %v7840_v4, %v1841_v29  ;;  %v7857_v63 = vpop.permute.xlu1 %2357  ;;  %11064 = vst [vmem:[#allocation99_spill] sm:$0xff] %v7878_v42 }
 0x399   : > { %v1746_v24 = vadd.f32 %v1714_v0, %v1495_v27  ;;  %11060 = vst [vmem:[#allocation95_spill] sm:$0xff] %v7857_v63  ;;  %v7863_v58 = vsel %vm1971_vm2, %v10733_v2, %v1943_v35  ;;  %v7869_v29 = vsel %vm1971_vm2, %v10737_v37, %v1944_v8  ;;  %v2270_v27 = vsub.s32 3, %v7699_v19 }
 0x39a   : > { %11061 = vst [vmem:[#allocation96_spill] sm:$0xff] %v7863_v58  ;;  %11062 = vst [vmem:[#allocation97_spill] sm:$0xff] %v7869_v29  ;;  %v1913_v5 = vadd.f32 %v1881_v32, %v1745_v52  ;;  %v1882_v7 = vmul.f32 %v7810_v17, %v1842_v44  ;;  %v7874_v0 = vrot.slane %v7744_v43, %v2102_v50  ;;  %v2438_v2 = vsub.s32 5, %v7699_v19 }
 0x39b   : > { %v2073_v51 = vmul.f32 %v7693_v10, %v7869_v29  ;;  %v2606_v32 = vsub.s32 6, %v7699_v19  ;;  %v10745_v52 = vrot.slane %v7804_v6, 1  ;;  %v7886_v45 = vrot.slane %v7744_v43, %v2270_v27 }
 0x39c   : > { %11063 = vst [vmem:[#allocation98_spill] sm:$0xff] %v7874_v0  ;;  %v1914_v36 = vadd.f32 %v1882_v7, %v1746_v24  ;;  %v10746_v48 = vrot.slane %v7813_v3, 1  ;;  %v2241_v29 = vmul.f32 %v7656_v56, %v7798_v61  ;;  %v7893_v42 = vadd.f32 %v7713_v21, %v7727_v47  ;;  %v2686_v61 = vpop.permute.xlu0 %2685 }
 0x39d   : > { %v2113_v22 = vmul.f32 %v7874_v0, %v2073_v51  ;;  %11065 = vst [vmem:[#allocation100_spill] sm:$0xff] %v7886_v45  ;;  %v7895_v51 = vpop.permute.xlu1 %2521  ;;  %v7898_v24 = vrot.slane %v7763_v18, %v2102_v50  ;;  %v7901_v7 = vrot.slane %v7744_v43, %v2438_v2  ;;  %v2242_v50 = vmul.f32 %v7679_v16, %v7833_v9 }
 0x39e   : > { %11066 = vst [vmem:[#allocation101_spill] sm:$0xff] %v7893_v42  ;;  %v7913_v21 = vsel %vm1971_vm2, %v1944_v8, %v10746_v48  ;;  %v2281_v37 = vmul.f32 %v7886_v45, %v2241_v29  ;;  %v2577_v8 = vmul.f32 %v7711_v49, %v7846_v23  ;;  %v7929_v48 = vrot.slane %v7763_v18, %v2270_v27 }
 0x39f   : > { %v2145_v44 = vadd.f32 %v2113_v22, %v1912_v34  ;;  %11067 = vst [vmem:[#allocation102_spill] sm:$0xff] %v7901_v7  ;;  %v7907_v22 = vsel %vm1971_vm2, %v1943_v35, %v10745_v52  ;;  %11069 = vst [vmem:[#allocation104_spill] sm:$0xff] %v7913_v21  ;;  %v2075_v60 = vmul.f32 %v7697_v13, %v7913_v21 }
 0x3a0   : > { %11068 = vst [vmem:[#allocation103_spill] sm:$0xff] %v7907_v22  ;;  %v2074_v34 = vmul.f32 %v7697_v13, %v7907_v22  ;;  %v2243_v35 = vmul.f32 %v7679_v16, %v7846_v23  ;;  %v2409_v52 = vmul.f32 %v7683_v41, %v7913_v21  ;;  %11070 = vst [vmem:[#allocation105_spill] sm:$0xff] %v7929_v48 }
 0x3a1   : > { %v2745_v54 = vmul.f32 %v2686_v61, %v7813_v3  ;;  %v2313_v63 = vadd.f32 %v2281_v37, %v2145_v44  ;;  %v7936_v13 = vrot.slane %v7744_v43, %v11071_v14  ;;  %v7939_v16 = vrot.slane %v7744_v43, %v2606_v32  ;;  %v7947_v44 = vpop.permute.xlu1 %2845 }
 0x3a2   : > { %v2114_v29 = vmul.f32 %v7898_v24, %v2074_v34  ;;  %v2115_v21 = vmul.f32 %v7874_v0, %v2075_v60  ;;  %v2449_v46 = vmul.f32 %v7901_v7, %v2409_v52  ;;  %v1839_v27 = vmul.f32 %v7671_v25, %v7736_v59  ;;  %11074 = vst [vmem:[#allocation108_spill] sm:$0xff] %v7947_v44 }
 0x3a3   : > { %11072 = vst [vmem:[#allocation106_spill] sm:$0xff] %v7936_v13  ;;  %11073 = vst [vmem:[#allocation107_spill] sm:$0xff] %v7939_v16  ;;  %v2282_v11 = vmul.f32 %v7929_v48, %v2242_v50  ;;  %v10757_v37 = vrot.slane %v7893_v42, 7  ;;  %v2283_v14 = vmul.f32 %v7886_v45, %v2243_v35  ;;  %v2617_v43 = vmul.f32 %v7939_v16, %v2577_v8 }
 0x3a4   : > { %v2146_v20 = vadd.f32 %v2114_v29, %v1913_v5  ;;  %v2147_v34 = vadd.f32 %v2115_v21, %v1914_v36  ;;  %v2481_v26 = vadd.f32 %v2449_v46, %v2313_v63  ;;  %v1492_v60 = vmul.f32 %v7790_v12, %v7749_v57 }
 0x3a5   : > { %v2785_v52 = vmul.f32 %v7936_v13, %v2745_v54  ;;  %v11075_v25 = vrot.slane %v7736_v59, 7  ;;  %v2072_v46 = vmul.f32 %v7693_v10, %v7863_v58  ;;  %v2240_v50 = vmul.f32 %v7656_v56, %v7783_v53  ;;  %v7977_v8 = vpop.permute.xlu1 %2849 }
 0x3a6   : > { %v7954_v7 = vadd.f32 %v2282_v11, %v2146_v20  ;;  %v7966_v36 = vadd.f32 %v2283_v14, %v2147_v34  ;;  %v2649_v63 = vadd.f32 %v2617_v43, %v2481_v26  ;;  %v1879_v20 = vmul.f32 %v7840_v4, %v1839_v27  ;;  %11077 = vst [vmem:[#allocation110_spill] sm:$0xff] %v7977_v8 }
 0x3a7   : > { %v7962_v5 = vsel %vm1554_vm1, %v10757_v37, %v11075_v25  ;;  %v2112_v35 = vmul.f32 %v7898_v24, %v2072_v46  ;;  %v2408_v10 = vmul.f32 %v7683_v41, %v7907_v22  ;;  %v7982_v29 = vrot.slane %v7763_v18, %v2438_v2 }
 0x3a8   : > { %11076 = vst [vmem:[#allocation109_spill] sm:$0xff] %v7962_v5  ;;  %v1671_v21 = vmul.f32 %v7593_v31, %v7962_v5  ;;  %v7970_v54 = vadd.f32 %v2785_v52, %v2649_v63  ;;  %v2280_v34 = vmul.f32 %v7929_v48, %v2240_v50  ;;  %v2576_v27 = vmul.f32 %v7711_v49, %v7833_v9 }
 0x3a9   : > { %11078 = vst [vmem:[#allocation111_spill] sm:$0xff] %v7982_v29  ;;  %v2448_v14 = vmul.f32 %v7982_v29, %v2408_v10  ;;  %v7988_v56 = vpop.permute.xlu1 %2197  ;;  %v7991_v52 = vrot.slane %v7763_v18, %v2606_v32  ;;  %v2744_v41 = vmul.f32 %v2686_v61, %v7804_v6  ;;  %v11081_v2 = vsub.s32 7, %v7699_v19 }
 0x3aa   : > { %v1711_v11 = vmul.f32 %v7794_v62, %v1671_v21  ;;  %11079 = vst [vmem:[#allocation112_spill] sm:$0xff] %v7988_v56  ;;  %v1675_v61 = vmul.f32 %v7627_v55, %v7833_v9 }
 0x3ab   : > { %11080 = vst [vmem:[#allocation113_spill] sm:$0xff] %v7991_v52  ;;  %v7997_v25 = vrot.slane %v7763_v18, %v11081_v2  ;;  %v2616_v46 = vmul.f32 %v7991_v52, %v2576_v27  ;;  %v1843_v18 = vmul.f32 %v7652_v38, %v7804_v6 }
 0x3ac   : > { %v1743_v26 = vadd.f32 %v1711_v11, %v1492_v60 }
 0x3ad   : > { %11082 = vst [vmem:[#allocation114_spill] sm:$0xff] %v7997_v25  ;;  %v2784_v49 = vmul.f32 %v7997_v25, %v2744_v41  ;;  %v8001_v21 = vpop.permute.xlu1 %2361  ;;  %v1715_v41 = vmul.f32 %v7794_v62, %v1675_v61  ;;  %v1883_v2 = vmul.f32 %v7840_v4, %v1843_v18 }
 0x3ae   : > { %v1911_v31 = vadd.f32 %v1879_v20, %v1743_v26 }
 0x3b0   : > { %v2144_v43 = vadd.f32 %v2112_v35, %v1911_v31  ;;  %v1676_v31 = vmul.f32 %v7627_v55, %v7846_v23 }
 0x3b1   : > { %v2690_v32 = vpop.permute.xlu1 %2689 }
 0x3b2   : > { %v2312_v60 = vadd.f32 %v2280_v34, %v2144_v43  ;;  %v1844_v34 = vmul.f32 %v7652_v38, %v7813_v3  ;;  %v1716_v18 = vmul.f32 %v7771_v15, %v1676_v31  ;;  %v11089_v31 = vrot.slane %v7813_v3, 7 }
 0x3b4   : > { %v2480_v63 = vadd.f32 %v2448_v14, %v2312_v60  ;;  %v1884_v37 = vmul.f32 %v7810_v17, %v1844_v34 }
 0x3b5   : > { %v8005_v50 = vpop.permute.xlu1 %2853 }
 0x3b6   : > { %v2648_v11 = vadd.f32 %v2616_v46, %v2480_v63  ;;  %11084 = vst [vmem:[#allocation116_spill] sm:$0xff] %v8005_v50  ;;  %v11086_v46 = vrot.slane %v7804_v6, 7 }
 0x3b8   : > { %v8003_v20 = vadd.f32 %v2784_v49, %v2648_v11  ;;  %v11087_v11 = vrot.slane %v7804_v6, 1 }
 0x3b9   : > { %v8021_v14 = vpop.permute.xlu1 %2365 }
 0x3ba   : > { %11083 = vst [vmem:[#allocation115_spill] sm:$0xff] %v8003_v20  ;;  %11085 = vst [vmem:[#allocation117_spill] sm:$0xff] %v8021_v14  ;;  %v8065_v20 = vpop.permute.xlu0 %2693 }
 0x3c9   : > { %v1389_v35 = vpop.f32.mrb[8].mxu0 }
 0x3ca   : > { %v8012_v10 = vadd.f32 %v1389_v35, %v7727_v47  ;;  %v1391_v26 = vpop.f32.mrb[9].mxu0 }
 0x3cb   : > { %v8019_v27 = vadd.f32 %v1391_v26, %v7716_v28  ;;  %v8047_v26 = vld [vmem:[#allocation13] sm:$0x3] }
 0x3cc   : > { %v1496_v9 = vmul.f32 %v7790_v12, %v8012_v10  ;;  %v1528_v43 = vrot.slane %v8012_v10, 7  ;;  %v10758_v60 = vrot.slane %v8012_v10, 1 }
 0x3cd   : > { %v1497_v55 = vmul.f32 %v7766_v33, %v8019_v27  ;;  %v10766_v38 = vrot.slane %v8019_v27, 7  ;;  %v1395_v23 = vpop.f32.mrb[10].mxu0  ;;  %v10770_v8 = vrot.slane %v8019_v27, 1  ;;  %v1846_v58 = vmul.f32 %v7675_v1, %v8019_v27 }
 0x3ce   : > { %v8036_v63 = vsel %vm1554_vm1, %v11086_v46, %v1528_v43  ;;  %v1747_v49 = vadd.f32 %v1715_v41, %v1496_v9  ;;  %v8044_v61 = vsel %vm1971_vm2, %v11087_v11, %v10758_v60  ;;  %v1397_v35 = vpop.f32.mrb[11].mxu0  ;;  %v1845_v46 = vmul.f32 %v7675_v1, %v8012_v10 }
 0x3cf   : > { %11088 = vst [vmem:[#allocation118_spill] sm:$0xff] %v8044_v61  ;;  %v2410_v9 = vmul.f32 %v7685_v40, %v8044_v61  ;;  %v2578_v6 = vmul.f32 %v7895_v51, %v8036_v63  ;;  %v2746_v11 = vmul.f32 %v2690_v32, %v8012_v10  ;;  %v1578_v34 = vsel %vm1554_vm1, %v11089_v31, %v10766_v38 }
 0x3d0   : > { %v8056_v41 = vadd.f32 %v1883_v2, %v1747_v49  ;;  %v1748_v60 = vadd.f32 %v1716_v18, %v1497_v55  ;;  %v8071_v2 = vrot.slane %v8047_v26, %v7719_v30  ;;  %v8073_v49 = vpop.permute.xlu1 %2529  ;;  %v2245_v55 = vmul.f32 %v7701_v39, %v1578_v34 }
 0x3d1   : > { %v2450_v5 = vmul.f32 %v7982_v29, %v2410_v9  ;;  %v1401_v22 = vpop.f32.mrb[12].mxu0  ;;  %v2618_v44 = vmul.f32 %v7991_v52, %v2578_v6  ;;  %v11091_v38 = vrot.slane %v7813_v3, 1  ;;  %v8090_v6 = vadd.f32 %v1395_v23, %v7727_v47  ;;  %v8105_v23 = vld [vmem:[%s11044_s16 + $0x18] ss:$0 sm:$0xff] }
 0x3d2   : > { %11090 = vst [vmem:[#allocation119_spill] sm:$0xff] %v8071_v2  ;;  %v1916_v31 = vadd.f32 %v1884_v37, %v1748_v60  ;;  %v8079_v18 = vpop.f32.mrb[13].mxu0  ;;  %v2579_v2 = vmul.f32 %v7895_v51, %v1578_v34  ;;  %v1885_v1 = vmul.f32 %v7840_v4, %v1845_v46  ;;  %v2786_v37 = vmul.f32 %v7997_v25, %v2746_v11  ;;  %v11092_v60 = vld [vmem:[#allocation71_spill] sm:$0xff]  ;;  %v11094_v11 = vld [vmem:[#allocation102_spill] sm:$0xff] }
 0x3d3   : > { %v2482_v9 = vadd.f32 %v2450_v5, %v7954_v7  ;;  %v1995_v30 = vsel %vm1971_vm2, %v11091_v38, %v10770_v8  ;;  %v2747_v53 = vmul.f32 %v2690_v32, %v8019_v27  ;;  %v1498_v38 = vmul.f32 %v7790_v12, %v8090_v6 }
 0x3d4   : > { %v2077_v57 = vmul.f32 %v11092_v60, %v1995_v30  ;;  %v2411_v7 = vmul.f32 %v7685_v40, %v1995_v30  ;;  %v2913_v3 = vmul.f32 %v8005_v50, %v1995_v30  ;;  %v1530_v40 = vrot.slane %v8090_v6, 7  ;;  %v8114_v30 = vpop.permute.xlu0 %2509 }
 0x3d5   : > { %v2650_v5 = vadd.f32 %v2618_v44, %v2482_v9  ;;  %v8100_v51 = vpop.f32.mrb[14].mxu0  ;;  %v11095_v44 = vld [vmem:[#allocation59_spill] sm:$0xff]  ;;  %11097 = vst [vmem:[#allocation120_spill] sm:$0xff] %v8114_v30  ;;  %v2285_v59 = vmul.f32 %v7886_v45, %v2245_v55  ;;  %v2619_v14 = vmul.f32 %v7939_v16, %v2579_v2  ;;  %v8134_v2 = vadd.f32 %v1397_v35, %v7716_v28 }
 0x3d6   : > { %11093 = vst [vmem:[#allocation71_spill] sm:$0xff] %v8100_v51  ;;  %v2117_v46 = vmul.f32 %v7874_v0, %v2077_v57  ;;  %v2451_v8 = vmul.f32 %v11094_v11, %v2411_v7  ;;  %v1677_v32 = vmul.f32 %v11095_v44, %v8036_v63  ;;  %v8112_v9 = vpop.f32.mrb[15].mxu0  ;;  %v2953_v56 = vmul.f32 %v8105_v23, %v2913_v3  ;;  %v8121_v57 = vpop.permute.xlu1 %2857 }
 0x3d7   : > { %11096 = vst [vmem:[#allocation59_spill] sm:$0xff] %v8112_v9  ;;  %v8116_v50 = vadd.f32 %v2786_v37, %v2650_v5  ;;  %v8126_v51 = vsel %vm1554_vm1, %v1528_v43, %v1530_v40  ;;  %v2787_v37 = vmul.f32 %v7936_v13, %v2747_v53  ;;  %v1678_v55 = vmul.f32 %v11095_v44, %v1578_v34  ;;  %v11100_v43 = vld [vmem:[#allocation64_spill] sm:$0xff] }
 0x3d8   : > { %v2149_v7 = vadd.f32 %v2117_v46, %v1916_v31  ;;  %v2483_v42 = vadd.f32 %v2451_v8, %v7966_v36  ;;  %v1717_v9 = vmul.f32 %v7794_v62, %v1677_v32  ;;  %v8131_v5 = vadd.f32 %v2953_v56, %v7970_v54 }
 0x3d9   : > { %v8137_v3 = vpop.f32.mrb[16].mxu0  ;;  %v1847_v46 = vmul.f32 %v11100_v43, %v8090_v6  ;;  %v2076_v53 = vmul.f32 %v11092_v60, %v8044_v61  ;;  %v1499_v54 = vmul.f32 %v7766_v33, %v8134_v2  ;;  %v10779_v56 = vrot.slane %v8134_v2, 7  ;;  %v11109_v61 = vld [vmem:[#allocation95_spill] sm:$0xff] }
 0x3da   : > { %11098 = vst [vmem:[#allocation121_spill] sm:$0xff] %v8131_v5  ;;  %11099 = vst [vmem:[#allocation122_spill] sm:$0xff] %v8137_v3  ;;  %v2317_v31 = vadd.f32 %v2285_v59, %v2149_v7  ;;  %v2651_v36 = vadd.f32 %v2619_v14, %v2483_v42  ;;  %v1749_v8 = vadd.f32 %v1717_v9, %v1498_v38  ;;  %v8141_v30 = vpop.f32.mrb[17].mxu0  ;;  %v10781_v59 = vrot.slane %v8134_v2, 1  ;;  %v2526_v14 = vpop.permute.xlu0 %2525 }
 0x3db   : > { %11101 = vst [vmem:[#allocation64_spill] sm:$0xff] %v8141_v30  ;;  %v1718_v35 = vmul.f32 %v7771_v15, %v1678_v55  ;;  %v8151_v42 = vadd.f32 %v1401_v22, %v7727_v47  ;;  %v1886_v38 = vmul.f32 %v7810_v17, %v1846_v58  ;;  %v8156_v60 = vmul.f32 %v8065_v20, %v8090_v6  ;;  %v8168_v22 = vpop.permute.xlu1 %2369 }
 0x3dc   : > { %v2819_v34 = vadd.f32 %v2787_v37, %v2651_v36  ;;  %v1917_v44 = vadd.f32 %v1885_v1, %v1749_v8  ;;  %v11102_v32 = vrot.slane %v8019_v27, 7  ;;  %11104 = vst [vmem:[#allocation124_spill] sm:$0xff] %v8168_v22  ;;  %v1887_v37 = vmul.f32 %v7840_v4, %v1847_v46  ;;  %v11106_v36 = vld [vmem:[#allocation87_spill] sm:$0xff] }
 0x3dd   : > { %v1750_v1 = vadd.f32 %v1718_v35, %v1499_v54  ;;  %v8166_v7 = vpop.f32.mrb[18].mxu0  ;;  %v11105_v58 = vrot.slane %v8019_v27, 1  ;;  %v11108_v35 = vld [vmem:[#allocation69_spill] sm:$0xff]  ;;  %v2749_v27 = vmul.f32 %v8065_v20, %v8134_v2  ;;  %v11110_v22 = vld [vmem:[#allocation63_spill] sm:$0xff] }
 0x3de   : > { %v8164_v9 = vsel %vm1554_vm1, %v11102_v32, %v10779_v56  ;;  %11103 = vst [vmem:[#allocation123_spill] sm:$0xff] %v8166_v7  ;;  %v8180_v56 = vpop.f32.mrb[19].mxu0  ;;  %v1679_v30 = vmul.f32 %v11110_v22, %v8126_v51 }
 0x3df   : > { %v1993_v55 = vsel %vm1971_vm2, %v11105_v58, %v10781_v59  ;;  %v2247_v8 = vmul.f32 %v11106_v36, %v8164_v9  ;;  %v2581_v32 = vmul.f32 %v2526_v14, %v8164_v9  ;;  %11107 = vst [vmem:[#allocation87_spill] sm:$0xff] %v8180_v56  ;;  %v1918_v54 = vadd.f32 %v1886_v38, %v1750_v1 }
 0x3e0   : > { %v2079_v5 = vmul.f32 %v11108_v35, %v1993_v55  ;;  %v2413_v7 = vmul.f32 %v11109_v61, %v1993_v55  ;;  %v2915_v46 = vmul.f32 %v8121_v57, %v1993_v55  ;;  %v1500_v58 = vmul.f32 %v7790_v12, %v8151_v42 }
 0x3e1   : > { %v10793_v59 = vrot.slane %v8151_v42, 7  ;;  %v1848_v38 = vmul.f32 %v11100_v43, %v8134_v2  ;;  %v8197_v3 = vpop.f32.mrb[20].mxu0  ;;  %v2287_v20 = vmul.f32 %v7886_v45, %v2247_v8  ;;  %v1719_v12 = vmul.f32 %v7794_v62, %v1679_v30 }
 0x3e2   : > { %v2119_v1 = vmul.f32 %v7874_v0, %v2079_v5  ;;  %v2453_v56 = vmul.f32 %v11094_v11, %v2413_v7  ;;  %v2955_v55 = vmul.f32 %v8105_v23, %v2915_v46  ;;  %11111 = vst [vmem:[#allocation69_spill] sm:$0xff] %v8197_v3  ;;  %v1949_v43 = vrot.slane %v8090_v6, 1  ;;  %v8208_v47 = vpop.f32.mrb[21].mxu0  ;;  %v8213_v3 = vpop.permute.xlu1 %2697 }
 0x3e3   : > { %v8204_v4 = vsel %vm1554_vm1, %v1530_v40, %v10793_v59  ;;  %11112 = vst [vmem:[#allocation95_spill] sm:$0xff] %v8208_v47  ;;  %v2621_v46 = vmul.f32 %v7939_v16, %v2581_v32  ;;  %v2789_v8 = vmul.f32 %v7936_v13, %v2749_v27  ;;  %v1751_v45 = vadd.f32 %v1719_v12, %v1500_v58 }
 0x3e4   : > { %v2151_v5 = vadd.f32 %v2119_v1, %v1918_v54  ;;  %v2485_v7 = vadd.f32 %v2453_v56, %v2317_v31  ;;  %v8211_v0 = vadd.f32 %v2955_v55, %v2819_v34  ;;  %v10796_v40 = vrot.slane %v8151_v42, 1  ;;  %v11117_v1 = vld [vmem:[#allocation92_spill] sm:$0xff] }
 0x3e5   : > { %v11114_v59 = vrot.slane %v8012_v10, 1  ;;  %v2750_v31 = vmul.f32 %v8213_v3, %v8151_v42  ;;  %v8226_v34 = vpop.f32.mrb[22].mxu0  ;;  %v1919_v32 = vadd.f32 %v1887_v37, %v1751_v45  ;;  %v2116_v10 = vmul.f32 %v7898_v24, %v2076_v53 }
 0x3e6   : > { %11113 = vst [vmem:[#allocation63_spill] sm:$0xff] %v8211_v0  ;;  %v8221_v30 = vadd.f32 %v2287_v20, %v2151_v5  ;;  %v2653_v54 = vadd.f32 %v2621_v46, %v2485_v7  ;;  %11115 = vst [vmem:[#allocation125_spill] sm:$0xff] %v8226_v34  ;;  %v1990_v12 = vsel %vm1971_vm2, %v1949_v43, %v10796_v40  ;;  %v8235_v27 = vpop.f32.mrb[23].mxu0 }
 0x3e7   : > { %v1992_v6 = vsel %vm1971_vm2, %v11114_v59, %v1949_v43  ;;  %v2244_v59 = vmul.f32 %v7701_v39, %v8036_v63  ;;  %11116 = vst [vmem:[#allocation126_spill] sm:$0xff] %v8235_v27  ;;  %v2080_v55 = vmul.f32 %v11117_v1, %v1990_v12  ;;  %v2246_v45 = vmul.f32 %v11106_v36, %v8126_v51 }
 0x3e8   : > { %v2078_v56 = vmul.f32 %v11108_v35, %v1992_v6  ;;  %v8237_v58 = vadd.f32 %v2789_v8, %v2653_v54  ;;  %v2148_v37 = vadd.f32 %v2116_v10, %v8056_v41  ;;  %v2412_v53 = vmul.f32 %v11109_v61, %v1992_v6  ;;  %v11119_v10 = vld [vmem:[#allocation72_spill] sm:$0xff] }
 0x3e9   : > { %v2284_v20 = vmul.f32 %v7929_v48, %v2244_v59  ;;  %v2414_v43 = vmul.f32 %v8001_v21, %v1990_v12  ;;  %v2120_v39 = vmul.f32 %v7898_v24, %v2080_v55  ;;  %v2286_v5 = vmul.f32 %v7929_v48, %v2246_v45  ;;  %v8250_v46 = vpop.f32.mrb[24].mxu0  ;;  %v2862_v59 = vpop.permute.xlu1 %2861 }
 0x3ea   : > { %v2118_v35 = vmul.f32 %v7898_v24, %v2078_v56  ;;  %v2580_v7 = vmul.f32 %v2526_v14, %v8126_v51  ;;  %v2452_v36 = vmul.f32 %v7982_v29, %v2412_v53  ;;  %v2582_v54 = vmul.f32 %v8073_v49, %v8204_v4  ;;  %v8256_v61 = vpop.f32.mrb[25].mxu0  ;;  %v8265_v55 = vpop.permute.xlu0 %2533 }
 0x3eb   : > { %v2316_v8 = vadd.f32 %v2284_v20, %v2148_v37  ;;  %v2454_v41 = vmul.f32 %v7982_v29, %v2414_v43  ;;  %11118 = vst [vmem:[#allocation92_spill] sm:$0xff] %v8256_v61  ;;  %v1888_v56 = vmul.f32 %v7810_v17, %v1848_v38  ;;  %v8263_v51 = vadd.f32 %v2120_v39, %v1919_v32  ;;  %v8272_v38 = vld [vmem:[%s11044_s16 + $0x10] ss:$0 sm:$0xff] }
 0x3ec   : > { %v2150_v63 = vadd.f32 %v2118_v35, %v1917_v44  ;;  %v8261_v44 = vrot.slane %v8047_v26, %v11119_v10  ;;  %v2620_v45 = vmul.f32 %v7991_v52, %v2580_v7  ;;  %v2914_v37 = vmul.f32 %v8121_v57, %v1992_v6 }
 0x3ed   : > { %v2484_v35 = vadd.f32 %v2452_v36, %v2316_v8  ;;  %v2916_v20 = vmul.f32 %v2862_v59, %v1990_v12  ;;  %v2622_v26 = vmul.f32 %v7991_v52, %v2582_v54  ;;  %v8277_v32 = vadd.f32 %v8079_v18, %v7716_v28  ;;  %v8281_v39 = vpop.f32.mrb[26].mxu0 }
 0x3ee   : > { %11120 = vst [vmem:[#allocation72_spill] sm:$0xff] %v8261_v44  ;;  %v2318_v14 = vadd.f32 %v2286_v5, %v2150_v63  ;;  %v1680_v43 = vmul.f32 %v11110_v22, %v8164_v9  ;;  %v2790_v57 = vmul.f32 %v7997_v25, %v2750_v31  ;;  %v2788_v12 = vmul.f32 %v7997_v25, %v8156_v60  ;;  %v8287_v5 = vpop.f32.mrb[27].mxu0 }
 0x3ef   : > { %v2652_v6 = vadd.f32 %v2620_v45, %v2484_v35  ;;  %v2954_v63 = vmul.f32 %v8272_v38, %v2914_v37  ;;  %11121 = vst [vmem:[#allocation127_spill] sm:$0xff] %v8287_v5  ;;  %v1501_v18 = vmul.f32 %v7766_v33, %v8277_v32  ;;  %v10794_v8 = vrot.slane %v8277_v32, 7  ;;  %v11124_v35 = vld [vmem:[#allocation75_spill] sm:$0xff] }
 0x3f0   : > { %v2486_v53 = vadd.f32 %v2454_v41, %v2318_v14  ;;  %v1720_v9 = vmul.f32 %v7771_v15, %v1680_v43  ;;  %v2956_v36 = vmul.f32 %v8272_v38, %v2916_v20  ;;  %v10795_v60 = vrot.slane %v8277_v32, 1  ;;  %v11125_v45 = vld [vmem:[#allocation71_spill] sm:$0xff]  ;;  %v8316_v43 = vpop.permute.xlu0 %2537 }
 0x3f1   : > { %v2820_v22 = vadd.f32 %v2788_v12, %v2652_v6  ;;  %v8295_v31 = vadd.f32 %v2954_v63, %v8116_v50  ;;  %v11123_v54 = vrot.slane %v8134_v2, 7  ;;  %v8308_v37 = vadd.f32 %v11125_v45, %v11124_v35  ;;  %v8310_v20 = vpop.f32.mrb[28].mxu0  ;;  %v11127_v50 = vld [vmem:[#allocation101_spill] sm:$0xff]  ;;  %v11132_v63 = vld [vmem:[#allocation68_spill] sm:$0xff] }
 0x3f2   : > { %v2654_v7 = vadd.f32 %v2622_v26, %v2486_v53  ;;  %v1752_v14 = vadd.f32 %v1720_v9, %v1501_v18  ;;  %v11128_v53 = vld [vmem:[#allocation88_spill] sm:$0xff]  ;;  %v11131_v6 = vrot.slane %v8134_v2, 1  ;;  %v8328_v18 = vpop.f32.mrb[29].mxu0  ;;  %v11133_v9 = vld [vmem:[#allocation55_spill] sm:$0xff]  ;;  %v11138_v44 = vrot.slane %v8151_v42, 7 }
 0x3f3   : > { %11122 = vst [vmem:[#allocation128_spill] sm:$0xff] %v8295_v31  ;;  %v8304_v10 = vsel %vm1554_vm1, %v11123_v54, %v10794_v8  ;;  %11126 = vst [vmem:[#allocation75_spill] sm:$0xff] %v8308_v37  ;;  %v8314_v26 = vmul.f32 %v11128_v53, %v11127_v50  ;;  %v1837_v54 = vmul.f32 %v11133_v9, %v11127_v50  ;;  %v11134_v8 = vld [vmem:[#allocation74_spill] sm:$0xff] }
 0x3f4   : > { %v2822_v41 = vadd.f32 %v2790_v57, %v2654_v7  ;;  %v8318_v57 = vadd.f32 %v2956_v36, %v2820_v22  ;;  %v1991_v12 = vsel %vm1971_vm2, %v11131_v6, %v10795_v60  ;;  %v1681_v7 = vmul.f32 %v11132_v63, %v8204_v4  ;;  %v11136_v60 = vld [vmem:[#allocation85_spill] sm:$0xff] }
 0x3f5   : > { %11129 = vst [vmem:[#allocation71_spill] sm:$0xff] %v8314_v26  ;;  %v8332_v45 = vadd.f32 %v1888_v56, %v1752_v14  ;;  %v2415_v22 = vmul.f32 %v8001_v21, %v1991_v12  ;;  %v2583_v36 = vmul.f32 %v8073_v49, %v8304_v10  ;;  %v8340_v6 = vmul.f32 %v7766_v33, %v11134_v8  ;;  %v8350_v14 = vpop.f32.mrb[30].mxu0 }
 0x3f6   : > { %11130 = vst [vmem:[#allocation129_spill] sm:$0xff] %v8318_v57  ;;  %v1849_v40 = vmul.f32 %v11136_v60, %v8151_v42  ;;  %v2917_v5 = vmul.f32 %v2862_v59, %v1991_v12  ;;  %v2751_v56 = vmul.f32 %v8213_v3, %v8277_v32  ;;  %v1502_v21 = vmul.f32 %v11128_v53, %v8308_v37  ;;  %v11141_v59 = vld [vmem:[#allocation94_spill] sm:$0xff] }
 0x3f7   : > { %11135 = vst [vmem:[#allocation68_spill] sm:$0xff] %v8340_v6  ;;  %v2455_v61 = vmul.f32 %v11094_v11, %v2415_v22  ;;  %v10798_v49 = vrot.slane %v8308_v37, 7  ;;  %v1838_v2 = vmul.f32 %v11133_v9, %v11134_v8  ;;  %v1721_v34 = vmul.f32 %v7794_v62, %v1681_v7  ;;  %v8357_v22 = vpop.f32.mrb[31].mxu0  ;;  %v8371_v7 = vpop.permute.xlu0 %2865 }
 0x3f8   : > { %v2957_v27 = vmul.f32 %v8105_v23, %v2917_v5  ;;  %11137 = vst [vmem:[#allocation55_spill] sm:$0xff] %v8357_v22  ;;  %v2623_v47 = vmul.f32 %v7939_v16, %v2583_v36  ;;  %v11140_v5 = vld [vmem:[#allocation112_spill] sm:$0xff]  ;;  %v1889_v31 = vmul.f32 %v11141_v59, %v1849_v40  ;;  %v11144_v36 = vrot.slane %v8151_v42, 1 }
 0x3f9   : > { %v2487_v3 = vadd.f32 %v2455_v61, %v8221_v30  ;;  %v8367_v0 = vsel %vm1554_vm1, %v11138_v44, %v10798_v49  ;;  %v2248_v9 = vmul.f32 %v11140_v5, %v8204_v4  ;;  %v1753_v30 = vadd.f32 %v1721_v34, %v1502_v21  ;;  %v11154_v40 = vld [vmem:[#allocation64_spill] sm:$0xff] }
 0x3fa   : > { %11139 = vst [vmem:[#allocation85_spill] sm:$0xff] %v8367_v0  ;;  %v8375_v6 = vadd.f32 %v2957_v27, %v8237_v58  ;;  %v11143_v61 = vrot.slane %v8308_v37, 1  ;;  %v2791_v49 = vmul.f32 %v7936_v13, %v2751_v56  ;;  %v2702_v27 = vpop.permute.xlu1 %2701  ;;  %v11145_v58 = vld [vmem:[#allocation117_spill] sm:$0xff]  ;;  %v2584_v21 = vmul.f32 %v8265_v55, %v8367_v0 }
 0x3fb   : > { %v2655_v44 = vadd.f32 %v2623_v47, %v2487_v3  ;;  %v2288_v62 = vmul.f32 %v7929_v48, %v2248_v9  ;;  %v1921_v57 = vadd.f32 %v1889_v31, %v1753_v30  ;;  %v8395_v56 = vmul.f32 %v11141_v59, %v1837_v54  ;;  %v11147_v9 = vld [vmem:[#allocation59_spill] sm:$0xff] }
 0x3fc   : > { %11142 = vst [vmem:[#allocation112_spill] sm:$0xff] %v8375_v6  ;;  %v1988_v26 = vsel %vm1971_vm2, %v11144_v36, %v11143_v61  ;;  %v1850_v3 = vmul.f32 %v11136_v60, %v8277_v32  ;;  %v8402_v30 = vadd.f32 %v11147_v9, %v7716_v28  ;;  %v8425_v6 = vadd.f32 %v11154_v40, %v7716_v28 }
 0x3fd   : > { %v2918_v4 = vmul.f32 %v8371_v7, %v1988_v26  ;;  %v2416_v34 = vmul.f32 %v11145_v58, %v1988_v26  ;;  %v8390_v42 = vadd.f32 %v2791_v49, %v2655_v44  ;;  %v2320_v47 = vadd.f32 %v2288_v62, %v8263_v51  ;;  %11146 = vst [vmem:[#allocation117_spill] sm:$0xff] %v8395_v56  ;;  %v11150_v51 = vld [vmem:[#allocation122_spill] sm:$0xff] }
 0x3fe   : > { %11148 = vst [vmem:[#allocation59_spill] sm:$0xff] %v8402_v30  ;;  %v1682_v49 = vmul.f32 %v11132_v63, %v8304_v10  ;;  %v2624_v44 = vmul.f32 %v7991_v52, %v2584_v21  ;;  %v2752_v62 = vmul.f32 %v2702_v27, %v8308_v37  ;;  %v8412_v54 = vadd.f32 %v11150_v51, %v11124_v35  ;;  %v11153_v21 = vld [vmem:[#allocation73_spill] sm:$0xff]  ;;  %v11155_v51 = vld [vmem:[#allocation78_spill] sm:$0xff] }
 0x3ff   : > { %v2958_v61 = vmul.f32 %v8272_v38, %v2918_v4  ;;  %v2456_v31 = vmul.f32 %v7982_v29, %v2416_v34  ;;  %v1503_v4 = vmul.f32 %v7766_v33, %v8402_v30  ;;  %v8419_v63 = vmul.f32 %v7810_v17, %v1838_v2 }
 0x400   : > { %11151 = vst [vmem:[#allocation122_spill] sm:$0xff] %v8412_v54  ;;  %v1722_v9 = vmul.f32 %v7771_v15, %v1682_v49  ;;  %v11157_v49 = vld [vmem:[#allocation77_spill] sm:$0xff] }
 0x401   : > { %v8406_v36 = vadd.f32 %v2958_v61, %v2822_v41  ;;  %v2488_v60 = vadd.f32 %v2456_v31, %v2320_v47  ;;  %11152 = vst [vmem:[#allocation131_spill] sm:$0xff] %v8419_v63  ;;  %v2081_v41 = vmul.f32 %v11117_v1, %v1991_v12  ;;  %v2082_v61 = vmul.f32 %v11153_v21, %v1988_v26  ;;  %v11156_v47 = vld [vmem:[#allocation76_spill] sm:$0xff]  ;;  %v8459_v63 = vpop.permute.xlu1 %2705 }
 0x402   : > { %v8429_v31 = vmul.f32 %v11156_v47, %v11155_v51  ;;  %v1754_v56 = vadd.f32 %v1722_v9, %v1503_v4  ;;  %v8434_v2 = vmul.f32 %v7766_v33, %v11157_v49  ;;  %v8438_v1 = vmul.f32 %v11156_v47, %v11157_v49 }
 0x403   : > { %11149 = vst [vmem:[#allocation130_spill] sm:$0xff] %v8406_v36  ;;  %v1890_v36 = vmul.f32 %v7810_v17, %v1850_v3  ;;  %v2656_v34 = vadd.f32 %v2624_v44, %v2488_v60  ;;  %v11160_v26 = vrot.slane %v11155_v51, 1  ;;  %v11161_v12 = vrot.slane %v11127_v50, 1 }
 0x404   : > { %11158 = vst [vmem:[#allocation73_spill] sm:$0xff] %v8434_v2  ;;  %11159 = vst [vmem:[#allocation64_spill] sm:$0xff] %v8438_v1  ;;  %v11163_v3 = vrot.slane %v8402_v30, 7  ;;  %v11164_v44 = vrot.slane %v8277_v32, 7  ;;  %v2792_v4 = vmul.f32 %v7997_v25, %v2752_v62  ;;  %v1954_v33 = vrot.slane %v8402_v30, 1  ;;  %v11166_v2 = vld [vmem:[#allocation98_spill] sm:$0xff] }
 0x405   : > { %v8446_v40 = vsel %vm1971_vm2, %v11161_v12, %v11160_v26  ;;  %v1922_v9 = vadd.f32 %v1890_v36, %v1754_v56  ;;  %v10806_v26 = vrot.slane %v8412_v54, 1  ;;  %v2121_v17 = vmul.f32 %v11166_v2, %v2081_v41  ;;  %v11168_v36 = vld [vmem:[#allocation93_spill] sm:$0xff]  ;;  %v11177_v1 = vld [vmem:[#allocation124_spill] sm:$0xff] }
 0x406   : > { %11162 = vst [vmem:[#allocation78_spill] sm:$0xff] %v8446_v40  ;;  %v8454_v60 = vsel %vm1554_vm1, %v11164_v44, %v11163_v3  ;;  %v2122_v59 = vmul.f32 %v7898_v24, %v2082_v61  ;;  %v11167_v3 = vrot.slane %v8277_v32, 1  ;;  %v2249_v56 = vmul.f32 %v11140_v5, %v8304_v10 }
 0x407   : > { %11165 = vst [vmem:[#allocation76_spill] sm:$0xff] %v8454_v60  ;;  %v2250_v44 = vmul.f32 %v11168_v36, %v8367_v0  ;;  %v2251_v47 = vmul.f32 %v11168_v36, %v8454_v60  ;;  %v2753_v12 = vmul.f32 %v2702_v27, %v8402_v30  ;;  %v11169_v41 = vrot.slane %v8308_v37, 1 }
 0x408   : > { %v1989_v62 = vsel %vm1971_vm2, %v11167_v3, %v1954_v33  ;;  %v11171_v61 = vrot.slane %v8425_v6, 1  ;;  %v11173_v3 = vrot.slane %v8412_v54, 7  ;;  %v11174_v27 = vrot.slane %v8308_v37, 7 }
 0x409   : > { %v8482_v32 = vsel %vm1971_vm2, %v11169_v41, %v10806_v26  ;;  %v2083_v5 = vmul.f32 %v11153_v21, %v1989_v62  ;;  %v2754_v41 = vmul.f32 %v8459_v63, %v8412_v54  ;;  %v2153_v26 = vadd.f32 %v2121_v17, %v8332_v45 }
 0x40a   : > { %11170 = vst [vmem:[#allocation77_spill] sm:$0xff] %v8482_v32  ;;  %v8488_v10 = vsel %vm1971_vm2, %v1954_v33, %v11171_v61  ;;  %v8497_v36 = vsel %vm1554_vm1, %v11174_v27, %v11173_v3  ;;  %v2154_v0 = vadd.f32 %v2122_v59, %v1921_v57  ;;  %v11176_v33 = vld [vmem:[#allocation100_spill] sm:$0xff]  ;;  %v2290_v21 = vmul.f32 %v7929_v48, %v2250_v44  ;;  %v2870_v57 = vpop.permute.xlu1 %2869 }
 0x40b   : > { %11172 = vst [vmem:[#allocation98_spill] sm:$0xff] %v8488_v10  ;;  %11175 = vst [vmem:[#allocation93_spill] sm:$0xff] %v8497_v36  ;;  %v2123_v15 = vmul.f32 %v11166_v2, %v2083_v5  ;;  %v2289_v61 = vmul.f32 %v11176_v33, %v2249_v56  ;;  %v2291_v50 = vmul.f32 %v11176_v33, %v2251_v47 }
 0x40c   : > { %v2417_v37 = vmul.f32 %v11145_v58, %v1989_v62  ;;  %v2418_v3 = vmul.f32 %v11177_v1, %v8482_v32  ;;  %v2419_v27 = vmul.f32 %v11177_v1, %v8488_v10  ;;  %v2585_v17 = vmul.f32 %v8265_v55, %v8454_v60 }
 0x40d   : > { %v2155_v45 = vadd.f32 %v2123_v15, %v1922_v9  ;;  %v2321_v59 = vadd.f32 %v2289_v61, %v2153_v26  ;;  %v2322_v5 = vadd.f32 %v2290_v21, %v2154_v0  ;;  %v2586_v56 = vmul.f32 %v8316_v43, %v8497_v36 }
 0x40e   : > { %v2824_v44 = vadd.f32 %v2792_v4, %v2656_v34  ;;  %v2457_v47 = vmul.f32 %v11094_v11, %v2417_v37  ;;  %v2458_v58 = vmul.f32 %v7982_v29, %v2418_v3  ;;  %v2459_v54 = vmul.f32 %v11094_v11, %v2419_v27 }
 0x40f   : > { %v2323_v48 = vadd.f32 %v2291_v50, %v2155_v45  ;;  %v2625_v1 = vmul.f32 %v7939_v16, %v2585_v17  ;;  %v2626_v22 = vmul.f32 %v7991_v52, %v2586_v56  ;;  %v2919_v55 = vmul.f32 %v8371_v7, %v1989_v62  ;;  %v11181_v17 = vld [vmem:[#allocation86_spill] sm:$0xff]  ;;  %v11183_v45 = vld [vmem:[#allocation80_spill] sm:$0xff] }
 0x410   : > { %v2489_v15 = vadd.f32 %v2457_v47, %v2321_v59  ;;  %v2490_v9 = vadd.f32 %v2458_v58, %v2322_v5  ;;  %v2920_v0 = vmul.f32 %v2870_v57, %v8482_v32  ;;  %v2921_v26 = vmul.f32 %v2870_v57, %v8488_v10  ;;  %v11182_v57 = vld [vmem:[#allocation66_spill] sm:$0xff]  ;;  %v11184_v59 = vld [vmem:[#allocation99_spill] sm:$0xff]  ;;  %v11185_v58 = vld [vmem:[#allocation81_spill] sm:$0xff] }
 0x411   : > { %v11178_v34 = vrot.slane %v11157_v49, 1  ;;  %v11179_v37 = vrot.slane %v11134_v8, 1  ;;  %v2794_v50 = vmul.f32 %v7997_v25, %v2754_v41  ;;  %v2491_v61 = vadd.f32 %v2459_v54, %v2323_v48 }
 0x412   : > { %v2959_v21 = vmul.f32 %v8105_v23, %v2919_v55  ;;  %v2657_v7 = vadd.f32 %v2625_v1, %v2489_v15  ;;  %v2658_v62 = vadd.f32 %v2626_v22, %v2490_v9  ;;  %v2793_v3 = vmul.f32 %v7936_v13, %v2753_v12  ;;  %v11186_v1 = vld [vmem:[#allocation79_spill] sm:$0xff] }
 0x413   : > { %v8529_v4 = vsel %vm1971_vm2, %v11179_v37, %v11178_v34  ;;  %v2960_v27 = vmul.f32 %v8272_v38, %v2920_v0  ;;  %v2574_v49 = vmul.f32 %v11182_v57, %v11181_v17  ;;  %v2742_v5 = vmul.f32 %v11184_v59, %v11183_v45  ;;  %v11187_v15 = vld [vmem:[#allocation67_spill] sm:$0xff]  ;;  %v11190_v34 = vld [vmem:[#allocation65_spill] sm:$0xff]  ;;  %v11195_v45 = vld [vmem:[#allocation104_spill] sm:$0xff] }
 0x414   : > { %11180 = vst [vmem:[#allocation124_spill] sm:$0xff] %v8529_v4  ;;  %v2961_v56 = vmul.f32 %v8105_v23, %v2921_v26  ;;  %v8541_v47 = vadd.f32 %v2959_v21, %v8390_v42  ;;  %v2825_v48 = vadd.f32 %v2793_v3, %v2657_v7  ;;  %v8543_v54 = vadd.f32 %v2794_v50, %v2658_v62  ;;  %v11188_v42 = vld [vmem:[#allocation61_spill] sm:$0xff]  ;;  %v11189_v26 = vld [vmem:[#allocation96_spill] sm:$0xff]  ;;  %v11193_v3 = vld [vmem:[#allocation103_spill] sm:$0xff] }
 0x415   : > { %v8545_v41 = vadd.f32 %v2960_v27, %v2824_v44  ;;  %v8550_v12 = vmul.f32 %v7997_v25, %v8429_v31  ;;  %v2239_v55 = vmul.f32 %v11186_v1, %v11185_v58  ;;  %v2071_v9 = vmul.f32 %v11187_v15, %v8529_v4  ;;  %v11191_v44 = vld [vmem:[#allocation97_spill] sm:$0xff]  ;;  %v11192_v21 = vld [vmem:[#allocation108_spill] sm:$0xff]  ;;  %v11194_v27 = vld [vmem:[#allocation110_spill] sm:$0xff] }
 0x416   : > { %v2404_v0 = vmul.f32 %v11188_v42, %v8446_v40  ;;  %v2406_v37 = vmul.f32 %v11190_v34, %v11189_v26  ;;  %v2407_v50 = vmul.f32 %v11190_v34, %v11191_v44  ;;  %v2908_v7 = vmul.f32 %v11192_v21, %v11189_v26  ;;  %v11199_v26 = vld [vmem:[#allocation82_spill] sm:$0xff] }
 0x417   : > { %v8564_v31 = vadd.f32 %v2961_v56, %v2825_v48  ;;  %v2909_v62 = vmul.f32 %v11192_v21, %v11191_v44  ;;  %v2910_v17 = vmul.f32 %v11194_v27, %v11193_v3  ;;  %v2911_v22 = vmul.f32 %v11194_v27, %v11195_v45 }
 0x418   : > { %v11196_v36 = vrot.slane %v8425_v6, 7  ;;  %v11197_v10 = vrot.slane %v8402_v30, 7  ;;  %v8581_v56 = vmul.f32 %v7991_v52, %v2574_v49  ;;  %v8584_v48 = vmul.f32 %v7997_v25, %v2742_v5  ;;  %v11217_v25 = vld [vmem:[#allocation116_spill] sm:$0xff]  ;;  %v11239_v30 = vld [vmem:[#allocation89_spill] sm:$0xff] }
 0x419   : > { %v2743_v44 = vmul.f32 %v11184_v59, %v11199_v26  ;;  %v2070_v21 = vmul.f32 %v11187_v15, %v8446_v40  ;;  %v8591_v3 = vmul.f32 %v11166_v2, %v2071_v9  ;;  %v2405_v27 = vmul.f32 %v11188_v42, %v8529_v4  ;;  %v11214_v4 = vld [vmem:[#allocation105_spill] sm:$0xff]  ;;  %v11216_v40 = vld [vmem:[#allocation118_spill] sm:$0xff] }
 0x41a   : > { %v8578_v34 = vsel %vm1554_vm1, %v11197_v10, %v11196_v36  ;;  %v2755_v10 = vmul.f32 %v8459_v63, %v8425_v6  ;;  %v8600_v49 = vmul.f32 %v7982_v29, %v2404_v0  ;;  %v8603_v59 = vmul.f32 %v7982_v29, %v2406_v37 }
 0x41b   : > { %11198 = vst [vmem:[#allocation86_spill] sm:$0xff] %v8578_v34  ;;  %v2587_v36 = vmul.f32 %v8316_v43, %v8578_v34  ;;  %v8606_v5 = vmul.f32 %v11094_v11, %v2407_v50  ;;  %v8609_v15 = vmul.f32 %v8272_v38, %v2908_v7  ;;  %v8612_v9 = vmul.f32 %v8105_v23, %v2909_v62  ;;  %v11202_v50 = vld [vmem:[#allocation109_spill] sm:$0xff]  ;;  %v11203_v62 = vld [vmem:[#allocation120_spill] sm:$0xff] }
 0x41c   : > { %v8615_v63 = vmul.f32 %v8272_v38, %v2910_v17  ;;  %v8618_v43 = vmul.f32 %v8105_v23, %v2911_v22  ;;  %v1490_v0 = vmul.f32 %v11128_v53, %v11155_v51  ;;  %v8624_v37 = vmul.f32 %v7898_v24, %v2070_v21 }
 0x41d   : > { %11200 = vst [vmem:[#allocation66_spill] sm:$0xff] %v8612_v9  ;;  %v2627_v42 = vmul.f32 %v7939_v16, %v2587_v36  ;;  %v2238_v7 = vmul.f32 %v11186_v1, %v11202_v50  ;;  %v2572_v45 = vmul.f32 %v11203_v62, %v11202_v50  ;;  %v2795_v17 = vmul.f32 %v7936_v13, %v2755_v10  ;;  %v11243_v9 = vld [vmem:[#allocation94_spill] sm:$0xff] }
 0x41e   : > { %11201 = vst [vmem:[#allocation80_spill] sm:$0xff] %v8618_v43  ;;  %v8633_v22 = vadd.f32 %v8250_v46, %v11124_v35  ;;  %v8636_v36 = vmul.f32 %v11176_v33, %v2239_v55  ;;  %v8640_v51 = vadd.f32 %v8281_v39, %v11124_v35  ;;  %v8644_v1 = vadd.f32 %v8310_v20, %v11124_v35  ;;  %v11208_v46 = vld [vmem:[#allocation123_spill] sm:$0xff] }
 0x41f   : > { %v2659_v26 = vadd.f32 %v2627_v42, %v2491_v61  ;;  %v8648_v21 = vadd.f32 %v8328_v18, %v7716_v28  ;;  %v2573_v61 = vmul.f32 %v11203_v62, %v11185_v58  ;;  %v8654_v10 = vadd.f32 %v11208_v46, %v11124_v35  ;;  %v11212_v20 = vld [vmem:[#allocation55_spill] sm:$0xff]  ;;  %v11215_v46 = vld [vmem:[#allocation90_spill] sm:$0xff] }
 0x420   : > { %11204 = vst [vmem:[#allocation99_spill] sm:$0xff] %v8633_v22  ;;  %11205 = vst [vmem:[#allocation81_spill] sm:$0xff] %v8640_v51  ;;  %v8660_v39 = vadd.f32 %v8350_v14, %v11124_v35  ;;  %v8664_v42 = vadd.f32 %v11212_v20, %v7716_v28  ;;  %v10828_v50 = vrot.slane %v8640_v51, 7  ;;  %v2278_v58 = vmul.f32 %v11214_v4, %v2238_v7  ;;  %v11233_v51 = vld [vmem:[#allocation119_spill] sm:$0xff] }
 0x421   : > { %11206 = vst [vmem:[#allocation79_spill] sm:$0xff] %v8644_v1  ;;  %11207 = vst [vmem:[#allocation67_spill] sm:$0xff] %v8648_v21  ;;  %v8656_v55 = vadd.f32 %v2795_v17, %v2659_v26  ;;  %v8670_v62 = vmul.f32 %v11094_v11, %v2405_v27  ;;  %v8674_v26 = vmul.f32 %v7991_v52, %v2572_v45  ;;  %v11218_v7 = vrot.slane %v8633_v22, 7  ;;  %v11236_v22 = vld [vmem:[#allocation122_spill] sm:$0xff] }
 0x422   : > { %11209 = vst [vmem:[#allocation61_spill] sm:$0xff] %v8654_v10  ;;  %11211 = vst [vmem:[#allocation65_spill] sm:$0xff] %v8660_v39  ;;  %v1550_v17 = vrot.slane %v8660_v39, 7  ;;  %v1551_v14 = vrot.slane %v8664_v42, 7  ;;  %v2575_v20 = vmul.f32 %v11182_v57, %v11215_v46  ;;  %v2912_v18 = vmul.f32 %v11217_v25, %v11216_v40  ;;  %v11220_v57 = vld [vmem:[#allocation64_spill] sm:$0xff] }
 0x423   : > { %11210 = vst [vmem:[#allocation96_spill] sm:$0xff] %v8656_v55  ;;  %11213 = vst [vmem:[#allocation97_spill] sm:$0xff] %v8664_v42  ;;  %v8687_v27 = vsel %vm1554_vm1, %v11218_v7, %v10828_v50  ;;  %v10829_v11 = vrot.slane %v8644_v1, 7  ;;  %v10836_v45 = vrot.slane %v8648_v21, 7  ;;  %v8693_v29 = vmul.f32 %v7939_v16, %v2573_v61  ;;  %v11223_v7 = vld [vmem:[#allocation101_spill] sm:$0xff] }
 0x424   : > { %11219 = vst [vmem:[#allocation108_spill] sm:$0xff] %v8687_v27  ;;  %v8697_v25 = vmul.f32 %v7936_v13, %v11220_v57  ;;  %v8700_v40 = vmul.f32 %v7936_v13, %v2743_v44  ;;  %v11224_v50 = vrot.slane %v11223_v7, 7  ;;  %v11227_v44 = vrot.slane %v11134_v8, 7  ;;  %v11230_v27 = vld [vmem:[#allocation60_spill] sm:$0xff]  ;;  %v11232_v21 = vld [vmem:[#allocation129_spill] sm:$0xff] }
 0x425   : > { %v8706_v46 = vsel %vm1554_vm1, %v10829_v11, %v1550_v17  ;;  %v8718_v61 = vsel %vm1554_vm1, %v10836_v45, %v1551_v14  ;;  %v11229_v11 = vld [vmem:[#allocation62_spill] sm:$0xff]  ;;  %v2952_v45 = vmul.f32 %v8272_v38, %v2912_v18  ;;  %v8742_v1 = vadd.f32 %v11233_v51, %v11232_v21 }
 0x426   : > { %11221 = vst [vmem:[#allocation103_spill] sm:$0xff] %v8700_v40  ;;  %11222 = vst [vmem:[#allocation110_spill] sm:$0xff] %v8706_v46  ;;  %v8712_v52 = vsel %vm1554_vm1, %v1550_v17, %v11224_v50  ;;  %v8724_v57 = vsel %vm1554_vm1, %v1551_v14, %v11227_v44  ;;  %v1835_v13 = vmul.f32 %v11229_v11, %v8660_v39  ;;  %v11231_v50 = vld [vmem:[#allocation52_spill] sm:$0xff]  ;;  %v11237_v43 = vrot.slane %v11236_v22, 1  ;;  %v11244_v22 = vld [vmem:[#allocation71_spill] sm:$0xff] }
 0x427   : > { %11225 = vst [vmem:[#allocation104_spill] sm:$0xff] %v8712_v52  ;;  %11226 = vst [vmem:[#allocation82_spill] sm:$0xff] %v8718_v61  ;;  %v1667_v34 = vmul.f32 %v11230_v27, %v8706_v46  ;;  %v1669_v17 = vmul.f32 %v11231_v50, %v8712_v52  ;;  %v1668_v32 = vmul.f32 %v11230_v27, %v8718_v61  ;;  %v11235_v46 = vrot.slane %v8654_v10, 1 }
 0x428   : > { %11228 = vst [vmem:[#allocation109_spill] sm:$0xff] %v8724_v57  ;;  %v1670_v14 = vmul.f32 %v11231_v50, %v8724_v57  ;;  %v1836_v44 = vmul.f32 %v11229_v11, %v8664_v42  ;;  %11234 = vst [vmem:[#allocation120_spill] sm:$0xff] %v8742_v1  ;;  %v11240_v50 = vld [vmem:[#allocation87_spill] sm:$0xff]  ;;  %v11242_v11 = vld [vmem:[#allocation84_spill] sm:$0xff]  ;;  %v1875_v53 = vmul.f32 %v11243_v9, %v1835_v13  ;;  %v11251_v13 = vrot.slane %v11134_v8, 1 }
 0x429   : > { %v8750_v18 = vsel %vm1971_vm2, %v11237_v43, %v11235_v46  ;;  %v1707_v27 = vmul.f32 %v11239_v30, %v1667_v34  ;;  %v1709_v61 = vmul.f32 %v11239_v30, %v1669_v17  ;;  %v8756_v55 = vadd.f32 %v11240_v50, %v7716_v28  ;;  %v11248_v50 = vld [vmem:[#allocation58_spill] sm:$0xff]  ;;  %v11249_v30 = vld [vmem:[#allocation68_spill] sm:$0xff]  ;;  %v11256_v8 = vld [vmem:[#allocation73_spill] sm:$0xff] }
 0x42a   : > { %11238 = vst [vmem:[#allocation123_spill] sm:$0xff] %v8750_v18  ;;  %v1708_v60 = vmul.f32 %v11242_v11, %v1668_v32  ;;  %v1710_v21 = vmul.f32 %v11242_v11, %v1670_v14  ;;  %v11245_v46 = vrot.slane %v11223_v7, 1  ;;  %v11246_v34 = vrot.slane %v8660_v39, 1  ;;  %v11250_v11 = vld [vmem:[#allocation91_spill] sm:$0xff]  ;;  %v11254_v7 = vld [vmem:[#allocation117_spill] sm:$0xff] }
 0x42b   : > { %11241 = vst [vmem:[#allocation55_spill] sm:$0xff] %v8756_v55  ;;  %v1739_v40 = vadd.f32 %v1707_v27, %v11244_v22  ;;  %v1741_v43 = vadd.f32 %v1709_v61, %v1490_v0  ;;  %v2236_v32 = vmul.f32 %v11248_v50, %v8712_v52  ;;  %v1876_v10 = vmul.f32 %v11250_v11, %v1836_v44  ;;  %v2874_v61 = vpop.permute.xlu0 %2873  ;;  %v11259_v44 = vld [vmem:[#allocation115_spill] sm:$0xff] }
 0x42c   : > { %v8769_v17 = vsel %vm1971_vm2, %v11246_v34, %v11245_v46  ;;  %v1740_v14 = vadd.f32 %v1708_v60, %v11249_v30  ;;  %v11252_v22 = vrot.slane %v8664_v42, 1  ;;  %v11255_v34 = vld [vmem:[#allocation57_spill] sm:$0xff]  ;;  %v2922_v60 = vmul.f32 %v2874_v61, %v8750_v18 }
 0x42d   : > { %11247 = vst [vmem:[#allocation105_spill] sm:$0xff] %v8769_v17  ;;  %v1907_v27 = vadd.f32 %v1875_v53, %v1739_v40  ;;  %v1909_v46 = vadd.f32 %v11254_v7, %v1741_v43  ;;  %v2068_v39 = vmul.f32 %v11255_v34, %v8769_v17  ;;  %v1742_v52 = vadd.f32 %v1710_v21, %v11256_v8  ;;  %v11257_v43 = vld [vmem:[#allocation128_spill] sm:$0xff]  ;;  %v11265_v17 = vld [vmem:[#allocation131_spill] sm:$0xff] }
 0x42e   : > { %v8781_v0 = vsel %vm1971_vm2, %v11252_v22, %v11251_v13  ;;  %v1908_v42 = vadd.f32 %v1876_v10, %v1740_v14  ;;  %v2237_v53 = vmul.f32 %v11248_v50, %v8724_v57  ;;  %v8798_v22 = vadd.f32 %v11233_v51, %v11257_v43  ;;  %v11260_v14 = vld [vmem:[#allocation63_spill] sm:$0xff] }
 0x42f   : > { %11253 = vst [vmem:[#allocation90_spill] sm:$0xff] %v8781_v0  ;;  %v2069_v30 = vmul.f32 %v11255_v34, %v8781_v0  ;;  %v2142_v13 = vadd.f32 %v8624_v37, %v1909_v46  ;;  %v2108_v40 = vmul.f32 %v7898_v24, %v2068_v39  ;;  %v3069_v34 = vmul.f32 %v8742_v1, %v8742_v1  ;;  %v11261_v39 = vld [vmem:[#allocation72_spill] sm:$0xff] }
 0x430   : > { %11258 = vst [vmem:[#allocation118_spill] sm:$0xff] %v8798_v22  ;;  %v2984_v0 = vadd.f32 %v2952_v45, %v11259_v44  ;;  %v2615_v8 = vmul.f32 %v7939_v16, %v2575_v20  ;;  %v2276_v37 = vmul.f32 %v11214_v4, %v2236_v32  ;;  %v8807_v46 = vadd.f32 %v11261_v39, %v11260_v14 }
 0x431   : > { %v2109_v7 = vmul.f32 %v11166_v2, %v2069_v30  ;;  %v2310_v10 = vadd.f32 %v2278_v58, %v2142_v13  ;;  %v2140_v21 = vadd.f32 %v2108_v40, %v1907_v27  ;;  %v11263_v30 = vld [vmem:[#allocation130_spill] sm:$0xff]  ;;  %v2962_v57 = vmul.f32 %v8272_v38, %v2922_v60 }
 0x432   : > { %11262 = vst [vmem:[#allocation116_spill] sm:$0xff] %v8807_v46  ;;  %v8811_v43 = vadd.f32 %v11233_v51, %v11263_v30  ;;  %v1910_v18 = vadd.f32 %v11265_v17, %v1742_v52  ;;  %v11266_v45 = vrot.slane %v8756_v55, 1  ;;  %v11267_v20 = vrot.slane %v8425_v6, 1  ;;  %v11268_v52 = vld [vmem:[#allocation112_spill] sm:$0xff] }
 0x433   : > { %v2141_v50 = vadd.f32 %v2109_v7, %v1908_v42  ;;  %v2478_v42 = vadd.f32 %v8603_v59, %v2310_v10  ;;  %v2308_v32 = vadd.f32 %v2276_v37, %v2140_v21  ;;  %v2277_v27 = vmul.f32 %v11176_v33, %v2237_v53 }
 0x434   : > { %11264 = vst [vmem:[#allocation64_spill] sm:$0xff] %v8811_v43  ;;  %v8821_v58 = vsel %vm1971_vm2, %v11267_v20, %v11266_v45  ;;  %v8827_v44 = vmul.f32 %v8798_v22, %v8798_v22  ;;  %v8830_v38 = vsel %vm667_vm0, %v3069_v34, 0.0  ;;  %v8834_v17 = vadd.f32 %v11261_v39, %v11268_v52  ;;  %v11280_v20 = vld [vmem:[#allocation121_spill] sm:$0xff] }
 0x435   : > { %v2143_v60 = vadd.f32 %v8591_v3, %v1910_v18  ;;  %v2994_v13 = vadd.f32 %v2962_v57, %v8543_v54  ;;  %v2646_v59 = vadd.f32 %v8581_v56, %v2478_v42  ;;  %v2476_v40 = vadd.f32 %v8600_v49, %v2308_v32  ;;  %v11271_v3 = vld [vmem:[#allocation69_spill] sm:$0xff]  ;;  %v11282_v42 = vld [vmem:[#allocation103_spill] sm:$0xff] }
 0x436   : > { %11269 = vst [vmem:[#allocation62_spill] sm:$0xff] %v8834_v17  ;;  %v2309_v53 = vadd.f32 %v2277_v27, %v2141_v50  ;;  %v8842_v7 = vmul.f32 %v8811_v43, %v8811_v43  ;;  %v8846_v34 = vadd.f32 %v11233_v51, %v8545_v41  ;;  %v2923_v37 = vmul.f32 %v2874_v61, %v8821_v58  ;;  %v11283_v27 = vld [vmem:[#allocation122_spill] sm:$0xff] }
 0x437   : > { %v2311_v10 = vadd.f32 %v8636_v36, %v2143_v60  ;;  %v8852_v54 = vadd.f32 %v11271_v3, %v11124_v35  ;;  %v2814_v56 = vadd.f32 %v8584_v48, %v2646_v59  ;;  %v2644_v49 = vadd.f32 %v8674_v26, %v2476_v40  ;;  %v11275_v36 = vld [vmem:[#allocation95_spill] sm:$0xff]  ;;  %v11286_v60 = vld [vmem:[#allocation85_spill] sm:$0xff] }
 0x438   : > { %11270 = vst [vmem:[#allocation60_spill] sm:$0xff] %v8846_v34  ;;  %v2477_v57 = vadd.f32 %v8670_v62, %v2309_v53  ;;  %v8859_v18 = vadd.f32 %v11261_v39, %v8541_v47  ;;  %v8863_v41 = vadd.f32 %v11261_v39, %v8564_v31  ;;  %v8867_v61 = vadd.f32 %v11275_v36, %v7716_v28  ;;  %v11289_v53 = vld [vmem:[#allocation76_spill] sm:$0xff]  ;;  %v11292_v36 = vld [vmem:[#allocation89_spill] sm:$0xff] }
 0x439   : > { %11272 = vst [vmem:[#allocation52_spill] sm:$0xff] %v8852_v54  ;;  %v2479_v21 = vadd.f32 %v8606_v5, %v2311_v10  ;;  %v8871_v48 = vadd.f32 %v11233_v51, %v2994_v13  ;;  %v2982_v26 = vadd.f32 %v8615_v63, %v2814_v56  ;;  %v2812_v62 = vadd.f32 %v8550_v12, %v2644_v49  ;;  %v1630_v5 = vpop.permute.xlu0 %1629  ;;  %v11290_v10 = vld [vmem:[#allocation96_spill] sm:$0xff] }
 0x43a   : > { %11273 = vst [vmem:[#allocation129_spill] sm:$0xff] %v8859_v18  ;;  %11274 = vst [vmem:[#allocation87_spill] sm:$0xff] %v8863_v41  ;;  %v2645_v47 = vadd.f32 %v8693_v29, %v2477_v57  ;;  %v8878_v50 = vmul.f32 %v8846_v34, %v8846_v34  ;;  %v2963_v31 = vmul.f32 %v8105_v23, %v2923_v37  ;;  %v11284_v23 = vld [vmem:[#allocation88_spill] sm:$0xff] }
 0x43b   : > { %11276 = vst [vmem:[#allocation94_spill] sm:$0xff] %v8867_v61  ;;  %11277 = vst [vmem:[#allocation71_spill] sm:$0xff] %v8871_v48  ;;  %v8882_v14 = vadd.f32 %v11233_v51, %v2984_v0  ;;  %v2647_v30 = vadd.f32 %v2615_v8, %v2479_v21  ;;  %v8885_v45 = vadd.f32 %v11233_v51, %v2982_v26  ;;  %v11285_v0 = vld [vmem:[#allocation83_spill] sm:$0xff]  ;;  %v11291_v49 = vld [vmem:[#allocation80_spill] sm:$0xff] }
 0x43c   : > { %v2980_v63 = vadd.f32 %v8609_v15, %v2812_v62  ;;  %v2813_v12 = vadd.f32 %v8697_v25, %v2645_v47  ;;  %v8891_v29 = vadd.f32 %v11261_v39, %v11280_v20  ;;  %v1504_v52 = vmul.f32 %v11284_v23, %v11283_v27  ;;  %v11288_v25 = vld [vmem:[#allocation66_spill] sm:$0xff] }
 0x43d   : > { %11278 = vst [vmem:[#allocation58_spill] sm:$0xff] %v8882_v14  ;;  %11279 = vst [vmem:[#allocation68_spill] sm:$0xff] %v8885_v45  ;;  %v2815_v32 = vadd.f32 %v11282_v42, %v2647_v30  ;;  %v1505_v8 = vmul.f32 %v11285_v0, %v8425_v6  ;;  %v1683_v13 = vmul.f32 %v1630_v5, %v11286_v60  ;;  %v11294_v30 = vld [vmem:[#allocation84_spill] sm:$0xff] }
 0x43e   : > { %11281 = vst [vmem:[#allocation91_spill] sm:$0xff] %v8891_v29  ;;  %v8900_v59 = vadd.f32 %v11233_v51, %v2980_v63  ;;  %v3066_v15 = vmul.f32 %v8885_v45, %v8885_v45  ;;  %v2981_v40 = vadd.f32 %v11288_v25, %v2813_v12  ;;  %v1684_v37 = vmul.f32 %v1630_v5, %v11289_v53  ;;  %v11295_v5 = vld [vmem:[#allocation125_spill] sm:$0xff]  ;;  %v11297_v25 = vld [vmem:[#allocation126_spill] sm:$0xff] }
 0x43f   : > { %v2995_v3 = vadd.f32 %v2963_v31, %v11290_v10  ;;  %v3067_v56 = vmul.f32 %v8882_v14, %v8882_v14  ;;  %v2983_v57 = vadd.f32 %v11291_v49, %v2815_v32  ;;  %v1723_v21 = vmul.f32 %v11292_v36, %v1683_v13  ;;  %v11301_v49 = vld [vmem:[#allocation127_spill] sm:$0xff] }
 0x440   : > { %11287 = vst [vmem:[#allocation117_spill] sm:$0xff] %v8900_v59  ;;  %v3065_v26 = vmul.f32 %v8900_v59, %v8900_v59  ;;  %v3074_v62 = vsel %vm667_vm0, %v3066_v15, 0.0  ;;  %v8915_v47 = vadd.f32 %v11261_v39, %v2981_v40  ;;  %v1724_v63 = vmul.f32 %v11294_v30, %v1684_v37 }
 0x441   : > { %v3072_v31 = vmul.f32 %v8871_v48, %v8871_v48  ;;  %v8922_v12 = vadd.f32 %v11295_v5, %v11124_v35  ;;  %v8925_v20 = vadd.f32 %v11261_v39, %v2983_v57  ;;  %v8927_v42 = vadd.f32 %v1723_v21, %v1504_v52  ;;  %v11298_v35 = vld [vmem:[#allocation92_spill] sm:$0xff] }
 0x442   : > { %11293 = vst [vmem:[#allocation57_spill] sm:$0xff] %v8915_v47  ;;  %v3073_v32 = vsel %vm667_vm0, %v3065_v26, 0.0  ;;  %v3125_v60 = vmul.f32 %v8915_v47, %v8915_v47  ;;  %v3127_v13 = vmul.f32 %v8891_v29, %v8891_v29  ;;  %v8934_v15 = vadd.f32 %v1724_v63, %v1505_v8 }
 0x443   : > { %11296 = vst [vmem:[#allocation73_spill] sm:$0xff] %v8925_v20  ;;  %v8938_v40 = vadd.f32 %v11297_v25, %v7716_v28  ;;  %v8942_v53 = vadd.f32 %v11298_v35, %v7716_v28  ;;  %v3075_v52 = vadd.f32 %v3074_v62, %v3073_v32  ;;  %v3126_v37 = vmul.f32 %v8925_v20, %v8925_v20 }
 0x444   : > { %v8947_v10 = vadd.f32 %v11261_v39, %v2995_v3  ;;  %v8951_v57 = vadd.f32 %v11301_v49, %v7716_v28  ;;  %v3076_v8 = vsel %vm667_vm0, %v3067_v56, 0.0  ;;  %v3133_v21 = vsel %vm667_vm0, %v3125_v60, 0.0 }
 0x445   : > { %11299 = vst [vmem:[#allocation128_spill] sm:$0xff] %v8942_v53  ;;  %v3077_v26 = vadd.f32 %v3076_v8, %v3075_v52  ;;  %v3078_v63 = vsel %vm667_vm0, %v8827_v44, 0.0  ;;  %v3128_v62 = vmul.f32 %v8807_v46, %v8807_v46  ;;  %v3134_v5 = vsel %vm667_vm0, %v3126_v37, 0.0 }
 0x446   : > { %11300 = vst [vmem:[#allocation115_spill] sm:$0xff] %v8947_v10  ;;  %11302 = vst [vmem:[#allocation63_spill] sm:$0xff] %v8951_v57  ;;  %v3129_v3 = vmul.f32 %v8834_v17, %v8834_v17  ;;  %v3135_v32 = vadd.f32 %v3134_v5, %v3133_v21  ;;  %v3136_v28 = vsel %vm667_vm0, %v3127_v13, 0.0  ;;  %v10870_v25 = vrot.slane %v8852_v54, 7 }
 0x447   : > { %v3079_v56 = vadd.f32 %v3078_v63, %v3077_v26  ;;  %v10871_v60 = vrot.slane %v8867_v61, 7  ;;  %v1542_v35 = vrot.slane %v8922_v12, 7  ;;  %v1543_v44 = vrot.slane %v8938_v40, 7 }
 0x448   : > { %v3130_v52 = vmul.f32 %v8859_v18, %v8859_v18  ;;  %v3137_v49 = vadd.f32 %v3136_v28, %v3135_v32  ;;  %v1959_v37 = vrot.slane %v8852_v54, 1  ;;  %v1960_v8 = vrot.slane %v8867_v61, 1  ;;  %v11305_v28 = vld [vmem:[#allocation61_spill] sm:$0xff] }
 0x449   : > { %v3081_v21 = vadd.f32 %v8830_v38, %v3079_v56  ;;  %v3138_v13 = vsel %vm667_vm0, %v3128_v62, 0.0  ;;  %v8977_v26 = vsel %vm1554_vm1, %v10870_v25, %v1542_v35  ;;  %v8983_v63 = vsel %vm1554_vm1, %v10871_v60, %v1543_v44 }
 0x44a   : > { %11303 = vst [vmem:[#allocation130_spill] sm:$0xff] %v8977_v26  ;;  %11304 = vst [vmem:[#allocation131_spill] sm:$0xff] %v8983_v63  ;;  %v3082_v5 = vsel %vm667_vm0, %v8842_v7, 0.0  ;;  %v3139_v32 = vadd.f32 %v3138_v13, %v3137_v49  ;;  %v11306_v38 = vrot.slane %v11305_v28, 1  ;;  %v11308_v56 = vrot.slane %v8756_v55, 1 }
 0x44b   : > { %v3131_v60 = vmul.f32 %v8863_v41, %v8863_v41  ;;  %v3083_v39 = vadd.f32 %v3082_v5, %v3081_v21  ;;  %v3140_v51 = vsel %vm667_vm0, %v3129_v3, 0.0  ;;  %v3084_v7 = vsel %vm667_vm0, %v8878_v50, 0.0 }
 0x44c   : > { %v8991_v62 = vsel %vm1971_vm2, %v11306_v38, %v1959_v37  ;;  %v8997_v25 = vsel %vm1971_vm2, %v11308_v56, %v1960_v8  ;;  %v3141_v49 = vadd.f32 %v3140_v51, %v3139_v32  ;;  %v1545_v13 = vrot.slane %v8942_v53, 7  ;;  %v11310_v38 = vld [vmem:[#allocation99_spill] sm:$0xff] }
 0x44d   : > { %11307 = vst [vmem:[#allocation112_spill] sm:$0xff] %v8991_v62  ;;  %11309 = vst [vmem:[#allocation69_spill] sm:$0xff] %v8997_v25  ;;  %v11311_v16 = vrot.slane %v11310_v38, 7  ;;  %v3086_v56 = vsel %vm667_vm0, %v3072_v31, 0.0  ;;  %v3085_v26 = vadd.f32 %v3084_v7, %v3083_v39  ;;  %v3132_v21 = vmul.f32 %v8947_v10, %v8947_v10 }
 0x44e   : > { %v3142_v3 = vsel %vm667_vm0, %v3130_v52, 0.0  ;;  %v9017_v51 = vsel %vm1554_vm1, %v1543_v44, %v1545_v13  ;;  %v1547_v50 = vrot.slane %v8951_v57, 7  ;;  %v1961_v32 = vrot.slane %v8922_v12, 1  ;;  %v11316_v44 = vld [vmem:[#allocation79_spill] sm:$0xff] }
 0x44f   : > { %v9009_v63 = vsel %vm1554_vm1, %v1542_v35, %v11311_v16  ;;  %v3143_v5 = vadd.f32 %v3142_v3, %v3141_v49  ;;  %11313 = vst [vmem:[#allocation121_spill] sm:$0xff] %v9017_v51  ;;  %v3144_v16 = vsel %vm667_vm0, %v3131_v60, 0.0  ;;  %v3087_v35 = vadd.f32 %v3086_v56, %v3085_v26  ;;  %v11318_v3 = vld [vmem:[#allocation81_spill] sm:$0xff] }
 0x450   : > { %11312 = vst [vmem:[#allocation95_spill] sm:$0xff] %v9009_v63  ;;  %v1962_v31 = vrot.slane %v8938_v40, 1  ;;  %v9025_v7 = vsel %vm1554_vm1, %v1545_v13, %v1547_v50  ;;  %v9029_v52 = vsel %vm1971_vm2, %v1959_v37, %v1961_v32  ;;  %v11317_v49 = vrot.slane %v11316_v44, 7 }
 0x451   : > { %v3145_v39 = vadd.f32 %v3144_v16, %v3143_v5  ;;  %11314 = vst [vmem:[#allocation103_spill] sm:$0xff] %v9025_v7  ;;  %11315 = vst [vmem:[#allocation122_spill] sm:$0xff] %v9029_v52  ;;  %v11319_v51 = vrot.slane %v11318_v3, 7  ;;  %v3088_v60 = vrot.slane %v3087_v35, 4  ;;  %v3146_v26 = vsel %vm667_vm0, %v3132_v21, 0.0  ;;  %v11322_v5 = vld [vmem:[#allocation67_spill] sm:$0xff] }
 0x452   : > { %v9042_v56 = vsel %vm1971_vm2, %v1960_v8, %v1962_v31  ;;  %v11323_v16 = vrot.slane %v11322_v5, 7  ;;  %v1963_v33 = vrot.slane %v11310_v38, 1  ;;  %v1964_v21 = vrot.slane %v8942_v53, 1 }
 0x453   : > { %v9037_v63 = vsel %vm1554_vm1, %v11319_v51, %v11317_v49  ;;  %11321 = vst [vmem:[#allocation83_spill] sm:$0xff] %v9042_v56  ;;  %v3147_v13 = vadd.f32 %v3146_v26, %v3145_v39  ;;  %v3089_v44 = vadd.f32 %v3088_v60, %v3087_v35  ;;  %v10883_v51 = vrot.slane %v11318_v3, 1 }
 0x454   : > { %11320 = vst [vmem:[#allocation88_spill] sm:$0xff] %v9037_v63  ;;  %v9048_v37 = vsel %vm1554_vm1, %v1547_v50, %v11323_v16  ;;  %v10886_v63 = vrot.slane %v8951_v57, 1  ;;  %v9068_v16 = vsel %vm1971_vm2, %v1961_v32, %v1963_v33 }
 0x455   : > { %11324 = vst [vmem:[#allocation85_spill] sm:$0xff] %v9048_v37  ;;  %v3148_v7 = vrot.slane %v3147_v13, 4  ;;  %v3090_v49 = vrot.slane %v3089_v44, 2  ;;  %v9058_v39 = vsel %vm1971_vm2, %v1963_v33, %v10883_v51  ;;  %11327 = vst [vmem:[#allocation96_spill] sm:$0xff] %v9068_v16  ;;  %v11346_v16 = vld [vmem:[#allocation75_spill] sm:$0xff] }
 0x456   : > { %11325 = vst [vmem:[#allocation66_spill] sm:$0xff] %v9058_v39  ;;  %v9064_v35 = vsel %vm1971_vm2, %v1964_v21, %v10886_v63 }
 0x457   : > { %v3149_v8 = vadd.f32 %v3148_v7, %v3147_v13  ;;  %v3091_v50 = vadd.f32 %v3090_v49, %v3089_v44  ;;  %11326 = vst [vmem:[#allocation76_spill] sm:$0xff] %v9064_v35  ;;  %v9072_v13 = vsel %vm1971_vm2, %v1962_v31, %v1964_v21 }
 0x458   : > { %11328 = vst [vmem:[#allocation80_spill] sm:$0xff] %v9072_v13 }
 0x459   : > { %v3150_v60 = vrot.slane %v3149_v8, 2  ;;  %v3092_v26 = vrot.slane %v3091_v50, 1 }
 0x45b   : > { %v3151_v7 = vadd.f32 %v3150_v60, %v3149_v8  ;;  %v3093_v51 = vadd.f32 %v3092_v26, %v3091_v50  ;;  %v5052_v50 = vld [vmem:[%s11329_s7] ss:$0 sm:$0xff] }
 0x45d   : > { %v3152_v37 = vrot.slane %v3151_v7, 1  ;;  %5983 = vrsqrt.f32 %v3093_v51  ;;  %vm3096_vm3 = vcmp.eq.f32.partialorder %v3093_v51, inf  ;;  %v3099_v63 = vand.u32 2147483648, %v3093_v51 }
 0x45e   : > { %vm3098_vm4 = vcmp.eq.f32.partialorder %v3093_v51, 0.0 }
 0x45f   : > { %v3153_v44 = vadd.f32 %v3152_v37, %v3151_v7 }
 0x461   : > { %5985 = vrsqrt.f32 %v3153_v44  ;;  %vm3156_vm5 = vcmp.eq.f32.partialorder %v3153_v44, inf  ;;  %v3159_v8 = vand.u32 2147483648, %v3153_v44  ;;  %vm3158_vm6 = vcmp.eq.f32.partialorder %v3153_v44, 0.0 }
 0x467   : > { %v5984_v49 = vpop.eup %5983 }
 0x468   : > { %v3095_v39 = vmul.f32 %v5984_v49, %v3093_v51 }
 0x46a   : > { %v3097_v5 = vsel %vm3096_vm3, %v3093_v51, %v3095_v39 }
 0x46b   : > { %v5986_v35 = vpop.eup %5985  ;;  %v3100_v57 = vsel %vm3098_vm4, %v3099_v63, %v3097_v5 }
 0x46c   : > { %v3155_v33 = vmul.f32 %v5986_v35, %v3153_v44  ;;  %v3101_v32 = vmax.f32 %v3100_v57, 1e-12 }
 0x46e   : > { %v3157_v60 = vsel %vm3156_vm5, %v3153_v44, %v3155_v33  ;;  %5987 = vrcp.f32 %v3101_v32 }
 0x46f   : > { %v3160_v31 = vsel %vm3158_vm6, %v3159_v8, %v3157_v60 }
 0x470   : > { %v3161_v21 = vmax.f32 %v3160_v31, 1e-12 }
 0x472   : > { %5989 = vrcp.f32 %v3161_v21 }
 0x478   : > { %v5988_v37 = vpop.eup %5987 }
 0x479   : > { %v3103_v26 = vmul.f32 %v5988_v37, %v8900_v59  ;;  %v3104_v63 = vmul.f32 %v5988_v37, %v8885_v45  ;;  %v3105_v33 = vmul.f32 %v5988_v37, %v8882_v14  ;;  %v3106_v21 = vmul.f32 %v5988_v37, %v8798_v22 }
 0x47a   : > { %v1508_v45 = vmul.f32 %v11284_v23, %v8852_v54 }
 0x47b   : > { %v3117_v51 = vmul.f32 %v5052_v50, %v3103_v26  ;;  %v3118_v49 = vmul.f32 %v5052_v50, %v3104_v63  ;;  %v3119_v31 = vmul.f32 %v5052_v50, %v3105_v33  ;;  %v3120_v63 = vmul.f32 %v5052_v50, %v3106_v21 }
 0x47c   : > { %v5990_v39 = vpop.eup %5989  ;;  %v3110_v33 = vmul.f32 %v5988_v37, %v8871_v48  ;;  %v11332_v21 = vmov 2  }
 0x47d   : > { %v3163_v57 = vmul.f32 %v5990_v39, %v8915_v47  ;;  %v3164_v5 = vmul.f32 %v5990_v39, %v8925_v20  ;;  %v3165_v35 = vmul.f32 %v5990_v39, %v8891_v29  ;;  %v3166_v7 = vmul.f32 %v5990_v39, %v8807_v46  ;;  %3171 = vxpose.xlu1.b32.start [1/8] (short) (narrow) %v3117_v51, 64 }
 0x47e   : > { %v3167_v8 = vmul.f32 %v5990_v39, %v8834_v17  ;;  %v3168_v60 = vmul.f32 %v5990_v39, %v8859_v18  ;;  %v3169_v46 = vmul.f32 %v5990_v39, %v8863_v41  ;;  %v3170_v51 = vmul.f32 %v5990_v39, %v8947_v10 }
 0x47f   : > { %v5537_v44 = vpack.c.bf16 %v3164_v5, %v3163_v57  ;;  %v5541_v32 = vpack.c.bf16 %v3166_v7, %v3165_v35  ;;  %v3107_v57 = vmul.f32 %v5988_v37, %v8742_v1  ;;  %v3108_v7 = vmul.f32 %v5988_v37, %v8811_v43 }
 0x480   : > { %v5545_v26 = vpack.c.bf16 %v3168_v60, %v3167_v8  ;;  %v5549_v5 = vpack.c.bf16 %v3170_v51, %v3169_v46  ;;  %v11330_v8 = vmov 0   ;;  %v9097_v46 = vld [vmem:[%s10993_s2 + $0x48] sm:$0xff]  ;;  %v9103_v60 = vld [vmem:[%s10993_s2 + $0x50] sm:$0xff]  ;;  %v11334_v51 = vmov 3  }
 0x481   : > { %5538 = vmatprep.subr.bf16.mxu1 %v5537_v44  ;;  %3172 = vxpose.xlu1.b32.cont [2/8] (short) (narrow) %v3118_v49, 64  ;;  %v3121_v35 = vmul.f32 %v5052_v50, %v3107_v57  ;;  %v3109_v49 = vmul.f32 %v5988_v37, %v8846_v34  ;;  %v11331_v37 = vmov 1   ;;  %v11335_v57 = vmov 5  }
 0x482   : > { %5540 = vmatpush3.bf16.msra.mxu1 %v5537_v44  ;;  %v3122_v44 = vmul.f32 %v5052_v50, %v3108_v7  ;;  %v1538_v10 = vrot.slane %v11305_v28, 7  ;;  %v1539_v18 = vrot.slane %v8756_v55, 7  ;;  %v11341_v29 = vrot.slane %v11283_v27, 7 }
 0x483   : > { %5542 = vmatprep.subr.bf16.mxu1 %v5541_v32  ;;  %v3123_v39 = vmul.f32 %v5052_v50, %v3109_v49  ;;  %v11342_v20 = vrot.slane %v8425_v6, 7  ;;  %v11343_v1 = vmov 8  }
 0x485   : > { %3173 = vxpose.xlu1.b32.cont [3/8] (short) (narrow) %v3119_v31, 64  ;;  %v9117_v31 = vld [vmem:[%s10993_s2 + $0x58] sm:$0xff]  ;;  %v9214_v47 = vsel %vm1554_vm1, %v11342_v20, %v1539_v18 }
 0x486   : > { %5544 = vmatpush3.bf16.msra.mxu1 %v5541_v32  ;;  %v3124_v32 = vmul.f32 %v5052_v50, %v3110_v33  ;;  %v9110_v50 = vld [vmem:[%s10993_s2 + $0x40] sm:$0xff] }
 0x487   : > { %5546 = vmatprep.subr.bf16.mxu1 %v5545_v26 }
 0x489   : > { %3174 = vxpose.xlu1.b32.cont [4/8] (short) (narrow) %v3120_v63, 64  ;;  %v9139_v63 = vld [vmem:[%s10993_s2 + $0x68] sm:$0xff] }
 0x48a   : > { %5548 = vmatpush3.bf16.msra.mxu1 %v5545_v26  ;;  %v9128_v26 = vld [vmem:[%s10993_s2 + $0x60] sm:$0xff] }
 0x48b   : > { %5550 = vmatprep.subr.bf16.mxu1 %v5549_v5  ;;  %11333 = vst [vmem:[#allocation89_spill] sm:$0xff] %v9128_v26 }
 0x48d   : > { %3175 = vxpose.xlu1.b32.cont [5/8] (short) (narrow) %v3121_v35, 64 }
 0x48e   : > { %5552 = vmatpush3.bf16.msra.mxu1 %v5549_v5  ;;  %v9152_v5 = vld [vmem:[%s10993_s2 + $0x70] sm:$0xff] }
 0x491   : > { %3176 = vxpose.xlu1.b32.cont [6/8] (short) (narrow) %v3122_v44, 64 }
 0x495   : > { %3177 = vxpose.xlu1.b32.cont [7/8] (short) (narrow) %v3123_v39, 64  ;;  %v11336_v39 = vmov 6  }
 0x499   : > { %3178 = vxpose.xlu1.b32.end [8/8] (short) (narrow) %v3124_v32, 64  ;;  %v9172_v32 = vld [vmem:[%s10993_s2 + $0x78] sm:$0xff] }
 0x49a   : > { %11337 = vst [vmem:[#allocation84_spill] sm:$0xff] %v9172_v32 }
 0x4b7   : > { %5873 = vset.pattern.permute.xlu1 %v11330_v8 }
 0x4b8   : > { %1634 = vperm.xlu1 %5873, %v9097_v46  }
 0x4bc   : > { %1639 = vperm.xlu1 %5873, %v9103_v60  }
 0x4c0   : > { %5874 = vset.pattern.permute.xlu1 %v11331_v37 }
 0x4c1   : > { %1804 = vperm.xlu1 %5874, %v9110_v50  }
 0x4c5   : > { %5876 = vset.pattern.permute.xlu1 %v11330_v8 }
 0x4c6   : > { %1644 = vperm.xlu1 %5876, %v9117_v31  }
 0x4ca   : > { %5877 = vset.pattern.permute.xlu1 %v11331_v37 }
 0x4cb   : > { %1812 = vperm.xlu1 %5877, %v9103_v60  }
 0x4cf   : > { %5878 = vset.pattern.permute.xlu1 %v11332_v21 }
 0x4d0   : > { %2041 = vperm.xlu1 %5878, %v9097_v46  }
 0x4d4   : > { %5879 = vset.pattern.permute.xlu1 %v11330_v8 }
 0x4d5   : > { %1649 = vperm.xlu1 %5879, %v9128_v26  }
 0x4d9   : > { %5880 = vset.pattern.permute.xlu1 %v11332_v21 }
 0x4da   : > { %2045 = vperm.xlu1 %5880, %v9103_v60  }
 0x4de   : > { %5881 = vset.pattern.permute.xlu1 %v11334_v51 }
 0x4df   : > { %2205 = vperm.xlu1 %5881, %v9110_v50  }
 0x4e3   : > { %5882 = vset.pattern.permute.xlu1 %v11330_v8 }
 0x4e4   : > { %1654 = vperm.xlu1 %5882, %v9139_v63  }
 0x4e8   : > { %5883 = vset.pattern.permute.xlu1 %v11331_v37 }
 0x4e9   : > { %1820 = vperm.xlu1 %5883, %v9128_v26  }
 0x4ed   : > { %5884 = vset.pattern.permute.xlu1 %v11334_v51 }
 0x4ee   : > { %2213 = vperm.xlu1 %5884, %v9103_v60  }
 0x4f2   : > { %5885 = vset.pattern.permute.xlu1 %v11335_v57 }
 0x4f3   : > { %2373 = vperm.xlu1 %5885, %v9110_v50  }
 0x4f7   : > { %5886 = vset.pattern.permute.xlu1 %v11330_v8 }
 0x4f8   : > { %1659 = vperm.xlu1 %5886, %v9152_v5  }
 0x4fc   : > { %5887 = vset.pattern.permute.xlu1 %v11331_v37 }
 0x4fd   : > { %1824 = vperm.xlu1 %5887, %v9139_v63   ;;  %v3187_v35 = vpop.trf.xlu1 }
 0x4fe   : > { %5305 = vmatprep.mubr.msk.f32.mxu1 %vm667_vm0, %v3187_v35 }
 0x501   : > { %5888 = vset.pattern.permute.xlu1 %v11334_v51  ;;  %v3188_v7 = vpop.trf.xlu1 }
 0x502   : > { %2217 = vperm.xlu1 %5888, %v9117_v31   ;;  %5306 = vmatmul.mubr.msk.f32.vlgmr.msra.gmra.mrb[0].mxu1 %vm667_vm0, %v3188_v7 }
 0x505   : > { %v3189_v44 = vpop.trf.xlu1 }
 0x506   : > { %5889 = vset.pattern.permute.xlu1 %v11335_v57  ;;  %5308 = vmatprep.mubr.msk.f32.mxu1 %vm667_vm0, %v3189_v44  ;;  %v9177_v44 = vpop.permute.xlu0 %1808 }
 0x507   : > { %2381 = vperm.xlu1 %5889, %v9103_v60  }
 0x509   : > { %v3190_v49 = vpop.trf.xlu1 }
 0x50a   : > { %5309 = vmatmul.mubr.msk.f32.gmra.mrb[2].mxu1 %vm667_vm0, %v3190_v49  ;;  %v1817_v49 = vpop.permute.xlu0 %1816 }
 0x50b   : > { %5890 = vset.pattern.permute.xlu1 %v11336_v39 }
 0x50c   : > { %2545 = vperm.xlu1 %5890, %v9097_v46  }
 0x50d   : > { %v3191_v33 = vpop.trf.xlu1 }
 0x50e   : > { %5311 = vmatprep.mubr.msk.f32.mxu1 %vm667_vm0, %v3191_v33  ;;  %v9186_v33 = vpop.permute.xlu0 %1828 }
 0x50f   : > { %11338 = vst [vmem:[#allocation125_spill] sm:$0xff] %v9186_v33  ;;  %v11344_v33 = vld [vmem:[#allocation77_spill] sm:$0xff] }
 0x510   : > { %5891 = vset.pattern.permute.xlu1 %v11330_v8 }
 0x511   : > { %1664 = vperm.xlu1 %5891, %v9172_v32   ;;  %v3192_v35 = vpop.trf.xlu1 }
 0x512   : > { %5312 = vmatmul.mubr.msk.f32.gmra.mrb[4].mxu1 %vm667_vm0, %v3192_v35  ;;  %v11339_v35 = vmov 7   ;;  %v9190_v41 = vpop.permute.xlu0 %2377 }
 0x515   : > { %5893 = vset.pattern.permute.xlu1 %v11332_v21  ;;  %v3193_v7 = vpop.trf.xlu1 }
 0x516   : > { %2057 = vperm.xlu1 %5893, %v9139_v63   ;;  %5314 = vmatprep.mubr.msk.f32.mxu1 %vm667_vm0, %v3193_v7  ;;  %v9194_v7 = vpop.permute.xlu0 %2385 }
 0x517   : > { %11340 = vst [vmem:[#allocation126_spill] sm:$0xff] %v9194_v7 }
 0x519   : > { %v3194_v8 = vpop.trf.xlu1 }
 0x51a   : > { %5894 = vset.pattern.permute.xlu1 %v11334_v51  ;;  %5315 = vmatmul.mubr.msk.f32.gmra.mrb[6].mxu1 %vm667_vm0, %v3194_v8  ;;  %v2038_v8 = vpop.permute.xlu0 %2037 }
 0x51b   : > { %2221 = vperm.xlu1 %5894, %v9128_v26  }
 0x51f   : > { %5896 = vset.pattern.permute.xlu1 %v11336_v39 }
 0x520   : > { %2549 = vperm.xlu1 %5896, %v9103_v60  }
 0x524   : > { %5897 = vset.pattern.permute.xlu1 %v11339_v35 }
 0x525   : > { %2709 = vperm.xlu1 %5897, %v9110_v50  }
 0x529   : > { %5898 = vset.pattern.permute.xlu1 %v11331_v37  ;;  %v2050_v37 = vpop.permute.xlu0 %2049 }
 0x52a   : > { %1832 = vperm.xlu1 %5898, %v9172_v32   ;;  %v11345_v32 = vld [vmem:[#allocation98_spill] sm:$0xff] }
 0x52b   : > { %v2085_v13 = vmul.f32 %v2038_v8, %v11345_v32 }
 0x52d   : > { %v9226_v20 = vpop.permute.xlu0 %2053 }
 0x52e   : > { %5899 = vset.pattern.permute.xlu1 %v11332_v21  ;;  %v9208_v21 = vsel %vm1554_vm1, %v11341_v29, %v1538_v10  ;;  %v1509_v29 = vmul.f32 %v11285_v0, %v8867_v61 }
 0x52f   : > { %2061 = vperm.xlu1 %5899, %v9152_v5  }
 0x533   : > { %5900 = vset.pattern.permute.xlu1 %v11335_v57 }
 0x534   : > { %2389 = vperm.xlu1 %5900, %v9128_v26   ;;  %v2084_v26 = vmul.f32 %v2038_v8, %v11344_v33  ;;  %v9257_v33 = vpop.permute.xlu0 %2065  ;;  %v11351_v8 = vld [vmem:[#allocation93_spill] sm:$0xff] }
 0x535   : > { %11350 = vst [vmem:[#allocation92_spill] sm:$0xff] %v9257_v33 }
 0x536   : > { %v2124_v32 = vmul.f32 %v7898_v24, %v2084_v26 }
 0x537   : > { %v1635_v17 = vpop.permute.xlu1 %1634 }
 0x538   : > { %5901 = vset.pattern.permute.xlu1 %v11336_v39  ;;  %v11347_v39 = vld [vmem:[#allocation59_spill] sm:$0xff] }
 0x539   : > { %2553 = vperm.xlu1 %5901, %v9117_v31  }
 0x53b   : > { %v1640_v48 = vpop.permute.xlu1 %1639 }
 0x53c   : > { %v1687_v34 = vmul.f32 %v1640_v48, %v9208_v21  ;;  %v1688_v43 = vmul.f32 %v1640_v48, %v9214_v47 }
 0x53d   : > { %5902 = vset.pattern.permute.xlu1 %v11343_v1 }
 0x53e   : > { %v1727_v22 = vmul.f32 %v11292_v36, %v1687_v34  ;;  %v1728_v14 = vmul.f32 %v11294_v30, %v1688_v43  ;;  %2877 = vperm.xlu1 %5902, %v9110_v50  }
 0x540   : > { %v9228_v59 = vadd.f32 %v1727_v22, %v1508_v45  ;;  %v9230_v7 = vadd.f32 %v1728_v14, %v1509_v29  ;;  %v1805_v48 = vpop.permute.xlu1 %1804  ;;  %v1857_v22 = vmul.f32 %v1817_v49, %v8852_v54  ;;  %v1858_v14 = vmul.f32 %v1817_v49, %v8867_v61  ;;  %v11352_v29 = vld [vmem:[#allocation86_spill] sm:$0xff] }
 0x541   : > { %v1851_v3 = vmul.f32 %v1805_v48, %v11346_v16  ;;  %v1852_v53 = vmul.f32 %v1805_v48, %v11347_v39  ;;  %v11348_v45 = vrot.slane %v8852_v54, 7  ;;  %v11349_v16 = vrot.slane %v8867_v61, 7 }
 0x542   : > { %2881 = vperm.xlu1 %5902, %v9097_v46   ;;  %v2125_v49 = vmul.f32 %v11166_v2, %v2085_v13  ;;  %v1686_v48 = vmul.f32 %v1635_v17, %v11352_v29 }
 0x543   : > { %v1891_v43 = vmul.f32 %v11243_v9, %v1851_v3  ;;  %v1892_v34 = vmul.f32 %v11250_v11, %v1852_v53  ;;  %v9245_v50 = vsel %vm1554_vm1, %v1538_v10, %v11348_v45  ;;  %v9251_v39 = vsel %vm1554_vm1, %v1539_v18, %v11349_v16 }
 0x544   : > { %v1685_v10 = vmul.f32 %v1635_v17, %v11351_v8  ;;  %v1897_v16 = vmul.f32 %v11243_v9, %v1857_v22  ;;  %v1726_v19 = vmul.f32 %v11294_v30, %v1686_v48  ;;  %v1854_v22 = vmul.f32 %v9177_v44, %v8425_v6 }
 0x545   : > { %v1923_v3 = vadd.f32 %v1891_v43, %v8927_v42  ;;  %v1924_v53 = vadd.f32 %v1892_v34, %v8934_v15  ;;  %v1645_v46 = vpop.permute.xlu1 %1644  ;;  %v1510_v42 = vmul.f32 %v11284_v23, %v8922_v12  ;;  %v1511_v15 = vmul.f32 %v11285_v0, %v8938_v40 }
 0x546   : > { %v1689_v45 = vmul.f32 %v1645_v46, %v9245_v50  ;;  %v1690_v18 = vmul.f32 %v1645_v46, %v9251_v39  ;;  %5904 = vset.pattern.permute.xlu1 %v11334_v51  ;;  %v2090_v34 = vmul.f32 %v2050_v37, %v9029_v52  ;;  %v2091_v51 = vmul.f32 %v2050_v37, %v9042_v56 }
 0x547   : > { %2229 = vperm.xlu1 %5904, %v9152_v5   ;;  %v9269_v13 = vadd.f32 %v2124_v32, %v1923_v3  ;;  %v9271_v26 = vadd.f32 %v2125_v49, %v1924_v53  ;;  %v1898_v46 = vmul.f32 %v11250_v11, %v1858_v14  ;;  %v1725_v33 = vmul.f32 %v11292_v36, %v1685_v10  ;;  %v2210_v14 = vpop.permute.xlu0 %2209 }
 0x548   : > { %v1729_v17 = vmul.f32 %v11292_v36, %v1689_v45  ;;  %v1730_v43 = vmul.f32 %v11294_v30, %v1690_v18  ;;  %v1506_v49 = vmul.f32 %v11284_v23, %v11305_v28  ;;  %v1507_v45 = vmul.f32 %v11285_v0, %v8756_v55 }
 0x549   : > { %v1853_v37 = vmul.f32 %v9177_v44, %v11283_v27  ;;  %v2130_v18 = vmul.f32 %v7898_v24, %v2090_v34  ;;  %v2254_v27 = vmul.f32 %v2210_v14, %v9208_v21  ;;  %v2255_v54 = vmul.f32 %v2210_v14, %v9214_v47  ;;  %v11355_v14 = vld [vmem:[#allocation100_spill] sm:$0xff] }
 0x54a   : > { %v1761_v3 = vadd.f32 %v1729_v17, %v1510_v42  ;;  %v1762_v32 = vadd.f32 %v1730_v43, %v1511_v15  ;;  %v1813_v53 = vpop.permute.xlu1 %1812  ;;  %v2131_v42 = vmul.f32 %v11166_v2, %v2091_v51  ;;  %v1757_v15 = vadd.f32 %v1725_v33, %v1506_v49 }
 0x54b   : > { %5905 = vset.pattern.permute.xlu1 %v11335_v57  ;;  %v1758_v17 = vadd.f32 %v1726_v19, %v1507_v45  ;;  %v1893_v44 = vmul.f32 %v11243_v9, %v1853_v37  ;;  %v2422_v19 = vmul.f32 %v9190_v41, %v8991_v62  ;;  %v2423_v33 = vmul.f32 %v9190_v41, %v8997_v25  ;;  %v9309_v51 = vpop.permute.xlu0 %2225  ;;  %v11356_v41 = vld [vmem:[#allocation130_spill] sm:$0xff] }
 0x54c   : > { %v1929_v10 = vadd.f32 %v1897_v16, %v1761_v3  ;;  %v1930_v48 = vadd.f32 %v1898_v46, %v1762_v32  ;;  %2393 = vperm.xlu1 %5905, %v9139_v63   ;;  %v1894_v16 = vmul.f32 %v11250_v11, %v1854_v22  ;;  %v11353_v46 = vld [vmem:[#allocation123_spill] sm:$0xff]  ;;  %11354 = vst [vmem:[#allocation127_spill] sm:$0xff] %v9309_v51 }
 0x54d   : > { %v1925_v32 = vadd.f32 %v1893_v44, %v1757_v15  ;;  %v2294_v22 = vmul.f32 %v11214_v4, %v2254_v27  ;;  %v11357_v51 = vld [vmem:[#allocation131_spill] sm:$0xff] }
 0x54e   : > { %v9293_v43 = vadd.f32 %v2130_v18, %v1929_v10  ;;  %v9295_v61 = vadd.f32 %v2131_v42, %v1930_v48  ;;  %v1926_v49 = vadd.f32 %v1894_v16, %v1758_v17  ;;  %v2295_v10 = vmul.f32 %v11355_v14, %v2255_v54  ;;  %v11358_v27 = vld [vmem:[#allocation111_spill] sm:$0xff]  ;;  %v11359_v54 = vld [vmem:[#allocation102_spill] sm:$0xff] }
 0x54f   : > { %v2042_v6 = vpop.permute.xlu1 %2041  ;;  %v1855_v48 = vmul.f32 %v1813_v53, %v11305_v28  ;;  %v1856_v18 = vmul.f32 %v1813_v53, %v8756_v55  ;;  %v2462_v16 = vmul.f32 %v11358_v27, %v2422_v19  ;;  %v1512_v53 = vmul.f32 %v11284_v23, %v11310_v38 }
 0x550   : > { %v2086_v3 = vmul.f32 %v2042_v6, %v11353_v46  ;;  %v2087_v34 = vmul.f32 %v2042_v6, %v8821_v58  ;;  %5906 = vset.pattern.permute.xlu1 %v11339_v35 }
 0x551   : > { %2721 = vperm.xlu1 %5906, %v9117_v31  }
 0x552   : > { %v2126_v45 = vmul.f32 %v7898_v24, %v2086_v3  ;;  %v2127_v37 = vmul.f32 %v11166_v2, %v2087_v34  ;;  %v2463_v3 = vmul.f32 %v11359_v54, %v2423_v33  ;;  %v11360_v34 = vld [vmem:[#allocation128_spill] sm:$0xff] }
 0x554   : > { %v2158_v42 = vadd.f32 %v2126_v45, %v1925_v32  ;;  %v2159_v6 = vadd.f32 %v2127_v37, %v1926_v49  ;;  %v1650_v56 = vpop.permute.xlu1 %1649  ;;  %v1513_v32 = vmul.f32 %v11285_v0, %v11360_v34  ;;  %v9329_v45 = vpop.permute.xlu0 %2233  ;;  %v1895_v37 = vmul.f32 %v11243_v9, %v1855_v48 }
 0x555   : > { %v1691_v52 = vmul.f32 %v1650_v56, %v11356_v41  ;;  %v1692_v15 = vmul.f32 %v1650_v56, %v11357_v51  ;;  %5907 = vset.pattern.permute.xlu1 %v11343_v1  ;;  %11361 = vst [vmem:[#allocation77_spill] sm:$0xff] %v9329_v45 }
 0x556   : > { %v2326_v17 = vadd.f32 %v2294_v22, %v2158_v42  ;;  %v2327_v44 = vadd.f32 %v2295_v10, %v2159_v6  ;;  %2885 = vperm.xlu1 %5907, %v9103_v60   ;;  %v1896_v60 = vmul.f32 %v11250_v11, %v1856_v18 }
 0x557   : > { %v1731_v49 = vmul.f32 %v11292_v36, %v1691_v52  ;;  %v1732_v56 = vmul.f32 %v11294_v30, %v1692_v15  ;;  %v1927_v52 = vadd.f32 %v1895_v37, %v9228_v59 }
 0x558   : > { %v9333_v22 = vadd.f32 %v2462_v16, %v2326_v17  ;;  %v9335_v19 = vadd.f32 %v2463_v3, %v2327_v44  ;;  %v1928_v48 = vadd.f32 %v1896_v60, %v9230_v7  ;;  %v9345_v17 = vpop.permute.xlu0 %2713 }
 0x559   : > { %v1763_v33 = vadd.f32 %v1731_v49, %v1512_v53  ;;  %v1764_v10 = vadd.f32 %v1732_v56, %v1513_v32  ;;  %v2046_v42 = vpop.permute.xlu1 %2045  ;;  %v11362_v49 = vmov 6  }
 0x55a   : > { %v2088_v6 = vmul.f32 %v2046_v42, %v8991_v62  ;;  %v2089_v55 = vmul.f32 %v2046_v42, %v8997_v25  ;;  %5909 = vset.pattern.permute.xlu1 %v11335_v57  ;;  %v11363_v42 = vld [vmem:[#allocation95_spill] sm:$0xff] }
 0x55b   : > { %2397 = vperm.xlu1 %5909, %v9152_v5  }
 0x55c   : > { %v2128_v18 = vmul.f32 %v7898_v24, %v2088_v6  ;;  %v2129_v15 = vmul.f32 %v11166_v2, %v2089_v55  ;;  %v9355_v60 = vpop.permute.xlu0 %2717 }
 0x55e   : > { %v2160_v44 = vadd.f32 %v2128_v18, %v1927_v52  ;;  %v2161_v16 = vadd.f32 %v2129_v15, %v1928_v48  ;;  %v2206_v3 = vpop.permute.xlu1 %2205  ;;  %v11366_v18 = vld [vmem:[#allocation63_spill] sm:$0xff] }
 0x55f   : > { %v2252_v53 = vmul.f32 %v2206_v3, %v11351_v8  ;;  %v2253_v32 = vmul.f32 %v2206_v3, %v11352_v29  ;;  %5910 = vset.pattern.permute.xlu1 %v11362_v49  ;;  %v11364_v8 = vld [vmem:[#allocation121_spill] sm:$0xff]  ;;  %v1515_v15 = vmul.f32 %v11285_v0, %v11366_v18 }
 0x560   : > { %2561 = vperm.xlu1 %5910, %v9139_v63   ;;  %v11365_v29 = vld [vmem:[#allocation81_spill] sm:$0xff] }
 0x561   : > { %v2292_v59 = vmul.f32 %v11214_v4, %v2252_v53  ;;  %v2293_v7 = vmul.f32 %v11355_v14, %v2253_v32  ;;  %v1514_v48 = vmul.f32 %v11284_v23, %v11365_v29 }
 0x563   : > { %v2324_v56 = vadd.f32 %v2292_v59, %v9269_v13  ;;  %v2325_v55 = vadd.f32 %v2293_v7, %v9271_v26  ;;  %v1655_v37 = vpop.permute.xlu1 %1654 }
 0x564   : > { %v1693_v6 = vmul.f32 %v1655_v37, %v11363_v42  ;;  %v1694_v52 = vmul.f32 %v1655_v37, %v11364_v8  ;;  %5912 = vset.pattern.permute.xlu1 %v11343_v1  ;;  %v11368_v37 = vld [vmem:[#allocation80_spill] sm:$0xff] }
 0x565   : > { %2889 = vperm.xlu1 %5912, %v9117_v31   ;;  %v11367_v31 = vld [vmem:[#allocation96_spill] sm:$0xff]  ;;  %v2093_v25 = vmul.f32 %v9226_v20, %v11368_v37 }
 0x566   : > { %v1733_v13 = vmul.f32 %v11292_v36, %v1693_v6  ;;  %v1734_v26 = vmul.f32 %v11294_v30, %v1694_v52  ;;  %v2092_v7 = vmul.f32 %v9226_v20, %v11367_v31  ;;  %v9378_v6 = vpop.permute.xlu0 %2725  ;;  %v11370_v52 = vld [vmem:[#allocation84_spill] sm:$0xff] }
 0x567   : > { %11369 = vst [vmem:[#allocation98_spill] sm:$0xff] %v9378_v6 }
 0x568   : > { %v9367_v3 = vadd.f32 %v1733_v13, %v1514_v48  ;;  %v9369_v53 = vadd.f32 %v1734_v26, %v1515_v15  ;;  %v1821_v32 = vpop.permute.xlu1 %1820 }
 0x569   : > { %v1859_v49 = vmul.f32 %v1821_v32, %v8922_v12  ;;  %v1860_v59 = vmul.f32 %v1821_v32, %v8938_v40  ;;  %5913 = vset.pattern.permute.xlu1 %v11335_v57  ;;  %v2132_v32 = vmul.f32 %v7898_v24, %v2092_v7  ;;  %v2133_v57 = vmul.f32 %v11166_v2, %v2093_v25 }
 0x56a   : > { %2401 = vperm.xlu1 %5913, %v11370_v52  }
 0x56b   : > { %v1899_v48 = vmul.f32 %v11243_v9, %v1859_v49  ;;  %v1900_v15 = vmul.f32 %v11250_v11, %v1860_v59  ;;  %v2542_v59 = vpop.permute.xlu0 %2541 }
 0x56d   : > { %v1931_v13 = vadd.f32 %v1899_v48, %v1763_v33  ;;  %v1932_v26 = vadd.f32 %v1900_v15, %v1764_v10  ;;  %v2214_v62 = vpop.permute.xlu1 %2213  ;;  %v2588_v15 = vmul.f32 %v2542_v59, %v9208_v21 }
 0x56e   : > { %v2256_v45 = vmul.f32 %v2214_v62, %v9245_v50  ;;  %v2257_v28 = vmul.f32 %v2214_v62, %v9251_v39  ;;  %5914 = vset.pattern.permute.xlu1 %v11339_v35  ;;  %v2589_v62 = vmul.f32 %v2542_v59, %v9214_v47  ;;  %v11374_v47 = vld [vmem:[#allocation108_spill] sm:$0xff] }
 0x56f   : > { %2729 = vperm.xlu1 %5914, %v9139_v63   ;;  %v9389_v20 = vadd.f32 %v2132_v32, %v1931_v13  ;;  %v9391_v49 = vadd.f32 %v2133_v57, %v1932_v26  ;;  %v11371_v13 = vld [vmem:[#allocation89_spill] sm:$0xff] }
 0x570   : > { %v2296_v33 = vmul.f32 %v11214_v4, %v2256_v45  ;;  %v2297_v10 = vmul.f32 %v11355_v14, %v2257_v28  ;;  %v11372_v28 = vld [vmem:[#allocation113_spill] sm:$0xff] }
 0x572   : > { %v2328_v7 = vadd.f32 %v2296_v33, %v2160_v44  ;;  %v2329_v48 = vadd.f32 %v2297_v10, %v2161_v16  ;;  %v2374_v25 = vpop.permute.xlu1 %2373  ;;  %v2628_v44 = vmul.f32 %v11372_v28, %v2588_v15  ;;  %v11373_v16 = vld [vmem:[#allocation107_spill] sm:$0xff] }
 0x573   : > { %v2420_v6 = vmul.f32 %v2374_v25, %v11353_v46  ;;  %v2421_v63 = vmul.f32 %v2374_v25, %v8821_v58  ;;  %5915 = vset.pattern.permute.xlu1 %v11343_v1  ;;  %v2629_v32 = vmul.f32 %v11373_v16, %v2589_v62  ;;  %v11375_v46 = vld [vmem:[#allocation103_spill] sm:$0xff]  ;;  %v11376_v58 = vld [vmem:[#allocation125_spill] sm:$0xff] }
 0x574   : > { %2893 = vperm.xlu1 %5915, %v11371_v13   ;;  %v1863_v25 = vmul.f32 %v11376_v58, %v11365_v29 }
 0x575   : > { %v2460_v26 = vmul.f32 %v11358_v27, %v2420_v6  ;;  %v2461_v45 = vmul.f32 %v11359_v54, %v2421_v63  ;;  %v1864_v6 = vmul.f32 %v11376_v58, %v11366_v18  ;;  %v11378_v63 = vld [vmem:[#allocation67_spill] sm:$0xff] }
 0x576   : > { %v1517_v13 = vmul.f32 %v11285_v0, %v11378_v63  ;;  %v1903_v58 = vmul.f32 %v11243_v9, %v1863_v25 }
 0x577   : > { %v2492_v57 = vadd.f32 %v2460_v26, %v2324_v56  ;;  %v2493_v21 = vadd.f32 %v2461_v45, %v2325_v55  ;;  %v1660_v33 = vpop.permute.xlu1 %1659  ;;  %v11377_v56 = vld [vmem:[#allocation79_spill] sm:$0xff] }
 0x578   : > { %v1695_v59 = vmul.f32 %v1660_v33, %v11374_v47  ;;  %v1696_v10 = vmul.f32 %v1660_v33, %v11375_v46  ;;  %5916 = vset.pattern.permute.xlu1 %v11339_v35  ;;  %v1516_v55 = vmul.f32 %v11284_v23, %v11377_v56 }
 0x579   : > { %2733 = vperm.xlu1 %5916, %v9152_v5   ;;  %v9413_v15 = vadd.f32 %v2628_v44, %v2492_v57  ;;  %v9415_v62 = vadd.f32 %v2629_v32, %v2493_v21  ;;  %v1904_v44 = vmul.f32 %v11250_v11, %v1864_v6 }
 0x57a   : > { %v1735_v35 = vmul.f32 %v11292_v36, %v1695_v59  ;;  %v1736_v26 = vmul.f32 %v11294_v30, %v1696_v10 }
 0x57c   : > { %v1767_v45 = vadd.f32 %v1735_v35, %v1516_v55  ;;  %v1768_v33 = vadd.f32 %v1736_v26, %v1517_v13  ;;  %v1825_v29 = vpop.permute.xlu1 %1824 }
 0x57d   : > { %v1861_v32 = vmul.f32 %v1825_v29, %v11310_v38  ;;  %v1862_v57 = vmul.f32 %v1825_v29, %v11360_v34  ;;  %2737 = vperm.xlu1 %5916, %v11370_v52   ;;  %v11379_v52 = vld [vmem:[#allocation126_spill] sm:$0xff] }
 0x57e   : > { %v9428_v21 = vadd.f32 %v1903_v58, %v1767_v45  ;;  %v9430_v18 = vadd.f32 %v1904_v44, %v1768_v33  ;;  %v2426_v35 = vmul.f32 %v11379_v52, %v11367_v31  ;;  %v2427_v26 = vmul.f32 %v11379_v52, %v11368_v37 }
 0x57f   : > { %v1901_v59 = vmul.f32 %v11243_v9, %v1861_v32  ;;  %v1902_v10 = vmul.f32 %v11250_v11, %v1862_v57  ;;  %v11381_v57 = vld [vmem:[#allocation83_spill] sm:$0xff] }
 0x580   : > { %v2467_v33 = vmul.f32 %v11359_v54, %v2427_v26 }
 0x581   : > { %v1933_v55 = vadd.f32 %v1901_v59, %v9367_v3  ;;  %v1934_v25 = vadd.f32 %v1902_v10, %v9369_v53  ;;  %5918 = vset.pattern.permute.xlu1 %v11343_v1  ;;  %v2218_v6 = vpop.permute.xlu1 %2217  ;;  %v2466_v1 = vmul.f32 %v11358_v27, %v2426_v35 }
 0x582   : > { %v2258_v13 = vmul.f32 %v2218_v6, %v11356_v41  ;;  %v2259_v29 = vmul.f32 %v2218_v6, %v11357_v51  ;;  %2901 = vperm.xlu1 %5918, %v9152_v5   ;;  %v11380_v5 = vld [vmem:[#allocation122_spill] sm:$0xff] }
 0x584   : > { %v2298_v45 = vmul.f32 %v11214_v4, %v2258_v13  ;;  %v2299_v3 = vmul.f32 %v11355_v14, %v2259_v29 }
 0x586   : > { %v2382_v53 = vpop.permute.xlu1 %2381  ;;  %v2330_v58 = vadd.f32 %v2298_v45, %v9293_v43  ;;  %v2331_v44 = vadd.f32 %v2299_v3, %v9295_v61  ;;  %v11382_v61 = vld [vmem:[#allocation52_spill] sm:$0xff]  ;;  %v11383_v3 = vld [vmem:[#allocation94_spill] sm:$0xff] }
 0x587   : > { %v2424_v32 = vmul.f32 %v2382_v53, %v11380_v5  ;;  %v2425_v59 = vmul.f32 %v2382_v53, %v11381_v57  ;;  %v2758_v45 = vmul.f32 %v9345_v17, %v11382_v61  ;;  %v2759_v53 = vmul.f32 %v9345_v17, %v11383_v3  ;;  %v11386_v17 = vld [vmem:[#allocation127_spill] sm:$0xff]  ;;  %v11388_v61 = vld [vmem:[#allocation76_spill] sm:$0xff] }
 0x588   : > { %v9452_v10 = vadd.f32 %v2466_v1, %v2330_v58  ;;  %v9454_v6 = vadd.f32 %v2467_v33, %v2331_v44  ;;  %v11384_v44 = vld [vmem:[#allocation114_spill] sm:$0xff] }
 0x589   : > { %v2464_v13 = vmul.f32 %v11358_v27, %v2424_v32  ;;  %v2465_v29 = vmul.f32 %v11359_v54, %v2425_v59  ;;  %v2798_v32 = vmul.f32 %v11384_v44, %v2758_v45 }
 0x58b   : > { %v2496_v52 = vadd.f32 %v2464_v13, %v2328_v7  ;;  %v2497_v35 = vadd.f32 %v2465_v29, %v2329_v48  ;;  %v2546_v37 = vpop.permute.xlu1 %2545  ;;  %v2262_v29 = vmul.f32 %v11386_v17, %v11374_v47 }
 0x58c   : > { %v2590_v26 = vmul.f32 %v2546_v37, %v9245_v50  ;;  %v2591_v43 = vmul.f32 %v2546_v37, %v9251_v39  ;;  %v11385_v50 = vld [vmem:[#allocation106_spill] sm:$0xff] }
 0x58d   : > { %v2799_v59 = vmul.f32 %v11385_v50, %v2759_v53 }
 0x58e   : > { %v2630_v1 = vmul.f32 %v11372_v28, %v2590_v26  ;;  %v2631_v33 = vmul.f32 %v11373_v16, %v2591_v43  ;;  %v2263_v26 = vmul.f32 %v11386_v17, %v11375_v46  ;;  %v11387_v43 = vld [vmem:[#allocation66_spill] sm:$0xff] }
 0x590   : > { %v2662_v58 = vadd.f32 %v2630_v1, %v9333_v22  ;;  %v2663_v7 = vadd.f32 %v2631_v33, %v9335_v19  ;;  %v1665_v48 = vpop.permute.xlu1 %1664 }
 0x592   : > { %v9470_v39 = vadd.f32 %v2798_v32, %v2662_v58  ;;  %v9472_v37 = vadd.f32 %v2799_v59, %v2663_v7  ;;  %v2302_v58 = vmul.f32 %v11214_v4, %v2262_v29  ;;  %v2303_v7 = vmul.f32 %v11355_v14, %v2263_v26 }
 0x593   : > { %v2760_v29 = vmul.f32 %v9355_v60, %v8922_v12  ;;  %v2761_v26 = vmul.f32 %v9355_v60, %v8938_v40  ;;  %v11390_v12 = vld [vmem:[#allocation88_spill] sm:$0xff] }
 0x595   : > { %v2058_v13 = vpop.permute.xlu1 %2057 }
 0x596   : > { %v2094_v22 = vmul.f32 %v2058_v13, %v11387_v43  ;;  %v2095_v19 = vmul.f32 %v2058_v13, %v11388_v61 }
 0x598   : > { %v2134_v3 = vmul.f32 %v7898_v24, %v2094_v22  ;;  %v2135_v45 = vmul.f32 %v11166_v2, %v2095_v19 }
 0x59a   : > { %v2166_v53 = vadd.f32 %v2134_v3, %v1933_v55  ;;  %v2167_v1 = vadd.f32 %v2135_v45, %v1934_v25  ;;  %v2222_v33 = vpop.permute.xlu1 %2221 }
 0x59b   : > { %v2260_v32 = vmul.f32 %v2222_v33, %v11363_v42  ;;  %v2261_v59 = vmul.f32 %v2222_v33, %v11364_v8  ;;  %v1968_v33 = vrot.slane %v11378_v63, 1 }
 0x59c   : > { %v9486_v17 = vadd.f32 %v2302_v58, %v2166_v53  ;;  %v9488_v31 = vadd.f32 %v2303_v7, %v2167_v1  ;;  %v2801_v58 = vmul.f32 %v11385_v50, %v2761_v26  ;;  %v1697_v7 = vmul.f32 %v1665_v48, %v11390_v12 }
 0x59d   : > { %v2300_v13 = vmul.f32 %v11214_v4, %v2260_v32  ;;  %v2301_v22 = vmul.f32 %v11355_v14, %v2261_v59  ;;  %v11391_v32 = vld [vmem:[#allocation85_spill] sm:$0xff] }
 0x59e   : > { %11389 = vst [vmem:[#allocation75_spill] sm:$0xff] %v9488_v31  ;;  %v1698_v40 = vmul.f32 %v1665_v48, %v11391_v32 }
 0x59f   : > { %v2550_v19 = vpop.permute.xlu1 %2549  ;;  %v9493_v55 = vadd.f32 %v2300_v13, %v9389_v20  ;;  %v9496_v25 = vadd.f32 %v2301_v22, %v9391_v49  ;;  %v1967_v20 = vrot.slane %v11377_v56, 1  ;;  %v2800_v49 = vmul.f32 %v11384_v44, %v2760_v29  ;;  %v11393_v22 = vld [vmem:[#allocation55_spill] sm:$0xff]  ;;  %v11397_v29 = vld [vmem:[#allocation97_spill] sm:$0xff] }
 0x5a0   : > { %v2592_v3 = vmul.f32 %v2550_v19, %v11356_v41  ;;  %v2593_v45 = vmul.f32 %v2550_v19, %v11357_v51  ;;  %v11392_v51 = vld [vmem:[#allocation61_spill] sm:$0xff]  ;;  %v11398_v31 = vrot.slane %v11397_v29, 1 }
 0x5a2   : > { %v2632_v53 = vmul.f32 %v11372_v28, %v2592_v3  ;;  %v2633_v1 = vmul.f32 %v11373_v16, %v2593_v45  ;;  %v11394_v3 = vld [vmem:[#allocation65_spill] sm:$0xff]  ;;  %v9524_v26 = vsel %vm1971_vm2, %v1968_v33, %v11398_v31 }
 0x5a3   : > { %v11395_v45 = vrot.slane %v11394_v3, 1 }
 0x5a4   : > { %v2664_v60 = vadd.f32 %v2632_v53, %v2496_v52  ;;  %v2665_v41 = vadd.f32 %v2633_v1, %v2497_v35  ;;  %v2710_v59 = vpop.permute.xlu1 %2709  ;;  %v1737_v1 = vmul.f32 %v11292_v36, %v1697_v7  ;;  %v1519_v36 = vmul.f32 %v11285_v0, %v11397_v29 }
 0x5a5   : > { %v2756_v13 = vmul.f32 %v2710_v59, %v11392_v51  ;;  %v2757_v19 = vmul.f32 %v2710_v59, %v11393_v22  ;;  %v9518_v38 = vsel %vm1971_vm2, %v1967_v20, %v11395_v45  ;;  %v1738_v59 = vmul.f32 %v11294_v30, %v1698_v40  ;;  %v11399_v51 = vld [vmem:[#allocation92_spill] sm:$0xff]  ;;  %v11400_v40 = vld [vmem:[#allocation110_spill] sm:$0xff] }
 0x5a6   : > { %v9526_v48 = vadd.f32 %v2800_v49, %v2664_v60  ;;  %v9528_v52 = vadd.f32 %v2801_v58, %v2665_v41  ;;  %v2098_v22 = vmul.f32 %v11399_v51, %v9518_v38  ;;  %v2099_v45 = vmul.f32 %v11399_v51, %v9524_v26  ;;  %v11401_v41 = vld [vmem:[#allocation77_spill] sm:$0xff] }
 0x5a7   : > { %v2796_v35 = vmul.f32 %v11384_v44, %v2756_v13  ;;  %v2797_v53 = vmul.f32 %v11385_v50, %v2757_v19  ;;  %v1518_v60 = vmul.f32 %v11284_v23, %v11394_v3  ;;  %v2266_v13 = vmul.f32 %v11401_v41, %v11400_v40  ;;  %v11402_v19 = vld [vmem:[#allocation82_spill] sm:$0xff]  ;;  %v11405_v40 = vld [vmem:[#allocation63_spill] sm:$0xff] }
 0x5a8   : > { %v2138_v23 = vmul.f32 %v7898_v24, %v2098_v22  ;;  %v2139_v0 = vmul.f32 %v11166_v2, %v2099_v45 }
 0x5a9   : > { %v9539_v31 = vadd.f32 %v2796_v35, %v9413_v15  ;;  %v9542_v49 = vadd.f32 %v2797_v53, %v9415_v62  ;;  %v1833_v58 = vpop.permute.xlu1 %1832  ;;  %v2267_v15 = vmul.f32 %v11401_v41, %v11402_v19  ;;  %v1769_v35 = vadd.f32 %v1737_v1, %v1518_v60 }
 0x5aa   : > { %v1865_v30 = vmul.f32 %v1833_v58, %v11377_v56  ;;  %v1866_v7 = vmul.f32 %v1833_v58, %v11378_v63  ;;  %v1770_v62 = vadd.f32 %v1738_v59, %v1519_v36  ;;  %v11403_v56 = vld [vmem:[#allocation81_spill] sm:$0xff]  ;;  %v11406_v41 = vrot.slane %v11405_v40, 1 }
 0x5ab   : > { %v11404_v58 = vrot.slane %v11403_v56, 1  ;;  %v2306_v60 = vmul.f32 %v11214_v4, %v2266_v13  ;;  %v2307_v36 = vmul.f32 %v11355_v14, %v2267_v15 }
 0x5ac   : > { %v1905_v53 = vmul.f32 %v11243_v9, %v1865_v30  ;;  %v1906_v51 = vmul.f32 %v11250_v11, %v1866_v7  ;;  %v9568_v1 = vsel %vm1971_vm2, %v11406_v41, %v1968_v33  ;;  %v2558_v33 = vpop.permute.xlu0 %2557 }
 0x5ad   : > { %v9562_v63 = vsel %vm1971_vm2, %v11404_v58, %v1967_v20 }
 0x5ae   : > { %v1937_v3 = vadd.f32 %v1905_v53, %v1769_v35  ;;  %v1938_v29 = vadd.f32 %v1906_v51, %v1770_v62  ;;  %v2062_v9 = vpop.permute.xlu1 %2061  ;;  %v11407_v51 = vld [vmem:[#allocation98_spill] sm:$0xff] }
 0x5af   : > { %v2096_v11 = vmul.f32 %v2062_v9, %v9562_v63  ;;  %v2097_v59 = vmul.f32 %v2062_v9, %v9568_v1 }
 0x5b0   : > { %v2170_v22 = vadd.f32 %v2138_v23, %v1937_v3  ;;  %v2171_v45 = vadd.f32 %v2139_v0, %v1938_v29  ;;  %v2596_v3 = vmul.f32 %v2558_v33, %v11374_v47  ;;  %v2597_v29 = vmul.f32 %v2558_v33, %v11375_v46 }
 0x5b1   : > { %v2136_v20 = vmul.f32 %v7898_v24, %v2096_v11  ;;  %v2137_v30 = vmul.f32 %v11166_v2, %v2097_v59  ;;  %v2764_v23 = vmul.f32 %v11407_v51, %v11403_v56 }
 0x5b2   : > { %v9576_v7 = vadd.f32 %v2306_v60, %v2170_v22  ;;  %v9578_v34 = vadd.f32 %v2307_v36, %v2171_v45  ;;  %v2637_v47 = vmul.f32 %v11373_v16, %v2597_v29  ;;  %v9619_v29 = vld [vmem:[%s11044_s16 + $0x18] ss:$0 sm:$0xff] }
 0x5b3   : > { %v2168_v35 = vadd.f32 %v2136_v20, %v9428_v21  ;;  %v2169_v62 = vadd.f32 %v2137_v30, %v9430_v18  ;;  %v2390_v53 = vpop.permute.xlu1 %2389  ;;  %v2765_v21 = vmul.f32 %v11407_v51, %v11405_v40  ;;  %v2636_v18 = vmul.f32 %v11372_v28, %v2596_v3  ;;  %v11409_v30 = vld [vmem:[#allocation69_spill] sm:$0xff] }
 0x5b4   : > { %v2428_v13 = vmul.f32 %v2390_v53, %v11387_v43  ;;  %v2429_v24 = vmul.f32 %v2390_v53, %v11388_v61  ;;  %v2804_v56 = vmul.f32 %v11384_v44, %v2764_v23  ;;  %v9613_v53 = vld [vmem:[%s11044_s16 + $0x10] ss:$0 sm:$0xff] }
 0x5b5   : > { %v2805_v22 = vmul.f32 %v11385_v50, %v2765_v21 }
 0x5b6   : > { %v2468_v2 = vmul.f32 %v11358_v27, %v2428_v13  ;;  %v2469_v15 = vmul.f32 %v11359_v54, %v2429_v24 }
 0x5b8   : > { %v2554_v0 = vpop.permute.xlu1 %2553  ;;  %v2500_v46 = vadd.f32 %v2468_v2, %v9493_v55  ;;  %v2501_v58 = vadd.f32 %v2469_v15, %v9496_v25 }
 0x5b9   : > { %v2594_v41 = vmul.f32 %v2554_v0, %v11363_v42  ;;  %v2595_v9 = vmul.f32 %v2554_v0, %v11364_v8  ;;  %v11408_v8 = vld [vmem:[#allocation112_spill] sm:$0xff] }
 0x5ba   : > { %v2668_v11 = vadd.f32 %v2636_v18, %v2500_v46  ;;  %v2669_v59 = vadd.f32 %v2637_v47, %v2501_v58 }
 0x5bb   : > { %v2634_v40 = vmul.f32 %v11372_v28, %v2594_v41  ;;  %v2635_v45 = vmul.f32 %v11373_v16, %v2595_v9 }
 0x5bc   : > { %v9602_v60 = vadd.f32 %v2804_v56, %v2668_v11  ;;  %v9604_v36 = vadd.f32 %v2805_v22, %v2669_v59  ;;  %v11410_v59 = vld [vmem:[#allocation75_spill] sm:$0xff] }
 0x5bd   : > { %v2878_v55 = vpop.permute.xlu1 %2877  ;;  %v2666_v25 = vadd.f32 %v2634_v40, %v9452_v10  ;;  %v2667_v42 = vadd.f32 %v2635_v45, %v9454_v6  ;;  %v11411_v40 = vld [vmem:[#allocation99_spill] sm:$0xff]  ;;  %v11412_v45 = vld [vmem:[#allocation128_spill] sm:$0xff] }
 0x5be   : > { %v2924_v20 = vmul.f32 %v2878_v55, %v11408_v8  ;;  %v2925_v33 = vmul.f32 %v2878_v55, %v11409_v30  ;;  %v9652_v55 = vld [vmem:[#allocation14 + $0x8] sm:$0xff]  ;;  %v9654_v30 = vld [vmem:[#allocation14] sm:$0xff] }
 0x5c0   : > { %v2964_v3 = vmul.f32 %v9613_v53, %v2924_v20  ;;  %v2965_v10 = vmul.f32 %v9619_v29, %v2925_v33 }
 0x5c1   : > { %v2882_v13 = vpop.permute.xlu1 %2881 }
 0x5c2   : > { %v9623_v6 = vadd.f32 %v2964_v3, %v9539_v31  ;;  %v9626_v24 = vadd.f32 %v2965_v10, %v9542_v49  ;;  %v2926_v2 = vmul.f32 %v2882_v13, %v11380_v5  ;;  %v2927_v15 = vmul.f32 %v2882_v13, %v11381_v57  ;;  %v11413_v10 = vld [vmem:[#allocation96_spill] sm:$0xff] }
 0x5c4   : > { %v2966_v51 = vmul.f32 %v9613_v53, %v2926_v2  ;;  %v2967_v23 = vmul.f32 %v9619_v29, %v2927_v15  ;;  %v11414_v2 = vld [vmem:[#allocation80_spill] sm:$0xff] }
 0x5c6   : > { %v9633_v21 = vadd.f32 %v2966_v51, %v9470_v39  ;;  %v9636_v18 = vadd.f32 %v2967_v23, %v9472_v37  ;;  %v2230_v47 = vpop.permute.xlu1 %2229 }
 0x5c7   : > { %v2264_v31 = vmul.f32 %v2230_v47, %v11390_v12  ;;  %v2265_v49 = vmul.f32 %v2230_v47, %v11391_v32 }
 0x5c9   : > { %v2304_v0 = vmul.f32 %v11214_v4, %v2264_v31  ;;  %v2305_v5 = vmul.f32 %v11355_v14, %v2265_v49 }
 0x5cb   : > { %v2336_v57 = vadd.f32 %v2304_v0, %v2168_v35  ;;  %v2337_v46 = vadd.f32 %v2305_v5, %v2169_v62  ;;  %v2394_v58 = vpop.permute.xlu1 %2393  ;;  %v2566_v5 = vpop.permute.xlu0 %2565 }
 0x5cc   : > { %v2430_v41 = vmul.f32 %v2394_v58, %v9562_v63  ;;  %v2431_v39 = vmul.f32 %v2394_v58, %v9568_v1 }
 0x5ce   : > { %v2470_v9 = vmul.f32 %v11358_v27, %v2430_v41  ;;  %v2471_v37 = vmul.f32 %v11359_v54, %v2431_v39  ;;  %v9676_v39 = vld [vmem:[#allocation14 + $0x18] sm:$0xff] }
 0x5d0   : > { %v2502_v11 = vadd.f32 %v2470_v9, %v9486_v17  ;;  %v2503_v56 = vadd.f32 %v2471_v37, %v11410_v59  ;;  %v2722_v22 = vpop.permute.xlu1 %2721  ;;  %v11415_v37 = vld [vmem:[#allocation110_spill] sm:$0xff] }
 0x5d1   : > { %v2762_v4 = vmul.f32 %v2722_v22, %v11411_v40  ;;  %v2763_v14 = vmul.f32 %v2722_v22, %v11412_v45  ;;  %v2600_v59 = vmul.f32 %v2566_v5, %v11415_v37  ;;  %v2601_v22 = vmul.f32 %v2566_v5, %v11402_v19 }
 0x5d3   : > { %v2802_v35 = vmul.f32 %v11384_v44, %v2762_v4  ;;  %v2803_v62 = vmul.f32 %v11385_v50, %v2763_v14  ;;  %v9687_v14 = vld [vmem:[#allocation14 + $0x10] sm:$0xff]  ;;  %v2640_v19 = vmul.f32 %v11372_v28, %v2600_v59 }
 0x5d5   : > { %v5307_v8 = vpop.f32.mrb[0].mxu1  ;;  %v2886_v20 = vpop.permute.xlu1 %2885  ;;  %v2834_v33 = vadd.f32 %v2802_v35, %v2666_v25  ;;  %v2835_v3 = vadd.f32 %v2803_v62, %v2667_v42 }
 0x5d6   : > { %v9657_v17 = vadd.f32 %v5307_v8, %v9652_v55  ;;  %v2928_v13 = vmul.f32 %v2886_v20, %v11413_v10  ;;  %v2929_v15 = vmul.f32 %v2886_v20, %v11414_v2  ;;  %v3293_v51 = vpop.f32.mrb[1].mxu1 }
 0x5d7   : > { %v9664_v31 = vadd.f32 %v3293_v51, %v9654_v30 }
 0x5d8   : > { %v2968_v23 = vmul.f32 %v9613_v53, %v2928_v13  ;;  %v2969_v47 = vmul.f32 %v9619_v29, %v2929_v15  ;;  %v3335_v49 = vsel %vm667_vm0, %v9657_v17, -inf  ;;  %v2641_v13 = vmul.f32 %v11373_v16, %v2601_v22  ;;  %v9713_v22 = vld [vmem:[#allocation14 + $0x20] sm:$0xff] }
 0x5d9   : > { %3336 = vmax.xlane.f32.xlu0 %v3335_v49  ;;  %v3332_v9 = vsel %vm667_vm0, %v9664_v31, -inf }
 0x5da   : > { %v9669_v25 = vadd.f32 %v2968_v23, %v9526_v48  ;;  %v9672_v42 = vadd.f32 %v2969_v47, %v9528_v52  ;;  %v2398_v0 = vpop.permute.xlu1 %2397 }
 0x5db   : > { %v2432_v58 = vmul.f32 %v2398_v0, %v9518_v38  ;;  %v2433_v41 = vmul.f32 %v2398_v0, %v9524_v26  ;;  %v2570_v0 = vpop.permute.xlu0 %2569 }
 0x5dd   : > { %v2472_v48 = vmul.f32 %v11358_v27, %v2432_v58  ;;  %v2473_v52 = vmul.f32 %v11359_v54, %v2433_v41  ;;  %3333 = vmax.xlane.f32.xlu0 %v3332_v9  ;;  %v5310_v40 = vpop.f32.mrb[2].mxu1 }
 0x5de   : > { %v9685_v4 = vadd.f32 %v5310_v40, %v9676_v39  ;;  %v3303_v45 = vpop.f32.mrb[3].mxu1 }
 0x5df   : > { %v2504_v35 = vadd.f32 %v2472_v48, %v2336_v57  ;;  %v2505_v62 = vadd.f32 %v2473_v52, %v2337_v46  ;;  %v2562_v8 = vpop.permute.xlu1 %2561  ;;  %v9694_v2 = vadd.f32 %v3303_v45, %v9687_v14  ;;  %v11416_v48 = vld [vmem:[#allocation104_spill] sm:$0xff] }
 0x5e0   : > { %v2598_v20 = vmul.f32 %v2562_v8, %v11390_v12  ;;  %v2599_v10 = vmul.f32 %v2562_v8, %v11391_v32  ;;  %v3341_v15 = vsel %vm667_vm0, %v9685_v4, -inf  ;;  %v9704_v32 = vld [vmem:[#allocation14 + $0x28] sm:$0xff] }
 0x5e1   : > { %3342 = vmax.xlane.f32.xlu0 %v3341_v15  ;;  %v9700_v46 = vadd.f32 %v2640_v19, %v2504_v35  ;;  %v9702_v12 = vadd.f32 %v2641_v13, %v2505_v62  ;;  %v3338_v41 = vsel %vm667_vm0, %v9694_v2, -inf  ;;  %v11417_v62 = vld [vmem:[#allocation105_spill] sm:$0xff]  ;;  %v2898_v19 = vpop.permute.xlu0 %2897  ;;  %v9729_v13 = vld [vmem:[#allocation14 + $0x38] sm:$0xff] }
 0x5e2   : > { %v2638_v51 = vmul.f32 %v11372_v28, %v2598_v20  ;;  %v2639_v57 = vmul.f32 %v11373_v16, %v2599_v10  ;;  %v11418_v20 = vld [vmem:[#allocation90_spill] sm:$0xff]  ;;  %v11419_v15 = vld [vmem:[#allocation109_spill] sm:$0xff] }
 0x5e4   : > { %v2670_v23 = vadd.f32 %v2638_v51, %v2502_v11  ;;  %v2671_v47 = vadd.f32 %v2639_v57, %v2503_v56  ;;  %v2890_v49 = vpop.permute.xlu1 %2889  ;;  %v2603_v51 = vmul.f32 %v2570_v0, %v11419_v15 }
 0x5e5   : > { %v2930_v5 = vmul.f32 %v2890_v49, %v11387_v43  ;;  %v2931_v58 = vmul.f32 %v2890_v49, %v11388_v61  ;;  %v5313_v9 = vpop.f32.mrb[4].mxu1  ;;  %3339 = vmax.xlane.f32.xlu0 %v3338_v41  ;;  %v2602_v61 = vmul.f32 %v2570_v0, %v11416_v48  ;;  %v2934_v41 = vmul.f32 %v2898_v19, %v9518_v38 }
 0x5e6   : > { %v9711_v37 = vadd.f32 %v5313_v9, %v9704_v32  ;;  %v3313_v59 = vpop.f32.mrb[5].mxu1 }
 0x5e7   : > { %v2970_v11 = vmul.f32 %v9613_v53, %v2930_v5  ;;  %v2971_v56 = vmul.f32 %v9619_v29, %v2931_v58  ;;  %v9725_v45 = vadd.f32 %v3313_v59, %v9713_v22  ;;  %v9737_v58 = vld [vmem:[#allocation14 + $0x30] sm:$0xff] }
 0x5e8   : > { %v3347_v43 = vsel %vm667_vm0, %v9711_v37, -inf }
 0x5e9   : > { %v9720_v52 = vadd.f32 %v2970_v11, %v2834_v33  ;;  %v9722_v40 = vadd.f32 %v2971_v56, %v2835_v3  ;;  %v2402_v35 = vpop.permute.xlu1 %2401  ;;  %3348 = vmax.xlane.f32.xlu0 %v3347_v43  ;;  %v2642_v3 = vmul.f32 %v11372_v28, %v2602_v61  ;;  %v3344_v49 = vsel %vm667_vm0, %v9725_v45, -inf  ;;  %v11420_v11 = vld [vmem:[#allocation79_spill] sm:$0xff] }
 0x5ea   : > { %v2434_v8 = vmul.f32 %v2402_v35, %v11417_v62  ;;  %v2435_v10 = vmul.f32 %v2402_v35, %v11418_v20  ;;  %v2935_v28 = vmul.f32 %v2898_v19, %v9524_v26  ;;  %v11421_v43 = vld [vmem:[#allocation67_spill] sm:$0xff]  ;;  %v2643_v61 = vmul.f32 %v11373_v16, %v2603_v51 }
 0x5eb   : > { %v2974_v26 = vmul.f32 %v9613_v53, %v2934_v41 }
 0x5ec   : > { %v2474_v57 = vmul.f32 %v11358_v27, %v2434_v8  ;;  %v2475_v33 = vmul.f32 %v11359_v54, %v2435_v10  ;;  %v2975_v19 = vmul.f32 %v9619_v29, %v2935_v28 }
 0x5ed   : > { %v5316_v5 = vpop.f32.mrb[6].mxu1  ;;  %3345 = vmax.xlane.f32.xlu0 %v3344_v49 }
 0x5ee   : > { %v2506_v9 = vadd.f32 %v2474_v57, %v9576_v7  ;;  %v2507_v59 = vadd.f32 %v2475_v33, %v9578_v34  ;;  %v9743_v0 = vadd.f32 %v5316_v5, %v9729_v13  ;;  %v2730_v27 = vpop.permute.xlu1 %2729  ;;  %v3323_v54 = vpop.f32.mrb[7].mxu1 }
 0x5ef   : > { %v2766_v56 = vmul.f32 %v2730_v27, %v11420_v11  ;;  %v2767_v48 = vmul.f32 %v2730_v27, %v11421_v43  ;;  %v9752_v7 = vadd.f32 %v3323_v54, %v9737_v58  ;;  %v11423_v11 = vld [vmem:[#allocation74_spill] sm:$0xff] }
 0x5f0   : > { %v3353_v38 = vsel %vm667_vm0, %v9743_v0, -inf  ;;  %v9756_v8 = vadd.f32 %v2642_v3, %v2506_v9  ;;  %v2675_v10 = vadd.f32 %v2643_v61, %v2507_v59 }
 0x5f1   : > { %v2806_v34 = vmul.f32 %v11384_v44, %v2766_v56  ;;  %v2807_v35 = vmul.f32 %v11385_v50, %v2767_v48  ;;  %3354 = vmax.xlane.f32.xlu0 %v3353_v38  ;;  %v3350_v57 = vsel %vm667_vm0, %v9752_v7, -inf }
 0x5f3   : > { %v2838_v15 = vadd.f32 %v2806_v34, %v2670_v23  ;;  %v2839_v16 = vadd.f32 %v2807_v35, %v2671_v47  ;;  %v2894_v51 = vpop.permute.xlu1 %2893 }
 0x5f4   : > { %v2932_v33 = vmul.f32 %v2894_v51, %v9562_v63  ;;  %v2933_v49 = vmul.f32 %v2894_v51, %v9568_v1  ;;  %v11422_v63 = vld [vmem:[#allocation97_spill] sm:$0xff] }
 0x5f5   : > { %v9764_v5 = vadd.f32 %v2974_v26, %v2838_v15  ;;  %v9766_v3 = vadd.f32 %v2975_v19, %v2839_v16  ;;  %3351 = vmax.xlane.f32.xlu0 %v3350_v57 }
 0x5f6   : > { %v2972_v9 = vmul.f32 %v9613_v53, %v2932_v33  ;;  %v2973_v41 = vmul.f32 %v9619_v29, %v2933_v49 }
 0x5f8   : > { %v9771_v23 = vadd.f32 %v2972_v9, %v9602_v60  ;;  %v9774_v47 = vadd.f32 %v2973_v41, %v9604_v36  ;;  %v9776_v59 = vpop.permute.xlu1 %2733  ;;  %v6073_v36 = vld [vmem:[%s10993_s2 + $0x78] sm:$0xff] }
 0x5f9   : > { %v2769_v1 = vmul.f32 %v9776_v59, %v11422_v63 }
 0x5fb   : > { %v2809_v27 = vmul.f32 %v11385_v50, %v2769_v1 }
 0x5fc   : > { %v9781_v54 = vpop.permute.xlu1 %2737 }
 0x5fd   : > { %v9784_v28 = vadd.f32 %v2809_v27, %v9702_v12  ;;  %v2771_v56 = vmul.f32 %v9781_v54, %v11423_v11 }
 0x5ff   : > { %v2811_v60 = vmul.f32 %v11385_v50, %v2771_v56 }
 0x601   : > { %v9789_v43 = vadd.f32 %v2811_v60, %v2675_v10 }
 0x60b   : > { %2905 = vperm.xlu0 %5917, %v6073_v36  }
 0x666   : > { %v3337_v48 = vpop.xlane.xlu0 %3336 }
 0x667   : > { %v3357_v61 = vsub.f32 %v9657_v17, %v3337_v48 }
 0x669   : > { %v3366_v38 = vmul.f32 1.442695, %v3357_v61 }
 0x66a   : > { %v3334_v34 = vpop.xlane.xlu0 %3333 }
 0x66b   : > { %5991 = vpow2.f32 %v3366_v38  ;;  %v3356_v12 = vsub.f32 %v9664_v31, %v3334_v34  ;;  %v11424_v34 = vld [vmem:[#allocation117_spill] sm:$0xff] }
 0x66d   : > { %v3364_v35 = vmul.f32 1.442695, %v3356_v12  ;;  %v11425_v12 = vld [vmem:[#allocation58_spill] sm:$0xff] }
 0x66e   : > { %v3343_v26 = vpop.xlane.xlu0 %3342 }
 0x66f   : > { %5993 = vpow2.f32 %v3364_v35  ;;  %v3359_v50 = vsub.f32 %v9685_v4, %v3343_v26  ;;  %v11426_v35 = vld [vmem:[#allocation118_spill] sm:$0xff]  ;;  %v11427_v26 = vld [vmem:[#allocation68_spill] sm:$0xff] }
 0x671   : > { %v3370_v16 = vmul.f32 1.442695, %v3359_v50  ;;  %v11428_v50 = vld [vmem:[#allocation120_spill] sm:$0xff] }
 0x672   : > { %v3340_v10 = vpop.xlane.xlu0 %3339 }
 0x673   : > { %v3358_v19 = vsub.f32 %v9694_v2, %v3340_v10  ;;  %v11429_v10 = vld [vmem:[#allocation64_spill] sm:$0xff] }
 0x675   : > { %v9798_v15 = vpop.eup %5991  ;;  %v3368_v51 = vmul.f32 1.442695, %v3358_v19  ;;  %v11430_v19 = vld [vmem:[#allocation60_spill] sm:$0xff] }
 0x676   : > { %v3383_v17 = vsel %vm667_vm0, %v9798_v15, 0.0  ;;  %v3349_v57 = vpop.xlane.xlu0 %3348 }
 0x677   : > { %3384 = vadd.xlane.f32.xlu0 %v3383_v17  ;;  %5995 = vpow2.f32 %v3368_v51  ;;  %v3361_v31 = vsub.f32 %v9711_v37, %v3349_v57  ;;  %v9845_v17 = vpop.permute.xlu1 %2901  ;;  %v11432_v57 = vld [vmem:[#allocation57_spill] sm:$0xff] }
 0x678   : > { %5997 = vpow2.f32 %v3370_v16  ;;  %v11431_v16 = vld [vmem:[#allocation71_spill] sm:$0xff] }
 0x679   : > { %v9803_v33 = vpop.eup %5993  ;;  %v3374_v49 = vmul.f32 1.442695, %v3361_v31  ;;  %v11433_v31 = vld [vmem:[#allocation65_spill] sm:$0xff] }
 0x67a   : > { %v3380_v4 = vsel %vm667_vm0, %v9803_v33, 0.0  ;;  %v3346_v2 = vpop.xlane.xlu0 %3345 }
 0x67b   : > { %3381 = vadd.xlane.f32.xlu1 %v3380_v4  ;;  %v3360_v9 = vsub.f32 %v9725_v45, %v3346_v2  ;;  %5999 = vpow2.f32 %v3374_v49  ;;  %v2768_v49 = vmul.f32 %v9776_v59, %v11433_v31  ;;  %v11434_v4 = vld [vmem:[#allocation73_spill] sm:$0xff]  ;;  %v11437_v59 = vld [vmem:[#allocation91_spill] sm:$0xff] }
 0x67d   : > { %v3372_v41 = vmul.f32 1.442695, %v3360_v9  ;;  %v11435_v9 = vld [vmem:[#allocation119_spill] sm:$0xff] }
 0x67e   : > { %v3355_v63 = vpop.xlane.xlu0 %3354 }
 0x67f   : > { %6001 = vpow2.f32 %v3372_v41  ;;  %v3363_v1 = vsub.f32 %v9743_v0, %v3355_v63  ;;  %v9857_v41 = vadd.f32 %v11435_v9, %v9633_v21  ;;  %v11436_v63 = vld [vmem:[#allocation101_spill] sm:$0xff]  ;;  %v2808_v21 = vmul.f32 %v11384_v44, %v2768_v49 }
 0x681   : > { %v9809_v27 = vpop.eup %5995  ;;  %v3378_v37 = vmul.f32 1.442695, %v3363_v1  ;;  %v2770_v1 = vmul.f32 %v9781_v54, %v11436_v63  ;;  %v11439_v54 = vld [vmem:[#allocation116_spill] sm:$0xff] }
 0x682   : > { %v3386_v11 = vsel %vm667_vm0, %v9809_v27, 0.0  ;;  %v9813_v56 = vpop.eup %5997  ;;  %v3352_v51 = vpop.xlane.xlu0 %3351 }
 0x683   : > { %6003 = vpow2.f32 %v3378_v37  ;;  %3387 = vadd.xlane.f32.xlu0 %v3386_v11  ;;  %v3389_v60 = vsel %vm667_vm0, %v9813_v56, 0.0  ;;  %v2936_v37 = vmul.f32 %v9845_v17, %v11417_v62  ;;  %v9865_v11 = vadd.f32 %v11435_v9, %v9623_v6 }
 0x684   : > { %v3742_v62 = vmul.f32 %v9857_v41, %v9857_v41  ;;  %v9882_v6 = vadd.f32 %v11435_v9, %v9720_v52  ;;  %v2840_v52 = vadd.f32 %v2808_v21, %v9700_v46 }
 0x685   : > { %v9817_v45 = vpop.eup %5999 }
 0x686   : > { %v3395_v48 = vsel %vm667_vm0, %v9817_v45, 0.0 }
 0x687   : > { %3390 = vadd.xlane.f32.xlu0 %v3389_v60  ;;  %v9871_v60 = vadd.f32 %v11435_v9, %v9669_v25  ;;  %v2976_v25 = vmul.f32 %v9613_v53, %v2936_v37 }
 0x689   : > { %v9819_v36 = vpop.eup %6001 }
 0x68a   : > { %v3392_v0 = vsel %vm667_vm0, %v9819_v36, 0.0  ;;  %v9853_v2 = vpop.permute.xlu0 %2905 }
 0x68b   : > { %3393 = vadd.xlane.f32.xlu1 %v3392_v0  ;;  %3396 = vadd.xlane.f32.xlu0 %v3395_v48  ;;  %v11438_v0 = vld [vmem:[#allocation78_spill] sm:$0xff] }
 0x68c   : > { %v2938_v48 = vmul.f32 %v9853_v2, %v11438_v0 }
 0x68d   : > { %v9825_v61 = vpop.eup %6003 }
 0x68e   : > { %v3401_v38 = vsel %vm667_vm0, %v9825_v61, 0.0 }
 0x68f   : > { %3402 = vadd.xlane.f32.xlu0 %v3401_v38  ;;  %v2810_v38 = vmul.f32 %v11384_v44, %v2770_v1  ;;  %v11441_v44 = vld [vmem:[#allocation129_spill] sm:$0xff]  ;;  %v9913_v1 = vadd.f32 %v11435_v9, %v9764_v5 }
 0x69c   : > { %3460 = vrot.lane.b32.xlu1 %v11424_v34, %s6399_s17  ;;  %v3741_v34 = vmul.f32 %v9865_v11, %v9865_v11 }
 0x69e   : > { %v3749_v31 = vsel %vm667_vm0, %v3741_v34, 0.0 }
 0x6a0   : > { %3464 = vrot.lane.b32.xlu1 %v11425_v12, %s6399_s17  ;;  %v11440_v12 = vld [vmem:[#allocation62_spill] sm:$0xff] }
 0x6a4   : > { %3466 = vrot.lane.b32.xlu1 %v11426_v35, %s6399_s17  ;;  %v3743_v35 = vmul.f32 %v9871_v60, %v9871_v60 }
 0x6a5   : > { %3462 = vrot.lane.b32.xlu0 %v11427_v26, %s6399_s17  ;;  %v9894_v26 = vadd.f32 %v11435_v9, %v9771_v23 }
 0x6a6   : > { %v3752_v23 = vsel %vm667_vm0, %v3743_v35, 0.0 }
 0x6a7   : > { %v3745_v46 = vmul.f32 %v9894_v26, %v9894_v26 }
 0x6a8   : > { %3468 = vrot.lane.b32.xlu1 %v11428_v50, %s6399_s17  ;;  %v2978_v50 = vmul.f32 %v9613_v53, %v2938_v48  ;;  %v11442_v53 = vld [vmem:[#allocation115_spill] sm:$0xff]  ;;  %v3746_v48 = vmul.f32 %v9913_v1, %v9913_v1 }
 0x6a9   : > { %3470 = vrot.lane.b32.xlu0 %v11429_v10, %s6399_s17  ;;  %v3750_v10 = vsel %vm667_vm0, %v3742_v62, 0.0 }
 0x6ac   : > { %3472 = vrot.lane.b32.xlu1 %v11430_v19, %s6399_s17  ;;  %v3744_v19 = vmul.f32 %v9882_v6, %v9882_v6 }
 0x6ad   : > { %3474 = vrot.lane.b32.xlu0 %v11431_v16, %s6399_s17  ;;  %v2842_v16 = vadd.f32 %v2810_v38, %v9756_v8  ;;  %v3362_v38 = vsub.f32 %v9752_v7, %v3352_v51 }
 0x6ae   : > { %v3754_v63 = vsel %vm667_vm0, %v3744_v19, 0.0 }
 0x6af   : > { %v3010_v49 = vadd.f32 %v2978_v50, %v2842_v16 }
 0x6b0   : > { %3476 = vrot.lane.b32.xlu1 %v11432_v57, %s6399_s17  ;;  %v3008_v57 = vadd.f32 %v2976_v25, %v2840_v52  ;;  %v3758_v25 = vsel %vm667_vm0, %v3746_v48, 0.0  ;;  %v3376_v52 = vmul.f32 1.442695, %v3362_v38 }
 0x6b1   : > { %3478 = vrot.lane.b32.xlu0 %v11434_v4, %s6399_s17  ;;  %v3751_v4 = vadd.f32 %v3750_v10, %v3749_v31  ;;  %v9920_v21 = vadd.f32 %v11435_v9, %v3010_v49 }
 0x6b2   : > { %v9916_v8 = vadd.f32 %v11435_v9, %v3008_v57  ;;  %6005 = vpow2.f32 %v3376_v52 }
 0x6b3   : > { %v3753_v37 = vadd.f32 %v3752_v23, %v3751_v4  ;;  %v3748_v5 = vmul.f32 %v9920_v21, %v9920_v21  ;;  %v11443_v23 = vld [vmem:[#allocation87_spill] sm:$0xff] }
 0x6b4   : > { %3480 = vrot.lane.b32.xlu1 %v11437_v59, %s6399_s17  ;;  %v3756_v59 = vsel %vm667_vm0, %v3745_v46, 0.0 }
 0x6b5   : > { %3482 = vrot.lane.b32.xlu0 %v11439_v54, %s6399_s17  ;;  %v3755_v0 = vadd.f32 %v3754_v63, %v3753_v37  ;;  %v3747_v54 = vmul.f32 %v9916_v8, %v9916_v8  ;;  %v3762_v9 = vsel %vm667_vm0, %v3748_v5, 0.0 }
 0x6b7   : > { %v3757_v62 = vadd.f32 %v3756_v59, %v3755_v0  ;;  %v3760_v34 = vsel %vm667_vm0, %v3747_v54, 0.0 }
 0x6b8   : > { %3484 = vrot.lane.b32.xlu1 %v11440_v12, %s6399_s17 }
 0x6b9   : > { %3486 = vrot.lane.b32.xlu0 %v11441_v44, %s6399_s17  ;;  %v3759_v12 = vadd.f32 %v3758_v25, %v3757_v62 }
 0x6bb   : > { %v3761_v35 = vadd.f32 %v3760_v34, %v3759_v12 }
 0x6bc   : > { %v9932_v19 = vpop.eup %6005 }
 0x6bd   : > { %3490 = vrot.lane.b32.xlu0 %v11442_v53, %s6399_s17  ;;  %v3763_v50 = vadd.f32 %v3762_v9, %v3761_v35  ;;  %v3398_v57 = vsel %vm667_vm0, %v9932_v19, 0.0  ;;  %v9945_v35 = vld [vmem:[%s11329_s7] ss:$0 sm:$0xff] }
 0x6bf   : > { %v3764_v44 = vrot.slane %v3763_v50, 4 }
 0x6c1   : > { %v3765_v10 = vadd.f32 %v3764_v44, %v3763_v50 }
 0x6c3   : > { %v3766_v16 = vrot.slane %v3765_v10, 2 }
 0x6c5   : > { %v3767_v7 = vadd.f32 %v3766_v16, %v3765_v10 }
 0x6c7   : > { %v3768_v51 = vrot.slane %v3767_v7, 1 }
 0x6c9   : > { %v3769_v31 = vadd.f32 %v3768_v51, %v3767_v7 }
 0x6cb   : > { %6007 = vrsqrt.f32 %v3769_v31  ;;  %vm3772_vm7 = vcmp.eq.f32.partialorder %v3769_v31, inf  ;;  %v3775_v4 = vand.u32 2147483648, %v3769_v31  ;;  %vm3774_vm8 = vcmp.eq.f32.partialorder %v3769_v31, 0.0 }
 0x6d5   : > { %v6008_v46 = vpop.eup %6007 }
 0x6d6   : > { %v3771_v49 = vmul.f32 %v6008_v46, %v3769_v31 }
 0x6d8   : > { %v3773_v53 = vsel %vm3772_vm7, %v3769_v31, %v3771_v49 }
 0x6d9   : > { %v3776_v63 = vsel %vm3774_vm8, %v3775_v4, %v3773_v53 }
 0x6da   : > { %v3777_v37 = vmax.f32 %v3776_v63, 1e-12 }
 0x6dc   : > { %3399 = vadd.xlane.f32.xlu1 %v3398_v57  ;;  %6009 = vrcp.f32 %v3777_v37 }
 0x6e6   : > { %v9938_v48 = vpop.eup %6009 }
 0x6e7   : > { %v3779_v38 = vmul.f32 %v9938_v48, %v9865_v11  ;;  %v3780_v50 = vmul.f32 %v9938_v48, %v9857_v41  ;;  %v3781_v31 = vmul.f32 %v9938_v48, %v9871_v60 }
 0x6e9   : > { %v3787_v52 = vmul.f32 %v9945_v35, %v3779_v38  ;;  %v3788_v51 = vmul.f32 %v9945_v35, %v3780_v50 }
 0x6ed   : > { %3488 = vrot.lane.b32.xlu1 %v11443_v23, %s6399_s17 }
 0x704   : > { %v3385_v59 = vpop.xlane.xlu0 %3384 }
 0x705   : > { %6011 = vrcp.f32 %v3385_v59 }
 0x708   : > { %v3382_v0 = vpop.xlane.xlu1 %3381 }
 0x709   : > { %6013 = vrcp.f32 %v3382_v0 }
 0x70f   : > { %v6012_v54 = vpop.eup %6011 }
 0x710   : > { %v3413_v62 = vmul.f32 %v6012_v54, %v3385_v59  ;;  %v3388_v5 = vpop.xlane.xlu0 %3387  ;;  %v3789_v59 = vmul.f32 %v9945_v35, %v3781_v31 }
 0x711   : > { %6015 = vrcp.f32 %v3388_v5 }
 0x712   : > { %v3421_v25 = vsub.f32 2.0, %v3413_v62  ;;  %v2937_v62 = vmul.f32 %v9845_v17, %v11418_v20 }
 0x713   : > { %v6014_v34 = vpop.eup %6013 }
 0x714   : > { %v3412_v12 = vmul.f32 %v6014_v34, %v3382_v0  ;;  %v3391_v9 = vpop.xlane.xlu0 %3390  ;;  %v3429_v44 = vmul.f32 %v6012_v54, %v3421_v25 }
 0x715   : > { %6017 = vrcp.f32 %v3391_v9 }
 0x716   : > { %v3420_v10 = vsub.f32 2.0, %v3412_v12  ;;  %3841 = vxpose.xlu1.b32.start [1/8] (short) (narrow) %v3787_v52, 64  ;;  %v3437_v23 = vmul.f32 %v9798_v15, %v3429_v44  ;;  %v3782_v15 = vmul.f32 %v9938_v48, %v9882_v6  ;;  %v3783_v52 = vmul.f32 %v9938_v48, %v9894_v26 }
 0x718   : > { %v3428_v16 = vmul.f32 %v6014_v34, %v3420_v10  ;;  %v3397_v57 = vpop.xlane.xlu0 %3396  ;;  %v3394_v7 = vpop.xlane.xlu1 %3393  ;;  %v3790_v12 = vmul.f32 %v9945_v35, %v3782_v15 }
 0x719   : > { %6019 = vrcp.f32 %v3397_v57 }
 0x71a   : > { %v3436_v46 = vmul.f32 %v9803_v33, %v3428_v16  ;;  %6021 = vrcp.f32 %v3394_v7  ;;  %3842 = vxpose.xlu1.b32.cont [2/8] (short) (narrow) %v3788_v51, 64  ;;  %v11446_v33 = vld [vmem:[#allocation72_spill] sm:$0xff] }
 0x71b   : > { %v6016_v53 = vpop.eup %6015  ;;  %v9968_v0 = vadd.f32 %v11446_v33, %v9626_v24  ;;  %v9972_v54 = vadd.f32 %v11446_v33, %v9636_v18  ;;  %v9984_v38 = vadd.f32 %v11446_v33, %v9672_v42  ;;  %v11447_v18 = vld [vmem:[#allocation124_spill] sm:$0xff]  ;;  %v9997_v50 = vadd.f32 %v11446_v33, %v9722_v40 }
 0x71c   : > { %v5553_v4 = vpack.c.bf16 %v3437_v23, %v3436_v46  ;;  %v3414_v63 = vmul.f32 %v6016_v53, %v3388_v5  ;;  %v9961_v37 = vpop.permute.xlu1 %3460  ;;  %v2939_v25 = vmul.f32 %v9853_v2, %v11447_v18  ;;  %v2977_v42 = vmul.f32 %v9619_v29, %v2937_v62 }
 0x71d   : > { %5333 = vmatprep.mubr.msk.f32.mxu1 %vm667_vm0, %v9961_v37  ;;  %v3795_v20 = vmul.f32 %v9968_v0, %v9968_v0  ;;  %v3796_v17 = vmul.f32 %v9972_v54, %v9972_v54  ;;  %v3797_v10 = vmul.f32 %v9984_v38, %v9984_v38  ;;  %v10004_v16 = vadd.f32 %v11446_v33, %v9774_v47 }
 0x71e   : > { %5555 = vmatprep.subr.msk.bf16.mxu1 %vm9957_vm9, %v5553_v4  ;;  %v3422_v5 = vsub.f32 2.0, %v3414_v63  ;;  %3843 = vxpose.xlu1.b32.cont [3/8] (short) (narrow) %v3789_v59, 64  ;;  %v2979_v51 = vmul.f32 %v9619_v29, %v2939_v25  ;;  %v3791_v40 = vmul.f32 %v9945_v35, %v3783_v52  ;;  %v3798_v59 = vmul.f32 %v9997_v50, %v9997_v50 }
 0x71f   : > { %5558 = vmatpush3.bf16.xpose.msk.msra.mxu1 %vm9957_vm9, %v5553_v4  ;;  %v6018_v24 = vpop.eup %6017  ;;  %v3803_v4 = vsel %vm667_vm0, %v3795_v20, 0.0  ;;  %v3804_v63 = vsel %vm667_vm0, %v3796_v17, 0.0  ;;  %v3009_v47 = vadd.f32 %v2977_v42, %v9784_v28  ;;  %v3785_v28 = vmul.f32 %v9938_v48, %v9916_v8 }
 0x720   : > { %v3415_v34 = vmul.f32 %v6018_v24, %v3391_v9  ;;  %v3430_v44 = vmul.f32 %v6016_v53, %v3422_v5  ;;  %v3784_v53 = vmul.f32 %v9938_v48, %v9913_v1  ;;  %v3806_v5 = vsel %vm667_vm0, %v3797_v10, 0.0 }
 0x721   : > { %v3011_v18 = vadd.f32 %v2979_v51, %v9789_v43  ;;  %v10027_v20 = vadd.f32 %v11446_v33, %v9766_v3  ;;  %v10030_v17 = vadd.f32 %v11446_v33, %v3009_v47 }
 0x722   : > { %v3423_v2 = vsub.f32 2.0, %v3415_v34  ;;  %3844 = vxpose.xlu1.b32.cont [4/8] (short) (narrow) %v3790_v12, 64  ;;  %v3438_v29 = vmul.f32 %v9809_v27, %v3430_v44  ;;  %v3792_v12 = vmul.f32 %v9945_v35, %v3784_v53  ;;  %v3805_v27 = vadd.f32 %v3804_v63, %v3803_v4 }
 0x723   : > { %v6020_v9 = vpop.eup %6019  ;;  %v10040_v3 = vadd.f32 %v11446_v33, %v3011_v18 }
 0x724   : > { %v6022_v31 = vpop.eup %6021  ;;  %v3431_v23 = vmul.f32 %v6018_v24, %v3423_v2  ;;  %v3417_v46 = vmul.f32 %v6020_v9, %v3397_v57  ;;  %v3799_v24 = vmul.f32 %v10004_v16, %v10004_v16  ;;  %v3807_v42 = vadd.f32 %v3806_v5, %v3805_v27 }
 0x725   : > { %v3416_v15 = vmul.f32 %v6022_v31, %v3394_v7  ;;  %v3802_v33 = vmul.f32 %v10040_v3, %v10040_v3 }
 0x726   : > { %v3439_v62 = vmul.f32 %v9813_v56, %v3431_v23  ;;  %v3425_v57 = vsub.f32 2.0, %v3417_v46  ;;  %3845 = vxpose.xlu1.b32.cont [5/8] (short) (narrow) %v3791_v40, 64  ;;  %v3808_v56 = vsel %vm667_vm0, %v3798_v59, 0.0  ;;  %v3810_v2 = vsel %vm667_vm0, %v3799_v24, 0.0 }
 0x727   : > { %v3424_v25 = vsub.f32 2.0, %v3416_v15  ;;  %v3809_v10 = vadd.f32 %v3808_v56, %v3807_v42  ;;  %v3816_v4 = vsel %vm667_vm0, %v3802_v33, 0.0 }
 0x728   : > { %v3433_v34 = vmul.f32 %v6020_v9, %v3425_v57  ;;  %v5559_v7 = vpack.c.bf16 %v3439_v62, %v3438_v29  ;;  %v3786_v9 = vmul.f32 %v9938_v48, %v9920_v21  ;;  %v10059_v29 = vpop.permute.xlu1 %3464 }
 0x729   : > { %v3432_v52 = vmul.f32 %v6022_v31, %v3424_v25  ;;  %v3800_v31 = vmul.f32 %v10027_v20, %v10027_v20  ;;  %v3811_v23 = vadd.f32 %v3810_v2, %v3809_v10 }
 0x72a   : > { %v3441_v43 = vmul.f32 %v9817_v45, %v3433_v34  ;;  %3846 = vxpose.xlu1.b32.cont [6/8] (short) (narrow) %v3792_v12, 64  ;;  %5561 = vmatprep.subr.msk.bf16.mxu1 %vm9957_vm9, %v5559_v7  ;;  %v3793_v45 = vmul.f32 %v9945_v35, %v3785_v28  ;;  %v3794_v48 = vmul.f32 %v9945_v35, %v3786_v9 }
 0x72b   : > { %v3440_v44 = vmul.f32 %v9819_v36, %v3432_v52  ;;  %5564 = vmatpush3.bf16.xpose.msk.msra.mxu1 %vm9957_vm9, %v5559_v7  ;;  %v3801_v36 = vmul.f32 %v10030_v17, %v10030_v17  ;;  %v3812_v46 = vsel %vm667_vm0, %v3800_v31, 0.0  ;;  %v3403_v7 = vpop.xlane.xlu0 %3402 }
 0x72c   : > { %v3813_v53 = vadd.f32 %v3812_v46, %v3811_v23  ;;  %v10061_v35 = vpop.permute.xlu1 %3466 }
 0x72d   : > { %v5565_v51 = vpack.c.bf16 %v3441_v43, %v3440_v44  ;;  %v3814_v40 = vsel %vm667_vm0, %v3801_v36, 0.0 }
 0x72e   : > { %3847 = vxpose.xlu1.b32.cont [7/8] (short) (narrow) %v3793_v45, 64  ;;  %v3815_v63 = vadd.f32 %v3814_v40, %v3813_v53 }
 0x72f   : > { %5567 = vmatprep.subr.msk.bf16.mxu1 %vm9957_vm9, %v5565_v51 }
 0x730   : > { %v3817_v59 = vadd.f32 %v3816_v4, %v3815_v63  ;;  %v10063_v24 = vpop.permute.xlu1 %3468 }
 0x731   : > { %11448 = vst [vmem:[#allocation59_spill] sm:$0xff] %v10063_v24 }
 0x732   : > { %3848 = vxpose.xlu1.b32.end [8/8] (short) (narrow) %v3794_v48, 64  ;;  %v3818_v15 = vrot.slane %v3817_v59, 4 }
 0x733   : > { %5570 = vmatpush3.bf16.xpose.msk.msra.mxu1 %vm9957_vm9, %v5565_v51 }
 0x734   : > { %v3819_v47 = vadd.f32 %v3818_v15, %v3817_v59  ;;  %v10065_v25 = vpop.permute.xlu1 %3472  ;;  %v10077_v59 = vpop.permute.xlu0 %3462 }
 0x735   : > { %11449 = vst [vmem:[#allocation93_spill] sm:$0xff] %v10065_v25 }
 0x736   : > { %v3820_v62 = vrot.slane %v3819_v47, 2 }
 0x738   : > { %v3821_v57 = vadd.f32 %v3820_v62, %v3819_v47  ;;  %v10067_v34 = vpop.permute.xlu1 %3476 }
 0x73a   : > { %v3822_v5 = vrot.slane %v3821_v57, 1 }
 0x73c   : > { %v3823_v18 = vadd.f32 %v3822_v5, %v3821_v57  ;;  %v10069_v28 = vpop.permute.xlu1 %3480 }
 0x73e   : > { %6023 = vrsqrt.f32 %v3823_v18  ;;  %vm3826_vm10 = vcmp.eq.f32.partialorder %v3823_v18, inf  ;;  %v3829_v56 = vand.u32 2147483648, %v3823_v18  ;;  %vm3828_vm11 = vcmp.eq.f32.partialorder %v3823_v18, 0.0 }
 0x73f   : > { %6025 = vrcp.f32 %v3403_v7 }
 0x740   : > { %v10071_v43 = vpop.permute.xlu1 %3484 }
 0x748   : > { %v6024_v12 = vpop.eup %6023 }
 0x749   : > { %v3825_v27 = vmul.f32 %v6024_v12, %v3823_v18  ;;  %v6026_v9 = vpop.eup %6025 }
 0x74a   : > { %v3419_v45 = vmul.f32 %v6026_v9, %v3403_v7 }
 0x74b   : > { %v3827_v52 = vsel %vm3826_vm10, %v3823_v18, %v3825_v27 }
 0x74c   : > { %v3830_v42 = vsel %vm3828_vm11, %v3829_v56, %v3827_v52  ;;  %v3427_v10 = vsub.f32 2.0, %v3419_v45 }
 0x74d   : > { %v3831_v2 = vmax.f32 %v3830_v42, 1e-12 }
 0x74e   : > { %v3435_v36 = vmul.f32 %v6026_v9, %v3427_v10 }
 0x750   : > { %v3443_v46 = vmul.f32 %v9825_v61, %v3435_v36 }
 0x769   : > { %v3400_v44 = vpop.xlane.xlu1 %3399 }
 0x76a   : > { %6027 = vrcp.f32 %v3400_v44 }
 0x76b   : > { %6029 = vrcp.f32 %v3831_v2 }
 0x76d   : > { %v10107_v42 = vpop.permute.xlu1 %3488 }
 0x774   : > { %v6028_v51 = vpop.eup %6027 }
 0x775   : > { %v3418_v31 = vmul.f32 %v6028_v51, %v3400_v44  ;;  %v6030_v33 = vpop.eup %6029 }
 0x776   : > { %v3833_v53 = vmul.f32 %v6030_v33, %v9968_v0  ;;  %v3834_v4 = vmul.f32 %v6030_v33, %v9972_v54  ;;  %v3835_v47 = vmul.f32 %v6030_v33, %v9984_v38  ;;  %v3836_v61 = vmul.f32 %v6030_v33, %v9997_v50 }
 0x777   : > { %v3426_v23 = vsub.f32 2.0, %v3418_v31  ;;  %v3837_v57 = vmul.f32 %v6030_v33, %v10004_v16  ;;  %v3838_v5 = vmul.f32 %v6030_v33, %v10027_v20  ;;  %v3839_v7 = vmul.f32 %v6030_v33, %v10030_v17 }
 0x778   : > { %v5577_v15 = vpack.c.bf16 %v3834_v4, %v3833_v53  ;;  %v5581_v62 = vpack.c.bf16 %v3836_v61, %v3835_v47  ;;  %v3840_v27 = vmul.f32 %v6030_v33, %v10040_v3 }
 0x779   : > { %v3434_v48 = vmul.f32 %v6028_v51, %v3426_v23  ;;  %v5585_v12 = vpack.c.bf16 %v3838_v5, %v3837_v57 }
 0x77a   : > { %v5589_v52 = vpack.c.bf16 %v3840_v27, %v3839_v7 }
 0x77b   : > { %v3442_v40 = vmul.f32 %v9932_v19, %v3434_v48  ;;  %v10085_v19 = vpop.permute.xlu0 %3470 }
 0x77c   : > { %11450 = vst [vmem:[#allocation86_spill] sm:$0xff] %v10085_v19 }
 0x77d   : > { %v5571_v63 = vpack.c.bf16 %v3443_v46, %v3442_v40 }
 0x77f   : > { %5573 = vmatprep.subr.msk.bf16.mxu1 %vm9957_vm9, %v5571_v63  ;;  %v10093_v18 = vpop.permute.xlu0 %3474 }
 0x780   : > { %5576 = vmatpush3.bf16.xpose.msk.msra.mxu1 %vm9957_vm9, %v5571_v63  ;;  %11451 = vst [vmem:[#allocation123_spill] sm:$0xff] %v10093_v18 }
 0x781   : > { %5578 = vmatprep.subr.bf16.mxu1 %v5577_v15 }
 0x783   : > { %v10103_v56 = vpop.permute.xlu0 %3478 }
 0x787   : > { %5334 = vmatmul.mubr.msk.f32.vlgmr.msra.gmra.mrb[8].mxu1 %vm667_vm0, %v10077_v59  ;;  %v10113_v44 = vpop.permute.xlu0 %3482 }
 0x788   : > { %5336 = vmatprep.mubr.msk.f32.mxu1 %vm667_vm0, %v10059_v29  ;;  %5580 = vmatpush3.bf16.msra.mxu1 %v5577_v15 }
 0x789   : > { %5582 = vmatprep.subr.bf16.mxu1 %v5581_v62 }
 0x78b   : > { %5337 = vmatmul.mubr.msk.f32.gmra.mrb[10].mxu1 %vm667_vm0, %v10061_v35  ;;  %v10121_v45 = vpop.permute.xlu0 %3486 }
 0x78c   : > { %5339 = vmatprep.mubr.msk.f32.mxu1 %vm667_vm0, %v10063_v24  ;;  %5584 = vmatpush3.bf16.msra.mxu1 %v5581_v62 }
 0x78d   : > { %5586 = vmatprep.subr.bf16.mxu1 %v5585_v12 }
 0x78f   : > { %5340 = vmatmul.mubr.msk.f32.gmra.mrb[12].mxu1 %vm667_vm0, %v10085_v19  ;;  %v10129_v51 = vpop.permute.xlu0 %3490 }
 0x790   : > { %5342 = vmatprep.mubr.msk.f32.mxu1 %vm667_vm0, %v10065_v25  ;;  %5588 = vmatpush3.bf16.msra.mxu1 %v5585_v12 }
 0x791   : > { %5590 = vmatprep.subr.bf16.mxu1 %v5589_v52 }
 0x793   : > { %5343 = vmatmul.mubr.msk.f32.gmra.mrb[14].mxu1 %vm667_vm0, %v10093_v18 }
 0x794   : > { %5345 = vmatprep.mubr.msk.f32.mxu1 %vm667_vm0, %v10067_v34  ;;  %5592 = vmatpush3.bf16.msra.mxu1 %v5589_v52 }
 0x796   : > { %v3857_v2 = vpop.trf.xlu1 }
 0x797   : > { %5346 = vmatmul.mubr.msk.f32.gmra.mrb[16].mxu1 %vm667_vm0, %v10103_v56 }
 0x798   : > { %5348 = vmatprep.mubr.msk.f32.mxu1 %vm667_vm0, %v10069_v28 }
 0x79a   : > { %v3858_v9 = vpop.trf.xlu1 }
 0x79b   : > { %5349 = vmatmul.mubr.msk.f32.gmra.mrb[18].mxu1 %vm667_vm0, %v10113_v44 }
 0x79c   : > { %5351 = vmatprep.mubr.msk.f32.mxu1 %vm667_vm0, %v10071_v43 }
 0x79e   : > { %v3859_v10 = vpop.trf.xlu1 }
 0x79f   : > { %5352 = vmatmul.mubr.msk.f32.gmra.mrb[20].mxu1 %vm667_vm0, %v10121_v45 }
 0x7a0   : > { %5354 = vmatprep.mubr.msk.f32.mxu1 %vm667_vm0, %v10107_v42 }
 0x7a2   : > { %v3860_v31 = vpop.trf.xlu1 }
 0x7a3   : > { %5355 = vmatmul.mubr.msk.f32.gmra.mrb[22].mxu1 %vm667_vm0, %v10129_v51 }
 0x7a4   : > { %5373 = vmatprep.mubr.msk.f32.mxu1 %vm667_vm0, %v3857_v2 }
 0x7a6   : > { %v3861_v36 = vpop.trf.xlu1 }
 0x7a7   : > { %5374 = vmatmul.mubr.msk.f32.vlgmr.msra.gmra.mrb[24].mxu1 %vm667_vm0, %v3858_v9 }
 0x7a8   : > { %5376 = vmatprep.mubr.msk.f32.mxu1 %vm667_vm0, %v3859_v10 }
 0x7aa   : > { %v3862_v23 = vpop.trf.xlu1 }
 0x7ab   : > { %5377 = vmatmul.mubr.msk.f32.gmra.mrb[26].mxu1 %vm667_vm0, %v3860_v31 }
 0x7ac   : > { %5379 = vmatprep.mubr.msk.f32.mxu1 %vm667_vm0, %v3861_v36 }
 0x7ae   : > { %v3863_v33 = vpop.trf.xlu1 }
 0x7af   : > { %5380 = vmatmul.mubr.msk.f32.gmra.mrb[28].mxu1 %vm667_vm0, %v3862_v23 }
 0x7b0   : > { %5382 = vmatprep.mubr.msk.f32.mxu1 %vm667_vm0, %v3863_v33 }
 0x7b2   : > { %v3864_v48 = vpop.trf.xlu1 }
 0x7b3   : > { %5383 = vmatmul.mubr.msk.f32.gmra.mrb[30].mxu1 %vm667_vm0, %v3864_v48 }
 0x85a   : > { %v10141_v46 = vpop.f32.mrb[8].mxu1 }
 0x85b   : > { %v10143_v40 = vpop.f32.mrb[9].mxu1 }
 0x85e   : > { %v10145_v53 = vpop.f32.mrb[10].mxu1 }
 0x85f   : > { %11452 = vst [vmem:[#allocation100_spill] sm:$0xff] %v10145_v53  ;;  %v10147_v4 = vpop.f32.mrb[11].mxu1 }
 0x862   : > { %v10149_v63 = vpop.f32.mrb[12].mxu1 }
 0x863   : > { %11453 = vst [vmem:[#allocation130_spill] sm:$0xff] %v10149_v63  ;;  %v10151_v15 = vpop.f32.mrb[13].mxu1 }
 0x864   : > { %11454 = vst [vmem:[#allocation131_spill] sm:$0xff] %v10151_v15 }
 0x866   : > { %v10153_v47 = vpop.f32.mrb[14].mxu1 }
 0x867   : > { %11455 = vst [vmem:[#allocation111_spill] sm:$0xff] %v10153_v47  ;;  %v10155_v61 = vpop.f32.mrb[15].mxu1 }
 0x868   : > { %11456 = vst [vmem:[#allocation102_spill] sm:$0xff] %v10155_v61 }
 0x86a   : > { %v10157_v62 = vpop.f32.mrb[16].mxu1 }
 0x86b   : > { %v10159_v57 = vpop.f32.mrb[17].mxu1 }
 0x86e   : > { %v10161_v5 = vpop.f32.mrb[18].mxu1 }
 0x86f   : > { %v10163_v12 = vpop.f32.mrb[19].mxu1 }
 0x872   : > { %v10165_v7 = vpop.f32.mrb[20].mxu1 }
 0x873   : > { %v10167_v27 = vpop.f32.mrb[21].mxu1 }
 0x876   : > { %v10169_v52 = vpop.f32.mrb[22].mxu1 }
 0x877   : > { %v10171_v2 = vpop.f32.mrb[23].mxu1 }
 0x87a   : > { %v5375_v9 = vpop.f32.mrb[24].mxu1 }
 0x87b   : > { %v3969_v10 = vadd.f32 %v5375_v9, %v9652_v55  ;;  %v3963_v31 = vpop.f32.mrb[25].mxu1 }
 0x87c   : > { %v3964_v36 = vadd.f32 %v3963_v31, %v9654_v30 }
 0x87d   : > { %v4005_v23 = vsel %vm667_vm0, %v3969_v10, -inf }
 0x87e   : > { %4006 = vmax.xlane.f32.xlu0 %v4005_v23  ;;  %v5378_v33 = vpop.f32.mrb[26].mxu1  ;;  %v4002_v18 = vsel %vm667_vm0, %v3964_v36, -inf }
 0x87f   : > { %v3979_v48 = vadd.f32 %v5378_v33, %v9676_v39  ;;  %v3973_v47 = vpop.f32.mrb[27].mxu1 }
 0x880   : > { %v3974_v63 = vadd.f32 %v3973_v47, %v9687_v14 }
 0x881   : > { %v4011_v25 = vsel %vm667_vm0, %v3979_v48, -inf }
 0x882   : > { %4003 = vmax.xlane.f32.xlu0 %v4002_v18  ;;  %v5381_v61 = vpop.f32.mrb[28].mxu1  ;;  %v4008_v30 = vsel %vm667_vm0, %v3974_v63, -inf }
 0x883   : > { %v3983_v19 = vpop.f32.mrb[29].mxu1  ;;  %v3989_v9 = vadd.f32 %v5381_v61, %v9704_v32 }
 0x884   : > { %v3984_v23 = vadd.f32 %v3983_v19, %v9713_v22 }
 0x885   : > { %v4017_v39 = vsel %vm667_vm0, %v3989_v9, -inf }
 0x886   : > { %4012 = vmax.xlane.f32.xlu0 %v4011_v25  ;;  %v5384_v55 = vpop.f32.mrb[30].mxu1  ;;  %v4014_v18 = vsel %vm667_vm0, %v3984_v23, -inf }
 0x887   : > { %v3993_v31 = vpop.f32.mrb[31].mxu1  ;;  %v3999_v14 = vadd.f32 %v5384_v55, %v9729_v13 }
 0x888   : > { %v3994_v33 = vadd.f32 %v3993_v31, %v9737_v58 }
 0x889   : > { %v4023_v47 = vsel %vm667_vm0, %v3999_v14, -inf }
 0x88a   : > { %4009 = vmax.xlane.f32.xlu0 %v4008_v30  ;;  %v4020_v25 = vsel %vm667_vm0, %v3994_v33, -inf }
 0x88e   : > { %4018 = vmax.xlane.f32.xlu0 %v4017_v39 }
 0x892   : > { %4015 = vmax.xlane.f32.xlu0 %v4014_v18 }
 0x896   : > { %4021 = vmax.xlane.f32.xlu0 %v4020_v25 }
 0x89a   : > { %4024 = vmax.xlane.f32.xlu0 %v4023_v47 }
 0x90b   : > { %v4007_v32 = vpop.xlane.xlu0 %4006 }
 0x90c   : > { %v4027_v61 = vsub.f32 %v3969_v10, %v4007_v32 }
 0x90e   : > { %v4036_v24 = vmul.f32 1.442695, %v4027_v61 }
 0x90f   : > { %v4004_v30 = vpop.xlane.xlu0 %4003 }
 0x910   : > { %v4026_v15 = vsub.f32 %v3964_v36, %v4004_v30 }
 0x912   : > { %v4034_v22 = vmul.f32 1.442695, %v4026_v15 }
 0x913   : > { %v4013_v19 = vpop.xlane.xlu0 %4012 }
 0x914   : > { %6031 = vpow2.f32 %v4034_v22  ;;  %v4029_v39 = vsub.f32 %v3979_v48, %v4013_v19 }
 0x915   : > { %6033 = vpow2.f32 %v4036_v24 }
 0x916   : > { %v4040_v58 = vmul.f32 1.442695, %v4029_v39 }
 0x917   : > { %v4010_v31 = vpop.xlane.xlu0 %4009 }
 0x918   : > { %6035 = vpow2.f32 %v4040_v58  ;;  %v4028_v13 = vsub.f32 %v3974_v63, %v4010_v31 }
 0x91a   : > { %v4038_v55 = vmul.f32 1.442695, %v4028_v13 }
 0x91b   : > { %v4019_v18 = vpop.xlane.xlu0 %4018 }
 0x91c   : > { %6037 = vpow2.f32 %v4038_v55  ;;  %v4031_v25 = vsub.f32 %v3989_v9, %v4019_v18 }
 0x91e   : > { %v10189_v53 = vpop.eup %6031  ;;  %v4044_v47 = vmul.f32 1.442695, %v4031_v25 }
 0x91f   : > { %v4016_v10 = vpop.xlane.xlu0 %4015  ;;  %v4050_v36 = vsel %vm667_vm0, %v10189_v53, 0.0  ;;  %v10193_v15 = vpop.eup %6033 }
 0x920   : > { %6039 = vpow2.f32 %v4044_v47  ;;  %v4030_v48 = vsub.f32 %v3984_v23, %v4016_v10  ;;  %4051 = vadd.xlane.f32.xlu0 %v4050_v36  ;;  %v4053_v9 = vsel %vm667_vm0, %v10193_v15, 0.0 }
 0x922   : > { %v10195_v24 = vpop.eup %6035  ;;  %v4042_v32 = vmul.f32 1.442695, %v4030_v48 }
 0x923   : > { %v4022_v63 = vpop.xlane.xlu0 %4021  ;;  %v4059_v61 = vsel %vm667_vm0, %v10195_v24, 0.0 }
 0x924   : > { %6041 = vpow2.f32 %v4042_v32  ;;  %v4032_v30 = vsub.f32 %v3994_v33, %v4022_v63  ;;  %4060 = vadd.xlane.f32.xlu1 %v4059_v61  ;;  %4054 = vadd.xlane.f32.xlu0 %v4053_v9 }
 0x926   : > { %v10201_v22 = vpop.eup %6037  ;;  %v4046_v19 = vmul.f32 1.442695, %v4032_v30 }
 0x927   : > { %v4025_v39 = vpop.xlane.xlu0 %4024  ;;  %v4056_v23 = vsel %vm667_vm0, %v10201_v22, 0.0 }
 0x928   : > { %6043 = vpow2.f32 %v4046_v19  ;;  %v4033_v58 = vsub.f32 %v3999_v14, %v4025_v39  ;;  %4057 = vadd.xlane.f32.xlu0 %v4056_v23 }
 0x92a   : > { %v10205_v31 = vpop.eup %6039  ;;  %v4048_v13 = vmul.f32 1.442695, %v4033_v58 }
 0x92b   : > { %v4065_v55 = vsel %vm667_vm0, %v10205_v31, 0.0 }
 0x92c   : > { %6045 = vpow2.f32 %v4048_v13  ;;  %4066 = vadd.xlane.f32.xlu0 %v4065_v55 }
 0x92e   : > { %v10209_v33 = vpop.eup %6041 }
 0x92f   : > { %v4062_v18 = vsel %vm667_vm0, %v10209_v33, 0.0 }
 0x930   : > { %4063 = vadd.xlane.f32.xlu0 %v4062_v18 }
 0x932   : > { %v10213_v25 = vpop.eup %6043 }
 0x933   : > { %v4068_v14 = vsel %vm667_vm0, %v10213_v25, 0.0 }
 0x934   : > { %4069 = vadd.xlane.f32.xlu0 %v4068_v14 }
 0x935   : > { %4132 = vrot.lane.b32.xlu1 %v9857_v41, %s6399_s17  ;;  %v4419_v41 = vld [vmem:[%s11457_s27 + $0x40] sm:$0xff] }
 0x936   : > { %v10219_v47 = vpop.eup %6045 }
 0x937   : > { %v4071_v10 = vsel %vm667_vm0, %v10219_v47, 0.0 }
 0x938   : > { %4072 = vadd.xlane.f32.xlu0 %v4071_v10 }
 0x939   : > { %4142 = vrot.lane.b32.xlu1 %v9916_v8, %s6399_s17  ;;  %v4423_v8 = vld [vmem:[%s11457_s27 + $0x60] sm:$0xff] }
 0x93d   : > { %4146 = vrot.lane.b32.xlu1 %v9968_v0, %s6399_s17 }
 0x941   : > { %4150 = vrot.lane.b32.xlu1 %v9984_v38, %s6399_s17  ;;  %v4426_v38 = vld [vmem:[%s11457_s27 + $0x78] sm:$0xff] }
 0x945   : > { %4154 = vrot.lane.b32.xlu1 %v10004_v16, %s6399_s17 }
 0x949   : > { %4158 = vrot.lane.b32.xlu1 %v10030_v17, %s6399_s17 }
 0x94e   : > { %4130 = vrot.lane.b32.xlu0 %v9865_v11, %s6399_s17  ;;  %v4420_v11 = vld [vmem:[%s11457_s27 + $0x48] sm:$0xff] }
 0x952   : > { %4134 = vrot.lane.b32.xlu0 %v9871_v60, %s6399_s17  ;;  %v10259_v60 = vpack.c.bf16 %v4420_v11, %v4419_v41 }
 0x954   : > { %5649 = vmatprep.subr.bf16.mxu1 %v10259_v60 }
 0x955   : > { %5653 = vmatpush3.bf16.msra.mxu1 %v10259_v60 }
 0x956   : > { %4136 = vrot.lane.b32.xlu0 %v9882_v6, %s6399_s17  ;;  %v4421_v6 = vld [vmem:[%s11457_s27 + $0x50] sm:$0xff] }
 0x95a   : > { %4138 = vrot.lane.b32.xlu0 %v9894_v26, %s6399_s17  ;;  %v4422_v26 = vld [vmem:[%s11457_s27 + $0x58] sm:$0xff] }
 0x95e   : > { %4140 = vrot.lane.b32.xlu0 %v9913_v1, %s6399_s17  ;;  %v10269_v1 = vpack.c.bf16 %v4422_v26, %v4421_v6 }
 0x960   : > { %5650 = vmatprep.subr.bf16.mxu1 %v10269_v1 }
 0x961   : > { %5654 = vmatpush3.bf16.msra.mxu1 %v10269_v1 }
 0x962   : > { %4144 = vrot.lane.b32.xlu0 %v9920_v21, %s6399_s17  ;;  %v4424_v21 = vld [vmem:[%s11457_s27 + $0x68] sm:$0xff] }
 0x963   : > { %v10279_v0 = vpack.c.bf16 %v4424_v21, %v4423_v8 }
 0x965   : > { %5651 = vmatprep.subr.bf16.mxu1 %v10279_v0 }
 0x966   : > { %4148 = vrot.lane.b32.xlu0 %v9972_v54, %s6399_s17  ;;  %v4425_v54 = vld [vmem:[%s11457_s27 + $0x70] sm:$0xff]  ;;  %5655 = vmatpush3.bf16.msra.mxu1 %v10279_v0 }
 0x96a   : > { %4152 = vrot.lane.b32.xlu0 %v9997_v50, %s6399_s17  ;;  %v10289_v50 = vpack.c.bf16 %v4426_v38, %v4425_v54 }
 0x96c   : > { %5652 = vmatprep.subr.bf16.mxu1 %v10289_v50 }
 0x96d   : > { %5656 = vmatpush3.bf16.msra.mxu1 %v10289_v50 }
 0x96e   : > { %4156 = vrot.lane.b32.xlu0 %v10027_v20, %s6399_s17 }
 0x972   : > { %4160 = vrot.lane.b32.xlu0 %v10040_v3, %s6399_s17  ;;  %s10545_s17 = scalar_lea.vmem [#allocation16], %s5034_s10  ;;  %s5160_s10 = sshll.u32 %s6511_s24, 11 }
 0x973   : > { %s4867_s13 = sshll.u32 %s10545_s17, 4  ;;  %s10580_s25 = scalar_lea.hbm %s11500_s28, %s5160_s10  ;;  %s10582_s13 = int_to_ptr.vmem [resolvable:$true] %s4867_s13 }
 0x974   : > { %s6301_s8 = scalar_lea.vmem %s10582_s13, 2048 }
 0x975   : > { %p6302_p13 = scmp.ne.s32.totalorder %s10582_s13, %s6301_s8 }
 0x977   : > { %p6303_p3 = pnand %p6302_p13, %p11501_p1 }
 0x979   : > { %p6304_p2 = pneg %p6303_p3 }
 0x9ad   : > { %v4052_v16 = vpop.xlane.xlu0 %4051 }
 0x9ae   : > { %6047 = vrcp.f32 %v4052_v16 }
 0x9b1   : > { %v4055_v20 = vpop.xlane.xlu0 %4054  ;;  %v4061_v17 = vpop.xlane.xlu1 %4060 }
 0x9b2   : > { %6049 = vrcp.f32 %v4055_v20 }
 0x9b3   : > { %6051 = vrcp.f32 %v4061_v17 }
 0x9b5   : > { %v4058_v3 = vpop.xlane.xlu0 %4057 }
 0x9b6   : > { %6053 = vrcp.f32 %v4058_v3 }
 0x9b8   : > { %v6048_v36 = vpop.eup %6047 }
 0x9b9   : > { %v4082_v48 = vmul.f32 %v6048_v36, %v4052_v16  ;;  %v4067_v32 = vpop.xlane.xlu0 %4066 }
 0x9ba   : > { %6055 = vrcp.f32 %v4067_v32 }
 0x9bb   : > { %v4090_v63 = vsub.f32 2.0, %v4082_v48 }
 0x9bc   : > { %v6050_v61 = vpop.eup %6049 }
 0x9bd   : > { %v6052_v9 = vpop.eup %6051  ;;  %v4083_v30 = vmul.f32 %v6050_v61, %v4055_v20  ;;  %v4064_v19 = vpop.xlane.xlu0 %4063  ;;  %v4098_v23 = vmul.f32 %v6048_v36, %v4090_v63 }
 0x9be   : > { %v4085_v39 = vmul.f32 %v6052_v9, %v4061_v17  ;;  %6057 = vrcp.f32 %v4064_v19 }
 0x9bf   : > { %v4091_v58 = vsub.f32 2.0, %v4083_v30  ;;  %v4106_v41 = vmul.f32 %v10189_v53, %v4098_v23 }
 0x9c0   : > { %v6054_v13 = vpop.eup %6053  ;;  %v4093_v55 = vsub.f32 2.0, %v4085_v39 }
 0x9c1   : > { %v4099_v18 = vmul.f32 %v6050_v61, %v4091_v58  ;;  %v4084_v14 = vmul.f32 %v6054_v13, %v4058_v3  ;;  %v4070_v10 = vpop.xlane.xlu0 %4069 }
 0x9c2   : > { %6059 = vrcp.f32 %v4070_v10  ;;  %v4101_v6 = vmul.f32 %v6052_v9, %v4093_v55 }
 0x9c3   : > { %v4107_v11 = vmul.f32 %v10193_v15, %v4099_v18  ;;  %v4092_v26 = vsub.f32 2.0, %v4084_v14 }
 0x9c4   : > { %v6056_v8 = vpop.eup %6055  ;;  %v4109_v20 = vmul.f32 %v10195_v24, %v4101_v6  ;;  %v10327_v6 = vpop.permute.xlu1 %4132 }
 0x9c5   : > { %v4100_v21 = vmul.f32 %v6054_v13, %v4092_v26  ;;  %v4087_v54 = vmul.f32 %v6056_v8, %v4067_v32  ;;  %v4073_v38 = vpop.xlane.xlu0 %4072  ;;  %v5593_v16 = vpack.c.bf16 %v4107_v11, %v4106_v41 }
 0x9c6   : > { %6061 = vrcp.f32 %v4073_v38 }
 0x9c7   : > { %v4108_v17 = vmul.f32 %v10201_v22, %v4100_v21  ;;  %v4095_v36 = vsub.f32 2.0, %v4087_v54  ;;  %5595 = vmatprep.subr.msk.bf16.mxu0 %vm9957_vm9, %v5593_v16  ;;  %v3725_v54 = vadd.f32 %v10159_v57, %v10067_v34  ;;  %v11459_v34 = vld [vmem:[#allocation24_spill] sm:$0xff] }
 0x9c8   : > { %v6058_v3 = vpop.eup %6057  ;;  %5598 = vmatpush3.bf16.xpose.msk.msra.mxu0 %vm9957_vm9, %v5593_v16  ;;  %v11458_v16 = vld [vmem:[#allocation23_spill] sm:$0xff] }
 0x9c9   : > { %v4086_v53 = vmul.f32 %v6058_v3, %v4064_v19  ;;  %v10301_v15 = vpop.permute.xlu0 %4130  ;;  %v5599_v48 = vpack.c.bf16 %v4109_v20, %v4108_v17  ;;  %v4103_v32 = vmul.f32 %v6056_v8, %v4095_v36  ;;  %v3733_v20 = vadd.f32 %v3725_v54, %v11458_v16  ;;  %v11466_v54 = vld [vmem:[#allocation38_spill] sm:$0xff] }
 0x9ca   : > { %5401 = vmatprep.mubr.msk.f32.mxu0 %vm667_vm0, %v10301_v15  ;;  %v3727_v17 = vadd.f32 %v10163_v12, %v10069_v28  ;;  %v11461_v28 = vld [vmem:[#allocation26_spill] sm:$0xff]  ;;  %v3730_v12 = vadd.f32 %v10165_v7, %v10121_v45  ;;  %v11465_v45 = vld [vmem:[#allocation36_spill] sm:$0xff] }
 0x9cb   : > { %v4094_v63 = vsub.f32 2.0, %v4086_v53  ;;  %5601 = vmatprep.subr.msk.bf16.mxu0 %vm9957_vm9, %v5599_v48  ;;  %v4111_v9 = vmul.f32 %v10205_v31, %v4103_v32  ;;  %v11460_v53 = vld [vmem:[#allocation25_spill] sm:$0xff]  ;;  %v11462_v32 = vld [vmem:[#allocation35_spill] sm:$0xff] }
 0x9cc   : > { %v6060_v24 = vpop.eup %6059 }
 0x9cd   : > { %v4102_v22 = vmul.f32 %v6058_v3, %v4094_v63  ;;  %v4088_v61 = vmul.f32 %v6060_v24, %v4070_v10  ;;  %v10311_v13 = vpop.permute.xlu0 %4134  ;;  %v3728_v3 = vadd.f32 %v10161_v5, %v10113_v44  ;;  %v11463_v44 = vld [vmem:[#allocation34_spill] sm:$0xff]  ;;  %v3732_v5 = vadd.f32 %v10169_v52, %v10129_v51 }
 0x9cf   : > { %v4110_v30 = vmul.f32 %v10209_v33, %v4102_v22  ;;  %v4096_v39 = vsub.f32 2.0, %v4088_v61  ;;  %v3740_v7 = vadd.f32 %v3732_v5, %v11465_v45 }
 0x9d0   : > { %v6062_v19 = vpop.eup %6061  ;;  %5604 = vmatpush3.bf16.xpose.msk.msra.mxu0 %vm9957_vm9, %v5599_v48  ;;  %v3735_v48 = vadd.f32 %v3727_v17, %v11460_v53  ;;  %v4416_v53 = vld [vmem:[%s11457_s27 + $0x28] sm:$0xff] }
 0x9d1   : > { %v4089_v23 = vmul.f32 %v6062_v19, %v4073_v38  ;;  %v5605_v58 = vpack.c.bf16 %v4111_v9, %v4110_v30  ;;  %v4104_v55 = vmul.f32 %v6060_v24, %v4096_v39  ;;  %v10317_v33 = vpop.permute.xlu0 %4136  ;;  %v3731_v24 = vadd.f32 %v10171_v2, %v10107_v42  ;;  %v4411_v42 = vld [vmem:[%s11457_s27] sm:$0xff]  ;;  %v4412_v2 = vld [vmem:[%s11457_s27 + $0x8] sm:$0xff] }
 0x9d2   : > { %v5633_v61 = vpack.c.bf16 %v4412_v2, %v4411_v42  ;;  %v3701_v42 = vadd.f32 %v10143_v40, %v9961_v37  ;;  %v3703_v40 = vadd.f32 %v10147_v4, %v10059_v29  ;;  %v11480_v4 = vld [vmem:[#allocation42_spill] sm:$0xff] }
 0x9d3   : > { %v4097_v18 = vsub.f32 2.0, %v4089_v23  ;;  %5607 = vmatprep.subr.msk.bf16.mxu0 %vm9957_vm9, %v5605_v58  ;;  %v4112_v10 = vmul.f32 %v10213_v25, %v4104_v55 }
 0x9d4   : > { %5634 = vmatprep.subr.bf16.mxu1 %v5633_v61 }
 0x9d5   : > { %v4105_v14 = vmul.f32 %v6062_v19, %v4097_v18  ;;  %v10323_v11 = vpop.permute.xlu0 %4138 }
 0x9d7   : > { %v4113_v31 = vmul.f32 %v10219_v47, %v4105_v14  ;;  %v10332_v47 = vpop.permute.xlu1 %4142 }
 0x9d8   : > { %5610 = vmatpush3.bf16.xpose.msk.msra.mxu0 %vm9957_vm9, %v5605_v58 }
 0x9d9   : > { %v5611_v41 = vpack.c.bf16 %v4113_v31, %v4112_v10  ;;  %v10330_v25 = vpop.permute.xlu0 %4140  ;;  %v4413_v31 = vld [vmem:[%s11457_s27 + $0x10] sm:$0xff] }
 0x9db   : > { %5613 = vmatprep.subr.msk.bf16.mxu0 %vm9957_vm9, %v5611_v41  ;;  %v4147_v26 = vpop.permute.xlu1 %4146 }
 0x9dd   : > { %v10340_v49 = vpop.permute.xlu0 %4144 }
 0x9e0   : > { %5616 = vmatpush3.bf16.xpose.msk.msra.mxu0 %vm9957_vm9, %v5611_v41  ;;  %v4414_v41 = vld [vmem:[%s11457_s27 + $0x18] sm:$0xff] }
 0x9e1   : > { %5618 = vmatprep.subr.bf16.mxu0 %v10259_v60  ;;  %v4149_v8 = vpop.permute.xlu0 %4148 }
 0x9e7   : > { %5402 = vmatmul.mubr.msk.f32.vlgmr.msra.gmra.mrb[32].mxu0 %vm667_vm0, %v10327_v6 }
 0x9e8   : > { %5404 = vmatprep.mubr.msk.f32.mxu0 %vm667_vm0, %v10311_v13  ;;  %5620 = vmatpush3.bf16.msra.mxu0 %v10259_v60  ;;  %v10354_v60 = vpop.permute.xlu1 %4150 }
 0x9e9   : > { %5622 = vmatprep.subr.bf16.mxu0 %v10269_v1 }
 0x9eb   : > { %5405 = vmatmul.mubr.msk.f32.gmra.mrb[34].mxu0 %vm667_vm0, %v10317_v33 }
 0x9ec   : > { %5407 = vmatprep.mubr.msk.f32.mxu0 %vm667_vm0, %v10323_v11  ;;  %5624 = vmatpush3.bf16.msra.mxu0 %v10269_v1  ;;  %v4153_v1 = vpop.permute.xlu0 %4152  ;;  %v10363_v21 = vpop.permute.xlu1 %4154 }
 0x9ed   : > { %5626 = vmatprep.subr.bf16.mxu0 %v10279_v0 }
 0x9ef   : > { %5408 = vmatmul.mubr.msk.f32.gmra.mrb[36].mxu0 %vm667_vm0, %v10330_v25 }
 0x9f0   : > { %5410 = vmatprep.mubr.msk.f32.mxu0 %vm667_vm0, %v10332_v47  ;;  %5628 = vmatpush3.bf16.msra.mxu0 %v10279_v0  ;;  %v10366_v0 = vpop.permute.xlu0 %4156  ;;  %v10372_v38 = vpop.permute.xlu1 %4158 }
 0x9f1   : > { %5630 = vmatprep.subr.bf16.mxu0 %v10289_v50 }
 0x9f3   : > { %5411 = vmatmul.mubr.msk.f32.gmra.mrb[38].mxu0 %vm667_vm0, %v10340_v49 }
 0x9f4   : > { %5413 = vmatprep.mubr.msk.f32.mxu0 %vm667_vm0, %v4147_v26  ;;  %5632 = vmatpush3.bf16.msra.mxu0 %v10289_v50  ;;  %v3726_v50 = vadd.f32 %v10157_v62, %v10103_v56  ;;  %v10383_v36 = vpop.permute.xlu0 %4160  ;;  %v3729_v56 = vadd.f32 %v10167_v27, %v10071_v43  ;;  %v3736_v62 = vadd.f32 %v3728_v3, %v11461_v28  ;;  %v11464_v27 = vld [vmem:[#allocation37_spill] sm:$0xff] }
 0x9f5   : > { %v3738_v43 = vadd.f32 %v3730_v12, %v11463_v44  ;;  %v3739_v22 = vadd.f32 %v3731_v24, %v11464_v27  ;;  %v5637_v3 = vpack.c.bf16 %v4414_v41, %v4413_v31  ;;  %v4417_v24 = vld [vmem:[%s11457_s27 + $0x30] sm:$0xff]  ;;  %v4418_v44 = vld [vmem:[%s11457_s27 + $0x38] sm:$0xff] }
 0x9f6   : > { %v3734_v57 = vadd.f32 %v3726_v50, %v11459_v34  ;;  %v3737_v63 = vadd.f32 %v3729_v56, %v11462_v32  ;;  %v11471_v27 = vld [vmem:[#allocation28_spill] sm:$0xff]  ;;  %v11474_v41 = vld [vmem:[#allocation39_spill] sm:$0xff] }
 0x9f7   : > { %5414 = vmatmul.mubr.msk.f32.gmra.mrb[40].mxu0 %vm667_vm0, %v4149_v8  ;;  %v3709_v37 = vadd.f32 %v3701_v42, %v11474_v41  ;;  %v11491_v42 = vld [vmem:[#allocation47_spill] sm:$0xff] }
 0x9f8   : > { %5416 = vmatprep.mubr.msk.f32.mxu0 %vm667_vm0, %v10354_v60 }
 0x9fb   : > { %5417 = vmatmul.mubr.msk.f32.gmra.mrb[42].mxu0 %vm667_vm0, %v4153_v1 }
 0x9fc   : > { %5419 = vmatprep.mubr.msk.f32.mxu0 %vm667_vm0, %v10363_v21 }
 0x9ff   : > { %5420 = vmatmul.mubr.msk.f32.gmra.mrb[44].mxu0 %vm667_vm0, %v10366_v0 }
 0xa00   : > { %5422 = vmatprep.mubr.msk.f32.mxu0 %vm667_vm0, %v10372_v38 }
 0xa03   : > { %5423 = vmatmul.mubr.msk.f32.gmra.mrb[46].mxu0 %vm667_vm0, %v10383_v36 }
 0xa04   : > { %5441 = vmatprep.mubr.msk.f32.mxu0 %vm667_vm0, %v3733_v20  ;;  %v11467_v20 = vld [vmem:[#allocation29_spill] sm:$0xff] }
 0xa07   : > { %5442 = vmatmul.mubr.msk.f32.vlgmr.msra.gmra.mrb[48].mxu0 %vm667_vm0, %v3734_v57 }
 0xa08   : > { %5444 = vmatprep.mubr.msk.f32.mxu0 %vm667_vm0, %v3735_v48  ;;  %v11468_v48 = vld [vmem:[#allocation30_spill] sm:$0xff] }
 0xa0b   : > { %5445 = vmatmul.mubr.msk.f32.gmra.mrb[50].mxu0 %vm667_vm0, %v3736_v62 }
 0xa0c   : > { %5447 = vmatprep.mubr.msk.f32.mxu0 %vm667_vm0, %v3737_v63 }
 0xa0f   : > { %5448 = vmatmul.mubr.msk.f32.gmra.mrb[52].mxu0 %vm667_vm0, %v3738_v43  ;;  %v11470_v43 = vld [vmem:[#allocation31_spill] sm:$0xff] }
 0xa10   : > { %5450 = vmatprep.mubr.msk.f32.mxu0 %vm667_vm0, %v3739_v22 }
 0xa13   : > { %5451 = vmatmul.mubr.msk.f32.gmra.mrb[54].mxu0 %vm667_vm0, %v3740_v7  ;;  %v5645_v7 = vpack.c.bf16 %v4418_v44, %v4417_v24  ;;  %v11487_v24 = vld [vmem:[#allocation123_spill] sm:$0xff] }
 0xa14   : > { %v11488_v44 = vld [vmem:[#allocation111_spill] sm:$0xff] }
 0xaba   : > { %v10418_v51 = vpop.f32.mrb[32].mxu0 }
 0xabb   : > { %v10420_v52 = vpop.f32.mrb[33].mxu0 }
 0xabe   : > { %v10422_v9 = vpop.f32.mrb[34].mxu0 }
 0xabf   : > { %v10424_v30 = vpop.f32.mrb[35].mxu0 }
 0xac2   : > { %v10426_v39 = vpop.f32.mrb[36].mxu0 }
 0xac3   : > { %v10428_v19 = vpop.f32.mrb[37].mxu0 }
 0xac6   : > { %v10430_v23 = vpop.f32.mrb[38].mxu0 }
 0xac7   : > { %v10432_v58 = vpop.f32.mrb[39].mxu0 }
 0xaca   : > { %v5415_v55 = vpop.f32.mrb[40].mxu0 }
 0xacb   : > { %v4396_v18 = vadd.f32 %v5415_v55, %v4149_v8  ;;  %v4324_v14 = vpop.f32.mrb[41].mxu0 }
 0xacc   : > { %v4395_v10 = vadd.f32 %v4324_v14, %v4147_v26  ;;  %v4415_v26 = vld [vmem:[%s11457_s27 + $0x20] sm:$0xff] }
 0xacd   : > { %v4404_v17 = vadd.f32 %v4396_v18, %v11467_v20  ;;  %v5641_v32 = vpack.c.bf16 %v4416_v53, %v4415_v26  ;;  %v11473_v14 = vld [vmem:[#allocation33_spill] sm:$0xff]  ;;  %v11481_v26 = vld [vmem:[#allocation86_spill] sm:$0xff] }
 0xace   : > { %v4403_v50 = vadd.f32 %v4395_v10, %v11466_v54  ;;  %v5418_v16 = vpop.f32.mrb[42].mxu0  ;;  %v11475_v54 = vld [vmem:[#allocation40_spill] sm:$0xff]  ;;  %v11477_v20 = vld [vmem:[#allocation41_spill] sm:$0xff]  ;;  %v11482_v53 = vld [vmem:[#allocation130_spill] sm:$0xff] }
 0xacf   : > { %v4398_v34 = vadd.f32 %v5418_v16, %v4153_v1  ;;  %v4334_v57 = vpop.f32.mrb[43].mxu0  ;;  %v11469_v1 = vld [vmem:[#allocation27_spill] sm:$0xff] }
 0xad0   : > { %v4397_v8 = vadd.f32 %v4334_v57, %v10354_v60  ;;  %5453 = vmatprep.mubr.msk.f32.mxu1 %vm667_vm0, %v4403_v50  ;;  %v11479_v57 = vld [vmem:[#allocation131_spill] sm:$0xff] }
 0xad1   : > { %5454 = vmatmul.mubr.msk.f32.vlgmr.msra.gmra.mrb[32].mxu1 %vm667_vm0, %v4404_v17  ;;  %v4406_v62 = vadd.f32 %v4398_v34, %v11469_v1  ;;  %v3711_v17 = vadd.f32 %v3703_v40, %v11477_v20  ;;  %v11478_v34 = vld [vmem:[#allocation59_spill] sm:$0xff] }
 0xad2   : > { %v4405_v56 = vadd.f32 %v4397_v8, %v11468_v48  ;;  %v5421_v28 = vpop.f32.mrb[44].mxu0  ;;  %5636 = vmatpush3.bf16.msra.mxu1 %v5633_v61  ;;  %v11472_v61 = vld [vmem:[#allocation32_spill] sm:$0xff]  ;;  %v3706_v48 = vadd.f32 %v11482_v53, %v11481_v26 }
 0xad3   : > { %v4400_v60 = vadd.f32 %v5421_v28, %v10366_v0  ;;  %v4344_v12 = vpop.f32.mrb[45].mxu0  ;;  %5638 = vmatprep.subr.bf16.mxu1 %v5637_v3  ;;  %v11483_v28 = vld [vmem:[#allocation43_spill] sm:$0xff] }
 0xad4   : > { %v4399_v63 = vadd.f32 %v4344_v12, %v10363_v21  ;;  %5456 = vmatprep.mubr.msk.f32.mxu1 %vm667_vm0, %v4405_v56 }
 0xad5   : > { %5457 = vmatmul.mubr.msk.f32.gmra.mrb[34].mxu1 %vm667_vm0, %v4406_v62  ;;  %v4408_v22 = vadd.f32 %v4400_v60, %v11471_v27  ;;  %v11485_v62 = vld [vmem:[#allocation102_spill] sm:$0xff] }
 0xad6   : > { %v4407_v5 = vadd.f32 %v4399_v63, %v11470_v43  ;;  %v5424_v0 = vpop.f32.mrb[46].mxu0  ;;  %5640 = vmatpush3.bf16.msra.mxu1 %v5637_v3  ;;  %v3705_v3 = vadd.f32 %v11479_v57, %v11478_v34  ;;  %v3708_v43 = vadd.f32 %v11488_v44, %v11487_v24 }
 0xad7   : > { %v4402_v21 = vadd.f32 %v5424_v0, %v10383_v36  ;;  %v4354_v45 = vpop.f32.mrb[47].mxu0  ;;  %5642 = vmatprep.subr.bf16.mxu1 %v5641_v32  ;;  %v3702_v36 = vadd.f32 %v10141_v46, %v10077_v59  ;;  %v11476_v59 = vld [vmem:[#allocation100_spill] sm:$0xff]  ;;  %v11489_v0 = vld [vmem:[#allocation45_spill] sm:$0xff] }
 0xad8   : > { %v4401_v2 = vadd.f32 %v4354_v45, %v10372_v38  ;;  %5459 = vmatprep.mubr.msk.f32.mxu1 %vm667_vm0, %v4407_v5  ;;  %v3704_v46 = vadd.f32 %v11476_v59, %v10061_v35  ;;  %v3713_v1 = vadd.f32 %v3705_v3, %v11483_v28  ;;  %v11484_v35 = vld [vmem:[#allocation93_spill] sm:$0xff] }
 0xad9   : > { %5460 = vmatmul.mubr.msk.f32.gmra.mrb[36].mxu1 %vm667_vm0, %v4408_v22  ;;  %v4410_v10 = vadd.f32 %v4402_v21, %v11473_v14  ;;  %v3710_v50 = vadd.f32 %v3702_v36, %v11475_v54  ;;  %v3707_v60 = vadd.f32 %v11485_v62, %v11484_v35  ;;  %v4371_v22 = vadd.f32 %v10420_v52, %v10301_v15  ;;  %v11490_v21 = vld [vmem:[#allocation46_spill] sm:$0xff]  ;;  %v11493_v36 = vld [vmem:[#allocation49_spill] sm:$0xff] }
 0xada   : > { %v4409_v55 = vadd.f32 %v4401_v2, %v11472_v61  ;;  %v10472_v18 = vpop.f32.mrb[48].mxu0  ;;  %5644 = vmatpush3.bf16.msra.mxu1 %v5641_v32  ;;  %v3712_v8 = vadd.f32 %v3704_v46, %v11480_v4  ;;  %v11486_v32 = vld [vmem:[#allocation44_spill] sm:$0xff]  ;;  %v3716_v45 = vadd.f32 %v3708_v43, %v11490_v21  ;;  %v4373_v61 = vadd.f32 %v10424_v30, %v10311_v13  ;;  %v11495_v30 = vld [vmem:[#allocation51_spill] sm:$0xff] }
 0xadb   : > { %v4541_v31 = vpop.f32.mrb[49].mxu0  ;;  %5646 = vmatprep.subr.bf16.mxu1 %v5645_v7  ;;  %v3714_v63 = vadd.f32 %v3706_v48, %v11486_v32  ;;  %v3715_v27 = vadd.f32 %v3707_v60, %v11489_v0  ;;  %v4379_v2 = vadd.f32 %v4371_v22, %v11491_v42  ;;  %v4374_v52 = vadd.f32 %v10422_v9, %v10317_v33  ;;  %v11496_v33 = vld [vmem:[#allocation53_spill] sm:$0xff] }
 0xadc   : > { %5462 = vmatprep.mubr.msk.f32.mxu1 %vm667_vm0, %v4409_v55  ;;  %v11492_v55 = vld [vmem:[#allocation48_spill] sm:$0xff]  ;;  %v4381_v14 = vadd.f32 %v4373_v61, %v11493_v36  ;;  %v4378_v9 = vadd.f32 %v10430_v23, %v10340_v49 }
 0xadd   : > { %5463 = vmatmul.mubr.msk.f32.gmra.mrb[38].mxu1 %vm667_vm0, %v4410_v10  ;;  %v4375_v10 = vadd.f32 %v10428_v19, %v10323_v11  ;;  %v11497_v19 = vld [vmem:[#allocation54_spill] sm:$0xff] }
 0xade   : > { %v5446_v38 = vpop.f32.mrb[50].mxu0  ;;  %5648 = vmatpush3.bf16.msra.mxu1 %v5645_v7  ;;  %5481 = vmatprep.mubr.msk.f32.mxu1 %vm667_vm0, %v3709_v37  ;;  %v4372_v7 = vadd.f32 %v10418_v51, %v10327_v6  ;;  %v11494_v6 = vld [vmem:[#allocation50_spill] sm:$0xff]  ;;  %v4376_v51 = vadd.f32 %v10426_v39, %v10330_v25  ;;  %v4377_v37 = vadd.f32 %v10432_v58, %v10332_v47  ;;  %v11498_v25 = vld [vmem:[#allocation56_spill] sm:$0xff]  ;;  %v5149_v58 = vld [vmem:[%s11499_s23] ss:$0 sm:$0xff]  ;;  %s6305_s23 = sshll.u32 %s6407_s26, 4  ;;  %s6306_s23 = int_to_ptr.vmem [resolvable:$false] %s6305_s23 }
 0xadf   : > { %v4551_v16 = vpop.f32.mrb[51].mxu0  ;;  %v4382_v13 = vadd.f32 %v4374_v52, %v11494_v6  ;;  %v4383_v41 = vadd.f32 %v4375_v10, %v11495_v30  ;;  %v4386_v39 = vadd.f32 %v4378_v9, %v11498_v25  ;;  %s6307_s10 = scalar_lea.vmem %s6306_s23, 4096  ;;  %p6308_p8 = scmp.lt.s32.totalorder %s10582_s13, %s6306_s23 }
 0xae0   : > { %v4380_v15 = vadd.f32 %v4372_v7, %v11492_v55  ;;  %v4384_v11 = vadd.f32 %v4376_v51, %v11496_v33  ;;  %v4385_v40 = vadd.f32 %v4377_v37, %v11497_v19  ;;  %p6309_p6 = scmp.lt.s32.totalorder %s6307_s10, %s6301_s8 }
 0xae1   : > { %5482 = vmatmul.mubr.msk.f32.vlgmr.msra.gmra.mrb[40].mxu1 %vm667_vm0, %v3710_v50 }
 0xae2   : > { %v5449_v29 = vpop.f32.mrb[52].mxu0  ;;  %5484 = vmatprep.mubr.msk.f32.mxu1 %vm667_vm0, %v3711_v17  ;;  %p6310_p11 = por %p6309_p6, %p6308_p8 }
 0xae3   : > { %v4561_v56 = vpop.f32.mrb[53].mxu0 }
 0xae4   : > { %p6311_p12 = pnand %p6310_p11, %p6304_p2 }
 0xae5   : > { %5485 = vmatmul.mubr.msk.f32.gmra.mrb[42].mxu1 %vm667_vm0, %v3712_v8 }
 0xae6   : > { %v5452_v12 = vpop.f32.mrb[54].mxu0  ;;  %5487 = vmatprep.mubr.msk.f32.mxu1 %vm667_vm0, %v3713_v1 }
 0xae7   : > { %v4571_v5 = vpop.f32.mrb[55].mxu0 }
 0xae9   : > { %5488 = vmatmul.mubr.msk.f32.gmra.mrb[44].mxu1 %vm667_vm0, %v3714_v63 }
 0xaea   : > { %5490 = vmatprep.mubr.msk.f32.mxu1 %vm667_vm0, %v3715_v27 }
 0xaed   : > { %5491 = vmatmul.mubr.msk.f32.gmra.mrb[46].mxu1 %vm667_vm0, %v3716_v45 }
 0xaee   : > { %5493 = vmatprep.mubr.msk.f32.mxu1 %vm667_vm0, %v4379_v2 }
 0xaf1   : > { %5494 = vmatmul.mubr.msk.f32.gmra.mrb[32].mxu1 %vm667_vm0, %v4380_v15 }
 0xaf2   : > { %5496 = vmatprep.mubr.msk.f32.mxu1 %vm667_vm0, %v4381_v14 }
 0xaf5   : > { %5497 = vmatmul.mubr.msk.f32.gmra.mrb[34].mxu1 %vm667_vm0, %v4382_v13 }
 0xaf6   : > { %5499 = vmatprep.mubr.msk.f32.mxu1 %vm667_vm0, %v4383_v41 }
 0xaf9   : > { %5500 = vmatmul.mubr.msk.f32.gmra.mrb[36].mxu1 %vm667_vm0, %v4384_v11 }
 0xafa   : > { %5502 = vmatprep.mubr.msk.f32.mxu1 %vm667_vm0, %v4385_v40 }
 0xafd   : > { %5503 = vmatmul.mubr.msk.f32.gmra.mrb[38].mxu1 %vm667_vm0, %v4386_v39 }
 0xbb4   : > { %v5483_v47 = vpop.f32.mrb[40].mxu1 }
 0xbb5   : > { %v4740_v54 = vadd.f32 %v5483_v47, %v10472_v18  ;;  %v4734_v50 = vpop.f32.mrb[41].mxu1 }
 0xbb6   : > { %v4735_v59 = vadd.f32 %v4734_v50, %v4541_v31 }
 0xbb7   : > { %v4821_v49 = vadd.f32 %v5149_v58, %v4740_v54 }
 0xbb8   : > { %v4820_v23 = vadd.f32 %v5149_v58, %v4735_v59  ;;  %v5486_v46 = vpop.f32.mrb[42].mxu1 }
 0xbb9   : > { %4837 = vst.msk [vmem:[%s10545_s17 + $0x8] sm:$0xff] %vm667_vm0, %v4821_v49  ;;  %v4750_v20 = vadd.f32 %v5486_v46, %v5446_v38  ;;  %v4744_v17 = vpop.f32.mrb[43].mxu1 }
 0xbba   : > { %4836 = vst.msk [vmem:[%s10545_s17] sm:$0xff] %vm667_vm0, %v4820_v23  ;;  %v4745_v18 = vadd.f32 %v4744_v17, %v4551_v16 }
 0xbbb   : > { %v4823_v31 = vadd.f32 %v5149_v58, %v4750_v20 }
 0xbbc   : > { %v4822_v34 = vadd.f32 %v5149_v58, %v4745_v18  ;;  %v5489_v57 = vpop.f32.mrb[44].mxu1 }
 0xbbd   : > { %4839 = vst.msk [vmem:[%s10545_s17 + $0x18] sm:$0xff] %vm667_vm0, %v4823_v31  ;;  %v4760_v3 = vadd.f32 %v5489_v57, %v5449_v29  ;;  %v4754_v4 = vpop.f32.mrb[45].mxu1 }
 0xbbe   : > { %4838 = vst.msk [vmem:[%s10545_s17 + $0x10] sm:$0xff] %vm667_vm0, %v4822_v34  ;;  %v4755_v8 = vadd.f32 %v4754_v4, %v4561_v56 }
 0xbbf   : > { %v4825_v26 = vadd.f32 %v5149_v58, %v4760_v3 }
 0xbc0   : > { %v4824_v38 = vadd.f32 %v5149_v58, %v4755_v8  ;;  %v5492_v53 = vpop.f32.mrb[46].mxu1 }
 0xbc1   : > { %4841 = vst.msk [vmem:[%s10545_s17 + $0x28] sm:$0xff] %vm667_vm0, %v4825_v26  ;;  %v4770_v16 = vadd.f32 %v5492_v53, %v5452_v12  ;;  %v4764_v48 = vpop.f32.mrb[47].mxu1 }
 0xbc2   : > { %4840 = vst.msk [vmem:[%s10545_s17 + $0x20] sm:$0xff] %vm667_vm0, %v4824_v38  ;;  %v4765_v28 = vadd.f32 %v4764_v48, %v4571_v5 }
 0xbc3   : > { %v4827_v29 = vadd.f32 %v5149_v58, %v4770_v16 }
 0xbc4   : > { %v4826_v1 = vadd.f32 %v5149_v58, %v4765_v28  ;;  %v5495_v35 = vpop.f32.mrb[32].mxu1 }
 0xbc5   : > { %4843 = vst.msk [vmem:[%s10545_s17 + $0x38] sm:$0xff] %vm667_vm0, %v4827_v29  ;;  %v4829_v56 = vadd.f32 %v5495_v35, %v5149_v58  ;;  %v4774_v62 = vpop.f32.mrb[33].mxu1 }
 0xbc6   : > { %4842 = vst.msk [vmem:[%s10545_s17 + $0x30] sm:$0xff] %vm667_vm0, %v4826_v1  ;;  %v4828_v60 = vadd.f32 %v5149_v58, %v4774_v62 }
 0xbc7   : > { %4845 = vst.msk [vmem:[%s10545_s17 + $0x48] sm:$0xff] %vm667_vm0, %v4829_v56 }
 0xbc8   : > { %4844 = vst.msk [vmem:[%s10545_s17 + $0x40] sm:$0xff] %vm667_vm0, %v4828_v60  ;;  %v5498_v12 = vpop.f32.mrb[34].mxu1 }
 0xbc9   : > { %v4831_v32 = vadd.f32 %v5498_v12, %v5149_v58  ;;  %v4784_v63 = vpop.f32.mrb[35].mxu1 }
 0xbca   : > { %v4830_v24 = vadd.f32 %v5149_v58, %v4784_v63 }
 0xbcb   : > { %4847 = vst.msk [vmem:[%s10545_s17 + $0x58] sm:$0xff] %vm667_vm0, %v4831_v32 }
 0xbcc   : > { %4846 = vst.msk [vmem:[%s10545_s17 + $0x50] sm:$0xff] %vm667_vm0, %v4830_v24  ;;  %v5501_v44 = vpop.f32.mrb[36].mxu1 }
 0xbcd   : > { %v4833_v43 = vadd.f32 %v5501_v44, %v5149_v58  ;;  %v4794_v5 = vpop.f32.mrb[37].mxu1 }
 0xbce   : > { %v4832_v0 = vadd.f32 %v5149_v58, %v4794_v5 }
 0xbcf   : > { %4849 = vst.msk [vmem:[%s10545_s17 + $0x68] sm:$0xff] %vm667_vm0, %v4833_v43 }
 0xbd0   : > { %4848 = vst.msk [vmem:[%s10545_s17 + $0x60] sm:$0xff] %vm667_vm0, %v4832_v0  ;;  %v5504_v27 = vpop.f32.mrb[38].mxu1 }
 0xbd1   : > { %v4835_v22 = vadd.f32 %v5504_v27, %v5149_v58  ;;  %v4804_v21 = vpop.f32.mrb[39].mxu1 }
 0xbd2   : > { %v4834_v45 = vadd.f32 %v5149_v58, %v4804_v21 }
 0xbd3   : > { %4851 = vst.msk [vmem:[%s10545_s17 + $0x78] sm:$0xff] %vm667_vm0, %v4835_v22 }
 0xbd4   : > { %4850 = vst.msk [vmem:[%s10545_s17 + $0x70] sm:$0xff] %vm667_vm0, %v4834_v45 }
 0xbd5   : > { %6314 = shalt.err (!%p6311_p12)
}
 0xbd6   : > { %s6315_s17 = scalar_lea.hbm %s10580_s25, 2048  ;;  %s6319_s26 = scalar_lea.hbm %s11500_s28, 4096 }
 0xbd7   : > { %p6316_p0 = scmp.ne.s32.totalorder %s10580_s25, %s6315_s17  ;;  %p6320_p7 = scmp.lt.u32.totalorder %s10580_s25, %s11500_s28 }
 0xbd8   : > { %p6321_p10 = scmp.lt.u32.totalorder %s6319_s26, %s6315_s17  ;;  %p6323_p13 = scmp.lt.u32.totalorder %s6315_s17, %s10580_s25 }
 0xbd9   : > { %p6317_p5 = pnand %p6316_p0, %p11501_p1 }
 0xbda   : > { %p6322_p4 = por %p6321_p10, %p6320_p7 }
 0xbdb   : > { %p6318_p9 = pneg %p6317_p5 }
 0xbdc   : > { %p6324_p3 = por %p6323_p13, %p6322_p4 }
 0xbde   : > { %p6325_p2 = pnand %p6324_p3, %p6318_p9 }
 0xbe0   : > { %6328 = shalt.err (!%p6325_p2)
}
 0xbe1   : > { %s6408_s8 = smov 128   ;;  %s6409_s10 = smov 8  }
 0xbe2   : > { %s11502_s0 = scalar_lea.sflag [#allocation4], %s6765_s22 }
 0xbe3   : > { %5703 = dma.vmem_to_hbm [thread:$0]  (%p11501_p1), %s10582_s13, 2048, %s10580_s25, %s11502_s0, %s6408_s8, %s6408_s8, %s6409_s10  }
 0xbe4 PF: > { %s4882_s24 = sand.u32 1, %s6371_s18   ;;  %p11503_p8 = scmp.ne.s32.totalorder %s10965_s29, 0 }
 0xbe5   : > { %p11504_p6 = scmp.ge.s32.totalorder %s6383_s21, 2  ;;  %s4883_s17 = scalar_lea.sflag [#allocation4], %s4882_s24 }
 0xbe7   : > { %p5732_p11 = pnand %p11504_p6, %p11503_p8 }
 0xbe9   : > { %6366 = dma.done.wait (!%p5732_p11), %s4883_s17, 2048  }
 0xbea   : > { %6368 = vsyncadd (!%p5732_p11), %s4883_s17, 4294965248  ;;  %p32_p12 = scmp.ge.s32.totalorder %s6689_s14, 4   ;;  %s11505_s18 = smov %s6375_s19 }
 0xbeb   : > { %s11506_s19 = smov %s6379_s20  ;;  %s11507_s20 = smov %s6701_s30 }
 0xbec   : > { %s11508_s21 = smov %s6689_s14  ;;  %34 = sbr.rel (!%p32_p12) target bundleno = 20 (0x14), region = 156 }
 0xbf3   :  { %4888 = vsyncpa [#allocation3], 1 }
 0xbf4   :  { %4890 = vsyncpa [#allocation3 + $0x1], 1 }
 0xbf5   :  { %4891 = vsyncpa [#allocation6], 1 }
 0xbf6   :  { %4892 = vsyncpa [#allocation9], 1 }
 0xbf7   :  { %4893 = vsyncpa [#allocation12], 1 }
 0xbf8   :  { %4894 = vsyncpa [#allocation15], 1 }
 0xbf9   :  { %4895 = vsyncpa [#allocation4], 1 }
 0xbfa   :  { %4897 = vsyncpa [#allocation4 + $0x1], 1 }

</bundles_post_ra>
